<compile_context>
chip_gen: v7x
topology: tpu7x:2x2x1
jax: 0.10.0
libtpu: 0.0.40
codegen_flags: <defaults>
</compile_context>

<pallas_src>
import jax
import jax.numpy as jnp
from jax.experimental import pallas as pl
from jax.experimental.pallas import tpu as pltpu

BN_EPS = 1e-5
MAX_CH = 256  # widest activation in the network


def _round_up(x, m):
    return (x + m - 1) // m * m


def _layout(Ho, Wo, B):
    """Row-layout constants for the flattened zero-halo, B-image-stacked scheme."""
    Wp = Wo + 2                              # padded width of one image row
    L = Ho * Wp                              # flat interior rows per image (incl. right halo)
    OFF = Wp + 1                             # flat offset of the 3x3 center tap
    OFF_TOP = _round_up(OFF, 16)             # bf16-tile-aligned interior start
    S_img = _round_up(L + Wp + 1, 16)        # per-image stride (>= L+Wp+1: no tap bleed)
    M = (B - 1) * S_img + _round_up(L, 16)   # rows processed per grid step (mult. of 16)
    R = _round_up(OFF_TOP + M + Wp + 1, 16)  # scratch rows (covers every shifted read)
    return Wp, L, OFF, OFF_TOP, S_img, M, R


# ---------------------------------------------------------------------------
# Fused whole-network kernel (one grid step == B images)
# ---------------------------------------------------------------------------
def _make_kernel(Ho, Wo, B):
    Wp, L, OFF, OFF_TOP, S_img, M, R = _layout(Ho, Wo, B)
    BASE = OFF_TOP - OFF                     # scratch row of tap (0,0) for output row 0
    TAIL = R - OFF_TOP - M                   # never-written bottom halo rows

    def kernel(xp_ref,
               w1_ref, b1_ref,
               r1wa_ref, r1ba_ref, r1wb_ref, r1bb_ref, r1ws_ref, r1bs_ref,
               r2wa_ref, r2ba_ref, r2wb_ref, r2bb_ref, r2ws_ref, r2bs_ref,
               c2w_ref, c2b_ref, c3w_ref, c3b_ref,
               seg_ref,
               padA, padB, col):
        f32, bf16 = jnp.float32, jnp.bfloat16

        # Re-zero only the never-written halo rows (cheap: ~32 rows per buffer).
        # Interior + gap rows [OFF_TOP, OFF_TOP+M) are fully rewritten (masked)
        # every layer, so no full-scratch zeroing and no program_id==0 dependence
        # (safe when the parallel grid axis is split across TensorCores).
        padA[0:OFF_TOP, :] = jnp.zeros((OFF_TOP, MAX_CH), bf16)
        padB[0:OFF_TOP, :] = jnp.zeros((OFF_TOP, MAX_CH), bf16)
        padA[OFF_TOP + M:R, :] = jnp.zeros((TAIL, MAX_CH), bf16)
        padB[OFF_TOP + M:R, :] = jnp.zeros((TAIL, MAX_CH), bf16)

        # Validity mask over the M stacked rows: 1 on real output pixels, 0 on the
        # right-halo columns and inter-image gap rows.  Unrolled range tests on an
        # iota -- no vector div/mod, regenerated for free on the VPU.
        r = jax.lax.broadcasted_iota(jnp.int32, (M, 1), 0)
        valid = None
        for b in range(B):
            for h in range(Ho):
                lo = b * S_img + h * Wp
                cur = (r >= lo) & (r < lo + Wo)
                valid = cur if valid is None else (valid | cur)
        mask = valid.astype(f32)

        def store_padded(dst, val, cout):
            # Masked rows map onto halo/gap cells -> they must be written as zero.
            dst[OFF_TOP:OFF_TOP + M, :cout] = (val * mask).astype(bf16)

        def conv3x3_taps(src, cin, cout, w_ref, b_ref):
            # 3x3 / pad=1 conv as 9 shifted bf16 matmuls (kept for cin=64, where a
            # deep-K im2col slab would need lane-misaligned 64-wide column writes).
            acc = jnp.zeros((M, cout), f32)
            for t in range(9):
                s = (t // 3) * Wp + (t % 3)
                acc = acc + jnp.dot(src[BASE + s:BASE + s + M, :cin], w_ref[t],
                                    preferred_element_type=f32)
            return jnp.maximum(acc + b_ref[...], 0.0)

        def conv3x3_deepk(src, cin, cout, w_ref, b_ref, extra=None):
            # 3x3 conv as ONE deep-K matmul: lane-aligned im2col slab [M, 9*cin]
            # built in VMEM from 9 shifted copies; weights are [9*cin, cout].
            for t in range(9):
                s = (t // 3) * Wp + (t % 3)
                col[:, t * cin:(t + 1) * cin] = src[BASE + s:BASE + s + M, :cin]
            acc = jnp.dot(col[:, :9 * cin], w_ref[...], preferred_element_type=f32)
            acc = acc + b_ref[...]
            if extra is not None:
                acc = acc + extra               # fused residual add
            return jnp.maximum(acc, 0.0)        # fused ReLU

        def conv1x1(src, cin, w_ref, b_ref):
            return jnp.dot(src[OFF_TOP:OFF_TOP + M, :cin], w_ref[...],
                           preferred_element_type=f32) + b_ref[...]

        # --- CNNBlock(4, 64, k=3, pad=0, stride=2): matmul on prebuilt patches
        h1 = jnp.dot(xp_ref[...], w1_ref[...], preferred_element_type=f32)
        h1 = jnp.maximum(h1 + b1_ref[...], 0.0)               # [M, 64]
        store_padded(padA, h1, 64)

        # --- ResBlock(64 -> 128): conv-bn-relu, conv-bn, +skip(conv1x1-bn), relu
        m1 = conv3x3_taps(padA, 64, 128, r1wa_ref, r1ba_ref)
        store_padded(padB, m1, 128)
        skip = conv1x1(padA, 64, r1ws_ref, r1bs_ref)
        o1 = conv3x3_deepk(padB, 128, 128, r1wb_ref, r1bb_ref, extra=skip)
        store_padded(padA, o1, 128)

        # --- ResBlock(128 -> 256)
        m2 = conv3x3_deepk(padA, 128, 256, r2wa_ref, r2ba_ref)
        store_padded(padB, m2, 256)
        skip = conv1x1(padA, 128, r2ws_ref, r2bs_ref)
        feat = conv3x3_deepk(padB, 256, 256, r2wb_ref, r2bb_ref, extra=skip)

        # Dropout2d (x2) -> identity in eval mode.

        # --- CNNBlock(256, 256, k=1)
        h2 = jnp.dot(feat.astype(bf16), c2w_ref[...], preferred_element_type=f32)
        h2 = jnp.maximum(h2 + c2b_ref[...], 0.0)

        # --- Conv2d(256, 4, k=1); LogSoftmax is computed in the XLA wrapper.
        seg = jnp.dot(h2.astype(bf16), c3w_ref[...], preferred_element_type=f32)
        seg_ref[...] = seg + c3b_ref[...]

    return kernel


# ---------------------------------------------------------------------------
# Parameter construction (synthetic, matches the PyTorch init distributions)
# ---------------------------------------------------------------------------
def init_params(seed=0):
    keys = list(jax.random.split(jax.random.PRNGKey(seed), 24))
    kit = iter(keys)
    inv_std = 1.0 / jnp.sqrt(1.0 + BN_EPS)   # eval BN: running_mean=0, var=1

    def conv(kw_key, kb_key, kh, kw, cin, cout):
        std = (2.0 / (cout * kh * kw)) ** 0.5          # kaiming_normal_, fan_out, relu
        w = jax.random.normal(kw_key, (kh * kw * cin, cout), jnp.float32) * std
        bound = 1.0 / ((cin * kh * kw) ** 0.5)         # default conv bias init
        b = jax.random.uniform(kb_key, (cout,), jnp.float32, -bound, bound)
        return w, b

    def fold(w, b, gamma, beta):
        # Fold eval-mode BN into the conv: y = (x@W + b)*s + beta, s = gamma/sqrt(1+eps)
        scale = gamma * inv_std
        wf = (w * scale[None, :]).astype(jnp.bfloat16)
        bf = (b * scale + beta).reshape(1, -1).astype(jnp.float32)
        return wf, bf

    weights = []

    # CNNBlock(4, 64, k=3, pad=0, stride=2): BN gamma ~ N(1, 0.02), beta = 0
    w, b = conv(next(kit), next(kit), 3, 3, 4, 64)
    gamma = 1.0 + 0.02 * jax.random.normal(next(kit), (64,), jnp.float32)
    wf, bf = fold(w, b, gamma, jnp.zeros((64,), jnp.float32))
    weights += [wf, bf]

    def resblock(cin, cout, deepk_first):
        ones = jnp.ones((cout,), jnp.float32)
        zeros = jnp.zeros((cout,), jnp.float32)
        w, b = conv(next(kit), next(kit), 3, 3, cin, cout)
        wa, ba = fold(w, b, ones, zeros)                 # [9*cin, cout]
        if not deepk_first:
            wa = wa.reshape(9, cin, cout)                # per-tap form (9-matmul conv)
        w, b = conv(next(kit), next(kit), 3, 3, cout, cout)
        wb, bb = fold(w, b, ones, zeros)                 # stays [9*cout, cout] (deep-K)
        w, b = conv(next(kit), next(kit), 1, 1, cin, cout)
        ws, bs = fold(w, b, ones, zeros)
        return [wa, ba, wb, bb, ws, bs]

    weights += resblock(64, 128, deepk_first=False)
    weights += resblock(128, 256, deepk_first=True)

    # CNNBlock(256, 256, k=1): BN gamma ~ N(1, 0.02), beta = 0
    w, b = conv(next(kit), next(kit), 1, 1, 256, 256)
    gamma = 1.0 + 0.02 * jax.random.normal(next(kit), (256,), jnp.float32)
    wf, bf = fold(w, b, gamma, jnp.zeros((256,), jnp.float32))
    weights += [wf, bf]

    # Final Conv2d(256, 4, k=1): no BN
    w, b = conv(next(kit), next(kit), 1, 1, 256, 4)
    weights += [w.astype(jnp.bfloat16), b.reshape(1, 4).astype(jnp.float32)]

    return weights


# ---------------------------------------------------------------------------
# Forward pass
# ---------------------------------------------------------------------------
def li_brain_tumor_seg_gen_forward(x_nchw, weights, block_b=None):
    N, Cin, H, W = x_nchw.shape
    Ho = (H - 3) // 2 + 1
    Wo = (W - 3) // 2 + 1
    B = block_b if block_b is not None else min(N, 4)   # images stacked per grid step
    G = -(-N // B)                                       # grid length
    Wp, L, OFF, OFF_TOP, S_img, M, R = _layout(Ho, Wo, B)

    x = jnp.transpose(x_nchw, (0, 2, 3, 1)).astype(jnp.float32)     # NHWC

    # Patch extraction only for the stride-2 "valid" entry conv (tiny [*, 9*Cin]),
    # laid out in the per-image padded-row order, B images stacked per grid block.
    cols = [x[:, i:i + 2 * Ho:2, j:j + 2 * Wo:2, :]
            for i in range(3) for j in range(3)]
    p = jnp.stack(cols, axis=3).reshape(N, Ho, Wo, 9 * Cin)
    p = jnp.pad(p, ((0, G * B - N), (0, 0), (0, Wp - Wo), (0, 0)))
    p = p.reshape(G * B, L, 9 * Cin)
    p = jnp.pad(p, ((0, 0), (0, S_img - L), (0, 0)))
    patches = p.reshape(G, B * S_img, 9 * Cin)[:, :M, :].astype(jnp.bfloat16)

    kernel = _make_kernel(Ho, Wo, B)

    def _const(shape):
        nd = len(shape)
        return pl.BlockSpec(shape, lambda g, _nd=nd: (0,) * _nd)

    in_specs = [pl.BlockSpec((None, M, 9 * Cin), lambda g: (g, 0, 0))]
    in_specs += [_const(w.shape) for w in weights]
    out_specs = pl.BlockSpec((None, M, 4), lambda g: (g, 0, 0))
    out_shape = jax.ShapeDtypeStruct((G, M, 4), jnp.float32)

    grid_spec = pltpu.PrefetchScalarGridSpec(
        num_scalar_prefetch=0,
        grid=(G,),
        in_specs=in_specs,
        out_specs=out_specs,
        scratch_shapes=[pltpu.VMEM((R, MAX_CH), jnp.bfloat16),       # padA
                        pltpu.VMEM((R, MAX_CH), jnp.bfloat16),       # padB
                        pltpu.VMEM((M, 9 * MAX_CH), jnp.bfloat16)])  # im2col slab

    seg_l = pl.pallas_call(
        kernel,
        out_shape=out_shape,
        grid_spec=grid_spec,
        compiler_params=pltpu.CompilerParams(
            dimension_semantics=("parallel",),          # image blocks -> both TCs on v7x
            vmem_limit_bytes=32 * 1024 * 1024),
    )(patches, *weights)

    # Unstack the image blocks, drop halo rows/columns, return NCHW + log-softmax.
    seg_l = jnp.pad(seg_l, ((0, 0), (0, B * S_img - M), (0, 0)))
    seg = seg_l.reshape(G * B, S_img, 4)[:N, :L]
    seg = seg.reshape(N, Ho, Wp, 4)[:, :, :Wo, :]
    seg = jnp.transpose(seg, (0, 3, 1, 2))
    logp = jax.nn.log_softmax(seg, axis=1)   # tiny; cheaper in XLA than a 4-lane kernel output
    return seg, logp


if __name__ == "__main__":
    x = jax.random.normal(jax.random.PRNGKey(0), (2, 4, 16, 16), jnp.float32)  # NCHW
    weights = init_params(seed=0)

    fwd = jax.jit(li_brain_tumor_seg_gen_forward)
    seg, logp = fwd(x, weights)
    seg = jax.block_until_ready(seg)
    logp = jax.block_until_ready(logp)

    assert seg.shape == (2, 4, 7, 7), seg.shape
    assert logp.shape == (2, 4, 7, 7), logp.shape
    assert bool(jnp.isfinite(seg).all()) and bool(jnp.isfinite(logp).all())
    # log-softmax probabilities must sum to 1 over the channel axis
    assert jnp.allclose(jnp.exp(logp).sum(axis=1), 1.0, atol=1e-3)
    # returned logp must be consistent with the returned logits
    assert jnp.allclose(logp, jax.nn.log_softmax(seg, axis=1), atol=1e-3)
    print("KERNEL_OK")
</pallas_src>

<mosaic_0001>
module attributes {stable_mosaic.version = 11 : i64} {
  func.func @kernel(%arg0: i32, %arg1: memref<1x144x36xbf16, #tpu.memory_space<vmem>>, %arg2: memref<36x64xbf16, #tpu.memory_space<vmem>>, %arg3: memref<1x64xf32, #tpu.memory_space<vmem>>, %arg4: memref<9x64x128xbf16, #tpu.memory_space<vmem>>, %arg5: memref<1x128xf32, #tpu.memory_space<vmem>>, %arg6: memref<1152x128xbf16, #tpu.memory_space<vmem>>, %arg7: memref<1x128xf32, #tpu.memory_space<vmem>>, %arg8: memref<64x128xbf16, #tpu.memory_space<vmem>>, %arg9: memref<1x128xf32, #tpu.memory_space<vmem>>, %arg10: memref<1152x256xbf16, #tpu.memory_space<vmem>>, %arg11: memref<1x256xf32, #tpu.memory_space<vmem>>, %arg12: memref<2304x256xbf16, #tpu.memory_space<vmem>>, %arg13: memref<1x256xf32, #tpu.memory_space<vmem>>, %arg14: memref<128x256xbf16, #tpu.memory_space<vmem>>, %arg15: memref<1x256xf32, #tpu.memory_space<vmem>>, %arg16: memref<256x256xbf16, #tpu.memory_space<vmem>>, %arg17: memref<1x256xf32, #tpu.memory_space<vmem>>, %arg18: memref<256x4xbf16, #tpu.memory_space<vmem>>, %arg19: memref<1x4xf32, #tpu.memory_space<vmem>>, %arg20: memref<1x144x4xf32, #tpu.memory_space<vmem>>, %arg21: memref<176x256xbf16, #tpu.memory_space<vmem>>, %arg22: memref<176x256xbf16, #tpu.memory_space<vmem>>, %arg23: memref<144x2304xbf16, #tpu.memory_space<vmem>>) attributes {dimension_semantics = [#tpu.dimension_semantics<parallel>], iteration_bounds = array<i64: 1>, scalar_prefetch = 0 : i64, scratch_operands = 3 : i64, tpu.core_type = #tpu.core_type<tc>, window_params = [{transform_indices = @transform_0, window_bounds = array<i64: 1, 144, 36>}, {pipeline_mode = #tpu.pipeline_mode<synchronous>, transform_indices = @transform_1, window_bounds = array<i64: 36, 64>}, {pipeline_mode = #tpu.pipeline_mode<synchronous>, transform_indices = @transform_2, window_bounds = array<i64: 1, 64>}, {pipeline_mode = #tpu.pipeline_mode<synchronous>, transform_indices = @transform_3, window_bounds = array<i64: 9, 64, 128>}, {pipeline_mode = #tpu.pipeline_mode<synchronous>, transform_indices = @transform_4, window_bounds = array<i64: 1, 128>}, {pipeline_mode = #tpu.pipeline_mode<synchronous>, transform_indices = @transform_5, window_bounds = array<i64: 1152, 128>}, {pipeline_mode = #tpu.pipeline_mode<synchronous>, transform_indices = @transform_6, window_bounds = array<i64: 1, 128>}, {pipeline_mode = #tpu.pipeline_mode<synchronous>, transform_indices = @transform_7, window_bounds = array<i64: 64, 128>}, {pipeline_mode = #tpu.pipeline_mode<synchronous>, transform_indices = @transform_8, window_bounds = array<i64: 1, 128>}, {pipeline_mode = #tpu.pipeline_mode<synchronous>, transform_indices = @transform_9, window_bounds = array<i64: 1152, 256>}, {pipeline_mode = #tpu.pipeline_mode<synchronous>, transform_indices = @transform_10, window_bounds = array<i64: 1, 256>}, {pipeline_mode = #tpu.pipeline_mode<synchronous>, transform_indices = @transform_11, window_bounds = array<i64: 2304, 256>}, {pipeline_mode = #tpu.pipeline_mode<synchronous>, transform_indices = @transform_12, window_bounds = array<i64: 1, 256>}, {pipeline_mode = #tpu.pipeline_mode<synchronous>, transform_indices = @transform_13, window_bounds = array<i64: 128, 256>}, {pipeline_mode = #tpu.pipeline_mode<synchronous>, transform_indices = @transform_14, window_bounds = array<i64: 1, 256>}, {pipeline_mode = #tpu.pipeline_mode<synchronous>, transform_indices = @transform_15, window_bounds = array<i64: 256, 256>}, {pipeline_mode = #tpu.pipeline_mode<synchronous>, transform_indices = @transform_16, window_bounds = array<i64: 1, 256>}, {pipeline_mode = #tpu.pipeline_mode<synchronous>, transform_indices = @transform_17, window_bounds = array<i64: 256, 4>}, {pipeline_mode = #tpu.pipeline_mode<synchronous>, transform_indices = @transform_18, window_bounds = array<i64: 1, 4>}, {transform_indices = @transform_19, window_bounds = array<i64: 1, 144, 4>}]} {
    %cst = arith.constant 0.000000e+00 : bf16
    %0 = vector.broadcast %cst : bf16 to vector<16x256xbf16>
    %c0 = arith.constant 0 : index
    %c0_0 = arith.constant 0 : index
    %1 = vector.load %arg21[%c0, %c0_0] : memref<176x256xbf16, #tpu.memory_space<vmem>>, vector<16x256xbf16>
    tpu.vector_store %arg21[%c0, %c0_0], %0 {strides = array<i32>} : memref<176x256xbf16, #tpu.memory_space<vmem>>, vector<16x256xbf16>,
    %cst_1 = arith.constant 0.000000e+00 : bf16
    %2 = vector.broadcast %cst_1 : bf16 to vector<16x256xbf16>
    %c0_2 = arith.constant 0 : index
    %c0_3 = arith.constant 0 : index
    %3 = vector.load %arg22[%c0_2, %c0_3] : memref<176x256xbf16, #tpu.memory_space<vmem>>, vector<16x256xbf16>
    tpu.vector_store %arg22[%c0_2, %c0_3], %2 {strides = array<i32>} : memref<176x256xbf16, #tpu.memory_space<vmem>>, vector<16x256xbf16>,
    %cst_4 = arith.constant 0.000000e+00 : bf16
    %4 = vector.broadcast %cst_4 : bf16 to vector<16x256xbf16>
    %c160 = arith.constant 160 : index
    %c0_5 = arith.constant 0 : index
    %5 = vector.load %arg21[%c160, %c0_5] : memref<176x256xbf16, #tpu.memory_space<vmem>>, vector<16x256xbf16>
    tpu.vector_store %arg21[%c160, %c0_5], %4 {strides = array<i32>} : memref<176x256xbf16, #tpu.memory_space<vmem>>, vector<16x256xbf16>,
    %cst_6 = arith.constant 0.000000e+00 : bf16
    %6 = vector.broadcast %cst_6 : bf16 to vector<16x256xbf16>
    %c160_7 = arith.constant 160 : index
    %c0_8 = arith.constant 0 : index
    %7 = vector.load %arg22[%c160_7, %c0_8] : memref<176x256xbf16, #tpu.memory_space<vmem>>, vector<16x256xbf16>
    tpu.vector_store %arg22[%c160_7, %c0_8], %6 {strides = array<i32>} : memref<176x256xbf16, #tpu.memory_space<vmem>>, vector<16x256xbf16>,
    %8 = tpu.iota {dimensions = array<i32: 0>} : vector<144x1xi32>
    %c0_i32 = arith.constant 0 : i32
    %9 = vector.broadcast %c0_i32 : i32 to vector<144x1xi32>
    %10 = arith.cmpi sge, %8, %9 : vector<144x1xi32>
    %c7_i32 = arith.constant 7 : i32
    %11 = vector.broadcast %c7_i32 : i32 to vector<144x1xi32>
    %12 = arith.cmpi slt, %8, %11 : vector<144x1xi32>
    %13 = arith.andi %10, %12 : vector<144x1xi1>
    %c9_i32 = arith.constant 9 : i32
    %14 = vector.broadcast %c9_i32 : i32 to vector<144x1xi32>
    %15 = arith.cmpi sge, %8, %14 : vector<144x1xi32>
    %c16_i32 = arith.constant 16 : i32
    %16 = vector.broadcast %c16_i32 : i32 to vector<144x1xi32>
    %17 = arith.cmpi slt, %8, %16 : vector<144x1xi32>
    %18 = arith.andi %15, %17 : vector<144x1xi1>
    %19 = arith.ori %13, %18 : vector<144x1xi1>
    %c18_i32 = arith.constant 18 : i32
    %20 = vector.broadcast %c18_i32 : i32 to vector<144x1xi32>
    %21 = arith.cmpi sge, %8, %20 : vector<144x1xi32>
    %c25_i32 = arith.constant 25 : i32
    %22 = vector.broadcast %c25_i32 : i32 to vector<144x1xi32>
    %23 = arith.cmpi slt, %8, %22 : vector<144x1xi32>
    %24 = arith.andi %21, %23 : vector<144x1xi1>
    %25 = arith.ori %19, %24 : vector<144x1xi1>
    %c27_i32 = arith.constant 27 : i32
    %26 = vector.broadcast %c27_i32 : i32 to vector<144x1xi32>
    %27 = arith.cmpi sge, %8, %26 : vector<144x1xi32>
    %c34_i32 = arith.constant 34 : i32
    %28 = vector.broadcast %c34_i32 : i32 to vector<144x1xi32>
    %29 = arith.cmpi slt, %8, %28 : vector<144x1xi32>
    %30 = arith.andi %27, %29 : vector<144x1xi1>
    %31 = arith.ori %25, %30 : vector<144x1xi1>
    %c36_i32 = arith.constant 36 : i32
    %32 = vector.broadcast %c36_i32 : i32 to vector<144x1xi32>
    %33 = arith.cmpi sge, %8, %32 : vector<144x1xi32>
    %c43_i32 = arith.constant 43 : i32
    %34 = vector.broadcast %c43_i32 : i32 to vector<144x1xi32>
    %35 = arith.cmpi slt, %8, %34 : vector<144x1xi32>
    %36 = arith.andi %33, %35 : vector<144x1xi1>
    %37 = arith.ori %31, %36 : vector<144x1xi1>
    %c45_i32 = arith.constant 45 : i32
    %38 = vector.broadcast %c45_i32 : i32 to vector<144x1xi32>
    %39 = arith.cmpi sge, %8, %38 : vector<144x1xi32>
    %c52_i32 = arith.constant 52 : i32
    %40 = vector.broadcast %c52_i32 : i32 to vector<144x1xi32>
    %41 = arith.cmpi slt, %8, %40 : vector<144x1xi32>
    %42 = arith.andi %39, %41 : vector<144x1xi1>
    %43 = arith.ori %37, %42 : vector<144x1xi1>
    %c54_i32 = arith.constant 54 : i32
    %44 = vector.broadcast %c54_i32 : i32 to vector<144x1xi32>
    %45 = arith.cmpi sge, %8, %44 : vector<144x1xi32>
    %c61_i32 = arith.constant 61 : i32
    %46 = vector.broadcast %c61_i32 : i32 to vector<144x1xi32>
    %47 = arith.cmpi slt, %8, %46 : vector<144x1xi32>
    %48 = arith.andi %45, %47 : vector<144x1xi1>
    %49 = arith.ori %43, %48 : vector<144x1xi1>
    %c80_i32 = arith.constant 80 : i32
    %50 = vector.broadcast %c80_i32 : i32 to vector<144x1xi32>
    %51 = arith.cmpi sge, %8, %50 : vector<144x1xi32>
    %c87_i32 = arith.constant 87 : i32
    %52 = vector.broadcast %c87_i32 : i32 to vector<144x1xi32>
    %53 = arith.cmpi slt, %8, %52 : vector<144x1xi32>
    %54 = arith.andi %51, %53 : vector<144x1xi1>
    %55 = arith.ori %49, %54 : vector<144x1xi1>
    %c89_i32 = arith.constant 89 : i32
    %56 = vector.broadcast %c89_i32 : i32 to vector<144x1xi32>
    %57 = arith.cmpi sge, %8, %56 : vector<144x1xi32>
    %c96_i32 = arith.constant 96 : i32
    %58 = vector.broadcast %c96_i32 : i32 to vector<144x1xi32>
    %59 = arith.cmpi slt, %8, %58 : vector<144x1xi32>
    %60 = arith.andi %57, %59 : vector<144x1xi1>
    %61 = arith.ori %55, %60 : vector<144x1xi1>
    %c98_i32 = arith.constant 98 : i32
    %62 = vector.broadcast %c98_i32 : i32 to vector<144x1xi32>
    %63 = arith.cmpi sge, %8, %62 : vector<144x1xi32>
    %c105_i32 = arith.constant 105 : i32
    %64 = vector.broadcast %c105_i32 : i32 to vector<144x1xi32>
    %65 = arith.cmpi slt, %8, %64 : vector<144x1xi32>
    %66 = arith.andi %63, %65 : vector<144x1xi1>
    %67 = arith.ori %61, %66 : vector<144x1xi1>
    %c107_i32 = arith.constant 107 : i32
    %68 = vector.broadcast %c107_i32 : i32 to vector<144x1xi32>
    %69 = arith.cmpi sge, %8, %68 : vector<144x1xi32>
    %c114_i32 = arith.constant 114 : i32
    %70 = vector.broadcast %c114_i32 : i32 to vector<144x1xi32>
    %71 = arith.cmpi slt, %8, %70 : vector<144x1xi32>
    %72 = arith.andi %69, %71 : vector<144x1xi1>
    %73 = arith.ori %67, %72 : vector<144x1xi1>
    %c116_i32 = arith.constant 116 : i32
    %74 = vector.broadcast %c116_i32 : i32 to vector<144x1xi32>
    %75 = arith.cmpi sge, %8, %74 : vector<144x1xi32>
    %c123_i32 = arith.constant 123 : i32
    %76 = vector.broadcast %c123_i32 : i32 to vector<144x1xi32>
    %77 = arith.cmpi slt, %8, %76 : vector<144x1xi32>
    %78 = arith.andi %75, %77 : vector<144x1xi1>
    %79 = arith.ori %73, %78 : vector<144x1xi1>
    %c125_i32 = arith.constant 125 : i32
    %80 = vector.broadcast %c125_i32 : i32 to vector<144x1xi32>
    %81 = arith.cmpi sge, %8, %80 : vector<144x1xi32>
    %c132_i32 = arith.constant 132 : i32
    %82 = vector.broadcast %c132_i32 : i32 to vector<144x1xi32>
    %83 = arith.cmpi slt, %8, %82 : vector<144x1xi32>
    %84 = arith.andi %81, %83 : vector<144x1xi1>
    %85 = arith.ori %79, %84 : vector<144x1xi1>
    %c134_i32 = arith.constant 134 : i32
    %86 = vector.broadcast %c134_i32 : i32 to vector<144x1xi32>
    %87 = arith.cmpi sge, %8, %86 : vector<144x1xi32>
    %c141_i32 = arith.constant 141 : i32
    %88 = vector.broadcast %c141_i32 : i32 to vector<144x1xi32>
    %89 = arith.cmpi slt, %8, %88 : vector<144x1xi32>
    %90 = arith.andi %87, %89 : vector<144x1xi1>
    %91 = arith.ori %85, %90 : vector<144x1xi1>
    %92 = arith.extui %91 : vector<144x1xi1> to vector<144x1xi32>
    %93 = arith.sitofp %92 : vector<144x1xi32> to vector<144x1xf32>
    %c0_9 = arith.constant 0 : index
    %c0_10 = arith.constant 0 : index
    %c0_11 = arith.constant 0 : index
    %94 = vector.load %arg1[%c0_9, %c0_10, %c0_11] : memref<1x144x36xbf16, #tpu.memory_space<vmem>>, vector<1x144x36xbf16>
    %95 = vector.shape_cast %94 : vector<1x144x36xbf16> to vector<144x36xbf16>
    %c0_12 = arith.constant 0 : index
    %c0_13 = arith.constant 0 : index
    %96 = vector.load %arg2[%c0_12, %c0_13] : memref<36x64xbf16, #tpu.memory_space<vmem>>, vector<36x64xbf16>
    %cst_14 = arith.constant dense<0.000000e+00> : vector<144x64xf32>
    %97 = tpu.matmul %95, %96, %cst_14 {dimension_numbers = #tpu.dot_dimension_numbers<[1], [0], [0], [1], [0, 0, 1, 1], [], []>} : vector<144x36xbf16>, vector<36x64xbf16>, vector<144x64xf32> -> vector<144x64xf32>
    %c0_15 = arith.constant 0 : index
    %c0_16 = arith.constant 0 : index
    %98 = vector.load %arg3[%c0_15, %c0_16] : memref<1x64xf32, #tpu.memory_space<vmem>>, vector<1x64xf32>
    %99 = vector.broadcast %98 : vector<1x64xf32> to vector<144x64xf32>
    %100 = arith.addf %97, %99 : vector<144x64xf32>
    %cst_17 = arith.constant 0.000000e+00 : f32
    %101 = vector.broadcast %cst_17 : f32 to vector<144x64xf32>
    %102 = arith.maximumf %100, %101 : vector<144x64xf32>
    %103 = vector.broadcast %93 : vector<144x1xf32> to vector<144x64xf32>
    %104 = arith.mulf %102, %103 : vector<144x64xf32>
    %105 = arith.truncf %104 : vector<144x64xf32> to vector<144x64xbf16>
    %c16 = arith.constant 16 : index
    %c0_18 = arith.constant 0 : index
    %106 = vector.load %arg21[%c16, %c0_18] : memref<176x256xbf16, #tpu.memory_space<vmem>>, vector<144x64xbf16>
    tpu.vector_store %arg21[%c16, %c0_18], %105 {strides = array<i32>} : memref<176x256xbf16, #tpu.memory_space<vmem>>, vector<144x64xbf16>,
    %cst_19 = arith.constant 0.000000e+00 : f32
    %107 = vector.broadcast %cst_19 : f32 to vector<144x128xf32>
    %c6 = arith.constant 6 : index
    %c0_20 = arith.constant 0 : index
    %108 = vector.load %arg21[%c6, %c0_20] : memref<176x256xbf16, #tpu.memory_space<vmem>>, vector<144x64xbf16>
    %c0_21 = arith.constant 0 : index
    %c0_22 = arith.constant 0 : index
    %c0_23 = arith.constant 0 : index
    %109 = vector.load %arg4[%c0_21, %c0_22, %c0_23] : memref<9x64x128xbf16, #tpu.memory_space<vmem>>, vector<1x64x128xbf16>
    %110 = vector.shape_cast %109 : vector<1x64x128xbf16> to vector<64x128xbf16>
    %cst_24 = arith.constant dense<0.000000e+00> : vector<144x128xf32>
    %111 = tpu.matmul %108, %110, %cst_24 {dimension_numbers = #tpu.dot_dimension_numbers<[1], [0], [0], [1], [0, 0, 1, 1], [], []>} : vector<144x64xbf16>, vector<64x128xbf16>, vector<144x128xf32> -> vector<144x128xf32>
    %112 = arith.addf %107, %111 : vector<144x128xf32>
    %c7 = arith.constant 7 : index
    %c0_25 = arith.constant 0 : index
    %113 = vector.load %arg21[%c7, %c0_25] : memref<176x256xbf16, #tpu.memory_space<vmem>>, vector<144x64xbf16>
    %c1 = arith.constant 1 : index
    %c0_26 = arith.constant 0 : index
    %c0_27 = arith.constant 0 : index
    %114 = vector.load %arg4[%c1, %c0_26, %c0_27] : memref<9x64x128xbf16, #tpu.memory_space<vmem>>, vector<1x64x128xbf16>
    %115 = vector.shape_cast %114 : vector<1x64x128xbf16> to vector<64x128xbf16>
    %cst_28 = arith.constant dense<0.000000e+00> : vector<144x128xf32>
    %116 = tpu.matmul %113, %115, %cst_28 {dimension_numbers = #tpu.dot_dimension_numbers<[1], [0], [0], [1], [0, 0, 1, 1], [], []>} : vector<144x64xbf16>, vector<64x128xbf16>, vector<144x128xf32> -> vector<144x128xf32>
    %117 = arith.addf %112, %116 : vector<144x128xf32>
    %c8 = arith.constant 8 : index
    %c0_29 = arith.constant 0 : index
    %118 = vector.load %arg21[%c8, %c0_29] : memref<176x256xbf16, #tpu.memory_space<vmem>>, vector<144x64xbf16>
    %c2 = arith.constant 2 : index
    %c0_30 = arith.constant 0 : index
    %c0_31 = arith.constant 0 : index
    %119 = vector.load %arg4[%c2, %c0_30, %c0_31] : memref<9x64x128xbf16, #tpu.memory_space<vmem>>, vector<1x64x128xbf16>
    %120 = vector.shape_cast %119 : vector<1x64x128xbf16> to vector<64x128xbf16>
    %cst_32 = arith.constant dense<0.000000e+00> : vector<144x128xf32>
    %121 = tpu.matmul %118, %120, %cst_32 {dimension_numbers = #tpu.dot_dimension_numbers<[1], [0], [0], [1], [0, 0, 1, 1], [], []>} : vector<144x64xbf16>, vector<64x128xbf16>, vector<144x128xf32> -> vector<144x128xf32>
    %122 = arith.addf %117, %121 : vector<144x128xf32>
    %c15 = arith.constant 15 : index
    %c0_33 = arith.constant 0 : index
    %123 = vector.load %arg21[%c15, %c0_33] : memref<176x256xbf16, #tpu.memory_space<vmem>>, vector<144x64xbf16>
    %c3 = arith.constant 3 : index
    %c0_34 = arith.constant 0 : index
    %c0_35 = arith.constant 0 : index
    %124 = vector.load %arg4[%c3, %c0_34, %c0_35] : memref<9x64x128xbf16, #tpu.memory_space<vmem>>, vector<1x64x128xbf16>
    %125 = vector.shape_cast %124 : vector<1x64x128xbf16> to vector<64x128xbf16>
    %cst_36 = arith.constant dense<0.000000e+00> : vector<144x128xf32>
    %126 = tpu.matmul %123, %125, %cst_36 {dimension_numbers = #tpu.dot_dimension_numbers<[1], [0], [0], [1], [0, 0, 1, 1], [], []>} : vector<144x64xbf16>, vector<64x128xbf16>, vector<144x128xf32> -> vector<144x128xf32>
    %127 = arith.addf %122, %126 : vector<144x128xf32>
    %c16_37 = arith.constant 16 : index
    %c0_38 = arith.constant 0 : index
    %128 = vector.load %arg21[%c16_37, %c0_38] : memref<176x256xbf16, #tpu.memory_space<vmem>>, vector<144x64xbf16>
    %c4 = arith.constant 4 : index
    %c0_39 = arith.constant 0 : index
    %c0_40 = arith.constant 0 : index
    %129 = vector.load %arg4[%c4, %c0_39, %c0_40] : memref<9x64x128xbf16, #tpu.memory_space<vmem>>, vector<1x64x128xbf16>
    %130 = vector.shape_cast %129 : vector<1x64x128xbf16> to vector<64x128xbf16>
    %cst_41 = arith.constant dense<0.000000e+00> : vector<144x128xf32>
    %131 = tpu.matmul %128, %130, %cst_41 {dimension_numbers = #tpu.dot_dimension_numbers<[1], [0], [0], [1], [0, 0, 1, 1], [], []>} : vector<144x64xbf16>, vector<64x128xbf16>, vector<144x128xf32> -> vector<144x128xf32>
    %132 = arith.addf %127, %131 : vector<144x128xf32>
    %c17 = arith.constant 17 : index
    %c0_42 = arith.constant 0 : index
    %133 = vector.load %arg21[%c17, %c0_42] : memref<176x256xbf16, #tpu.memory_space<vmem>>, vector<144x64xbf16>
    %c5 = arith.constant 5 : index
    %c0_43 = arith.constant 0 : index
    %c0_44 = arith.constant 0 : index
    %134 = vector.load %arg4[%c5, %c0_43, %c0_44] : memref<9x64x128xbf16, #tpu.memory_space<vmem>>, vector<1x64x128xbf16>
    %135 = vector.shape_cast %134 : vector<1x64x128xbf16> to vector<64x128xbf16>
    %cst_45 = arith.constant dense<0.000000e+00> : vector<144x128xf32>
    %136 = tpu.matmul %133, %135, %cst_45 {dimension_numbers = #tpu.dot_dimension_numbers<[1], [0], [0], [1], [0, 0, 1, 1], [], []>} : vector<144x64xbf16>, vector<64x128xbf16>, vector<144x128xf32> -> vector<144x128xf32>
    %137 = arith.addf %132, %136 : vector<144x128xf32>
    %c24 = arith.constant 24 : index
    %c0_46 = arith.constant 0 : index
    %138 = vector.load %arg21[%c24, %c0_46] : memref<176x256xbf16, #tpu.memory_space<vmem>>, vector<144x64xbf16>
    %c6_47 = arith.constant 6 : index
    %c0_48 = arith.constant 0 : index
    %c0_49 = arith.constant 0 : index
    %139 = vector.load %arg4[%c6_47, %c0_48, %c0_49] : memref<9x64x128xbf16, #tpu.memory_space<vmem>>, vector<1x64x128xbf16>
    %140 = vector.shape_cast %139 : vector<1x64x128xbf16> to vector<64x128xbf16>
    %cst_50 = arith.constant dense<0.000000e+00> : vector<144x128xf32>
    %141 = tpu.matmul %138, %140, %cst_50 {dimension_numbers = #tpu.dot_dimension_numbers<[1], [0], [0], [1], [0, 0, 1, 1], [], []>} : vector<144x64xbf16>, vector<64x128xbf16>, vector<144x128xf32> -> vector<144x128xf32>
    %142 = arith.addf %137, %141 : vector<144x128xf32>
    %c25 = arith.constant 25 : index
    %c0_51 = arith.constant 0 : index
    %143 = vector.load %arg21[%c25, %c0_51] : memref<176x256xbf16, #tpu.memory_space<vmem>>, vector<144x64xbf16>
    %c7_52 = arith.constant 7 : index
    %c0_53 = arith.constant 0 : index
    %c0_54 = arith.constant 0 : index
    %144 = vector.load %arg4[%c7_52, %c0_53, %c0_54] : memref<9x64x128xbf16, #tpu.memory_space<vmem>>, vector<1x64x128xbf16>
    %145 = vector.shape_cast %144 : vector<1x64x128xbf16> to vector<64x128xbf16>
    %cst_55 = arith.constant dense<0.000000e+00> : vector<144x128xf32>
    %146 = tpu.matmul %143, %145, %cst_55 {dimension_numbers = #tpu.dot_dimension_numbers<[1], [0], [0], [1], [0, 0, 1, 1], [], []>} : vector<144x64xbf16>, vector<64x128xbf16>, vector<144x128xf32> -> vector<144x128xf32>
    %147 = arith.addf %142, %146 : vector<144x128xf32>
    %c26 = arith.constant 26 : index
    %c0_56 = arith.constant 0 : index
    %148 = vector.load %arg21[%c26, %c0_56] : memref<176x256xbf16, #tpu.memory_space<vmem>>, vector<144x64xbf16>
    %c8_57 = arith.constant 8 : index
    %c0_58 = arith.constant 0 : index
    %c0_59 = arith.constant 0 : index
    %149 = vector.load %arg4[%c8_57, %c0_58, %c0_59] : memref<9x64x128xbf16, #tpu.memory_space<vmem>>, vector<1x64x128xbf16>
    %150 = vector.shape_cast %149 : vector<1x64x128xbf16> to vector<64x128xbf16>
    %cst_60 = arith.constant dense<0.000000e+00> : vector<144x128xf32>
    %151 = tpu.matmul %148, %150, %cst_60 {dimension_numbers = #tpu.dot_dimension_numbers<[1], [0], [0], [1], [0, 0, 1, 1], [], []>} : vector<144x64xbf16>, vector<64x128xbf16>, vector<144x128xf32> -> vector<144x128xf32>
    %152 = arith.addf %147, %151 : vector<144x128xf32>
    %c0_61 = arith.constant 0 : index
    %c0_62 = arith.constant 0 : index
    %153 = vector.load %arg5[%c0_61, %c0_62] : memref<1x128xf32, #tpu.memory_space<vmem>>, vector<1x128xf32>
    %154 = vector.broadcast %153 : vector<1x128xf32> to vector<144x128xf32>
    %155 = arith.addf %152, %154 : vector<144x128xf32>
    %cst_63 = arith.constant 0.000000e+00 : f32
    %156 = vector.broadcast %cst_63 : f32 to vector<144x128xf32>
    %157 = arith.maximumf %155, %156 : vector<144x128xf32>
    %158 = vector.broadcast %93 : vector<144x1xf32> to vector<144x128xf32>
    %159 = arith.mulf %157, %158 : vector<144x128xf32>
    %160 = arith.truncf %159 : vector<144x128xf32> to vector<144x128xbf16>
    %c16_64 = arith.constant 16 : index
    %c0_65 = arith.constant 0 : index
    %161 = vector.load %arg22[%c16_64, %c0_65] : memref<176x256xbf16, #tpu.memory_space<vmem>>, vector<144x128xbf16>
    tpu.vector_store %arg22[%c16_64, %c0_65], %160 {strides = array<i32>} : memref<176x256xbf16, #tpu.memory_space<vmem>>, vector<144x128xbf16>,
    %c16_66 = arith.constant 16 : index
    %c0_67 = arith.constant 0 : index
    %162 = vector.load %arg21[%c16_66, %c0_67] : memref<176x256xbf16, #tpu.memory_space<vmem>>, vector<144x64xbf16>
    %c0_68 = arith.constant 0 : index
    %c0_69 = arith.constant 0 : index
    %163 = vector.load %arg8[%c0_68, %c0_69] : memref<64x128xbf16, #tpu.memory_space<vmem>>, vector<64x128xbf16>
    %cst_70 = arith.constant dense<0.000000e+00> : vector<144x128xf32>
    %164 = tpu.matmul %162, %163, %cst_70 {dimension_numbers = #tpu.dot_dimension_numbers<[1], [0], [0], [1], [0, 0, 1, 1], [], []>} : vector<144x64xbf16>, vector<64x128xbf16>, vector<144x128xf32> -> vector<144x128xf32>
    %c0_71 = arith.constant 0 : index
    %c0_72 = arith.constant 0 : index
    %165 = vector.load %arg9[%c0_71, %c0_72] : memref<1x128xf32, #tpu.memory_space<vmem>>, vector<1x128xf32>
    %166 = vector.broadcast %165 : vector<1x128xf32> to vector<144x128xf32>
    %167 = arith.addf %164, %166 : vector<144x128xf32>
    %c6_73 = arith.constant 6 : index
    %c0_74 = arith.constant 0 : index
    %168 = vector.load %arg22[%c6_73, %c0_74] : memref<176x256xbf16, #tpu.memory_space<vmem>>, vector<144x128xbf16>
    %c0_75 = arith.constant 0 : index
    %c0_76 = arith.constant 0 : index
    %169 = vector.load %arg23[%c0_75, %c0_76] : memref<144x2304xbf16, #tpu.memory_space<vmem>>, vector<144x128xbf16>
    tpu.vector_store %arg23[%c0_75, %c0_76], %168 {strides = array<i32>} : memref<144x2304xbf16, #tpu.memory_space<vmem>>, vector<144x128xbf16>,
    %c7_77 = arith.constant 7 : index
    %c0_78 = arith.constant 0 : index
    %170 = vector.load %arg22[%c7_77, %c0_78] : memref<176x256xbf16, #tpu.memory_space<vmem>>, vector<144x128xbf16>
    %c0_79 = arith.constant 0 : index
    %c128 = arith.constant 128 : index
    %171 = vector.load %arg23[%c0_79, %c128] : memref<144x2304xbf16, #tpu.memory_space<vmem>>, vector<144x128xbf16>
    tpu.vector_store %arg23[%c0_79, %c128], %170 {strides = array<i32>} : memref<144x2304xbf16, #tpu.memory_space<vmem>>, vector<144x128xbf16>,
    %c8_80 = arith.constant 8 : index
    %c0_81 = arith.constant 0 : index
    %172 = vector.load %arg22[%c8_80, %c0_81] : memref<176x256xbf16, #tpu.memory_space<vmem>>, vector<144x128xbf16>
    %c0_82 = arith.constant 0 : index
    %c256 = arith.constant 256 : index
    %173 = vector.load %arg23[%c0_82, %c256] : memref<144x2304xbf16, #tpu.memory_space<vmem>>, vector<144x128xbf16>
    tpu.vector_store %arg23[%c0_82, %c256], %172 {strides = array<i32>} : memref<144x2304xbf16, #tpu.memory_space<vmem>>, vector<144x128xbf16>,
    %c15_83 = arith.constant 15 : index
    %c0_84 = arith.constant 0 : index
    %174 = vector.load %arg22[%c15_83, %c0_84] : memref<176x256xbf16, #tpu.memory_space<vmem>>, vector<144x128xbf16>
    %c0_85 = arith.constant 0 : index
    %c384 = arith.constant 384 : index
    %175 = vector.load %arg23[%c0_85, %c384] : memref<144x2304xbf16, #tpu.memory_space<vmem>>, vector<144x128xbf16>
    tpu.vector_store %arg23[%c0_85, %c384], %174 {strides = array<i32>} : memref<144x2304xbf16, #tpu.memory_space<vmem>>, vector<144x128xbf16>,
    %c16_86 = arith.constant 16 : index
    %c0_87 = arith.constant 0 : index
    %176 = vector.load %arg22[%c16_86, %c0_87] : memref<176x256xbf16, #tpu.memory_space<vmem>>, vector<144x128xbf16>
    %c0_88 = arith.constant 0 : index
    %c512 = arith.constant 512 : index
    %177 = vector.load %arg23[%c0_88, %c512] : memref<144x2304xbf16, #tpu.memory_space<vmem>>, vector<144x128xbf16>
    tpu.vector_store %arg23[%c0_88, %c512], %176 {strides = array<i32>} : memref<144x2304xbf16, #tpu.memory_space<vmem>>, vector<144x128xbf16>,
    %c17_89 = arith.constant 17 : index
    %c0_90 = arith.constant 0 : index
    %178 = vector.load %arg22[%c17_89, %c0_90] : memref<176x256xbf16, #tpu.memory_space<vmem>>, vector<144x128xbf16>
    %c0_91 = arith.constant 0 : index
    %c640 = arith.constant 640 : index
    %179 = vector.load %arg23[%c0_91, %c640] : memref<144x2304xbf16, #tpu.memory_space<vmem>>, vector<144x128xbf16>
    tpu.vector_store %arg23[%c0_91, %c640], %178 {strides = array<i32>} : memref<144x2304xbf16, #tpu.memory_space<vmem>>, vector<144x128xbf16>,
    %c24_92 = arith.constant 24 : index
    %c0_93 = arith.constant 0 : index
    %180 = vector.load %arg22[%c24_92, %c0_93] : memref<176x256xbf16, #tpu.memory_space<vmem>>, vector<144x128xbf16>
    %c0_94 = arith.constant 0 : index
    %c768 = arith.constant 768 : index
    %181 = vector.load %arg23[%c0_94, %c768] : memref<144x2304xbf16, #tpu.memory_space<vmem>>, vector<144x128xbf16>
    tpu.vector_store %arg23[%c0_94, %c768], %180 {strides = array<i32>} : memref<144x2304xbf16, #tpu.memory_space<vmem>>, vector<144x128xbf16>,
    %c25_95 = arith.constant 25 : index
    %c0_96 = arith.constant 0 : index
    %182 = vector.load %arg22[%c25_95, %c0_96] : memref<176x256xbf16, #tpu.memory_space<vmem>>, vector<144x128xbf16>
    %c0_97 = arith.constant 0 : index
    %c896 = arith.constant 896 : index
    %183 = vector.load %arg23[%c0_97, %c896] : memref<144x2304xbf16, #tpu.memory_space<vmem>>, vector<144x128xbf16>
    tpu.vector_store %arg23[%c0_97, %c896], %182 {strides = array<i32>} : memref<144x2304xbf16, #tpu.memory_space<vmem>>, vector<144x128xbf16>,
    %c26_98 = arith.constant 26 : index
    %c0_99 = arith.constant 0 : index
    %184 = vector.load %arg22[%c26_98, %c0_99] : memref<176x256xbf16, #tpu.memory_space<vmem>>, vector<144x128xbf16>
    %c0_100 = arith.constant 0 : index
    %c1024 = arith.constant 1024 : index
    %185 = vector.load %arg23[%c0_100, %c1024] : memref<144x2304xbf16, #tpu.memory_space<vmem>>, vector<144x128xbf16>
    tpu.vector_store %arg23[%c0_100, %c1024], %184 {strides = array<i32>} : memref<144x2304xbf16, #tpu.memory_space<vmem>>, vector<144x128xbf16>,
    %c0_101 = arith.constant 0 : index
    %c0_102 = arith.constant 0 : index
    %186 = vector.load %arg23[%c0_101, %c0_102] : memref<144x2304xbf16, #tpu.memory_space<vmem>>, vector<144x1152xbf16>
    %c0_103 = arith.constant 0 : index
    %c0_104 = arith.constant 0 : index
    %187 = vector.load %arg6[%c0_103, %c0_104] : memref<1152x128xbf16, #tpu.memory_space<vmem>>, vector<1152x128xbf16>
    %cst_105 = arith.constant dense<0.000000e+00> : vector<144x128xf32>
    %188 = tpu.matmul %186, %187, %cst_105 {dimension_numbers = #tpu.dot_dimension_numbers<[1], [0], [0], [1], [0, 0, 1, 1], [], []>} : vector<144x1152xbf16>, vector<1152x128xbf16>, vector<144x128xf32> -> vector<144x128xf32>
    %c0_106 = arith.constant 0 : index
    %c0_107 = arith.constant 0 : index
    %189 = vector.load %arg7[%c0_106, %c0_107] : memref<1x128xf32, #tpu.memory_space<vmem>>, vector<1x128xf32>
    %190 = vector.broadcast %189 : vector<1x128xf32> to vector<144x128xf32>
    %191 = arith.addf %188, %190 : vector<144x128xf32>
    %192 = arith.addf %191, %167 : vector<144x128xf32>
    %cst_108 = arith.constant 0.000000e+00 : f32
    %193 = vector.broadcast %cst_108 : f32 to vector<144x128xf32>
    %194 = arith.maximumf %192, %193 : vector<144x128xf32>
    %195 = vector.broadcast %93 : vector<144x1xf32> to vector<144x128xf32>
    %196 = arith.mulf %194, %195 : vector<144x128xf32>
    %197 = arith.truncf %196 : vector<144x128xf32> to vector<144x128xbf16>
    %c16_109 = arith.constant 16 : index
    %c0_110 = arith.constant 0 : index
    %198 = vector.load %arg21[%c16_109, %c0_110] : memref<176x256xbf16, #tpu.memory_space<vmem>>, vector<144x128xbf16>
    tpu.vector_store %arg21[%c16_109, %c0_110], %197 {strides = array<i32>} : memref<176x256xbf16, #tpu.memory_space<vmem>>, vector<144x128xbf16>,
    %c6_111 = arith.constant 6 : index
    %c0_112 = arith.constant 0 : index
    %199 = vector.load %arg21[%c6_111, %c0_112] : memref<176x256xbf16, #tpu.memory_space<vmem>>, vector<144x128xbf16>
    %c0_113 = arith.constant 0 : index
    %c0_114 = arith.constant 0 : index
    %200 = vector.load %arg23[%c0_113, %c0_114] : memref<144x2304xbf16, #tpu.memory_space<vmem>>, vector<144x128xbf16>
    tpu.vector_store %arg23[%c0_113, %c0_114], %199 {strides = array<i32>} : memref<144x2304xbf16, #tpu.memory_space<vmem>>, vector<144x128xbf16>,
    %c7_115 = arith.constant 7 : index
    %c0_116 = arith.constant 0 : index
    %201 = vector.load %arg21[%c7_115, %c0_116] : memref<176x256xbf16, #tpu.memory_space<vmem>>, vector<144x128xbf16>
    %c0_117 = arith.constant 0 : index
    %c128_118 = arith.constant 128 : index
    %202 = vector.load %arg23[%c0_117, %c128_118] : memref<144x2304xbf16, #tpu.memory_space<vmem>>, vector<144x128xbf16>
    tpu.vector_store %arg23[%c0_117, %c128_118], %201 {strides = array<i32>} : memref<144x2304xbf16, #tpu.memory_space<vmem>>, vector<144x128xbf16>,
    %c8_119 = arith.constant 8 : index
    %c0_120 = arith.constant 0 : index
    %203 = vector.load %arg21[%c8_119, %c0_120] : memref<176x256xbf16, #tpu.memory_space<vmem>>, vector<144x128xbf16>
    %c0_121 = arith.constant 0 : index
    %c256_122 = arith.constant 256 : index
    %204 = vector.load %arg23[%c0_121, %c256_122] : memref<144x2304xbf16, #tpu.memory_space<vmem>>, vector<144x128xbf16>
    tpu.vector_store %arg23[%c0_121, %c256_122], %203 {strides = array<i32>} : memref<144x2304xbf16, #tpu.memory_space<vmem>>, vector<144x128xbf16>,
    %c15_123 = arith.constant 15 : index
    %c0_124 = arith.constant 0 : index
    %205 = vector.load %arg21[%c15_123, %c0_124] : memref<176x256xbf16, #tpu.memory_space<vmem>>, vector<144x128xbf16>
    %c0_125 = arith.constant 0 : index
    %c384_126 = arith.constant 384 : index
    %206 = vector.load %arg23[%c0_125, %c384_126] : memref<144x2304xbf16, #tpu.memory_space<vmem>>, vector<144x128xbf16>
    tpu.vector_store %arg23[%c0_125, %c384_126], %205 {strides = array<i32>} : memref<144x2304xbf16, #tpu.memory_space<vmem>>, vector<144x128xbf16>,
    %c16_127 = arith.constant 16 : index
    %c0_128 = arith.constant 0 : index
    %207 = vector.load %arg21[%c16_127, %c0_128] : memref<176x256xbf16, #tpu.memory_space<vmem>>, vector<144x128xbf16>
    %c0_129 = arith.constant 0 : index
    %c512_130 = arith.constant 512 : index
    %208 = vector.load %arg23[%c0_129, %c512_130] : memref<144x2304xbf16, #tpu.memory_space<vmem>>, vector<144x128xbf16>
    tpu.vector_store %arg23[%c0_129, %c512_130], %207 {strides = array<i32>} : memref<144x2304xbf16, #tpu.memory_space<vmem>>, vector<144x128xbf16>,
    %c17_131 = arith.constant 17 : index
    %c0_132 = arith.constant 0 : index
    %209 = vector.load %arg21[%c17_131, %c0_132] : memref<176x256xbf16, #tpu.memory_space<vmem>>, vector<144x128xbf16>
    %c0_133 = arith.constant 0 : index
    %c640_134 = arith.constant 640 : index
    %210 = vector.load %arg23[%c0_133, %c640_134] : memref<144x2304xbf16, #tpu.memory_space<vmem>>, vector<144x128xbf16>
    tpu.vector_store %arg23[%c0_133, %c640_134], %209 {strides = array<i32>} : memref<144x2304xbf16, #tpu.memory_space<vmem>>, vector<144x128xbf16>,
    %c24_135 = arith.constant 24 : index
    %c0_136 = arith.constant 0 : index
    %211 = vector.load %arg21[%c24_135, %c0_136] : memref<176x256xbf16, #tpu.memory_space<vmem>>, vector<144x128xbf16>
    %c0_137 = arith.constant 0 : index
    %c768_138 = arith.constant 768 : index
    %212 = vector.load %arg23[%c0_137, %c768_138] : memref<144x2304xbf16, #tpu.memory_space<vmem>>, vector<144x128xbf16>
    tpu.vector_store %arg23[%c0_137, %c768_138], %211 {strides = array<i32>} : memref<144x2304xbf16, #tpu.memory_space<vmem>>, vector<144x128xbf16>,
    %c25_139 = arith.constant 25 : index
    %c0_140 = arith.constant 0 : index
    %213 = vector.load %arg21[%c25_139, %c0_140] : memref<176x256xbf16, #tpu.memory_space<vmem>>, vector<144x128xbf16>
    %c0_141 = arith.constant 0 : index
    %c896_142 = arith.constant 896 : index
    %214 = vector.load %arg23[%c0_141, %c896_142] : memref<144x2304xbf16, #tpu.memory_space<vmem>>, vector<144x128xbf16>
    tpu.vector_store %arg23[%c0_141, %c896_142], %213 {strides = array<i32>} : memref<144x2304xbf16, #tpu.memory_space<vmem>>, vector<144x128xbf16>,
    %c26_143 = arith.constant 26 : index
    %c0_144 = arith.constant 0 : index
    %215 = vector.load %arg21[%c26_143, %c0_144] : memref<176x256xbf16, #tpu.memory_space<vmem>>, vector<144x128xbf16>
    %c0_145 = arith.constant 0 : index
    %c1024_146 = arith.constant 1024 : index
    %216 = vector.load %arg23[%c0_145, %c1024_146] : memref<144x2304xbf16, #tpu.memory_space<vmem>>, vector<144x128xbf16>
    tpu.vector_store %arg23[%c0_145, %c1024_146], %215 {strides = array<i32>} : memref<144x2304xbf16, #tpu.memory_space<vmem>>, vector<144x128xbf16>,
    %c0_147 = arith.constant 0 : index
    %c0_148 = arith.constant 0 : index
    %217 = vector.load %arg23[%c0_147, %c0_148] : memref<144x2304xbf16, #tpu.memory_space<vmem>>, vector<144x1152xbf16>
    %c0_149 = arith.constant 0 : index
    %c0_150 = arith.constant 0 : index
    %218 = vector.load %arg10[%c0_149, %c0_150] : memref<1152x256xbf16, #tpu.memory_space<vmem>>, vector<1152x256xbf16>
    %cst_151 = arith.constant dense<0.000000e+00> : vector<144x256xf32>
    %219 = tpu.matmul %217, %218, %cst_151 {dimension_numbers = #tpu.dot_dimension_numbers<[1], [0], [0], [1], [0, 0, 1, 1], [], []>} : vector<144x1152xbf16>, vector<1152x256xbf16>, vector<144x256xf32> -> vector<144x256xf32>
    %c0_152 = arith.constant 0 : index
    %c0_153 = arith.constant 0 : index
    %220 = vector.load %arg11[%c0_152, %c0_153] : memref<1x256xf32, #tpu.memory_space<vmem>>, vector<1x256xf32>
    %221 = vector.broadcast %220 : vector<1x256xf32> to vector<144x256xf32>
    %222 = arith.addf %219, %221 : vector<144x256xf32>
    %cst_154 = arith.constant 0.000000e+00 : f32
    %223 = vector.broadcast %cst_154 : f32 to vector<144x256xf32>
    %224 = arith.maximumf %222, %223 : vector<144x256xf32>
    %225 = vector.broadcast %93 : vector<144x1xf32> to vector<144x256xf32>
    %226 = arith.mulf %224, %225 : vector<144x256xf32>
    %227 = arith.truncf %226 : vector<144x256xf32> to vector<144x256xbf16>
    %c16_155 = arith.constant 16 : index
    %c0_156 = arith.constant 0 : index
    %228 = vector.load %arg22[%c16_155, %c0_156] : memref<176x256xbf16, #tpu.memory_space<vmem>>, vector<144x256xbf16>
    tpu.vector_store %arg22[%c16_155, %c0_156], %227 {strides = array<i32>} : memref<176x256xbf16, #tpu.memory_space<vmem>>, vector<144x256xbf16>,
    %c16_157 = arith.constant 16 : index
    %c0_158 = arith.constant 0 : index
    %229 = vector.load %arg21[%c16_157, %c0_158] : memref<176x256xbf16, #tpu.memory_space<vmem>>, vector<144x128xbf16>
    %c0_159 = arith.constant 0 : index
    %c0_160 = arith.constant 0 : index
    %230 = vector.load %arg14[%c0_159, %c0_160] : memref<128x256xbf16, #tpu.memory_space<vmem>>, vector<128x256xbf16>
    %cst_161 = arith.constant dense<0.000000e+00> : vector<144x256xf32>
    %231 = tpu.matmul %229, %230, %cst_161 {dimension_numbers = #tpu.dot_dimension_numbers<[1], [0], [0], [1], [0, 0, 1, 1], [], []>} : vector<144x128xbf16>, vector<128x256xbf16>, vector<144x256xf32> -> vector<144x256xf32>
    %c0_162 = arith.constant 0 : index
    %c0_163 = arith.constant 0 : index
    %232 = vector.load %arg15[%c0_162, %c0_163] : memref<1x256xf32, #tpu.memory_space<vmem>>, vector<1x256xf32>
    %233 = vector.broadcast %232 : vector<1x256xf32> to vector<144x256xf32>
    %234 = arith.addf %231, %233 : vector<144x256xf32>
    %c6_164 = arith.constant 6 : index
    %c0_165 = arith.constant 0 : index
    %235 = vector.load %arg22[%c6_164, %c0_165] : memref<176x256xbf16, #tpu.memory_space<vmem>>, vector<144x256xbf16>
    %c0_166 = arith.constant 0 : index
    %c0_167 = arith.constant 0 : index
    %236 = vector.load %arg23[%c0_166, %c0_167] : memref<144x2304xbf16, #tpu.memory_space<vmem>>, vector<144x256xbf16>
    tpu.vector_store %arg23[%c0_166, %c0_167], %235 {strides = array<i32>} : memref<144x2304xbf16, #tpu.memory_space<vmem>>, vector<144x256xbf16>,
    %c7_168 = arith.constant 7 : index
    %c0_169 = arith.constant 0 : index
    %237 = vector.load %arg22[%c7_168, %c0_169] : memref<176x256xbf16, #tpu.memory_space<vmem>>, vector<144x256xbf16>
    %c0_170 = arith.constant 0 : index
    %c256_171 = arith.constant 256 : index
    %238 = vector.load %arg23[%c0_170, %c256_171] : memref<144x2304xbf16, #tpu.memory_space<vmem>>, vector<144x256xbf16>
    tpu.vector_store %arg23[%c0_170, %c256_171], %237 {strides = array<i32>} : memref<144x2304xbf16, #tpu.memory_space<vmem>>, vector<144x256xbf16>,
    %c8_172 = arith.constant 8 : index
    %c0_173 = arith.constant 0 : index
    %239 = vector.load %arg22[%c8_172, %c0_173] : memref<176x256xbf16, #tpu.memory_space<vmem>>, vector<144x256xbf16>
    %c0_174 = arith.constant 0 : index
    %c512_175 = arith.constant 512 : index
    %240 = vector.load %arg23[%c0_174, %c512_175] : memref<144x2304xbf16, #tpu.memory_space<vmem>>, vector<144x256xbf16>
    tpu.vector_store %arg23[%c0_174, %c512_175], %239 {strides = array<i32>} : memref<144x2304xbf16, #tpu.memory_space<vmem>>, vector<144x256xbf16>,
    %c15_176 = arith.constant 15 : index
    %c0_177 = arith.constant 0 : index
    %241 = vector.load %arg22[%c15_176, %c0_177] : memref<176x256xbf16, #tpu.memory_space<vmem>>, vector<144x256xbf16>
    %c0_178 = arith.constant 0 : index
    %c768_179 = arith.constant 768 : index
    %242 = vector.load %arg23[%c0_178, %c768_179] : memref<144x2304xbf16, #tpu.memory_space<vmem>>, vector<144x256xbf16>
    tpu.vector_store %arg23[%c0_178, %c768_179], %241 {strides = array<i32>} : memref<144x2304xbf16, #tpu.memory_space<vmem>>, vector<144x256xbf16>,
    %c16_180 = arith.constant 16 : index
    %c0_181 = arith.constant 0 : index
    %243 = vector.load %arg22[%c16_180, %c0_181] : memref<176x256xbf16, #tpu.memory_space<vmem>>, vector<144x256xbf16>
    %c0_182 = arith.constant 0 : index
    %c1024_183 = arith.constant 1024 : index
    %244 = vector.load %arg23[%c0_182, %c1024_183] : memref<144x2304xbf16, #tpu.memory_space<vmem>>, vector<144x256xbf16>
    tpu.vector_store %arg23[%c0_182, %c1024_183], %243 {strides = array<i32>} : memref<144x2304xbf16, #tpu.memory_space<vmem>>, vector<144x256xbf16>,
    %c17_184 = arith.constant 17 : index
    %c0_185 = arith.constant 0 : index
    %245 = vector.load %arg22[%c17_184, %c0_185] : memref<176x256xbf16, #tpu.memory_space<vmem>>, vector<144x256xbf16>
    %c0_186 = arith.constant 0 : index
    %c1280 = arith.constant 1280 : index
    %246 = vector.load %arg23[%c0_186, %c1280] : memref<144x2304xbf16, #tpu.memory_space<vmem>>, vector<144x256xbf16>
    tpu.vector_store %arg23[%c0_186, %c1280], %245 {strides = array<i32>} : memref<144x2304xbf16, #tpu.memory_space<vmem>>, vector<144x256xbf16>,
    %c24_187 = arith.constant 24 : index
    %c0_188 = arith.constant 0 : index
    %247 = vector.load %arg22[%c24_187, %c0_188] : memref<176x256xbf16, #tpu.memory_space<vmem>>, vector<144x256xbf16>
    %c0_189 = arith.constant 0 : index
    %c1536 = arith.constant 1536 : index
    %248 = vector.load %arg23[%c0_189, %c1536] : memref<144x2304xbf16, #tpu.memory_space<vmem>>, vector<144x256xbf16>
    tpu.vector_store %arg23[%c0_189, %c1536], %247 {strides = array<i32>} : memref<144x2304xbf16, #tpu.memory_space<vmem>>, vector<144x256xbf16>,
    %c25_190 = arith.constant 25 : index
    %c0_191 = arith.constant 0 : index
    %249 = vector.load %arg22[%c25_190, %c0_191] : memref<176x256xbf16, #tpu.memory_space<vmem>>, vector<144x256xbf16>
    %c0_192 = arith.constant 0 : index
    %c1792 = arith.constant 1792 : index
    %250 = vector.load %arg23[%c0_192, %c1792] : memref<144x2304xbf16, #tpu.memory_space<vmem>>, vector<144x256xbf16>
    tpu.vector_store %arg23[%c0_192, %c1792], %249 {strides = array<i32>} : memref<144x2304xbf16, #tpu.memory_space<vmem>>, vector<144x256xbf16>,
    %c26_193 = arith.constant 26 : index
    %c0_194 = arith.constant 0 : index
    %251 = vector.load %arg22[%c26_193, %c0_194] : memref<176x256xbf16, #tpu.memory_space<vmem>>, vector<144x256xbf16>
    %c0_195 = arith.constant 0 : index
    %c2048 = arith.constant 2048 : index
    %252 = vector.load %arg23[%c0_195, %c2048] : memref<144x2304xbf16, #tpu.memory_space<vmem>>, vector<144x256xbf16>
    tpu.vector_store %arg23[%c0_195, %c2048], %251 {strides = array<i32>} : memref<144x2304xbf16, #tpu.memory_space<vmem>>, vector<144x256xbf16>,
    %c0_196 = arith.constant 0 : index
    %c0_197 = arith.constant 0 : index
    %253 = vector.load %arg23[%c0_196, %c0_197] : memref<144x2304xbf16, #tpu.memory_space<vmem>>, vector<144x2304xbf16>
    %c0_198 = arith.constant 0 : index
    %c0_199 = arith.constant 0 : index
    %254 = vector.load %arg12[%c0_198, %c0_199] : memref<2304x256xbf16, #tpu.memory_space<vmem>>, vector<2304x256xbf16>
    %cst_200 = arith.constant dense<0.000000e+00> : vector<144x256xf32>
    %255 = tpu.matmul %253, %254, %cst_200 {dimension_numbers = #tpu.dot_dimension_numbers<[1], [0], [0], [1], [0, 0, 1, 1], [], []>} : vector<144x2304xbf16>, vector<2304x256xbf16>, vector<144x256xf32> -> vector<144x256xf32>
    %c0_201 = arith.constant 0 : index
    %c0_202 = arith.constant 0 : index
    %256 = vector.load %arg13[%c0_201, %c0_202] : memref<1x256xf32, #tpu.memory_space<vmem>>, vector<1x256xf32>
    %257 = vector.broadcast %256 : vector<1x256xf32> to vector<144x256xf32>
    %258 = arith.addf %255, %257 : vector<144x256xf32>
    %259 = arith.addf %258, %234 : vector<144x256xf32>
    %cst_203 = arith.constant 0.000000e+00 : f32
    %260 = vector.broadcast %cst_203 : f32 to vector<144x256xf32>
    %261 = arith.maximumf %259, %260 : vector<144x256xf32>
    %262 = arith.truncf %261 : vector<144x256xf32> to vector<144x256xbf16>
    %c0_204 = arith.constant 0 : index
    %c0_205 = arith.constant 0 : index
    %263 = vector.load %arg16[%c0_204, %c0_205] : memref<256x256xbf16, #tpu.memory_space<vmem>>, vector<256x256xbf16>
    %cst_206 = arith.constant dense<0.000000e+00> : vector<144x256xf32>
    %264 = tpu.matmul %262, %263, %cst_206 {dimension_numbers = #tpu.dot_dimension_numbers<[1], [0], [0], [1], [0, 0, 1, 1], [], []>} : vector<144x256xbf16>, vector<256x256xbf16>, vector<144x256xf32> -> vector<144x256xf32>
    %c0_207 = arith.constant 0 : index
    %c0_208 = arith.constant 0 : index
    %265 = vector.load %arg17[%c0_207, %c0_208] : memref<1x256xf32, #tpu.memory_space<vmem>>, vector<1x256xf32>
    %266 = vector.broadcast %265 : vector<1x256xf32> to vector<144x256xf32>
    %267 = arith.addf %264, %266 : vector<144x256xf32>
    %cst_209 = arith.constant 0.000000e+00 : f32
    %268 = vector.broadcast %cst_209 : f32 to vector<144x256xf32>
    %269 = arith.maximumf %267, %268 : vector<144x256xf32>
    %270 = arith.truncf %269 : vector<144x256xf32> to vector<144x256xbf16>
    %c0_210 = arith.constant 0 : index
    %c0_211 = arith.constant 0 : index
    %271 = vector.load %arg18[%c0_210, %c0_211] : memref<256x4xbf16, #tpu.memory_space<vmem>>, vector<256x4xbf16>
    %cst_212 = arith.constant dense<0.000000e+00> : vector<144x4xf32>
    %272 = tpu.matmul %270, %271, %cst_212 {dimension_numbers = #tpu.dot_dimension_numbers<[1], [0], [0], [1], [0, 0, 1, 1], [], []>} : vector<144x256xbf16>, vector<256x4xbf16>, vector<144x4xf32> -> vector<144x4xf32>
    %c0_213 = arith.constant 0 : index
    %c0_214 = arith.constant 0 : index
    %273 = vector.load %arg19[%c0_213, %c0_214] : memref<1x4xf32, #tpu.memory_space<vmem>>, vector<1x4xf32>
    %274 = vector.broadcast %273 : vector<1x4xf32> to vector<144x4xf32>
    %275 = arith.addf %272, %274 : vector<144x4xf32>
    %c0_215 = arith.constant 0 : index
    %c0_216 = arith.constant 0 : index
    %c0_217 = arith.constant 0 : index
    %276 = vector.load %arg20[%c0_215, %c0_216, %c0_217] : memref<1x144x4xf32, #tpu.memory_space<vmem>>, vector<1x144x4xf32>
    %277 = vector.shape_cast %276 : vector<1x144x4xf32> to vector<144x4xf32>
    %278 = vector.shape_cast %275 : vector<144x4xf32> to vector<1x144x4xf32>
    tpu.vector_store %arg20[%c0_215, %c0_216, %c0_217], %278 {strides = array<i32>} : memref<1x144x4xf32, #tpu.memory_space<vmem>>, vector<1x144x4xf32>,
    return
  }
  func.func @transform_0(%arg0: i32) -> (i32, i32, i32) {
    %c0_i32 = arith.constant 0 : i32
    %c0_i32_0 = arith.constant 0 : i32
    %c0_i32_1 = arith.constant 0 : i32
    return %arg0, %c0_i32, %c0_i32_0 : i32, i32, i32
  }
  func.func @transform_1(%arg0: i32) -> (i32, i32) {
    %c0_i32 = arith.constant 0 : i32
    %c0_i32_0 = arith.constant 0 : i32
    %c0_i32_1 = arith.constant 0 : i32
    return %c0_i32, %c0_i32_0 : i32, i32
  }
  func.func @transform_2(%arg0: i32) -> (i32, i32) {
    %c0_i32 = arith.constant 0 : i32
    %c0_i32_0 = arith.constant 0 : i32
    %c0_i32_1 = arith.constant 0 : i32
    return %c0_i32, %c0_i32_0 : i32, i32
  }
  func.func @transform_3(%arg0: i32) -> (i32, i32, i32) {
    %c0_i32 = arith.constant 0 : i32
    %c0_i32_0 = arith.constant 0 : i32
    %c0_i32_1 = arith.constant 0 : i32
    %c0_i32_2 = arith.constant 0 : i32
    return %c0_i32, %c0_i32_0, %c0_i32_1 : i32, i32, i32
  }
  func.func @transform_4(%arg0: i32) -> (i32, i32) {
    %c0_i32 = arith.constant 0 : i32
    %c0_i32_0 = arith.constant 0 : i32
    %c0_i32_1 = arith.constant 0 : i32
    return %c0_i32, %c0_i32_0 : i32, i32
  }
  func.func @transform_5(%arg0: i32) -> (i32, i32) {
    %c0_i32 = arith.constant 0 : i32
    %c0_i32_0 = arith.constant 0 : i32
    %c0_i32_1 = arith.constant 0 : i32
    return %c0_i32, %c0_i32_0 : i32, i32
  }
  func.func @transform_6(%arg0: i32) -> (i32, i32) {
    %c0_i32 = arith.constant 0 : i32
    %c0_i32_0 = arith.constant 0 : i32
    %c0_i32_1 = arith.constant 0 : i32
    return %c0_i32, %c0_i32_0 : i32, i32
  }
  func.func @transform_7(%arg0: i32) -> (i32, i32) {
    %c0_i32 = arith.constant 0 : i32
    %c0_i32_0 = arith.constant 0 : i32
    %c0_i32_1 = arith.constant 0 : i32
    return %c0_i32, %c0_i32_0 : i32, i32
  }
  func.func @transform_8(%arg0: i32) -> (i32, i32) {
    %c0_i32 = arith.constant 0 : i32
    %c0_i32_0 = arith.constant 0 : i32
    %c0_i32_1 = arith.constant 0 : i32
    return %c0_i32, %c0_i32_0 : i32, i32
  }
  func.func @transform_9(%arg0: i32) -> (i32, i32) {
    %c0_i32 = arith.constant 0 : i32
    %c0_i32_0 = arith.constant 0 : i32
    %c0_i32_1 = arith.constant 0 : i32
    return %c0_i32, %c0_i32_0 : i32, i32
  }
  func.func @transform_10(%arg0: i32) -> (i32, i32) {
    %c0_i32 = arith.constant 0 : i32
    %c0_i32_0 = arith.constant 0 : i32
    %c0_i32_1 = arith.constant 0 : i32
    return %c0_i32, %c0_i32_0 : i32, i32
  }
  func.func @transform_11(%arg0: i32) -> (i32, i32) {
    %c0_i32 = arith.constant 0 : i32
    %c0_i32_0 = arith.constant 0 : i32
    %c0_i32_1 = arith.constant 0 : i32
    return %c0_i32, %c0_i32_0 : i32, i32
  }
  func.func @transform_12(%arg0: i32) -> (i32, i32) {
    %c0_i32 = arith.constant 0 : i32
    %c0_i32_0 = arith.constant 0 : i32
    %c0_i32_1 = arith.constant 0 : i32
    return %c0_i32, %c0_i32_0 : i32, i32
  }
  func.func @transform_13(%arg0: i32) -> (i32, i32) {
    %c0_i32 = arith.constant 0 : i32
    %c0_i32_0 = arith.constant 0 : i32
    %c0_i32_1 = arith.constant 0 : i32
    return %c0_i32, %c0_i32_0 : i32, i32
  }
  func.func @transform_14(%arg0: i32) -> (i32, i32) {
    %c0_i32 = arith.constant 0 : i32
    %c0_i32_0 = arith.constant 0 : i32
    %c0_i32_1 = arith.constant 0 : i32
    return %c0_i32, %c0_i32_0 : i32, i32
  }
  func.func @transform_15(%arg0: i32) -> (i32, i32) {
    %c0_i32 = arith.constant 0 : i32
    %c0_i32_0 = arith.constant 0 : i32
    %c0_i32_1 = arith.constant 0 : i32
    return %c0_i32, %c0_i32_0 : i32, i32
  }
  func.func @transform_16(%arg0: i32) -> (i32, i32) {
    %c0_i32 = arith.constant 0 : i32
    %c0_i32_0 = arith.constant 0 : i32
    %c0_i32_1 = arith.constant 0 : i32
    return %c0_i32, %c0_i32_0 : i32, i32
  }
  func.func @transform_17(%arg0: i32) -> (i32, i32) {
    %c0_i32 = arith.constant 0 : i32
    %c0_i32_0 = arith.constant 0 : i32
    %c0_i32_1 = arith.constant 0 : i32
    return %c0_i32, %c0_i32_0 : i32, i32
  }
  func.func @transform_18(%arg0: i32) -> (i32, i32) {
    %c0_i32 = arith.constant 0 : i32
    %c0_i32_0 = arith.constant 0 : i32
    %c0_i32_1 = arith.constant 0 : i32
    return %c0_i32, %c0_i32_0 : i32, i32
  }
  func.func @transform_19(%arg0: i32) -> (i32, i32, i32) {
    %c0_i32 = arith.constant 0 : i32
    %c0_i32_0 = arith.constant 0 : i32
    %c0_i32_1 = arith.constant 0 : i32
    return %arg0, %c0_i32, %c0_i32_0 : i32, i32, i32
  }
}

</mosaic_0001>

<bundles_post_ra>
// kernel: li_brain_tumor_seg_gen_forward.1
= control target key start
LH: loop header
LB: loop body
LE: loop exit
PB: predicated region body
PF: predicated region fallthrough
CT: control target
= control target key end

     0   :  { %s21899_s0 = inlined_call_operand.vmem [shape: bf16[1,144,36], index: 0, kind: input, shape index: {}]   ;;  %s21900_s1 = inlined_call_operand.hbm [shape: bf16[36,64], index: 1, kind: input, shape index: {}]   ;;  %s21901_s2 = inlined_call_operand.hbm [shape: f32[1,64], index: 2, kind: input, shape index: {}]   ;;  %s21902_s3 = inlined_call_operand.hbm [shape: bf16[9,64,128], index: 3, kind: input, shape index: {}]   ;;  %s21903_s4 = inlined_call_operand.hbm [shape: f32[1,128], index: 4, kind: input, shape index: {}]   ;;  %s21904_s5 = inlined_call_operand.vmem [shape: bf16[1152,128], index: 5, kind: input, shape index: {}]   ;;  %s21905_s6 = inlined_call_operand.hbm [shape: f32[1,128], index: 6, kind: input, shape index: {}]   ;;  %s21906_s7 = inlined_call_operand.vmem [shape: bf16[64,128], index: 7, kind: input, shape index: {}]   ;;  %s21907_s8 = inlined_call_operand.hbm [shape: f32[1,128], index: 8, kind: input, shape index: {}]   ;;  %s21908_s9 = inlined_call_operand.hbm [shape: bf16[1152,256], index: 9, kind: input, shape index: {}]   ;;  %s21909_s10 = inlined_call_operand.vmem [shape: f32[1,256], index: 10, kind: input, shape index: {}]   ;;  %s21910_s11 = inlined_call_operand.vmem [shape: bf16[2304,256], index: 11, kind: input, shape index: {}]   ;;  %s21911_s12 = inlined_call_operand.hbm [shape: f32[1,256], index: 12, kind: input, shape index: {}]   ;;  %s21912_s13 = inlined_call_operand.hbm [shape: bf16[128,256], index: 13, kind: input, shape index: {}]   ;;  %s21913_s14 = inlined_call_operand.hbm [shape: f32[1,256], index: 14, kind: input, shape index: {}]   ;;  %s21914_s15 = inlined_call_operand.hbm [shape: bf16[256,256], index: 15, kind: input, shape index: {}]   ;;  %s21915_s16 = inlined_call_operand.hbm [shape: f32[1,256], index: 16, kind: input, shape index: {}]   ;;  %s21916_s17 = inlined_call_operand.vmem [shape: bf16[256,4], index: 17, kind: input, shape index: {}]   ;;  %s21917_s18 = inlined_call_operand.hbm [shape: f32[1,4], index: 18, kind: input, shape index: {}]   ;;  %s21918_s19 = inlined_call_operand.vmem [shape: f32[1,144,4], index: 19, kind: output, shape index: {}]  }
   0x1   :  { %22017 = sst [smem:[#allocation67_spill]] %s21899_s0 }
   0x2   :  { %22018 = sst [smem:[#allocation68_spill]] %s21900_s1 }
   0x3   :  { %22019 = sst [smem:[#allocation69_spill]] %s21901_s2 }
   0x4   :  { %22020 = sst [smem:[#allocation70_spill]] %s21902_s3 }
   0x5   :  { %24 = vsyncpa [#allocation6], 0 }
   0x6   :  { %25 = vsyncpa [#allocation8], 0 }
   0x7   :  { %26 = vsyncpa [#allocation11], 0 }
   0x8   :  { %27 = vsyncpa [#allocation14], 0 }
   0x9   :  { %28 = vsyncpa [#allocation17], 0 }
   0xa   :  { %29 = vsyncpa [#allocation20], 0 }
   0xb   :  { %30 = vsyncpa [#allocation23], 0  ;;  %s17131_s0 = smov [#allocation7]   ;;  %s17132_s20 = smov [#allocation10]  }
   0xc   :  { %s51_s30 = sshll.u32 %s17131_s0, 4  ;;  %s73_s21 = sshll.u32 %s17132_s20, 4  ;;  %s52_s30 = int_to_ptr.vmem [resolvable:$true] %s51_s30  ;;  %s74_s21 = int_to_ptr.vmem [resolvable:$true] %s73_s21 }
   0xd   :  { %s22021_s2 = sld [smem:[#allocation69_spill]] }
  0x13   :  { %s16831_s23 = scalar_lea.hbm %s22021_s2, 16 }
  0x14   :  { %p16832_p0 = scmp.ne.s32.totalorder %s22021_s2, %s16831_s23  ;;  %p16835_p1 = scmp.lt.u32.totalorder %s16831_s23, %s22021_s2 }
  0x16   :  { %p16837_p2 = pnand %p16835_p1, %p16832_p0 }
  0x18   :  { %16840 = shalt.err (!%p16837_p2)
}
  0x19   :  { %s16841_s27 = scalar_lea.vmem %s52_s30, 16  ;;  %s16845_s28 = scalar_lea.vmem %s52_s30, 32 }
  0x1a   :  { %p16842_p3 = scmp.ne.s32.totalorder %s52_s30, %s16841_s27  ;;  %p16846_p4 = scmp.lt.s32.totalorder %s52_s30, %s52_s30 }
  0x1b   :  { %p16847_p5 = scmp.lt.s32.totalorder %s16845_s28, %s16841_s27 }
  0x1d   :  { %p16848_p6 = por %p16847_p5, %p16846_p4 }
  0x1f   :  { %p16849_p7 = pnand %p16848_p6, %p16842_p3 }
  0x21   :  { %16852 = shalt.err (!%p16849_p7)
}
  0x22   :  { %54 = dma.hbm_to_vmem [thread:$0]  %s22021_s2, 16, %s52_s30, [#allocation8]  }
  0x23   :  { %s16853_s22 = scalar_lea.hbm %s21903_s4, 16 }
  0x24   :  { %p16854_p8 = scmp.ne.s32.totalorder %s21903_s4, %s16853_s22  ;;  %p16857_p9 = scmp.lt.u32.totalorder %s16853_s22, %s21903_s4 }
  0x26   :  { %p16859_p10 = pnand %p16857_p9, %p16854_p8 }
  0x28   :  { %16862 = shalt.err (!%p16859_p10)
}
  0x29   :  { %s16863_s26 = scalar_lea.vmem %s74_s21, 16  ;;  %s16867_s27 = scalar_lea.vmem %s74_s21, 32 }
  0x2a   :  { %p16864_p11 = scmp.ne.s32.totalorder %s74_s21, %s16863_s26  ;;  %p16868_p12 = scmp.lt.s32.totalorder %s74_s21, %s74_s21 }
  0x2b   :  { %p16869_p13 = scmp.lt.s32.totalorder %s16867_s27, %s16863_s26 }
  0x2d   :  { %p16870_p0 = por %p16869_p13, %p16868_p12 }
  0x2f   :  { %p16871_p1 = pnand %p16870_p0, %p16864_p11 }
  0x31   :  { %16874 = shalt.err (!%p16871_p1)
}
  0x32   :  { %76 = dma.hbm_to_vmem [thread:$0]  %s21903_s4, 16, %s74_s21, [#allocation11]  }
  0x33   :  { %s17133_s28 = smov [#allocation13]   ;;  %s17134_s0 = smov [#allocation16]  }
  0x34   :  { %s97_s29 = sshll.u32 %s17133_s28, 4  ;;  %s123_s20 = sshll.u32 %s17134_s0, 4  ;;  %s98_s29 = int_to_ptr.vmem [resolvable:$true] %s97_s29  ;;  %s124_s20 = int_to_ptr.vmem [resolvable:$true] %s123_s20 }
  0x35   :  { %s16875_s24 = scalar_lea.hbm %s21907_s8, 16 }
  0x36   :  { %p16876_p2 = scmp.ne.s32.totalorder %s21907_s8, %s16875_s24  ;;  %p16879_p3 = scmp.lt.u32.totalorder %s16875_s24, %s21907_s8 }
  0x38   :  { %p16881_p4 = pnand %p16879_p3, %p16876_p2 }
  0x3a   :  { %16884 = shalt.err (!%p16881_p4)
}
  0x3b   :  { %s16885_s4 = scalar_lea.vmem %s98_s29, 16  ;;  %s16889_s21 = scalar_lea.vmem %s98_s29, 32 }
  0x3c   :  { %p16886_p5 = scmp.ne.s32.totalorder %s98_s29, %s16885_s4  ;;  %p16890_p6 = scmp.lt.s32.totalorder %s98_s29, %s98_s29 }
  0x3d   :  { %p16891_p7 = scmp.lt.s32.totalorder %s16889_s21, %s16885_s4 }
  0x3f   :  { %p16892_p8 = por %p16891_p7, %p16890_p6 }
  0x41   :  { %p16893_p9 = pnand %p16892_p8, %p16886_p5 }
  0x43   :  { %16896 = shalt.err (!%p16893_p9)
}
  0x44   :  { %100 = dma.hbm_to_vmem [thread:$0]  %s21907_s8, 16, %s98_s29, [#allocation14]  }
  0x45   :  { %s16897_s0 = scalar_lea.hbm %s21911_s12, 32 }
  0x46   :  { %p16898_p10 = scmp.ne.s32.totalorder %s21911_s12, %s16897_s0  ;;  %p16901_p11 = scmp.lt.u32.totalorder %s16897_s0, %s21911_s12 }
  0x48   :  { %p16903_p12 = pnand %p16901_p11, %p16898_p10 }
  0x4a   :  { %16906 = shalt.err (!%p16903_p12)
}
  0x4b   :  { %s16907_s25 = scalar_lea.vmem %s124_s20, 32  ;;  %p16912_p0 = scmp.lt.s32.totalorder %s124_s20, %s124_s20 }
  0x4c   :  { %p16908_p13 = scmp.ne.s32.totalorder %s124_s20, %s16907_s25  ;;  %p16913_p1 = scmp.lt.s32.totalorder %s16907_s25, %s16907_s25 }
  0x4e   :  { %p16914_p2 = por %p16913_p1, %p16912_p0 }
  0x50   :  { %p16915_p3 = pnand %p16914_p2, %p16908_p13 }
  0x52   :  { %16918 = shalt.err (!%p16915_p3)
}
  0x53   :  { %126 = dma.hbm_to_vmem [thread:$0]  %s21911_s12, 32, %s124_s20, [#allocation17]  }
  0x54   :  { %s17135_s3 = smov [#allocation19]   ;;  %s17136_s4 = smov [#allocation22]  }
  0x55   :  { %s145_s26 = sshll.u32 %s17135_s3, 4  ;;  %s167_s21 = sshll.u32 %s17136_s4, 4  ;;  %s146_s26 = int_to_ptr.vmem [resolvable:$true] %s145_s26  ;;  %s168_s21 = int_to_ptr.vmem [resolvable:$true] %s167_s21 }
  0x56   :  { %s16919_s2 = scalar_lea.hbm %s21913_s14, 32 }
  0x57   :  { %p16920_p4 = scmp.ne.s32.totalorder %s21913_s14, %s16919_s2  ;;  %p16923_p5 = scmp.lt.u32.totalorder %s16919_s2, %s21913_s14 }
  0x59   :  { %p16925_p6 = pnand %p16923_p5, %p16920_p4 }
  0x5b   :  { %16928 = shalt.err (!%p16925_p6)
}
  0x5c   :  { %s16929_s12 = scalar_lea.vmem %s146_s26, 32  ;;  %p16934_p8 = scmp.lt.s32.totalorder %s146_s26, %s146_s26 }
  0x5d   :  { %p16930_p7 = scmp.ne.s32.totalorder %s146_s26, %s16929_s12  ;;  %p16935_p9 = scmp.lt.s32.totalorder %s16929_s12, %s16929_s12 }
  0x5f   :  { %p16936_p10 = por %p16935_p9, %p16934_p8 }
  0x61   :  { %p16937_p11 = pnand %p16936_p10, %p16930_p7 }
  0x63   :  { %16940 = shalt.err (!%p16937_p11)
}
  0x64   :  { %148 = dma.hbm_to_vmem [thread:$0]  %s21913_s14, 32, %s146_s26, [#allocation20]  }
  0x65   :  { %s16941_s8 = scalar_lea.hbm %s21915_s16, 32 }
  0x66   :  { %p16942_p12 = scmp.ne.s32.totalorder %s21915_s16, %s16941_s8  ;;  %p16945_p13 = scmp.lt.u32.totalorder %s16941_s8, %s21915_s16 }
  0x68   :  { %p16947_p0 = pnand %p16945_p13, %p16942_p12 }
  0x6a   :  { %16950 = shalt.err (!%p16947_p0)
}
  0x6b   :  { %s16951_s30 = scalar_lea.vmem %s168_s21, 32  ;;  %p16956_p2 = scmp.lt.s32.totalorder %s168_s21, %s168_s21 }
  0x6c   :  { %p16952_p1 = scmp.ne.s32.totalorder %s168_s21, %s16951_s30  ;;  %p16957_p3 = scmp.lt.s32.totalorder %s16951_s30, %s16951_s30 }
  0x6e   :  { %p16958_p4 = por %p16957_p3, %p16956_p2 }
  0x70   :  { %p16959_p5 = pnand %p16958_p4, %p16952_p1 }
  0x72   :  { %16962 = shalt.err (!%p16959_p5)
}
  0x73   :  { %170 = dma.hbm_to_vmem [thread:$0]  %s21915_s16, 32, %s168_s21, [#allocation23]  }
  0x74   :  { %s17137_s2 = smov [#allocation5]   ;;  %s22022_s22 = sld [smem:[#allocation68_spill]] }
  0x75   :  { %s38_s28 = sshll.u32 %s17137_s2, 4  ;;  %s39_s28 = int_to_ptr.vmem [resolvable:$true] %s38_s28 }
  0x7a   :  { %s16963_s12 = scalar_lea.hbm %s22022_s22, 320 }
  0x7b   :  { %p16964_p6 = scmp.ne.s32.totalorder %s22022_s22, %s16963_s12  ;;  %p16967_p7 = scmp.lt.u32.totalorder %s16963_s12, %s22022_s22 }
  0x7d   :  { %p16969_p8 = pnand %p16967_p7, %p16964_p6 }
  0x7f   :  { %16972 = shalt.err (!%p16969_p8)
}
  0x80   :  { %s16973_s8 = scalar_lea.vmem %s39_s28, 320  ;;  %p16978_p10 = scmp.lt.s32.totalorder %s39_s28, %s39_s28 }
  0x81   :  { %p16974_p9 = scmp.ne.s32.totalorder %s39_s28, %s16973_s8  ;;  %p16979_p11 = scmp.lt.s32.totalorder %s16973_s8, %s16973_s8 }
  0x83   :  { %p16980_p12 = por %p16979_p11, %p16978_p10 }
  0x85   :  { %p16981_p13 = pnand %p16980_p12, %p16974_p9 }
  0x87   :  { %16984 = shalt.err (!%p16981_p13)
}
  0x88   :  { %s17138_s16 = smov 64   ;;  %s17139_s21 = smov 4  }
  0x89   :  { %44 = dma.hbm_to_vmem [thread:$0]  %s22022_s22, 320, %s39_s28, [#allocation6], %s17138_s16, %s17138_s16, %s17139_s21  }
  0x8a   :  { %s17140_s4 = smov [#allocation9]   ;;  %s17141_s30 = smov [#allocation12]  }
  0x8b   :  { %s60_s27 = sshll.u32 %s17140_s4, 4  ;;  %s85_s14 = sshll.u32 %s17141_s30, 4  ;;  %s61_s27 = int_to_ptr.vmem [resolvable:$true] %s60_s27  ;;  %s86_s14 = int_to_ptr.vmem [resolvable:$true] %s85_s14 }
  0x8c   :  { %s22023_s0 = sld [smem:[#allocation70_spill]] }
  0x92   :  { %s16985_s1 = scalar_lea.hbm %s22023_s0, 4608 }
  0x93   :  { %p16986_p0 = scmp.ne.s32.totalorder %s22023_s0, %s16985_s1  ;;  %p16989_p1 = scmp.lt.u32.totalorder %s16985_s1, %s22023_s0 }
  0x95   :  { %p16991_p2 = pnand %p16989_p1, %p16986_p0 }
  0x97   :  { %16994 = shalt.err (!%p16991_p2)
}
  0x98   :  { %s16995_s28 = scalar_lea.vmem %s61_s27, 4608  ;;  %p17000_p4 = scmp.lt.s32.totalorder %s61_s27, %s61_s27 }
  0x99   :  { %p16996_p3 = scmp.ne.s32.totalorder %s61_s27, %s16995_s28  ;;  %p17001_p5 = scmp.lt.s32.totalorder %s16995_s28, %s16995_s28 }
  0x9b   :  { %p17002_p6 = por %p17001_p5, %p17000_p4 }
  0x9d   :  { %p17003_p7 = pnand %p17002_p6, %p16996_p3 }
  0x9f   :  { %17006 = shalt.err (!%p17003_p7)
}
  0xa0   :  { %66 = dma.hbm_to_vmem [thread:$0]  %s22023_s0, 4608, %s61_s27, [#allocation8], %s17138_s16, %s17138_s16, %s17139_s21  }
  0xa1   :  { %s17007_s3 = scalar_lea.hbm %s21905_s6, 16 }
  0xa2   :  { %p17008_p8 = scmp.ne.s32.totalorder %s21905_s6, %s17007_s3  ;;  %p17011_p9 = scmp.lt.u32.totalorder %s17007_s3, %s21905_s6 }
  0xa4   :  { %p17013_p10 = pnand %p17011_p9, %p17008_p8 }
  0xa6   :  { %17016 = shalt.err (!%p17013_p10)
}
  0xa7   :  { %s17017_s1 = scalar_lea.vmem %s86_s14, 16  ;;  %s17021_s12 = scalar_lea.vmem %s86_s14, 32 }
  0xa8   :  { %p17018_p11 = scmp.ne.s32.totalorder %s86_s14, %s17017_s1  ;;  %p17022_p12 = scmp.lt.s32.totalorder %s86_s14, %s86_s14 }
  0xa9   :  { %p17023_p13 = scmp.lt.s32.totalorder %s17021_s12, %s17017_s1 }
  0xab   :  { %p17024_p0 = por %p17023_p13, %p17022_p12 }
  0xad   :  { %p17025_p1 = pnand %p17024_p0, %p17018_p11 }
  0xaf   :  { %17028 = shalt.err (!%p17025_p1)
}
  0xb0   :  { %88 = dma.hbm_to_vmem [thread:$0]  %s21905_s6, 16, %s86_s14, [#allocation11]  }
  0xb1   :  { %s17142_s27 = smov [#allocation15]   ;;  %s17029_s23 = scalar_lea.hbm %s21908_s9, 18432 }
  0xb2   :  { %s106_s0 = sshll.u32 %s17142_s27, 4  ;;  %p17030_p2 = scmp.ne.s32.totalorder %s21908_s9, %s17029_s23  ;;  %s107_s0 = int_to_ptr.vmem [resolvable:$true] %s106_s0 }
  0xb3   :  { %p17033_p3 = scmp.lt.u32.totalorder %s17029_s23, %s21908_s9 }
  0xb5   :  { %p17035_p4 = pnand %p17033_p3, %p17030_p2 }
  0xb7   :  { %17038 = shalt.err (!%p17035_p4)
}
  0xb8   :  { %s17039_s29 = scalar_lea.vmem %s107_s0, 18432  ;;  %p17044_p6 = scmp.lt.s32.totalorder %s107_s0, %s107_s0 }
  0xb9   :  { %p17040_p5 = scmp.ne.s32.totalorder %s107_s0, %s17039_s29  ;;  %p17045_p7 = scmp.lt.s32.totalorder %s17039_s29, %s17039_s29 }
  0xbb   :  { %p17046_p8 = por %p17045_p7, %p17044_p6 }
  0xbd   :  { %p17047_p9 = pnand %p17046_p8, %p17040_p5 }
  0xbf   :  { %17050 = shalt.err (!%p17047_p9)
}
  0xc0   :  { %s17143_s6 = smov 128   ;;  %s17144_s14 = smov 8  }
  0xc1   :  { %112 = dma.hbm_to_vmem [thread:$0]  %s21908_s9, 18432, %s107_s0, [#allocation14], %s17143_s6, %s17143_s6, %s17144_s14  }
  0xc2   :  { %s17145_s30 = smov [#allocation18]   ;;  %s17146_s2 = smov [#allocation21]  }
  0xc3   :  { %s132_s26 = sshll.u32 %s17145_s30, 4  ;;  %s154_s1 = sshll.u32 %s17146_s2, 4  ;;  %s133_s26 = int_to_ptr.vmem [resolvable:$true] %s132_s26  ;;  %s17374_s1 = int_to_ptr.vmem [resolvable:$true] %s154_s1 }
  0xc4   :  { %s17051_s21 = scalar_lea.hbm %s21912_s13, 2048 }
  0xc5   :  { %p17052_p10 = scmp.ne.s32.totalorder %s21912_s13, %s17051_s21  ;;  %p17055_p11 = scmp.lt.u32.totalorder %s17051_s21, %s21912_s13 }
  0xc7   :  { %p17057_p12 = pnand %p17055_p11, %p17052_p10 }
  0xc9   :  { %17060 = shalt.err (!%p17057_p12)
}
  0xca   :  { %s17061_s9 = scalar_lea.vmem %s133_s26, 2048  ;;  %p17066_p0 = scmp.lt.s32.totalorder %s133_s26, %s133_s26 }
  0xcb   :  { %p17062_p13 = scmp.ne.s32.totalorder %s133_s26, %s17061_s9  ;;  %p17067_p1 = scmp.lt.s32.totalorder %s17061_s9, %s17061_s9 }
  0xcd   :  { %p17068_p2 = por %p17067_p1, %p17066_p0 }
  0xcf   :  { %p17069_p3 = pnand %p17068_p2, %p17062_p13 }
  0xd1   :  { %17072 = shalt.err (!%p17069_p3)
}
  0xd2   :  { %138 = dma.hbm_to_vmem [thread:$0]  %s21912_s13, 2048, %s133_s26, [#allocation17], %s17143_s6, %s17143_s6, %s17144_s14  }
  0xd3   :  { %s17073_s8 = scalar_lea.hbm %s21914_s15, 4096 }
  0xd4   :  { %p17074_p4 = scmp.ne.s32.totalorder %s21914_s15, %s17073_s8  ;;  %p17077_p5 = scmp.lt.u32.totalorder %s17073_s8, %s21914_s15 }
  0xd6   :  { %p17079_p6 = pnand %p17077_p5, %p17074_p4 }
  0xd8   :  { %17082 = shalt.err (!%p17079_p6)
}
  0xd9   :  { %s17083_s2 = scalar_lea.vmem %s17374_s1, 4096  ;;  %p17088_p8 = scmp.lt.s32.totalorder %s17374_s1, %s17374_s1 }
  0xda   :  { %p17084_p7 = scmp.ne.s32.totalorder %s17374_s1, %s17083_s2  ;;  %p17089_p9 = scmp.lt.s32.totalorder %s17083_s2, %s17083_s2 }
  0xdc   :  { %p17090_p10 = por %p17089_p9, %p17088_p8 }
  0xde   :  { %p17091_p11 = pnand %p17090_p10, %p17084_p7 }
  0xe0   :  { %17094 = shalt.err (!%p17091_p11)
}
  0xe1   :  { %160 = dma.hbm_to_vmem [thread:$0]  %s21914_s15, 4096, %s17374_s1, [#allocation20], %s17143_s6, %s17143_s6, %s17144_s14  }
  0xe2   :  { %s17147_s12 = smov [#allocation24]   ;;  %s17095_s20 = scalar_lea.hbm %s21917_s18, 16 }
  0xe3   :  { %s179_s16 = sshll.u32 %s17147_s12, 4  ;;  %p17096_p12 = scmp.ne.s32.totalorder %s21917_s18, %s17095_s20  ;;  %s180_s16 = int_to_ptr.vmem [resolvable:$true] %s179_s16 }
  0xe4   :  { %p17099_p13 = scmp.lt.u32.totalorder %s17095_s20, %s21917_s18 }
  0xe6   :  { %p17101_p0 = pnand %p17099_p13, %p17096_p12 }
  0xe8   :  { %17104 = shalt.err (!%p17101_p0)
}
  0xe9   :  { %s17105_s28 = scalar_lea.vmem %s180_s16, 16  ;;  %s17109_s15 = scalar_lea.vmem %s180_s16, 32 }
  0xea   :  { %p17106_p1 = scmp.ne.s32.totalorder %s180_s16, %s17105_s28  ;;  %p17110_p2 = scmp.lt.s32.totalorder %s180_s16, %s180_s16 }
  0xeb   :  { %p17111_p3 = scmp.lt.s32.totalorder %s17109_s15, %s17105_s28 }
  0xed   :  { %p17112_p4 = por %p17111_p3, %p17110_p2 }
  0xef   :  { %p17113_p5 = pnand %p17112_p4, %p17106_p1 }
  0xf1   :  { %17116 = shalt.err (!%p17113_p5)
}
  0xf2   :  { %182 = dma.hbm_to_vmem [thread:$0]  %s21917_s18, 16, %s180_s16, [#allocation23]  }
  0xf3   :  { %17117 = dma.done.wait [#allocation6], 320  }
  0xf4   :  { %17118 = vsyncadd [#allocation6], 4294966976 }
  0xf5   :  { %17119 = dma.done.wait [#allocation8], 4624  }
  0xf6   :  { %17120 = vsyncadd [#allocation8], 4294962672 }
  0xf7   :  { %17121 = dma.done.wait [#allocation11], 32  }
  0xf8   :  { %17122 = vsyncadd [#allocation11], 4294967264 }
  0xf9   :  { %17123 = dma.done.wait [#allocation14], 18448  }
  0xfa   :  { %17124 = vsyncadd [#allocation14], 4294948848 }
  0xfb   :  { %17125 = dma.done.wait [#allocation17], 2080  }
  0xfc   :  { %17126 = vsyncadd [#allocation17], 4294965216 }
  0xfd   :  { %17127 = dma.done.wait [#allocation20], 4128  }
  0xfe   :  { %17128 = vsyncadd [#allocation20], 4294963168 }
  0xff   :  { %17129 = dma.done.wait [#allocation23], 48  }
 0x100   :  { %17130 = vsyncadd [#allocation23], 4294967248  ;;  %v21923_v0 = vmov 0.0   ;;  %vm17149_vm0 = vmmov 0   ;;  %v15943_v1 = vld [vmem:[#allocation5] sm:$0xff]   ;;  %v15944_v2 = vld [vmem:[#allocation5 + $0x8] sm:$0xff]   ;;  %v231_v23 = vlaneseq }
 0x101   :  { %14735 = vmatprep.subr.bf16.mxu0 %v21923_v0  ;;  %14741 = vmatprep.mubr.msk.bf16.mxu0 %vm17149_vm0, %v21923_v0  ;;  %v15945_v3 = vld [vmem:[#allocation5 + $0x10] ss:$0 sps:$4 sm:$0x33]   ;;  %vm1394_vm1 = vcmask 1041408   ;;  %s22024_s22 = sld [smem:[#allocation67_spill]]  ;;  %vm1366_vm2 = vcmask 293888  }
 0x102   :  { %15269 = vmatprep.subr.bf16.mxu1 %v21923_v0  ;;  %14761 = vmatprep.mubr.msk.bf16.mxu1 %vm17149_vm0, %v21923_v0  ;;  %v1396_v4 = vsel %vm1394_vm1, %v15945_v3, 0  ;;  %v15955_v7 = vld [vmem:[#allocation9 + $0x20] sm:$0xff]   ;;  %v15956_v15 = vld [vmem:[#allocation9 + $0x28] sm:$0xff]   ;;  %v17150_v16 = vmov 0   ;;  %v15957_v18 = vld [vmem:[#allocation9 + $0x30] sm:$0xff]   ;;  %v17497_v24 = vshrl.u32 %v231_v23, 7 }
 0x103   :  { %14736 = vmatpush3.bf16.msra.mxu0 %v15943_v1  ;;  %15272 = vmatpush3.bf16.msra.mxu1 %v15943_v1  ;;  %223 = vst [vmem:[#allocation2] sm:$0xff] %v17150_v16  ;;  %225 = vst [vmem:[#allocation3] sm:$0xff] %v17150_v16  ;;  %v15958_v17 = vld [vmem:[#allocation9 + $0xa0] sm:$0xff]   ;;  %v15960_v19 = vld [vmem:[#allocation9 + $0xa8] sm:$0xff]  }
 0x104   :  { %14737 = vmatprep.subr.bf16.mxu0 %v21923_v0  ;;  %15270 = vmatprep.subr.bf16.mxu1 %v21923_v0  ;;  %226 = vst [vmem:[#allocation3 + $0x8] sm:$0xff] %v17150_v16  ;;  %227 = vst [vmem:[#allocation2 + $0xa0] sm:$0xff] %v17150_v16  ;;  %v15959_v20 = vld [vmem:[#allocation9 + $0x38] sm:$0xff]   ;;  %v15961_v21 = vld [vmem:[#allocation9 + $0xb0] sm:$0xff]   ;;  %v235_v25 = vadd.s32 24, %v17497_v24  ;;  %v236_v27 = vadd.s32 32, %v17497_v24 }
 0x105   :  { %229 = vst [vmem:[#allocation3 + $0xa0] sm:$0xff] %v17150_v16  ;;  %230 = vst [vmem:[#allocation3 + $0xa8] sm:$0xff] %v17150_v16  ;;  %v15963_v22 = vld [vmem:[#allocation9 + $0xb8] sm:$0xff]   ;;  %v233_v28 = vadd.s32 8, %v17497_v24  ;;  %v234_v29 = vadd.s32 16, %v17497_v24  ;;  %vm268_vm6 = vcmp.lt.s32.totalorder %v17497_v24, 7 }
 0x106   :  { %22025 = vst [vmem:[#allocation32_spill] sm:$0xff] %v17497_v24  ;;  %vm397_vm3 = vcmp.lt.s32.totalorder %v235_v25, 25  ;;  %vm451_vm4 = vcmp.ge.s32.totalorder %v235_v25, 27  ;;  %vm470_vm7 = vcmp.lt.s32.totalorder %v236_v27, 34  ;;  %vm524_vm8 = vcmp.ge.s32.totalorder %v236_v27, 36 }
 0x107   :  { %14738 = vmatpush3.bf16.msra.mxu0 %v15944_v2  ;;  %15273 = vmatpush3.bf16.msra.mxu1 %v15944_v2  ;;  %v15946_v5 = vld [vmem:[%s22024_s22] sm:$0xff]   ;;  %v15950_v6 = vld [vmem:[%s22024_s22 + $0x28] sm:$0xff]   ;;  %v15952_v9 = vld [vmem:[%s22024_s22 + $0x30] sm:$0xff]   ;;  %v242_v30 = vadd.s32 80, %v17497_v24  ;;  %vm305_vm9 = vcmp.ge.s32.totalorder %v233_v28, 9  ;;  %vm378_vm10 = vcmp.ge.s32.totalorder %v234_v29, 18 }
 0x108   :  { %14739 = vmatprep.subr.bf16.mxu0 %v21923_v0  ;;  %15271 = vmatprep.subr.bf16.mxu1 %v21923_v0  ;;  %v15947_v8 = vld [vmem:[%s22024_s22 + $0x8] sm:$0xff]   ;;  %v15948_v10 = vld [vmem:[%s22024_s22 + $0x10] sm:$0xff]   ;;  %v15953_v11 = vld [vmem:[%s22024_s22 + $0x38] sm:$0xff]   ;;  %v237_v31 = vadd.s32 40, %v17497_v24  ;;  %v238_v32 = vadd.s32 48, %v17497_v24  ;;  %v243_v33 = vadd.s32 88, %v17497_v24 }
 0x109   :  { %v15949_v12 = vld [vmem:[%s22024_s22 + $0x18] sm:$0xff]   ;;  %v15954_v13 = vld [vmem:[%s22024_s22 + $0x40] sm:$0xff]   ;;  %vm17500_vm5 = vmor %vm397_vm3, %vm451_vm4  ;;  %v17513_v34 = vsel %vm268_vm6, 1.0, %v21923_v0  ;;  %v245_v36 = vadd.s32 104, %v17497_v24  ;;  %v17523_v38 = vsel %vm305_vm9, 1.0, %v21923_v0  ;;  %v17526_v39 = vsel %vm378_vm10, 1.0, %v21923_v0 }
 0x10a   :  { %v15951_v14 = vld [vmem:[%s22024_s22 + $0x20] sm:$0xff]   ;;  %22028 = vst [vmem:[#allocation33_spill] sm:$0xff] %v17513_v34  ;;  %vm17515_vm11 = vmor %vm470_vm7, %vm524_vm8  ;;  %v17520_v37 = vld [vmem:[#allocation7] ss:$0 sm:$0xff]  ;;  %vm764_vm12 = vcmp.lt.s32.totalorder %v242_v30, 87  ;;  %v17531_v40 = vsel %vm17500_vm5, 1.0, %v21923_v0 }
 0x10b   :  { %14740 = vmatpush3.bf16.msra.mxu0 %v1396_v4  ;;  %15274 = vmatpush3.bf16.msra.mxu1 %v1396_v4  ;;  %22031 = vst [vmem:[#allocation34_spill] sm:$0xff] %v17523_v38  ;;  %22032 = vst [vmem:[#allocation35_spill] sm:$0xff] %v17526_v39  ;;  %vm543_vm13 = vcmp.lt.s32.totalorder %v237_v31, 43  ;;  %v244_v41 = vadd.s32 96, %v17497_v24  ;;  %vm597_vm14 = vcmp.ge.s32.totalorder %v237_v31, 45  ;;  %vm616_vm15 = vcmp.lt.s32.totalorder %v238_v32, 52 }
 0x10c   :  { %14777 = vmatprep.subr.bf16.mxu1 %v21923_v0  ;;  %14997 = vmatprep.subr.bf16.mxu0 %v21923_v0  ;;  %22033 = vst [vmem:[#allocation36_spill] sm:$0xff] %v17531_v40  ;;  %vm819_vm1 = vcmp.ge.s32.totalorder %v243_v33, 89  ;;  %v17535_v42 = vsel %vm764_vm12, 1.0, %v21923_v0  ;;  %vm965_vm3 = vcmp.ge.s32.totalorder %v245_v36, 107  ;;  %vm1548_vm4 = vcmask 523264   ;;  %vm17546_vm6 = vmor %vm543_vm13, %vm597_vm14 }
 0x10d   :  { %22034 = vst [vmem:[#allocation37_spill] sm:$0xff] %v17535_v42  ;;  %v17537_v44 = vld [vmem:[#allocation2] sm:$0xf8]  ;;  %v246_v46 = vadd.s32 112, %v17497_v24  ;;  %vm892_vm5 = vcmp.ge.s32.totalorder %v244_v41, 98  ;;  %v247_v53 = vadd.s32 120, %v17497_v24 }
 0x10e   :  { %14742 = vmatmul.mubr.msk.bf16.vlgmr.msra.gmra.mrb[0].mxu0 %vm1366_vm2, %v15946_v5  ;;  %14762 = vmatmul.mubr.msk.bf16.vlgmr.msra.gmra.mrb[0].mxu1 %vm1366_vm2, %v15950_v6  ;;  %vm670_vm7 = vcmp.ge.s32.totalorder %v238_v32, 54  ;;  %v17553_v61 = vsel %vm819_vm1, 1.0, %v21923_v0  ;;  %v1588_v1 = vshrl.u32 %v17537_v44, 16  ;;  %v17566_v4 = vsel %vm17515_vm11, 1.0, %v21923_v0 }
 0x10f   :  { %14745 = vmatprep.mubr.msk.bf16.mxu0 %vm17149_vm0, %v21923_v0  ;;  %14765 = vmatprep.mubr.msk.bf16.mxu1 %vm17149_vm0, %v21923_v0  ;;  %22037 = vst [vmem:[#allocation38_spill] sm:$0xff] %v17553_v61  ;;  %vm984_vm9 = vcmp.lt.s32.totalorder %v246_v46, 114  ;;  %vm1038_vm10 = vcmp.ge.s32.totalorder %v246_v46, 116  ;;  %22040 = vst [vmem:[#allocation39_spill] sm:$0xff] %v17566_v4  ;;  %v1591_v5 = vshll.u32 %v17537_v44, 16  ;;  %v17571_v6 = vsel %vm892_vm5, 1.0, %v21923_v0 }
 0x110   :  { %14778 = vmatpush3.bf16.msra.mxu1 %v15955_v7  ;;  %14998 = vmatpush3.bf16.msra.mxu0 %v15958_v17  ;;  %22041 = vst [vmem:[#allocation40_spill] sm:$0xff] %v17571_v6  ;;  %vm17576_vm12 = vmor %vm616_vm15, %vm670_vm7  ;;  %vm1057_vm11 = vcmp.lt.s32.totalorder %v247_v53, 123  ;;  %vm1111_vm14 = vcmp.ge.s32.totalorder %v247_v53, 125  ;;  %v1590_v31 = vrot.slane %v1588_v1, 3  ;;  %vm1586_vm1 = vsmask.f32 4352 }
 0x111   :  { %14779 = vmatprep.subr.bf16.mxu1 %v21923_v0  ;;  %14999 = vmatprep.subr.bf16.mxu0 %v21923_v0  ;;  %vm17581_vm13 = vmor %vm984_vm9, %vm1038_vm10  ;;  %v1593_v32 = vrot.slane %v1591_v5, 4  ;;  %vm2639_vm7 = vsmask.f32 7424  ;;  %vm3114_vm9 = vsmask.f32 3328 }
 0x112   :  { %vm17594_vm15 = vmor %vm1057_vm11, %vm1111_vm14  ;;  %vm2235_vm10 = vsmask.f32 256  ;;  %vm3350_vm11 = vcmask 1042432  }
 0x114   :  { %14780 = vmatpush3.bf16.msra.mxu1 %v15956_v15  ;;  %15000 = vmatpush3.bf16.msra.mxu0 %v15960_v19 }
 0x115   :  { %14781 = vmatprep.subr.bf16.mxu1 %v21923_v0  ;;  %15001 = vmatprep.subr.bf16.mxu0 %v21923_v0 }
 0x116   :  { %14746 = vmatmul.mubr.msk.bf16.gmra.mrb[4].mxu0 %vm1366_vm2, %v15947_v8  ;;  %14766 = vmatmul.mubr.msk.bf16.gmra.mrb[4].mxu1 %vm1366_vm2, %v15952_v9 }
 0x117   :  { %14749 = vmatprep.mubr.msk.bf16.mxu0 %vm17149_vm0, %v21923_v0  ;;  %14769 = vmatprep.mubr.msk.bf16.mxu1 %vm17149_vm0, %v21923_v0 }
 0x118   :  { %14782 = vmatpush3.bf16.msra.mxu1 %v15957_v18  ;;  %15002 = vmatpush3.bf16.msra.mxu0 %v15961_v21 }
 0x119   :  { %14783 = vmatprep.subr.bf16.mxu1 %v21923_v0  ;;  %15003 = vmatprep.subr.bf16.mxu0 %v21923_v0 }
 0x11c   :  { %14784 = vmatpush3.bf16.msra.mxu1 %v15959_v20  ;;  %15004 = vmatpush3.bf16.msra.mxu0 %v15963_v22  ;;  %v248_v22 = vadd.s32 128, %v17497_v24 }
 0x11d   :  { %14821 = vmatprep.subr.bf16.mxu1 %v21923_v0  ;;  %15085 = vmatprep.subr.bf16.mxu0 %v21923_v0 }
 0x11e   :  { %14750 = vmatmul.mubr.msk.bf16.gmra.mrb[8].mxu0 %vm1366_vm2, %v15948_v10  ;;  %14770 = vmatmul.mubr.msk.bf16.gmra.mrb[8].mxu1 %vm1366_vm2, %v15953_v11 }
 0x11f   :  { %14753 = vmatprep.mubr.msk.bf16.mxu0 %vm17149_vm0, %v21923_v0  ;;  %14773 = vmatprep.mubr.msk.bf16.mxu1 %vm17149_vm0, %v21923_v0 }
 0x126   :  { %14754 = vmatmul.mubr.msk.bf16.gmra.mrb[12].mxu0 %vm1366_vm2, %v15949_v12  ;;  %14774 = vmatmul.mubr.msk.bf16.gmra.mrb[12].mxu1 %vm1366_vm2, %v15954_v13 }
 0x127   :  { %14757 = vmatprep.mubr.msk.bf16.mxu0 %vm17149_vm0, %v21923_v0  ;;  %14785 = vmatprep.mubr.msk.bf16.mxu1 %vm17149_vm0, %v21923_v0 }
 0x12e   :  { %14758 = vmatmul.mubr.msk.bf16.gmra.mrb[16].mxu0 %vm1366_vm2, %v15951_v14  ;;  %vm911_vm2 = vcmp.lt.s32.totalorder %v245_v36, 105  ;;  %v17606_v36 = vsel %vm17546_vm6, 1.0, %v21923_v0 }
 0x12f   :  { %15005 = vmatprep.mubr.msk.bf16.mxu0 %vm17149_vm0, %v21923_v0  ;;  %vm17557_vm8 = vmor %vm911_vm2, %vm965_vm3  ;;  %22049 = vst [vmem:[#allocation42_spill] sm:$0xff] %v17606_v36  ;;  %vm1130_vm2 = vcmp.lt.s32.totalorder %v248_v22, 132  ;;  %vm1184_vm3 = vcmp.ge.s32.totalorder %v248_v22, 134 }
 0x130   :  { %v17601_v33 = vsel %vm17557_vm8, 1.0, %v21923_v0  ;;  %vm17648_vm6 = vmor %vm1130_vm2, %vm1184_vm3 }
 0x131   :  { %22048 = vst [vmem:[#allocation41_spill] sm:$0xff] %v17601_v33 }
 0x1e1   :  { %v1432_v43 = vpop.f32.mrb[0].mxu0  ;;  %v1472_v45 = vpop.f32.mrb[0].mxu1 }
 0x1e2   :  { %v1433_v47 = vadd.f32 %v17520_v37, %v1432_v43  ;;  %v14743_v48 = vpop.f32.mrb[1].mxu0  ;;  %v1473_v49 = vadd.f32 %v17520_v37, %v1472_v45  ;;  %v14763_v50 = vpop.f32.mrb[1].mxu1  ;;  %v17610_v45 = vadd.s32 56, %v17497_v24 }
 0x1e3   :  { %v1435_v51 = vpop.f32.mrb[2].mxu0  ;;  %v1475_v52 = vpop.f32.mrb[2].mxu1 }
 0x1e4   :  { %v1503_v54 = vmax.f32 %v1433_v47, 0.0  ;;  %v1436_v55 = vadd.f32 %v17520_v37, %v1435_v51  ;;  %v14744_v56 = vpop.f32.mrb[3].mxu0  ;;  %v1513_v58 = vmax.f32 %v1473_v49, 0.0  ;;  %v1476_v59 = vadd.f32 %v17520_v37, %v1475_v52  ;;  %v14764_v60 = vpop.f32.mrb[3].mxu1 }
 0x1e5   :  { %v17627_v60 = vsel %vm17581_vm13, 1.0, %v21923_v0  ;;  %vm689_vm5 = vcmp.lt.s32.totalorder %v17610_v45, 61  ;;  %vm2030_vm13 = vcmask 1043456  }
 0x1e6   :  { %v1504_v63 = vmax.f32 %v1436_v55, 0.0  ;;  %v1531_v2 = vmul.f32 %v17535_v42, %v1513_v58  ;;  %v1514_v3 = vmax.f32 %v1476_v59, 0.0  ;;  %v1521_v7 = vmul.f32 %v17513_v34, %v1503_v54  ;;  %22051 = vst [vmem:[#allocation44_spill] sm:$0xff] %v17627_v60 }
 0x1e7   :  { %v17620_v58 = vsel %vm17576_vm12, 1.0, %v21923_v0  ;;  %vm1842_vm12 = vcmask 1044480  }
 0x1e8   :  { %v1522_v8 = vmul.f32 %v17523_v38, %v1504_v63  ;;  %v1532_v10 = vmul.f32 %v17553_v61, %v1514_v3  ;;  %22050 = vst [vmem:[#allocation43_spill] sm:$0xff] %v17620_v58  ;;  %v249_v63 = vadd.s32 136, %v17497_v24 }
 0x1e9   :  { %v1440_v12 = vpop.f32.mrb[4].mxu0  ;;  %v1480_v13 = vpop.f32.mrb[4].mxu1 }
 0x1ea   :  { %v1539_v14 = vpack.c.bf16 %v1522_v8, %v1521_v7  ;;  %v1441_v15 = vadd.f32 %v17520_v37, %v1440_v12  ;;  %v14747_v16 = vpop.f32.mrb[5].mxu0  ;;  %v1544_v17 = vpack.c.bf16 %v1532_v10, %v1531_v2  ;;  %v1481_v18 = vadd.f32 %v17520_v37, %v1480_v13  ;;  %v14767_v19 = vpop.f32.mrb[5].mxu1 }
 0x1eb   :  { %v1443_v20 = vpop.f32.mrb[6].mxu0  ;;  %v1483_v21 = vpop.f32.mrb[6].mxu1  ;;  %v17643_v10 = vsel %vm17594_vm15, 1.0, %v21923_v0  ;;  %vm1203_vm8 = vcmp.lt.s32.totalorder %v249_v63, 141 }
 0x1ec   :  { %1549 = vst.msk [vmem:[#allocation2 + $0x10] sm:$0xff] %vm1548_vm4, %v1539_v14  ;;  %v1505_v23 = vmax.f32 %v1441_v15, 0.0  ;;  %v1444_v25 = vadd.f32 %v17520_v37, %v1443_v20  ;;  %v14748_v26 = vpop.f32.mrb[7].mxu0  ;;  %1554 = vst.msk [vmem:[#allocation2 + $0x60] sm:$0xff] %vm1548_vm4, %v1544_v17  ;;  %v1515_v27 = vmax.f32 %v1481_v18, 0.0  ;;  %v1484_v28 = vadd.f32 %v17520_v37, %v1483_v21  ;;  %v14768_v29 = vpop.f32.mrb[7].mxu1 }
 0x1ed   :  { %22052 = vst [vmem:[#allocation45_spill] sm:$0xff] %v17643_v10  ;;  %v1594_v14 = vor.u32 %v1593_v32, %v1590_v31  ;;  %v15962_v17 = vld [vmem:[#allocation9] sm:$0xff]  }
 0x1ee   :  { %v1506_v35 = vmax.f32 %v1444_v25, 0.0  ;;  %v1533_v41 = vmul.f32 %v17571_v6, %v1515_v27  ;;  %v1516_v43 = vmax.f32 %v1484_v28, 0.0  ;;  %v1523_v46 = vmul.f32 %v17526_v39, %v1505_v23 }
 0x1f0   :  { %v1524_v47 = vmul.f32 %v17531_v40, %v1506_v35  ;;  %v1534_v48 = vmul.f32 %v17601_v33, %v1516_v43 }
 0x1f1   :  { %v1448_v49 = vpop.f32.mrb[8].mxu0  ;;  %v1488_v50 = vpop.f32.mrb[8].mxu1 }
 0x1f2   :  { %v1540_v51 = vpack.c.bf16 %v1524_v47, %v1523_v46  ;;  %v1449_v52 = vadd.f32 %v17520_v37, %v1448_v49  ;;  %v14751_v53 = vpop.f32.mrb[9].mxu0  ;;  %v1545_v54 = vpack.c.bf16 %v1534_v48, %v1533_v41  ;;  %v1489_v55 = vadd.f32 %v17520_v37, %v1488_v50  ;;  %v14771_v56 = vpop.f32.mrb[9].mxu1  ;;  %v15964_v46 = vld [vmem:[#allocation9 + $0x8] sm:$0xff]  }
 0x1f3   :  { %v1451_v57 = vpop.f32.mrb[10].mxu0  ;;  %v17622_v59 = vld [vmem:[#allocation2 + $0x10] sm:$0xff]  ;;  %v1491_v62 = vpop.f32.mrb[10].mxu1  ;;  %v17668_v48 = vsel %vm17648_vm6, 1.0, %v21923_v0  ;;  %v17683_v56 = vsel %vm689_vm5, 1.0, %v21923_v0 }
 0x1f4   :  { %1550 = vst.msk [vmem:[#allocation2 + $0x20] sm:$0xff] %vm1548_vm4, %v1540_v51  ;;  %v1507_v1 = vmax.f32 %v1449_v52, 0.0  ;;  %v1452_v2 = vadd.f32 %v17520_v37, %v1451_v57  ;;  %v14752_v3 = vpop.f32.mrb[11].mxu0  ;;  %v17633_v5 = vshrl.u32 %v17622_v59, 16  ;;  %v17636_v7 = vshll.u32 %v17622_v59, 16  ;;  %1555 = vst.msk [vmem:[#allocation2 + $0x70] sm:$0xff] %vm1548_vm4, %v1545_v54 }
 0x1f5   :  { %v14772_v8 = vpop.f32.mrb[11].mxu1  ;;  %v1517_v9 = vmax.f32 %v1489_v55, 0.0  ;;  %v1492_v11 = vadd.f32 %v17520_v37, %v1491_v62  ;;  %22055 = vst [vmem:[#allocation46_spill] sm:$0xff] %v17668_v48  ;;  %22056 = vst [vmem:[#allocation47_spill] sm:$0xff] %v17683_v56  ;;  %v17689_v62 = vsel %vm1203_vm8, 1.0, %v21923_v0 }
 0x1f6   :  { %v1508_v13 = vmax.f32 %v1452_v2, 0.0  ;;  %v1598_v15 = vrot.slane %v17633_v5, 3  ;;  %v1601_v16 = vrot.slane %v17636_v7, 4  ;;  %v1525_v20 = vmul.f32 %v17566_v4, %v1507_v1  ;;  %22057 = vst [vmem:[#allocation48_spill] sm:$0xff] %v17689_v62  ;;  %v15967_v2 = vld [vmem:[#allocation9 + $0xe0] sm:$0xff]  }
 0x1f7   :  { %v1535_v18 = vmul.f32 %v17627_v60, %v1517_v9  ;;  %v1518_v19 = vmax.f32 %v1492_v11, 0.0  ;;  %v2645_v25 = vrot.slane %v17636_v7, 1 }
 0x1f8   :  { %v1526_v21 = vmul.f32 %v17606_v36, %v1508_v13  ;;  %v1602_v22 = vor.u32 %v1601_v16, %v1598_v15 }
 0x1f9   :  { %v1456_v23 = vpop.f32.mrb[12].mxu0  ;;  %v1536_v26 = vmul.f32 %v17643_v10, %v1518_v19  ;;  %v1496_v27 = vpop.f32.mrb[12].mxu1  ;;  %v2646_v8 = vor.u32 %v2645_v25, %v17633_v5  ;;  %v22058_v10 = vmov 0.0  }
 0x1fa   :  { %v1541_v28 = vpack.c.bf16 %v1526_v21, %v1525_v20  ;;  %v1457_v29 = vadd.f32 %v17520_v37, %v1456_v23  ;;  %v14755_v30 = vpop.f32.mrb[13].mxu0  ;;  %v1603_v31 = vsel %vm1586_vm1, %v1594_v14, %v1602_v22  ;;  %v1497_v32 = vadd.f32 %v17520_v37, %v1496_v27  ;;  %v14775_v35 = vpop.f32.mrb[13].mxu1  ;;  %v15965_v14 = vld [vmem:[#allocation9 + $0x10] sm:$0xff]   ;;  %v15968_v20 = vld [vmem:[#allocation9 + $0xe8] sm:$0xff]  }
 0x1fb   :  { %v1459_v41 = vpop.f32.mrb[14].mxu0  ;;  %14786 = vmatmul.mubr.msk.bf16.vlgmr.msra.gmra.mrb[16].mxu1 %vm1548_vm4, %v1603_v31  ;;  %v17663_v43 = vld [vmem:[#allocation2 + $0x20] sm:$0xff]  ;;  %v1546_v47 = vpack.c.bf16 %v1536_v26, %v1535_v18  ;;  %v1499_v49 = vpop.f32.mrb[14].mxu1 }
 0x1fc   :  { %1551 = vst.msk [vmem:[#allocation2 + $0x30] sm:$0xff] %vm1548_vm4, %v1541_v28  ;;  %v1509_v50 = vmax.f32 %v1457_v29, 0.0  ;;  %v1460_v51 = vadd.f32 %v17520_v37, %v1459_v41  ;;  %14822 = vmatpush3.bf16.msra.mxu1 %v15962_v17  ;;  %v14756_v52 = vpop.f32.mrb[15].mxu0  ;;  %v17673_v53 = vshll.u32 %v17663_v43, 16  ;;  %14789 = vmatprep.mubr.msk.bf16.mxu1 %vm17149_vm0, %v21923_v0  ;;  %v17678_v54 = vshrl.u32 %v17663_v43, 16  ;;  %v14776_v55 = vpop.f32.mrb[15].mxu1 }
 0x1fd   :  { %14823 = vmatprep.subr.bf16.mxu1 %v21923_v0  ;;  %1556 = vst.msk [vmem:[#allocation2 + $0x80] sm:$0xff] %vm1548_vm4, %v1546_v47  ;;  %v1519_v57 = vmax.f32 %v1497_v32, 0.0  ;;  %v1500_v1 = vadd.f32 %v17520_v37, %v1499_v49  ;;  %v15969_v52 = vld [vmem:[#allocation9 + $0xf0] sm:$0xff]  }
 0x1fe   :  { %v1510_v3 = vmax.f32 %v1460_v51, 0.0  ;;  %v2650_v9 = vrot.slane %v17673_v53, 1  ;;  %v1607_v45 = vrot.slane %v17678_v54, 3  ;;  %v1610_v11 = vrot.slane %v17673_v53, 4  ;;  %v18311_v4 = vld [vmem:[#allocation2 + $0x20] sm:$0xff] }
 0x1ff   :  { %v1537_v12 = vmul.f32 %v17668_v48, %v1519_v57  ;;  %v1520_v13 = vmax.f32 %v1500_v1, 0.0  ;;  %v1527_v63 = vmul.f32 %v17620_v58, %v1509_v50  ;;  %v3123_v50 = vrot.slane %v17678_v54, 4  ;;  %v16803_v58 = vld [vmem:[#allocation2 + $0x10] sm:$0xff] }
 0x200   :  { %v1528_v15 = vmul.f32 %v17683_v56, %v1510_v3  ;;  %v2651_v16 = vsel %vm2639_vm7, %v2646_v8, %v2650_v9  ;;  %14824 = vmatpush3.bf16.msra.mxu1 %v15964_v46  ;;  %v1611_v18 = vor.u32 %v1610_v11, %v1607_v45  ;;  %v15966_v46 = vld [vmem:[#allocation9 + $0x18] sm:$0xff]   ;;  %v17731_v3 = vld [vmem:[#allocation2 + $0x60] sm:$0xff]  ;;  %v15987_v56 = vld [vmem:[#allocation9 + $0xc0] sm:$0xff]  }
 0x201   :  { %v1464_v17 = vpop.f32.mrb[16].mxu0  ;;  %15006 = vmatmul.mubr.msk.bf16.vlgmr.msra.gmra.mrb[20].mxu0 %vm1548_vm4, %v2651_v16  ;;  %v1538_v19 = vmul.f32 %v17689_v62, %v1520_v13  ;;  %14825 = vmatprep.subr.bf16.mxu1 %v21923_v0  ;;  %v15971_v8 = vld [vmem:[#allocation9 + $0xf8] sm:$0xff]  }
 0x202   :  { %v1542_v21 = vpack.c.bf16 %v1528_v15, %v1527_v63  ;;  %v1465_v23 = vadd.f32 %v17520_v37, %v1464_v17  ;;  %v14759_v25 = vpop.f32.mrb[17].mxu0  ;;  %15009 = vmatprep.mubr.msk.bf16.mxu0 %vm17149_vm0, %v21923_v0  ;;  %v1612_v27 = vsel %vm1586_vm1, %v1602_v22, %v1611_v18  ;;  %15086 = vmatpush3.bf16.msra.mxu0 %v15967_v2  ;;  %v17756_v17 = vshll.u32 %v17731_v3, 16 }
 0x203   :  { %v1467_v26 = vpop.f32.mrb[18].mxu0  ;;  %v17707_v28 = vld [vmem:[#allocation2 + $0x30] sm:$0xff]  ;;  %v1547_v29 = vpack.c.bf16 %v1538_v19, %v1537_v12  ;;  %14790 = vmatmul.mubr.msk.bf16.gmra.mrb[20].mxu1 %vm1548_vm4, %v1612_v27  ;;  %15087 = vmatprep.subr.bf16.mxu0 %v21923_v0 }
 0x204   :  { %1552 = vst.msk [vmem:[#allocation2 + $0x40] sm:$0xff] %vm1548_vm4, %v1542_v21  ;;  %v1511_v30 = vmax.f32 %v1465_v23, 0.0  ;;  %v1468_v31 = vadd.f32 %v17520_v37, %v1467_v26  ;;  %v14760_v32 = vpop.f32.mrb[19].mxu0  ;;  %v17713_v35 = vshll.u32 %v17707_v28, 16  ;;  %v17716_v41 = vshrl.u32 %v17707_v28, 16  ;;  %14793 = vmatprep.mubr.msk.bf16.mxu1 %vm17149_vm0, %v21923_v0  ;;  %14826 = vmatpush3.bf16.msra.mxu1 %v15965_v14  ;;  %v17767_v27 = vld [vmem:[#allocation2 + $0x70] sm:$0xff] }
 0x205   :  { %1557 = vst.msk [vmem:[#allocation2 + $0x90] sm:$0xff] %vm1548_vm4, %v1547_v29  ;;  %v2654_v37 = vor.u32 %v2650_v9, %v17678_v54  ;;  %14827 = vmatprep.subr.bf16.mxu1 %v21923_v0  ;;  %v3124_v9 = vrot.slane %v17673_v53, 5  ;;  %v17771_v32 = vshll.u32 %v17767_v27, 16 }
 0x206   :  { %v1512_v22 = vmax.f32 %v1468_v31, 0.0  ;;  %v2658_v47 = vrot.slane %v17713_v35, 1  ;;  %v1616_v49 = vrot.slane %v17716_v41, 3  ;;  %v1619_v51 = vrot.slane %v17713_v35, 4  ;;  %15088 = vmatpush3.bf16.msra.mxu0 %v15968_v20 }
 0x207   :  { %v1529_v55 = vmul.f32 0.0, %v1511_v30  ;;  %15089 = vmatprep.subr.bf16.mxu0 %v21923_v0  ;;  %v17740_v13 = vor.u32 %v3124_v9, %v3123_v50  ;;  %v3127_v14 = vrot.slane %v17716_v41, 4  ;;  %v3128_v16 = vrot.slane %v17713_v35, 5 }
 0x208   :  { %v1530_v57 = vmul.f32 0.0, %v1512_v22  ;;  %v2659_v1 = vsel %vm2639_vm7, %v2654_v37, %v2658_v47  ;;  %v1620_v2 = vor.u32 %v1619_v51, %v1616_v49  ;;  %14828 = vmatpush3.bf16.msra.mxu1 %v15966_v46  ;;  %v2662_v19 = vor.u32 %v2658_v47, %v17716_v41  ;;  %v17773_v46 = vld [vmem:[#allocation2 + $0x80] sm:$0xff] }
 0x209   :  { %15010 = vmatmul.mubr.msk.bf16.gmra.mrb[24].mxu0 %vm1548_vm4, %v2659_v1  ;;  %14865 = vmatprep.subr.bf16.mxu1 %v21923_v0  ;;  %v3129_v29 = vor.u32 %v3128_v16, %v3127_v14  ;;  %v17789_v51 = vshrl.u32 %v17767_v27, 16  ;;  %v3140_v14 = vrot.slane %v17756_v17, 5  ;;  %v3144_v62 = vrot.slane %v17771_v32, 5 }
 0x20a   :  { %v1543_v45 = vpack.c.bf16 %v1530_v57, %v1529_v55  ;;  %15013 = vmatprep.mubr.msk.bf16.mxu0 %vm17149_vm0, %v21923_v0  ;;  %v1621_v11 = vsel %vm1586_vm1, %v1611_v18, %v1620_v2  ;;  %15090 = vmatpush3.bf16.msra.mxu0 %v15969_v52  ;;  %v17759_v18 = vshrl.u32 %v17731_v3, 16  ;;  %v17792_v52 = vshll.u32 %v17773_v46, 16 }
 0x20b   :  { %v17738_v12 = vld [vmem:[#allocation2 + $0x40] sm:$0xff]  ;;  %14794 = vmatmul.mubr.msk.bf16.gmra.mrb[24].mxu1 %vm1548_vm4, %v1621_v11  ;;  %15091 = vmatprep.subr.bf16.mxu0 %v21923_v0  ;;  %v17779_v22 = vsel %vm3114_vm9, %v17740_v13, %v3129_v29  ;;  %v3143_v16 = vrot.slane %v17789_v51, 4 }
 0x20c   :  { %1553 = vst.msk [vmem:[#allocation2 + $0x50] sm:$0xff] %vm1548_vm4, %v1543_v45  ;;  %v17746_v63 = vshll.u32 %v17738_v12, 16  ;;  %v17749_v15 = vshrl.u32 %v17738_v12, 16  ;;  %14797 = vmatprep.mubr.msk.bf16.mxu1 %vm17149_vm0, %v21923_v0  ;;  %v1643_v26 = vrot.slane %v17759_v18, 3  ;;  %v3139_v55 = vrot.slane %v17759_v18, 4 }
 0x20e   :  { %v2666_v20 = vrot.slane %v17746_v63, 1  ;;  %v1625_v21 = vrot.slane %v17749_v15, 3  ;;  %v1628_v23 = vrot.slane %v17746_v63, 4  ;;  %15092 = vmatpush3.bf16.msra.mxu0 %v15971_v8  ;;  %v3131_v47 = vrot.slane %v17749_v15, 4  ;;  %v17805_v8 = vld [vmem:[#allocation2 + $0x90] sm:$0xff] }
 0x20f   :  { %15173 = vmatprep.subr.bf16.mxu0 %v21923_v0  ;;  %v3132_v49 = vrot.slane %v17746_v63, 5  ;;  %v17811_v11 = vshll.u32 %v17805_v8, 16  ;;  %v17832_v60 = vshrl.u32 %v17805_v8, 16 }
 0x210   :  { %v2667_v30 = vsel %vm2639_vm7, %v2662_v19, %v2666_v20  ;;  %v1629_v31 = vor.u32 %v1628_v23, %v1625_v21  ;;  %v2670_v45 = vor.u32 %v2666_v20, %v17749_v15 }
 0x211   :  { %15014 = vmatmul.mubr.msk.bf16.gmra.mrb[28].mxu0 %vm1548_vm4, %v2667_v30  ;;  %v3133_v9 = vor.u32 %v3132_v49, %v3131_v47  ;;  %v3141_v47 = vor.u32 %v3140_v14, %v3139_v55  ;;  %v3148_v55 = vrot.slane %v17792_v52, 5 }
 0x212   :  { %v1630_v37 = vsel %vm1586_vm1, %v1620_v2, %v1629_v31  ;;  %15017 = vmatprep.mubr.msk.bf16.mxu0 %vm17149_vm0, %v21923_v0  ;;  %v17803_v2 = vshrl.u32 %v17773_v46, 16 }
 0x213   :  { %v17786_v50 = vld [vmem:[#allocation2 + $0x50] sm:$0xff]  ;;  %14798 = vmatmul.mubr.msk.bf16.gmra.mrb[28].mxu1 %vm1548_vm4, %v1630_v37  ;;  %v17819_v30 = vsel %vm3114_vm9, %v3129_v29, %v3133_v9 }
 0x214   :  { %v17797_v57 = vshll.u32 %v17786_v50, 16  ;;  %v17800_v1 = vshrl.u32 %v17786_v50, 16  ;;  %14801 = vmatprep.mubr.msk.bf16.mxu1 %vm17149_vm0, %v21923_v0  ;;  %v1646_v0 = vrot.slane %v17756_v17, 4  ;;  %v3147_v48 = vrot.slane %v17803_v2, 4 }
 0x216   :  { %v2674_v19 = vrot.slane %v17797_v57, 1  ;;  %v1634_v21 = vrot.slane %v17800_v1, 3  ;;  %v1637_v23 = vrot.slane %v17797_v57, 4  ;;  %v3135_v20 = vrot.slane %v17800_v1, 4 }
 0x217   :  { %v3136_v37 = vrot.slane %v17797_v57, 5 }
 0x218   :  { %v2675_v49 = vsel %vm2639_vm7, %v2670_v45, %v2674_v19  ;;  %v1638_v25 = vor.u32 %v1637_v23, %v1634_v21  ;;  %v3145_v21 = vor.u32 %v3144_v62, %v3143_v16  ;;  %v2678_v23 = vor.u32 %v2674_v19, %v17800_v1 }
 0x219   :  { %15018 = vmatmul.mubr.msk.bf16.gmra.mrb[32].mxu0 %vm1548_vm4, %v2675_v49  ;;  %v3137_v24 = vor.u32 %v3136_v37, %v3135_v20  ;;  %v3151_v20 = vrot.slane %v17832_v60, 4  ;;  %v3152_v37 = vrot.slane %v17811_v11, 5  ;;  %v1647_v62 = vor.u32 %v1646_v0, %v1643_v26 }
 0x21a   :  { %v1639_v29 = vsel %vm1586_vm1, %v1629_v31, %v1638_v25  ;;  %15021 = vmatprep.mubr.msk.bf16.mxu0 %vm17149_vm0, %v22058_v10  ;;  %v3149_v31 = vor.u32 %v3148_v55, %v3147_v48  ;;  %v17848_v49 = vsel %vm3114_vm9, %v3141_v47, %v3145_v21  ;;  %v22059_v16 = vrot.slane %v17756_v17, 1 }
 0x21b   :  { %v17836_v45 = vsel %vm3114_vm9, %v3133_v9, %v3137_v24  ;;  %v17839_v14 = vsel %vm3114_vm9, %v3137_v24, %v3141_v47  ;;  %14802 = vmatmul.mubr.msk.bf16.gmra.mrb[32].mxu1 %vm1548_vm4, %v1639_v29  ;;  %v17853_v24 = vor.u32 %v3152_v37, %v3151_v20  ;;  %v1652_v47 = vrot.slane %v17789_v51, 3 }
 0x21c   :  { %14805 = vmatprep.mubr.msk.bf16.mxu1 %vm17149_vm0, %v22058_v10  ;;  %v17851_v9 = vsel %vm3114_vm9, %v3145_v21, %v3149_v31  ;;  %v2683_v48 = vsel %vm2639_vm7, %v2678_v23, %v22059_v16  ;;  %v1655_v29 = vrot.slane %v17771_v32, 4  ;;  %v2240_v55 = vrot.slane %v17633_v5, 7 }
 0x21d   :  { %v17860_v19 = vsel %vm3114_vm9, %v3149_v31, %v17853_v24  ;;  %v2243_v0 = vrot.slane %v17678_v54, 7  ;;  %v1648_v26 = vsel %vm1586_vm1, %v1638_v25, %v1647_v62  ;;  %v22060_v21 = vmov %v22059_v16 }
 0x21e   :  { %v2686_v23 = vor.u32 %v22060_v21, %v17759_v18  ;;  %v2246_v31 = vrot.slane %v17716_v41, 7  ;;  %v2690_v20 = vrot.slane %v17771_v32, 1  ;;  %v17877_v37 = vor.u32 %v2240_v55, %v17636_v7 }
 0x21f   :  { %v2244_v5 = vor.u32 %v17673_v53, %v2243_v0  ;;  %v2249_v54 = vrot.slane %v17749_v15, 7  ;;  %v2252_v16 = vrot.slane %v17800_v1, 7  ;;  %v2255_v41 = vrot.slane %v17759_v18, 7 }
 0x220   :  { %v2247_v25 = vor.u32 %v17713_v35, %v2246_v31  ;;  %v2261_v53 = vrot.slane %v17803_v2, 7  ;;  %v2691_v18 = vsel %vm2639_vm7, %v2686_v23, %v2690_v20 }
 0x221   :  { %15022 = vmatmul.mubr.msk.bf16.gmra.mrb[36].mxu0 %vm1548_vm4, %v2683_v48  ;;  %v2258_v48 = vrot.slane %v17789_v51, 7  ;;  %v17888_v21 = vsel %vm2235_vm10, %v2240_v55, %v2244_v5  ;;  %v2250_v7 = vor.u32 %v17746_v63, %v2249_v54  ;;  %v2253_v33 = vor.u32 %v17797_v57, %v2252_v16 }
 0x222   :  { %15025 = vmatprep.mubr.msk.bf16.mxu0 %vm17149_vm0, %v22058_v10  ;;  %v17893_v15 = vsel %vm2235_vm10, %v2243_v0, %v2247_v25  ;;  %v2256_v35 = vor.u32 %v17756_v17, %v2255_v41  ;;  %v2267_v63 = vrot.slane %v17832_v60, 7  ;;  %v2694_v5 = vor.u32 %v2690_v20, %v17789_v51  ;;  %v17926_v25 = vld [vmem:[#allocation2 + $0x90] sm:$0xf] }
 0x223   :  { %14806 = vmatmul.mubr.msk.bf16.gmra.mrb[36].mxu1 %vm1548_vm4, %v1648_v26  ;;  %v1656_v26 = vor.u32 %v1655_v29, %v1652_v47  ;;  %v2259_v1 = vor.u32 %v17771_v32, %v2258_v48  ;;  %v17900_v47 = vsel %vm2235_vm10, %v2246_v31, %v2250_v7  ;;  %v2262_v29 = vor.u32 %v17792_v52, %v2261_v53 }
 0x224   :  { %14809 = vmatprep.mubr.msk.bf16.mxu1 %vm17149_vm0, %v22058_v10  ;;  %v17906_v55 = vsel %vm2235_vm10, %v2249_v54, %v2253_v33  ;;  %v17909_v57 = vsel %vm2235_vm10, %v2252_v16, %v2256_v35  ;;  %v2270_v0 = vor.u32 %v17811_v11, %v2267_v63  ;;  %v1661_v31 = vrot.slane %v17803_v2, 3 }
 0x225   :  { %v17912_v17 = vsel %vm2235_vm10, %v2255_v41, %v2259_v1  ;;  %v17917_v32 = vsel %vm2235_vm10, %v2258_v48, %v2262_v29  ;;  %v1657_v23 = vsel %vm1586_vm1, %v1647_v62, %v1656_v26  ;;  %v1664_v33 = vrot.slane %v17792_v52, 4  ;;  %v2629_v1 = vld [vmem:[#allocation2 + $0xa0] sm:$0x1] }
 0x226   :  { %v2698_v54 = vrot.slane %v17792_v52, 1  ;;  %v17929_v16 = vsel %vm2235_vm10, %v2261_v53, %v2270_v0  ;;  %v1668_v62 = vshrl.u32 %v17926_v25, 16  ;;  %v1671_v48 = vshll.u32 %v17926_v25, 16  ;;  %v17950_v0 = vld [vmem:[#allocation2 + $0x10] sm:$0xf0] }
 0x227   :  { %v1665_v41 = vor.u32 %v1664_v33, %v1661_v31  ;;  %v2706_v35 = vrot.slane %v17811_v11, 1  ;;  %v2712_v63 = vshll.u32 %v2629_v1, 16  ;;  %v3119_v31 = vshll.u32 %v17950_v0, 16  ;;  %v15976_v1 = vld [vmem:[%s21906_s7 + $0x8] sm:$0xff]  }
 0x228   :  { %v2699_v7 = vsel %vm2639_vm7, %v2694_v5, %v2698_v54  ;;  %v1670_v52 = vrot.slane %v1668_v62, 3  ;;  %v1673_v20 = vrot.slane %v1671_v48, 4  ;;  %v2702_v53 = vor.u32 %v2698_v54, %v17803_v2 }
 0x229   :  { %15026 = vmatmul.mubr.msk.bf16.gmra.mrb[40].mxu0 %vm1548_vm4, %v2691_v18  ;;  %v1666_v51 = vsel %vm1586_vm1, %v1656_v26, %v1665_v41  ;;  %v2710_v2 = vor.u32 %v17832_v60, %v2706_v35  ;;  %v2714_v11 = vrot.slane %v2712_v63, 1  ;;  %v1843_v33 = vrot.slane %v17537_v44, 3  ;;  %v15972_v44 = vld [vmem:[#allocation9 + $0x48] sm:$0xff]  }
 0x22a   :  { %15029 = vmatprep.mubr.msk.bf16.mxu0 %vm17149_vm0, %v22058_v10  ;;  %v1674_v18 = vor.u32 %v1673_v20, %v1670_v52  ;;  %v2707_v29 = vsel %vm2639_vm7, %v2702_v53, %v2706_v35  ;;  %v1844_v5 = vrot.slane %v17622_v59, 3  ;;  %v3121_v62 = vrot.slane %v3119_v31, 5  ;;  %v15975_v52 = vld [vmem:[%s21906_s7] sm:$0xff]  }
 0x22b   :  { %14810 = vmatmul.mubr.msk.bf16.gmra.mrb[40].mxu1 %vm1548_vm4, %v1657_v23  ;;  %v3116_v23 = vshrl.u32 %v17950_v0, 16  ;;  %v2715_v54 = vsel %vm2639_vm7, %v2710_v2, %v2714_v11  ;;  %v15973_v53 = vld [vmem:[#allocation9 + $0x50] sm:$0xff]   ;;  %v1852_v11 = vrot.slane %v17786_v50, 3  ;;  %v1856_v31 = vrot.slane %v17767_v27, 3 }
 0x22c   :  { %14813 = vmatprep.mubr.msk.bf16.mxu1 %vm17149_vm0, %v22058_v10  ;;  %v1675_v26 = vsel %vm1586_vm1, %v1665_v41, %v1674_v18  ;;  %v15970_v41 = vld [vmem:[#allocation9 + $0x40] sm:$0xff]   ;;  %v1845_v48 = vsel %vm1842_vm12, %v1843_v33, %v1844_v5  ;;  %v1848_v18 = vrot.slane %v17707_v28, 3  ;;  %v1858_v33 = vrot.slane %v17773_v46, 3 }
 0x22d   :  { %v3118_v60 = vrot.slane %v3116_v23, 4  ;;  %v1854_v23 = vrot.slane %v17731_v3, 3 }
 0x231   :  { %15030 = vmatmul.mubr.msk.bf16.gmra.mrb[44].mxu0 %vm1548_vm4, %v2699_v7  ;;  %v3122_v7 = vor.u32 %v3121_v62, %v3118_v60 }
 0x232   :  { %15033 = vmatprep.mubr.msk.bf16.mxu0 %vm17149_vm0, %v22058_v10 }
 0x233   :  { %14814 = vmatmul.mubr.msk.bf16.gmra.mrb[44].mxu1 %vm1548_vm4, %v1666_v51  ;;  %v1846_v51 = vrot.slane %v17663_v43, 3  ;;  %v3126_v20 = vsel %vm3114_vm9, %v3122_v7, %v17740_v13  ;;  %v15974_v13 = vld [vmem:[#allocation9 + $0x58] sm:$0xff]  }
 0x234   :  { %14817 = vmatprep.mubr.msk.bf16.mxu1 %vm17149_vm0, %v22058_v10 }
 0x235   :  { %v1847_v35 = vsel %vm1842_vm12, %v1844_v5, %v1846_v51  ;;  %v1849_v63 = vsel %vm1842_vm12, %v1846_v51, %v1848_v18  ;;  %v18045_v5 = vld [vmem:[#allocation2 + $0xa0] sm:$0x1f] }
 0x236   :  { %v3159_v60 = vshll.u32 %v18045_v5, 16  ;;  %v2018_v51 = vld [vmem:[#allocation2] sm:$0xf0] }
 0x239   :  { %15034 = vmatmul.mubr.msk.bf16.gmra.mrb[48].mxu0 %vm1548_vm4, %v2707_v29  ;;  %v15977_v29 = vld [vmem:[%s21906_s7 + $0x10] sm:$0xff]  }
 0x23a   :  { %15037 = vmatprep.mubr.msk.bf16.mxu0 %vm17149_vm0, %v22058_v10 }
 0x23b   :  { %14818 = vmatmul.mubr.msk.bf16.gmra.mrb[48].mxu1 %vm1548_vm4, %v1675_v26  ;;  %v15979_v26 = vld [vmem:[%s21906_s7 + $0x18] sm:$0xff]  }
 0x23c   :  { %14829 = vmatprep.mubr.msk.bf16.mxu1 %vm17149_vm0, %v22058_v10 }
 0x241   :  { %15038 = vmatmul.mubr.msk.bf16.gmra.mrb[52].mxu0 %vm1548_vm4, %v2715_v54  ;;  %v1567_v54 = vld [vmem:[#allocation2 + $0x90] sm:$0x7] }
 0x242   :  { %15093 = vmatprep.mubr.msk.bf16.mxu0 %vm17149_vm0, %v22058_v10  ;;  %v1860_v62 = vrot.slane %v1567_v54, 3 }
 0x243   :  { %14830 = vmatmul.mubr.msk.bf16.vlgmr.msra.gmra.mrb[52].mxu1 %vm1548_vm4, %v1845_v48 }
 0x244   :  { %14866 = vmatpush3.bf16.msra.mxu1 %v15970_v41  ;;  %14833 = vmatprep.mubr.msk.bf16.mxu1 %vm17149_vm0, %v22058_v10  ;;  %v3156_v41 = vshrl.u32 %v18045_v5, 16 }
 0x245   :  { %14867 = vmatprep.subr.bf16.mxu1 %v22058_v10 }
 0x246   :  { %v3158_v48 = vrot.slane %v3156_v41, 4 }
 0x248   :  { %14868 = vmatpush3.bf16.msra.mxu1 %v15972_v44  ;;  %v1861_v44 = vsel %vm1842_vm12, %v1858_v33, %v1860_v62 }
 0x249   :  { %15094 = vmatmul.mubr.msk.bf16.vlgmr.msra.gmra.mrb[56].mxu0 %vm1548_vm4, %v3126_v20  ;;  %14869 = vmatprep.subr.bf16.mxu1 %v22058_v10  ;;  %v2032_v20 = vrot.slane %v17622_v59, 4 }
 0x24a   :  { %15097 = vmatprep.mubr.msk.bf16.mxu0 %vm17149_vm0, %v22058_v10  ;;  %15174 = vmatpush3.bf16.msra.mxu0 %v15975_v52  ;;  %v2031_v52 = vrot.slane %v2018_v51, 4 }
 0x24b   :  { %14834 = vmatmul.mubr.msk.bf16.gmra.mrb[56].mxu1 %vm1548_vm4, %v1847_v35  ;;  %15175 = vmatprep.subr.bf16.mxu0 %v22058_v10 }
 0x24c   :  { %14837 = vmatprep.mubr.msk.bf16.mxu1 %vm17149_vm0, %v22058_v10  ;;  %14870 = vmatpush3.bf16.msra.mxu1 %v15973_v53  ;;  %v2033_v35 = vsel %vm2030_vm13, %v2031_v52, %v2032_v20 }
 0x24d   :  { %14871 = vmatprep.subr.bf16.mxu1 %v22058_v10 }
 0x24e   :  { %15176 = vmatpush3.bf16.msra.mxu0 %v15976_v1  ;;  %v15980_v1 = vld [vmem:[#allocation9 + $0x68] sm:$0xff]  }
 0x24f   :  { %15177 = vmatprep.subr.bf16.mxu0 %v22058_v10 }
 0x250   :  { %14872 = vmatpush3.bf16.msra.mxu1 %v15974_v13  ;;  %v15981_v13 = vld [vmem:[#allocation9 + $0x70] sm:$0xff]  }
 0x251   :  { %15098 = vmatmul.mubr.msk.bf16.gmra.mrb[60].mxu0 %vm1548_vm4, %v17779_v22  ;;  %14909 = vmatprep.subr.bf16.mxu1 %v22058_v10  ;;  %v1850_v22 = vrot.slane %v17738_v12, 3 }
 0x252   :  { %15101 = vmatprep.mubr.msk.bf16.mxu0 %vm17149_vm0, %v22058_v10  ;;  %15178 = vmatpush3.bf16.msra.mxu0 %v15977_v29  ;;  %v15982_v29 = vld [vmem:[#allocation9 + $0x78] sm:$0xff]  }
 0x253   :  { %14838 = vmatmul.mubr.msk.bf16.gmra.mrb[60].mxu1 %vm1548_vm4, %v1849_v63  ;;  %15179 = vmatprep.subr.bf16.mxu0 %v22058_v10  ;;  %v1851_v2 = vsel %vm1842_vm12, %v1848_v18, %v1850_v22 }
 0x254   :  { %14841 = vmatprep.mubr.msk.bf16.mxu1 %vm17149_vm0, %v22058_v10 }
 0x256   :  { %15180 = vmatpush3.bf16.msra.mxu0 %v15979_v26  ;;  %v2038_v26 = vrot.slane %v17738_v12, 4 }
 0x259   :  { %15102 = vmatmul.mubr.msk.bf16.gmra.mrb[64].mxu0 %vm1548_vm4, %v17819_v30  ;;  %v1853_v30 = vsel %vm1842_vm12, %v1850_v22, %v1852_v11  ;;  %v2040_v22 = vrot.slane %v17786_v50, 4 }
 0x25a   :  { %15105 = vmatprep.mubr.msk.bf16.mxu0 %vm17149_vm0, %v22058_v10 }
 0x25b   :  { %14842 = vmatmul.mubr.msk.bf16.gmra.mrb[64].mxu1 %vm1548_vm4, %v1851_v2  ;;  %v2042_v2 = vrot.slane %v17731_v3, 4 }
 0x25c   :  { %14845 = vmatprep.mubr.msk.bf16.mxu1 %vm17149_vm0, %v22058_v10 }
 0x261   :  { %15106 = vmatmul.mubr.msk.bf16.gmra.mrb[68].mxu0 %vm1548_vm4, %v17836_v45  ;;  %v1855_v45 = vsel %vm1842_vm12, %v1852_v11, %v1854_v23  ;;  %v2044_v11 = vrot.slane %v17767_v27, 4 }
 0x262   :  { %15109 = vmatprep.mubr.msk.bf16.mxu0 %vm17149_vm0, %v22058_v10 }
 0x263   :  { %14846 = vmatmul.mubr.msk.bf16.gmra.mrb[68].mxu1 %vm1548_vm4, %v1853_v30  ;;  %v18144_v30 = vsel %vm2030_vm13, %v2042_v2, %v2044_v11 }
 0x264   :  { %14849 = vmatprep.mubr.msk.bf16.mxu1 %vm17149_vm0, %v22058_v10 }
 0x269   :  { %15110 = vmatmul.mubr.msk.bf16.gmra.mrb[72].mxu0 %vm1548_vm4, %v17839_v14  ;;  %v1857_v14 = vsel %vm1842_vm12, %v1854_v23, %v1856_v31  ;;  %v18151_v23 = vrot.slane %v17773_v46, 4 }
 0x26a   :  { %15113 = vmatprep.mubr.msk.bf16.mxu0 %vm17149_vm0, %v22058_v10 }
 0x26b   :  { %14850 = vmatmul.mubr.msk.bf16.gmra.mrb[72].mxu1 %vm1548_vm4, %v1855_v45  ;;  %v2048_v45 = vrot.slane %v17926_v25, 4 }
 0x26c   :  { %14853 = vmatprep.mubr.msk.bf16.mxu1 %vm17149_vm0, %v22058_v10 }
 0x271   :  { %15114 = vmatmul.mubr.msk.bf16.gmra.mrb[76].mxu0 %vm1548_vm4, %v17848_v49  ;;  %v1859_v49 = vsel %vm1842_vm12, %v1856_v31, %v1858_v33  ;;  %v2224_v31 = vld [vmem:[#allocation2] sm:$0x80] }
 0x272   :  { %15117 = vmatprep.mubr.msk.bf16.mxu0 %vm17149_vm0, %v22058_v10 }
 0x273   :  { %14854 = vmatmul.mubr.msk.bf16.gmra.mrb[76].mxu1 %vm1548_vm4, %v1857_v14  ;;  %v2237_v14 = vshrl.u32 %v2224_v31, 16 }
 0x274   :  { %14857 = vmatprep.mubr.msk.bf16.mxu1 %vm17149_vm0, %v22058_v10 }
 0x275   :  { %v2239_v25 = vrot.slane %v2237_v14, 7 }
 0x279   :  { %15118 = vmatmul.mubr.msk.bf16.gmra.mrb[80].mxu0 %vm1548_vm4, %v17851_v9  ;;  %v3161_v9 = vrot.slane %v3159_v60, 5  ;;  %v2242_v60 = vsel %vm2235_vm10, %v2239_v25, %v17877_v37  ;;  %v15985_v37 = vld [vmem:[#allocation9 + $0x90] sm:$0xff]  }
 0x27a   :  { %15121 = vmatprep.mubr.msk.bf16.mxu0 %vm17149_vm0, %v22058_v10 }
 0x27b   :  { %14858 = vmatmul.mubr.msk.bf16.gmra.mrb[80].mxu1 %vm1548_vm4, %v1859_v49  ;;  %v3162_v7 = vor.u32 %v3161_v9, %v3158_v48  ;;  %v15984_v9 = vld [vmem:[#allocation9 + $0x88] sm:$0xff]  }
 0x27c   :  { %14861 = vmatprep.mubr.msk.bf16.mxu1 %vm17149_vm0, %v22058_v10 }
 0x27d   :  { %v3163_v53 = vsel %vm3114_vm9, %v17853_v24, %v3162_v7  ;;  %v18075_v24 = vrot.slane %v17663_v43, 4 }
 0x27f   :  { %v2035_v18 = vsel %vm2030_vm13, %v2032_v20, %v18075_v24 }
 0x281   :  { %15122 = vmatmul.mubr.msk.bf16.gmra.mrb[84].mxu0 %vm1548_vm4, %v17860_v19  ;;  %v15978_v19 = vld [vmem:[#allocation9 + $0x60] sm:$0xff]  }
 0x282   :  { %15125 = vmatprep.mubr.msk.bf16.mxu0 %vm17149_vm0, %v22058_v10 }
 0x283   :  { %14862 = vmatmul.mubr.msk.bf16.gmra.mrb[84].mxu1 %vm1548_vm4, %v1861_v44 }
 0x284   :  { %14873 = vmatprep.mubr.msk.bf16.mxu1 %vm17149_vm0, %v22058_v10 }
 0x289   :  { %15126 = vmatmul.mubr.msk.bf16.gmra.mrb[88].mxu0 %vm1548_vm4, %v3163_v53 }
 0x28a   :  { %15181 = vmatprep.mubr.msk.bf16.mxu0 %vm17149_vm0, %v22058_v10 }
 0x28b   :  { %14874 = vmatmul.mubr.msk.bf16.vlgmr.msra.gmra.mrb[88].mxu1 %vm1548_vm4, %v2033_v35  ;;  %v15986_v35 = vld [vmem:[#allocation9 + $0x98] sm:$0xff]  }
 0x28c   :  { %14910 = vmatpush3.bf16.msra.mxu1 %v15978_v19  ;;  %14877 = vmatprep.mubr.msk.bf16.mxu1 %vm17149_vm0, %v22058_v10 }
 0x28d   :  { %14911 = vmatprep.subr.bf16.mxu1 %v22058_v10 }
 0x290   :  { %14912 = vmatpush3.bf16.msra.mxu1 %v15980_v1 }
 0x291   :  { %15182 = vmatmul.mubr.msk.bf16.vlgmr.msra.gmra.mrb[92].mxu0 %vm1548_vm4, %v17622_v59  ;;  %14913 = vmatprep.subr.bf16.mxu1 %v22058_v10  ;;  %v2036_v59 = vrot.slane %v17707_v28, 4 }
 0x292   :  { %15185 = vmatprep.mubr.msk.bf16.mxu0 %vm17149_vm0, %v22058_v10 }
 0x293   :  { %14878 = vmatmul.mubr.msk.bf16.gmra.mrb[92].mxu1 %vm1548_vm4, %v2035_v18  ;;  %v18096_v63 = vsel %vm2030_vm13, %v18075_v24, %v2036_v59 }
 0x294   :  { %14881 = vmatprep.mubr.msk.bf16.mxu1 %vm17149_vm0, %v22058_v10  ;;  %14914 = vmatpush3.bf16.msra.mxu1 %v15981_v13 }
 0x295   :  { %14915 = vmatprep.subr.bf16.mxu1 %v22058_v10 }
 0x298   :  { %14916 = vmatpush3.bf16.msra.mxu1 %v15982_v29 }
 0x299   :  { %15186 = vmatmul.mubr.msk.bf16.gmra.mrb[96].mxu0 %vm1548_vm4, %v17663_v43  ;;  %14953 = vmatprep.subr.bf16.mxu1 %v22058_v10  ;;  %v18108_v43 = vsel %vm2030_vm13, %v2036_v59, %v2038_v26 }
 0x29a   :  { %15189 = vmatprep.mubr.msk.bf16.mxu0 %vm17149_vm0, %v22058_v10 }
 0x29b   :  { %14882 = vmatmul.mubr.msk.bf16.gmra.mrb[96].mxu1 %vm1548_vm4, %v18096_v63 }
 0x29c   :  { %14885 = vmatprep.mubr.msk.bf16.mxu1 %vm17149_vm0, %v22058_v10 }
 0x2a1   :  { %15190 = vmatmul.mubr.msk.bf16.gmra.mrb[100].mxu0 %vm1548_vm4, %v17707_v28  ;;  %v18120_v28 = vsel %vm2030_vm13, %v2038_v26, %v2040_v22 }
 0x2a2   :  { %15193 = vmatprep.mubr.msk.bf16.mxu0 %vm17149_vm0, %v22058_v10 }
 0x2a3   :  { %14886 = vmatmul.mubr.msk.bf16.gmra.mrb[100].mxu1 %vm1548_vm4, %v18108_v43 }
 0x2a4   :  { %14889 = vmatprep.mubr.msk.bf16.mxu1 %vm17149_vm0, %v22058_v10 }
 0x2a9   :  { %15194 = vmatmul.mubr.msk.bf16.gmra.mrb[104].mxu0 %vm1548_vm4, %v17738_v12  ;;  %v18132_v12 = vsel %vm2030_vm13, %v2040_v22, %v2042_v2 }
 0x2aa   :  { %15197 = vmatprep.mubr.msk.bf16.mxu0 %vm17149_vm0, %v22058_v10 }
 0x2ab   :  { %14890 = vmatmul.mubr.msk.bf16.gmra.mrb[104].mxu1 %vm1548_vm4, %v18120_v28 }
 0x2ac   :  { %14893 = vmatprep.mubr.msk.bf16.mxu1 %vm17149_vm0, %v22058_v10 }
 0x2b1   :  { %15198 = vmatmul.mubr.msk.bf16.gmra.mrb[108].mxu0 %vm1548_vm4, %v17786_v50 }
 0x2b2   :  { %15201 = vmatprep.mubr.msk.bf16.mxu0 %vm17149_vm0, %v22058_v10 }
 0x2b3   :  { %14894 = vmatmul.mubr.msk.bf16.gmra.mrb[108].mxu1 %vm1548_vm4, %v18132_v12 }
 0x2b4   :  { %14897 = vmatprep.mubr.msk.bf16.mxu1 %vm17149_vm0, %v22058_v10 }
 0x2b9   :  { %15202 = vmatmul.mubr.msk.bf16.gmra.mrb[112].mxu0 %vm1548_vm4, %v17731_v3  ;;  %v18159_v3 = vsel %vm2030_vm13, %v2044_v11, %v18151_v23 }
 0x2ba   :  { %15205 = vmatprep.mubr.msk.bf16.mxu0 %vm17149_vm0, %v22058_v10 }
 0x2bb   :  { %14898 = vmatmul.mubr.msk.bf16.gmra.mrb[112].mxu1 %vm1548_vm4, %v18144_v30 }
 0x2bc   :  { %14901 = vmatprep.mubr.msk.bf16.mxu1 %vm17149_vm0, %v22058_v10 }
 0x2c1   :  { %15206 = vmatmul.mubr.msk.bf16.gmra.mrb[116].mxu0 %vm1548_vm4, %v17767_v27  ;;  %v2049_v27 = vsel %vm2030_vm13, %v18151_v23, %v2048_v45 }
 0x2c2   :  { %15209 = vmatprep.mubr.msk.bf16.mxu0 %vm17149_vm0, %v22058_v10 }
 0x2c3   :  { %14902 = vmatmul.mubr.msk.bf16.gmra.mrb[116].mxu1 %vm1548_vm4, %v18159_v3 }
 0x2c4   :  { %14905 = vmatprep.mubr.msk.bf16.mxu1 %vm17149_vm0, %v22058_v10 }
 0x2c9   :  { %15210 = vmatmul.mubr.msk.bf16.gmra.mrb[120].mxu0 %vm1548_vm4, %v17773_v46  ;;  %v15983_v46 = vld [vmem:[#allocation9 + $0x80] sm:$0xff]  }
 0x2ca   :  { %15213 = vmatprep.mubr.msk.bf16.mxu0 %vm17149_vm0, %v22058_v10 }
 0x2cb   :  { %14906 = vmatmul.mubr.msk.bf16.gmra.mrb[120].mxu1 %vm1548_vm4, %v2049_v27 }
 0x2cc   :  { %14917 = vmatprep.mubr.msk.bf16.mxu1 %vm17149_vm0, %v22058_v10 }
 0x2ce   :  { %v18175_v33 = vpop.f32.mrb[16].mxu1 }
 0x2cf   :  { %v14787_v49 = vpop.f32.mrb[17].mxu1 }
 0x2d0   :  { %v18177_v54 = vpop.f32.mrb[18].mxu1 }
 0x2d1   :  { %v14788_v41 = vpop.f32.mrb[19].mxu1  ;;  %15214 = vmatmul.mubr.msk.bf16.gmra.mrb[124].mxu0 %vm1548_vm4, %v17805_v8 }
 0x2d3   :  { %14918 = vmatmul.mubr.msk.bf16.vlgmr.msra.gmra.mrb[124].mxu1 %vm1548_vm4, %v2242_v60 }
 0x2d4   :  { %v18184_v62 = vpop.f32.mrb[20].mxu0  ;;  %14954 = vmatpush3.bf16.msra.mxu1 %v15983_v46  ;;  %14921 = vmatprep.mubr.msk.bf16.mxu1 %vm17149_vm0, %v22058_v10 }
 0x2d5   :  { %v15007_v48 = vpop.f32.mrb[21].mxu0  ;;  %14955 = vmatprep.subr.bf16.mxu1 %v22058_v10 }
 0x2d6   :  { %v18188_v44 = vpop.f32.mrb[22].mxu0  ;;  %v18191_v7 = vpop.f32.mrb[20].mxu1 }
 0x2d7   :  { %v15008_v8 = vpop.f32.mrb[23].mxu0  ;;  %v14791_v51 = vpop.f32.mrb[21].mxu1 }
 0x2d8   :  { %v18193_v52 = vpop.f32.mrb[22].mxu1  ;;  %14956 = vmatpush3.bf16.msra.mxu1 %v15984_v9 }
 0x2d9   :  { %v14792_v20 = vpop.f32.mrb[23].mxu1  ;;  %14957 = vmatprep.subr.bf16.mxu1 %v22058_v10 }
 0x2db   :  { %14922 = vmatmul.mubr.msk.bf16.gmra.mrb[128].mxu1 %vm1548_vm4, %v17888_v21 }
 0x2dc   :  { %v18198_v53 = vpop.f32.mrb[24].mxu0  ;;  %14925 = vmatprep.mubr.msk.bf16.mxu1 %vm17149_vm0, %v22058_v10  ;;  %14958 = vmatpush3.bf16.msra.mxu1 %v15985_v37 }
 0x2dd   :  { %v15011_v19 = vpop.f32.mrb[25].mxu0  ;;  %14959 = vmatprep.subr.bf16.mxu1 %v22058_v10 }
 0x2de   :  { %v18202_v1 = vpop.f32.mrb[26].mxu0  ;;  %v18205_v13 = vpop.f32.mrb[24].mxu1 }
 0x2df   :  { %v15012_v18 = vpop.f32.mrb[27].mxu0  ;;  %v14795_v29 = vpop.f32.mrb[25].mxu1 }
 0x2e0   :  { %v18207_v59 = vpop.f32.mrb[26].mxu1  ;;  %14960 = vmatpush3.bf16.msra.mxu1 %v15986_v35 }
 0x2e1   :  { %v14796_v21 = vpop.f32.mrb[27].mxu1  ;;  %15041 = vmatprep.subr.bf16.mxu1 %v22058_v10 }
 0x2e3   :  { %14926 = vmatmul.mubr.msk.bf16.gmra.mrb[132].mxu1 %vm1548_vm4, %v17893_v15 }
 0x2e4   :  { %v18212_v26 = vpop.f32.mrb[28].mxu0  ;;  %14929 = vmatprep.mubr.msk.bf16.mxu1 %vm17149_vm0, %v22058_v10 }
 0x2e5   :  { %v15015_v22 = vpop.f32.mrb[29].mxu0 }
 0x2e6   :  { %v18216_v2 = vpop.f32.mrb[30].mxu0  ;;  %v18218_v11 = vpop.f32.mrb[28].mxu1 }
 0x2e7   :  { %v15016_v45 = vpop.f32.mrb[31].mxu0  ;;  %v14799_v31 = vpop.f32.mrb[29].mxu1 }
 0x2e8   :  { %v18220_v27 = vpop.f32.mrb[30].mxu1 }
 0x2e9   :  { %v14800_v14 = vpop.f32.mrb[31].mxu1 }
 0x2eb   :  { %14930 = vmatmul.mubr.msk.bf16.gmra.mrb[136].mxu1 %vm1548_vm4, %v17900_v47 }
 0x2ec   :  { %v18224_v49 = vpop.f32.mrb[32].mxu0  ;;  %14933 = vmatprep.mubr.msk.bf16.mxu1 %vm17149_vm0, %v22058_v10 }
 0x2ed   :  { %v15019_v15 = vpop.f32.mrb[33].mxu0 }
 0x2ee   :  { %v18228_v25 = vpop.f32.mrb[34].mxu0  ;;  %v18230_v41 = vpop.f32.mrb[32].mxu1 }
 0x2ef   :  { %v15020_v46 = vpop.f32.mrb[35].mxu0  ;;  %v14803_v60 = vpop.f32.mrb[33].mxu1 }
 0x2f0   :  { %v18232_v48 = vpop.f32.mrb[34].mxu1 }
 0x2f1   :  { %v14804_v9 = vpop.f32.mrb[35].mxu1 }
 0x2f3   :  { %14934 = vmatmul.mubr.msk.bf16.gmra.mrb[140].mxu1 %vm1548_vm4, %v17906_v55 }
 0x2f4   :  { %v18236_v8 = vpop.f32.mrb[36].mxu0  ;;  %14937 = vmatprep.mubr.msk.bf16.mxu1 %vm17149_vm0, %v22058_v10 }
 0x2f5   :  { %v15023_v47 = vpop.f32.mrb[37].mxu0 }
 0x2f6   :  { %v18240_v51 = vpop.f32.mrb[38].mxu0  ;;  %v18242_v37 = vpop.f32.mrb[36].mxu1 }
 0x2f7   :  { %v15024_v20 = vpop.f32.mrb[39].mxu0  ;;  %v14807_v19 = vpop.f32.mrb[37].mxu1 }
 0x2f8   :  { %v18244_v35 = vpop.f32.mrb[38].mxu1 }
 0x2f9   :  { %v14808_v18 = vpop.f32.mrb[39].mxu1 }
 0x2fb   :  { %14938 = vmatmul.mubr.msk.bf16.gmra.mrb[144].mxu1 %vm1548_vm4, %v17909_v57 }
 0x2fc   :  { %v18248_v29 = vpop.f32.mrb[40].mxu0  ;;  %14941 = vmatprep.mubr.msk.bf16.mxu1 %vm17149_vm0, %v22058_v10 }
 0x2fd   :  { %v15027_v55 = vpop.f32.mrb[41].mxu0 }
 0x2fe   :  { %v18252_v21 = vpop.f32.mrb[42].mxu0  ;;  %v18254_v22 = vpop.f32.mrb[40].mxu1 }
 0x2ff   :  { %v15028_v45 = vpop.f32.mrb[43].mxu0  ;;  %v14811_v31 = vpop.f32.mrb[41].mxu1 }
 0x300   :  { %v18256_v14 = vpop.f32.mrb[42].mxu1 }
 0x301   :  { %v14812_v15 = vpop.f32.mrb[43].mxu1 }
 0x303   :  { %14942 = vmatmul.mubr.msk.bf16.gmra.mrb[148].mxu1 %vm1548_vm4, %v17912_v17 }
 0x304   :  { %v18260_v46 = vpop.f32.mrb[44].mxu0  ;;  %14945 = vmatprep.mubr.msk.bf16.mxu1 %vm17149_vm0, %v22058_v10 }
 0x305   :  { %v15031_v57 = vpop.f32.mrb[45].mxu0 }
 0x306   :  { %v18264_v60 = vpop.f32.mrb[46].mxu0  ;;  %v18266_v9 = vpop.f32.mrb[44].mxu1 }
 0x307   :  { %v15032_v47 = vpop.f32.mrb[47].mxu0  ;;  %v14815_v20 = vpop.f32.mrb[45].mxu1 }
 0x308   :  { %v18268_v19 = vpop.f32.mrb[46].mxu1 }
 0x309   :  { %v14816_v18 = vpop.f32.mrb[47].mxu1 }
 0x30b   :  { %14946 = vmatmul.mubr.msk.bf16.gmra.mrb[152].mxu1 %vm1548_vm4, %v17917_v32 }
 0x30c   :  { %v18272_v55 = vpop.f32.mrb[48].mxu0  ;;  %14949 = vmatprep.mubr.msk.bf16.mxu1 %vm17149_vm0, %v22058_v10 }
 0x30d   :  { %v15035_v17 = vpop.f32.mrb[49].mxu0 }
 0x30e   :  { %v18276_v45 = vpop.f32.mrb[50].mxu0  ;;  %v18278_v31 = vpop.f32.mrb[48].mxu1 }
 0x30f   :  { %v15036_v15 = vpop.f32.mrb[51].mxu0  ;;  %v14819_v57 = vpop.f32.mrb[49].mxu1 }
 0x310   :  { %v18280_v47 = vpop.f32.mrb[50].mxu1 }
 0x311   :  { %v14820_v20 = vpop.f32.mrb[51].mxu1 }
 0x313   :  { %14950 = vmatmul.mubr.msk.bf16.gmra.mrb[156].mxu1 %vm1548_vm4, %v17929_v16 }
 0x314   :  { %v18284_v18 = vpop.f32.mrb[52].mxu0  ;;  %14961 = vmatprep.mubr.msk.bf16.mxu1 %vm17149_vm0, %v22058_v10 }
 0x315   :  { %22061 = vst [vmem:[#allocation49_spill] sm:$0xff] %v18284_v18  ;;  %v15039_v32 = vpop.f32.mrb[53].mxu0 }
 0x316   :  { %v18288_v17 = vpop.f32.mrb[54].mxu0  ;;  %v1947_v6 = vpop.f32.mrb[52].mxu1 }
 0x317   :  { %22062 = vst [vmem:[#allocation50_spill] sm:$0xff] %v18288_v17  ;;  %v15040_v61 = vpop.f32.mrb[55].mxu0  ;;  %v18291_v42 = vadd.f32 %v1947_v6, %v18175_v33  ;;  %v14831_v15 = vpop.f32.mrb[53].mxu1 }
 0x318   :  { %v1950_v57 = vpop.f32.mrb[54].mxu1  ;;  %v15988_v61 = vld [vmem:[#allocation9 + $0xc8] sm:$0xff]  }
 0x319   :  { %v18294_v20 = vadd.f32 %v1950_v57, %v18177_v54  ;;  %v14832_v16 = vpop.f32.mrb[55].mxu1 }
 0x31b   :  { %14962 = vmatmul.mubr.msk.bf16.vlgmr.msra.gmra.mrb[160].mxu1 %vm1548_vm4, %v16803_v58  ;;  %v15989_v58 = vld [vmem:[#allocation9 + $0xd0] sm:$0xff]  }
 0x31c   :  { %v18297_v32 = vpop.f32.mrb[56].mxu0  ;;  %15042 = vmatpush3.bf16.msra.mxu1 %v15987_v56  ;;  %14965 = vmatprep.mubr.msk.bf16.mxu1 %vm17149_vm0, %v22058_v10 }
 0x31d   :  { %22063 = vst [vmem:[#allocation51_spill] sm:$0xff] %v18297_v32  ;;  %v15095_v36 = vpop.f32.mrb[57].mxu0  ;;  %15043 = vmatprep.subr.bf16.mxu1 %v22058_v10  ;;  %v18423_v32 = vld [vmem:[#allocation2 + $0x90] sm:$0xff] }
 0x31e   :  { %v18301_v6 = vpop.f32.mrb[58].mxu0  ;;  %v1955_v33 = vpop.f32.mrb[56].mxu1 }
 0x31f   :  { %22064 = vst [vmem:[#allocation52_spill] sm:$0xff] %v18301_v6  ;;  %v15096_v15 = vpop.f32.mrb[59].mxu0  ;;  %v18305_v54 = vadd.f32 %v1955_v33, %v18191_v7  ;;  %v14835_v57 = vpop.f32.mrb[57].mxu1  ;;  %v15990_v7 = vld [vmem:[#allocation9 + $0xd8] sm:$0xff]   ;;  %v18407_v6 = vld [vmem:[#allocation2 + $0x80] sm:$0xff] }
 0x320   :  { %v1958_v16 = vpop.f32.mrb[58].mxu1  ;;  %15044 = vmatpush3.bf16.msra.mxu1 %v15988_v61 }
 0x321   :  { %v18308_v56 = vadd.f32 %v1958_v16, %v18193_v52  ;;  %v14836_v36 = vpop.f32.mrb[59].mxu1  ;;  %15045 = vmatprep.subr.bf16.mxu1 %v22058_v10 }
 0x323   :  { %14966 = vmatmul.mubr.msk.bf16.gmra.mrb[164].mxu1 %vm1548_vm4, %v18311_v4 }
 0x324   :  { %v18315_v40 = vpop.f32.mrb[60].mxu0  ;;  %14969 = vmatprep.mubr.msk.bf16.mxu1 %vm17149_vm0, %v22058_v10  ;;  %15046 = vmatpush3.bf16.msra.mxu1 %v15989_v58  ;;  %v18329_v58 = vld [vmem:[#allocation2 + $0x30] sm:$0xff] }
 0x325   :  { %22065 = vst [vmem:[#allocation53_spill] sm:$0xff] %v18315_v40  ;;  %v15099_v15 = vpop.f32.mrb[61].mxu0  ;;  %15047 = vmatprep.subr.bf16.mxu1 %v22058_v10  ;;  %v18391_v40 = vld [vmem:[#allocation2 + $0x70] sm:$0xff] }
 0x326   :  { %v18319_v61 = vpop.f32.mrb[62].mxu0  ;;  %v1963_v52 = vpop.f32.mrb[60].mxu1 }
 0x327   :  { %22066 = vst [vmem:[#allocation54_spill] sm:$0xff] %v18319_v61  ;;  %v15100_v33 = vpop.f32.mrb[63].mxu0  ;;  %v18323_v57 = vadd.f32 %v1963_v52, %v18205_v13  ;;  %v14839_v16 = vpop.f32.mrb[61].mxu1  ;;  %v18345_v61 = vld [vmem:[#allocation2 + $0x40] sm:$0xff] }
 0x328   :  { %v1966_v36 = vpop.f32.mrb[62].mxu1  ;;  %15048 = vmatpush3.bf16.msra.mxu1 %v15990_v7 }
 0x329   :  { %v18326_v39 = vadd.f32 %v1966_v36, %v18207_v59  ;;  %v14840_v15 = vpop.f32.mrb[63].mxu1  ;;  %15129 = vmatprep.subr.bf16.mxu1 %v22058_v10 }
 0x32b   :  { %14970 = vmatmul.mubr.msk.bf16.gmra.mrb[168].mxu1 %vm1548_vm4, %v18329_v58 }
 0x32c   :  { %v18333_v38 = vpop.f32.mrb[64].mxu0  ;;  %14973 = vmatprep.mubr.msk.bf16.mxu1 %vm17149_vm0, %v22058_v10 }
 0x32d   :  { %22067 = vst [vmem:[#allocation55_spill] sm:$0xff] %v18333_v38  ;;  %v15103_v33 = vpop.f32.mrb[65].mxu0 }
 0x32e   :  { %v18337_v13 = vpop.f32.mrb[66].mxu0  ;;  %v1971_v7 = vpop.f32.mrb[64].mxu1 }
 0x32f   :  { %22068 = vst [vmem:[#allocation56_spill] sm:$0xff] %v18337_v13  ;;  %v15104_v52 = vpop.f32.mrb[67].mxu0  ;;  %v18340_v59 = vadd.f32 %v1971_v7, %v18218_v11  ;;  %v14843_v16 = vpop.f32.mrb[65].mxu1 }
 0x330   :  { %v1974_v36 = vpop.f32.mrb[66].mxu1 }
 0x331   :  { %v18343_v15 = vadd.f32 %v1974_v36, %v18220_v27  ;;  %v14844_v34 = vpop.f32.mrb[67].mxu1 }
 0x333   :  { %14974 = vmatmul.mubr.msk.bf16.gmra.mrb[172].mxu1 %vm1548_vm4, %v18345_v61 }
 0x334   :  { %v18349_v33 = vpop.f32.mrb[68].mxu0  ;;  %14977 = vmatprep.mubr.msk.bf16.mxu1 %vm17149_vm0, %v22058_v10 }
 0x335   :  { %22069 = vst [vmem:[#allocation57_spill] sm:$0xff] %v18349_v33  ;;  %v15107_v38 = vpop.f32.mrb[69].mxu0 }
 0x336   :  { %v18353_v52 = vpop.f32.mrb[70].mxu0  ;;  %v1979_v11 = vpop.f32.mrb[68].mxu1 }
 0x337   :  { %22070 = vst [vmem:[#allocation58_spill] sm:$0xff] %v18353_v52  ;;  %v15108_v7 = vpop.f32.mrb[71].mxu0  ;;  %v18356_v16 = vadd.f32 %v1979_v11, %v18230_v41  ;;  %v14847_v27 = vpop.f32.mrb[69].mxu1 }
 0x338   :  { %v1982_v34 = vpop.f32.mrb[70].mxu1 }
 0x339   :  { %v18359_v36 = vadd.f32 %v1982_v34, %v18232_v48  ;;  %v14848_v13 = vpop.f32.mrb[71].mxu1 }
 0x33b   :  { %14978 = vmatmul.mubr.msk.bf16.gmra.mrb[176].mxu1 %vm1548_vm4, %v17786_v50  ;;  %v18375_v50 = vld [vmem:[#allocation2 + $0x60] sm:$0xff] }
 0x33c   :  { %v18363_v38 = vpop.f32.mrb[72].mxu0  ;;  %14981 = vmatprep.mubr.msk.bf16.mxu1 %vm17149_vm0, %v22058_v10 }
 0x33d   :  { %22071 = vst [vmem:[#allocation59_spill] sm:$0xff] %v18363_v38  ;;  %v15111_v33 = vpop.f32.mrb[73].mxu0 }
 0x33e   :  { %v18367_v52 = vpop.f32.mrb[74].mxu0  ;;  %v1987_v7 = vpop.f32.mrb[72].mxu1 }
 0x33f   :  { %22072 = vst [vmem:[#allocation60_spill] sm:$0xff] %v18367_v52  ;;  %v15112_v41 = vpop.f32.mrb[75].mxu0  ;;  %v18370_v11 = vadd.f32 %v1987_v7, %v18242_v37  ;;  %v14851_v27 = vpop.f32.mrb[73].mxu1 }
 0x340   :  { %v1990_v48 = vpop.f32.mrb[74].mxu1 }
 0x341   :  { %v18373_v13 = vadd.f32 %v1990_v48, %v18244_v35  ;;  %v14852_v34 = vpop.f32.mrb[75].mxu1 }
 0x343   :  { %14982 = vmatmul.mubr.msk.bf16.gmra.mrb[180].mxu1 %vm1548_vm4, %v18375_v50 }
 0x344   :  { %v18379_v33 = vpop.f32.mrb[76].mxu0  ;;  %14985 = vmatprep.mubr.msk.bf16.mxu1 %vm17149_vm0, %v22058_v10 }
 0x345   :  { %22073 = vst [vmem:[#allocation61_spill] sm:$0xff] %v18379_v33  ;;  %v15115_v38 = vpop.f32.mrb[77].mxu0 }
 0x346   :  { %v18383_v41 = vpop.f32.mrb[78].mxu0  ;;  %v1995_v37 = vpop.f32.mrb[76].mxu1 }
 0x347   :  { %22074 = vst [vmem:[#allocation62_spill] sm:$0xff] %v18383_v41  ;;  %v15116_v7 = vpop.f32.mrb[79].mxu0  ;;  %v18386_v27 = vadd.f32 %v1995_v37, %v18254_v22  ;;  %v14855_v35 = vpop.f32.mrb[77].mxu1 }
 0x348   :  { %v1998_v48 = vpop.f32.mrb[78].mxu1 }
 0x349   :  { %v18389_v34 = vadd.f32 %v1998_v48, %v18256_v14  ;;  %v14856_v52 = vpop.f32.mrb[79].mxu1 }
 0x34b   :  { %14986 = vmatmul.mubr.msk.bf16.gmra.mrb[184].mxu1 %vm1548_vm4, %v18391_v40 }
 0x34c   :  { %v18395_v38 = vpop.f32.mrb[80].mxu0  ;;  %14989 = vmatprep.mubr.msk.bf16.mxu1 %vm17149_vm0, %v22058_v10 }
 0x34d   :  { %22075 = vst [vmem:[#allocation63_spill] sm:$0xff] %v18395_v38  ;;  %v15119_v33 = vpop.f32.mrb[81].mxu0 }
 0x34e   :  { %v18399_v7 = vpop.f32.mrb[82].mxu0  ;;  %v2003_v22 = vpop.f32.mrb[80].mxu1 }
 0x34f   :  { %22076 = vst [vmem:[#allocation64_spill] sm:$0xff] %v18399_v7  ;;  %v15120_v37 = vpop.f32.mrb[83].mxu0  ;;  %v18402_v35 = vadd.f32 %v2003_v22, %v18266_v9  ;;  %v14859_v14 = vpop.f32.mrb[81].mxu1 }
 0x350   :  { %v2006_v52 = vpop.f32.mrb[82].mxu1 }
 0x351   :  { %v18405_v48 = vadd.f32 %v2006_v52, %v18268_v19  ;;  %v14860_v41 = vpop.f32.mrb[83].mxu1 }
 0x353   :  { %14990 = vmatmul.mubr.msk.bf16.gmra.mrb[188].mxu1 %vm1548_vm4, %v18407_v6 }
 0x354   :  { %v18411_v33 = vpop.f32.mrb[84].mxu0  ;;  %14993 = vmatprep.mubr.msk.bf16.mxu1 %vm17149_vm0, %v22058_v10 }
 0x355   :  { %22077 = vst [vmem:[#allocation65_spill] sm:$0xff] %v18411_v33  ;;  %v15123_v38 = vpop.f32.mrb[85].mxu0 }
 0x356   :  { %v18415_v37 = vpop.f32.mrb[86].mxu0  ;;  %v2011_v9 = vpop.f32.mrb[84].mxu1 }
 0x357   :  { %22078 = vst [vmem:[#allocation66_spill] sm:$0xff] %v18415_v37  ;;  %v15124_v22 = vpop.f32.mrb[87].mxu0  ;;  %v14863_v14 = vpop.f32.mrb[85].mxu1  ;;  %v18418_v19 = vadd.f32 %v2011_v9, %v18278_v31  ;;  %v15991_v37 = vld [vmem:[#allocation9 + $0x100] sm:$0xff]  }
 0x358   :  { %v2014_v41 = vpop.f32.mrb[86].mxu1 }
 0x359   :  { %v14864_v52 = vpop.f32.mrb[87].mxu1  ;;  %v18421_v7 = vadd.f32 %v2014_v41, %v18280_v47  ;;  %v2911_v41 = vrot.slane %v17950_v0, 4 }
 0x35b   :  { %14994 = vmatmul.mubr.msk.bf16.gmra.mrb[192].mxu1 %vm1548_vm4, %v18423_v32 }
 0x35c   :  { %v18427_v38 = vpop.f32.mrb[88].mxu0  ;;  %15049 = vmatprep.mubr.msk.bf16.mxu1 %vm17149_vm0, %v22058_v10 }
 0x35d   :  { %v15127_v33 = vpop.f32.mrb[89].mxu0 }
 0x35e   :  { %v18431_v22 = vpop.f32.mrb[90].mxu0  ;;  %v2135_v31 = vpop.f32.mrb[88].mxu1  ;;  %v2913_v33 = vsel %vm2030_vm13, %v2911_v41, %v18075_v24 }
 0x35f   :  { %v15128_v9 = vpop.f32.mrb[91].mxu0  ;;  %v14875_v14 = vpop.f32.mrb[89].mxu1  ;;  %v18434_v52 = vadd.f32 %v2135_v31, %v18291_v42 }
 0x360   :  { %v2138_v47 = vpop.f32.mrb[90].mxu1  ;;  %v15992_v9 = vld [vmem:[#allocation9 + $0x108] sm:$0xff]  }
 0x361   :  { %v14876_v17 = vpop.f32.mrb[91].mxu1  ;;  %v18438_v18 = vadd.f32 %v2138_v47, %v18294_v20  ;;  %v15993_v20 = vld [vmem:[#allocation9 + $0x110] sm:$0xff]  }
 0x363   :  { %15050 = vmatmul.mubr.msk.bf16.vlgmr.msra.gmra.mrb[196].mxu1 %vm1548_vm4, %v2913_v33 }
 0x364   :  { %15130 = vmatpush3.bf16.msra.mxu1 %v15991_v37  ;;  %15053 = vmatprep.mubr.msk.bf16.mxu1 %vm17149_vm0, %v22058_v10  ;;  %v15994_v37 = vld [vmem:[#allocation9 + $0x118] sm:$0xff]  }
 0x365   :  { %15131 = vmatprep.subr.bf16.mxu1 %v22058_v10 }
 0x366   :  { %v2143_v42 = vpop.f32.mrb[92].mxu1 }
 0x367   :  { %v14879_v31 = vpop.f32.mrb[93].mxu1  ;;  %v18447_v0 = vadd.f32 %v2143_v42, %v18305_v54 }
 0x368   :  { %v2146_v17 = vpop.f32.mrb[94].mxu1  ;;  %15132 = vmatpush3.bf16.msra.mxu1 %v15992_v9 }
 0x369   :  { %v14880_v14 = vpop.f32.mrb[95].mxu1  ;;  %15133 = vmatprep.subr.bf16.mxu1 %v22058_v10  ;;  %v18451_v24 = vadd.f32 %v2146_v17, %v18308_v56 }
 0x36b   :  { %15054 = vmatmul.mubr.msk.bf16.gmra.mrb[200].mxu1 %vm1548_vm4, %v18096_v63 }
 0x36c   :  { %15057 = vmatprep.mubr.msk.bf16.mxu1 %vm17149_vm0, %v22058_v10  ;;  %15134 = vmatpush3.bf16.msra.mxu1 %v15993_v20 }
 0x36d   :  { %15135 = vmatprep.subr.bf16.mxu1 %v22058_v10 }
 0x36e   :  { %v2151_v54 = vpop.f32.mrb[96].mxu1 }
 0x36f   :  { %v14883_v47 = vpop.f32.mrb[97].mxu1  ;;  %v18459_v41 = vadd.f32 %v2151_v54, %v18323_v57 }
 0x370   :  { %v2154_v33 = vpop.f32.mrb[98].mxu1  ;;  %15136 = vmatpush3.bf16.msra.mxu1 %v15994_v37 }
 0x371   :  { %v14884_v9 = vpop.f32.mrb[99].mxu1  ;;  %v18462_v56 = vadd.f32 %v2154_v33, %v18326_v39 }
 0x373   :  { %15058 = vmatmul.mubr.msk.bf16.gmra.mrb[204].mxu1 %vm1548_vm4, %v18108_v43 }
 0x374   :  { %15061 = vmatprep.mubr.msk.bf16.mxu1 %vm17149_vm0, %v22058_v10 }
 0x376   :  { %v2159_v63 = vpop.f32.mrb[100].mxu1 }
 0x377   :  { %v14887_v42 = vpop.f32.mrb[101].mxu1  ;;  %v18469_v31 = vadd.f32 %v2159_v63, %v18340_v59 }
 0x378   :  { %v2162_v17 = vpop.f32.mrb[102].mxu1 }
 0x379   :  { %v14888_v57 = vpop.f32.mrb[103].mxu1  ;;  %v18472_v20 = vadd.f32 %v2162_v17, %v18343_v15 }
 0x37b   :  { %15062 = vmatmul.mubr.msk.bf16.gmra.mrb[208].mxu1 %vm1548_vm4, %v18120_v28 }
 0x37c   :  { %15065 = vmatprep.mubr.msk.bf16.mxu1 %vm17149_vm0, %v22058_v10 }
 0x37e   :  { %v2167_v39 = vpop.f32.mrb[104].mxu1 }
 0x37f   :  { %v14891_v43 = vpop.f32.mrb[105].mxu1  ;;  %v18479_v14 = vadd.f32 %v2167_v39, %v18356_v16 }
 0x380   :  { %v2170_v37 = vpop.f32.mrb[106].mxu1 }
 0x381   :  { %v14892_v54 = vpop.f32.mrb[107].mxu1  ;;  %v18482_v59 = vadd.f32 %v2170_v37, %v18359_v36 }
 0x383   :  { %15066 = vmatmul.mubr.msk.bf16.gmra.mrb[212].mxu1 %vm1548_vm4, %v18132_v12 }
 0x384   :  { %15069 = vmatprep.mubr.msk.bf16.mxu1 %vm17149_vm0, %v22058_v10 }
 0x386   :  { %v2175_v28 = vpop.f32.mrb[108].mxu1 }
 0x387   :  { %v14895_v15 = vpop.f32.mrb[109].mxu1  ;;  %v18489_v47 = vadd.f32 %v2175_v28, %v18370_v11 }
 0x388   :  { %v2178_v33 = vpop.f32.mrb[110].mxu1 }
 0x389   :  { %v14896_v9 = vpop.f32.mrb[111].mxu1  ;;  %v18492_v16 = vadd.f32 %v2178_v33, %v18373_v13  ;;  %v2926_v13 = vrot.slane %v18423_v32, 4 }
 0x38b   :  { %15070 = vmatmul.mubr.msk.bf16.gmra.mrb[216].mxu1 %vm1548_vm4, %v18144_v30 }
 0x38c   :  { %15073 = vmatprep.mubr.msk.bf16.mxu1 %vm17149_vm0, %v22058_v10 }
 0x38e   :  { %v2183_v12 = vpop.f32.mrb[112].mxu1 }
 0x38f   :  { %v14899_v36 = vpop.f32.mrb[113].mxu1  ;;  %v18499_v63 = vadd.f32 %v2183_v12, %v18386_v27 }
 0x390   :  { %v2186_v42 = vpop.f32.mrb[114].mxu1 }
 0x391   :  { %v14900_v17 = vpop.f32.mrb[115].mxu1  ;;  %v18502_v11 = vadd.f32 %v2186_v42, %v18389_v34  ;;  %v2927_v34 = vsel %vm2030_vm13, %v18151_v23, %v2926_v13  ;;  %v3338_v23 = vld [vmem:[#allocation2 + $0x10] sm:$0xe0]  ;;  %v3352_v42 = vrot.slane %v18311_v4, 5  ;;  %v3354_v4 = vrot.slane %v18329_v58, 5 }
 0x393   :  { %15074 = vmatmul.mubr.msk.bf16.gmra.mrb[220].mxu1 %vm1548_vm4, %v18159_v3  ;;  %v2891_v3 = vld [vmem:[#allocation2 + $0xa0] sm:$0xf] }
 0x394   :  { %15077 = vmatprep.mubr.msk.bf16.mxu1 %vm17149_vm0, %v22058_v10  ;;  %v2928_v28 = vrot.slane %v2891_v3, 4 }
 0x396   :  { %v2191_v30 = vpop.f32.mrb[116].mxu1  ;;  %v2929_v12 = vsel %vm2030_vm13, %v2926_v13, %v2928_v28  ;;  %v3355_v28 = vsel %vm3350_vm11, %v3352_v42, %v3354_v4 }
 0x397   :  { %v14903_v57 = vpop.f32.mrb[117].mxu1  ;;  %v18510_v39 = vadd.f32 %v2191_v30, %v18402_v35 }
 0x398   :  { %v2194_v27 = vpop.f32.mrb[118].mxu1 }
 0x399   :  { %v14904_v43 = vpop.f32.mrb[119].mxu1  ;;  %v18513_v37 = vadd.f32 %v2194_v27, %v18405_v48 }
 0x39b   :  { %15078 = vmatmul.mubr.msk.bf16.gmra.mrb[224].mxu1 %vm1548_vm4, %v2927_v34 }
 0x39c   :  { %15081 = vmatprep.mubr.msk.bf16.mxu1 %vm17149_vm0, %v22058_v10 }
 0x39e   :  { %v2199_v54 = vpop.f32.mrb[120].mxu1 }
 0x39f   :  { %v18521_v15 = vadd.f32 %v2199_v54, %v18418_v19  ;;  %v14907_v35 = vpop.f32.mrb[121].mxu1 }
 0x3a0   :  { %v2202_v33 = vpop.f32.mrb[122].mxu1 }
 0x3a1   :  { %v18524_v9 = vadd.f32 %v2202_v33, %v18421_v7  ;;  %v14908_v48 = vpop.f32.mrb[123].mxu1  ;;  %v3351_v7 = vrot.slane %v3338_v23, 5  ;;  %v3356_v33 = vrot.slane %v18345_v61, 5 }
 0x3a3   :  { %15082 = vmatmul.mubr.msk.bf16.gmra.mrb[228].mxu1 %vm1548_vm4, %v2929_v12  ;;  %v3353_v27 = vsel %vm3350_vm11, %v3351_v7, %v3352_v42  ;;  %v3357_v23 = vsel %vm3350_vm11, %v3354_v4, %v3356_v33  ;;  %v16811_v42 = vld [vmem:[#allocation2 + $0x50] sm:$0xff] }
 0x3a4   :  { %15137 = vmatprep.mubr.msk.bf16.mxu1 %vm17149_vm0, %v22058_v10 }
 0x3a6   :  { %v2357_v36 = vpop.f32.mrb[124].mxu1 }
 0x3a7   :  { %v18532_v19 = vadd.f32 %v2357_v36, %v18434_v52  ;;  %v14919_v17 = vpop.f32.mrb[125].mxu1 }
 0x3a8   :  { %v2360_v30 = vpop.f32.mrb[126].mxu1  ;;  %v3358_v17 = vrot.slane %v16811_v42, 5 }
 0x3a9   :  { %v18535_v57 = vadd.f32 %v2360_v30, %v18438_v18  ;;  %v14920_v13 = vpop.f32.mrb[127].mxu1 }
 0x3aa   :  { %v3359_v13 = vsel %vm3350_vm11, %v3356_v33, %v3358_v17 }
 0x3ab   :  { %15138 = vmatmul.mubr.msk.bf16.vlgmr.msra.gmra.mrb[232].mxu1 %vm1548_vm4, %v3353_v27 }
 0x3ac   :  { %15141 = vmatprep.mubr.msk.bf16.mxu1 %vm17149_vm0, %v22058_v10 }
 0x3ae   :  { %v2365_v43 = vpop.f32.mrb[128].mxu1 }
 0x3af   :  { %v18543_v52 = vadd.f32 %v2365_v43, %v18447_v0  ;;  %v14923_v34 = vpop.f32.mrb[129].mxu1  ;;  %v3360_v43 = vrot.slane %v18375_v50, 5 }
 0x3b0   :  { %v2368_v3 = vpop.f32.mrb[130].mxu1 }
 0x3b1   :  { %v18546_v54 = vadd.f32 %v2368_v3, %v18451_v24  ;;  %v14924_v18 = vpop.f32.mrb[131].mxu1 }
 0x3b2   :  { %v3361_v18 = vsel %vm3350_vm11, %v3358_v17, %v3360_v43 }
 0x3b3   :  { %15142 = vmatmul.mubr.msk.bf16.gmra.mrb[236].mxu1 %vm1548_vm4, %v3355_v28 }
 0x3b4   :  { %15145 = vmatprep.mubr.msk.bf16.mxu1 %vm17149_vm0, %v22058_v10 }
 0x3b6   :  { %v2373_v35 = vpop.f32.mrb[132].mxu1 }
 0x3b7   :  { %v18554_v58 = vadd.f32 %v2373_v35, %v18459_v41  ;;  %v14927_v0 = vpop.f32.mrb[133].mxu1  ;;  %v3362_v35 = vrot.slane %v18391_v40, 5  ;;  %v3364_v40 = vrot.slane %v18407_v6, 5 }
 0x3b8   :  { %v2376_v48 = vpop.f32.mrb[134].mxu1 }
 0x3b9   :  { %v18557_v12 = vadd.f32 %v2376_v48, %v18462_v56  ;;  %v14928_v24 = vpop.f32.mrb[135].mxu1  ;;  %v15995_v48 = vld [vmem:[%s21904_s5 + $0xc0] sm:$0xff]   ;;  %v3365_v6 = vsel %vm3350_vm11, %v3362_v35, %v3364_v40 }
 0x3ba   :  { %v15996_v24 = vld [vmem:[%s21904_s5 + $0x80] sm:$0xff]   ;;  %14438 = vmatprep.subr.bf16.mxu0 %v15995_v48  ;;  %v16001_v48 = vld [vmem:[%s21904_s5 + $0xd8] sm:$0xff]  }
 0x3bb   :  { %15146 = vmatmul.mubr.msk.bf16.gmra.mrb[240].mxu1 %vm1548_vm4, %v3357_v23  ;;  %v3363_v23 = vsel %vm3350_vm11, %v3360_v43, %v3362_v35  ;;  %14439 = vmatpush3.bf16.msra.mxu0 %v15996_v24 }
 0x3bc   :  { %15149 = vmatprep.mubr.msk.bf16.mxu1 %vm17149_vm0, %v22058_v10 }
 0x3be   :  { %v2381_v36 = vpop.f32.mrb[136].mxu1 }
 0x3bf   :  { %v18564_v61 = vadd.f32 %v2381_v36, %v18469_v31  ;;  %v14931_v41 = vpop.f32.mrb[137].mxu1 }
 0x3c0   :  { %v2384_v30 = vpop.f32.mrb[138].mxu1 }
 0x3c1   :  { %v18567_v7 = vadd.f32 %v2384_v30, %v18472_v20  ;;  %v14932_v56 = vpop.f32.mrb[139].mxu1  ;;  %v15997_v30 = vld [vmem:[%s21904_s5 + $0xc8] sm:$0xff]  }
 0x3c2   :  { %v15998_v56 = vld [vmem:[%s21904_s5 + $0x88] sm:$0xff]   ;;  %14440 = vmatprep.subr.bf16.mxu0 %v15997_v30 }
 0x3c3   :  { %15150 = vmatmul.mubr.msk.bf16.gmra.mrb[244].mxu1 %vm1548_vm4, %v3359_v13  ;;  %14441 = vmatpush3.bf16.msra.mxu0 %v15998_v56 }
 0x3c4   :  { %15153 = vmatprep.mubr.msk.bf16.mxu1 %vm17149_vm0, %v22058_v10 }
 0x3c6   :  { %v2389_v27 = vpop.f32.mrb[140].mxu1 }
 0x3c7   :  { %v18575_v4 = vadd.f32 %v2389_v27, %v18479_v14  ;;  %v14935_v31 = vpop.f32.mrb[141].mxu1 }
 0x3c8   :  { %v2392_v34 = vpop.f32.mrb[142].mxu1 }
 0x3c9   :  { %v18578_v3 = vadd.f32 %v2392_v34, %v18482_v59  ;;  %v14936_v20 = vpop.f32.mrb[143].mxu1 }
 0x3ca   :  { %v15999_v20 = vld [vmem:[%s21904_s5 + $0xd0] sm:$0xff]  }
 0x3cb   :  { %15154 = vmatmul.mubr.msk.bf16.gmra.mrb[248].mxu1 %vm1548_vm4, %v3361_v18  ;;  %v16000_v18 = vld [vmem:[%s21904_s5 + $0x90] sm:$0xff]   ;;  %14442 = vmatprep.subr.bf16.mxu0 %v15999_v20 }
 0x3cc   :  { %15157 = vmatprep.mubr.msk.bf16.mxu1 %vm17149_vm0, %v22058_v10  ;;  %14443 = vmatpush3.bf16.msra.mxu0 %v16000_v18 }
 0x3cd   :  { %14444 = vmatprep.subr.bf16.mxu0 %v16001_v48 }
 0x3ce   :  { %v2397_v28 = vpop.f32.mrb[144].mxu1 }
 0x3cf   :  { %v18586_v50 = vadd.f32 %v2397_v28, %v18489_v47  ;;  %v14939_v14 = vpop.f32.mrb[145].mxu1 }
 0x3d0   :  { %v2400_v33 = vpop.f32.mrb[146].mxu1 }
 0x3d1   :  { %v18589_v0 = vadd.f32 %v2400_v33, %v18492_v16  ;;  %v14940_v59 = vpop.f32.mrb[147].mxu1 }
 0x3d3   :  { %15158 = vmatmul.mubr.msk.bf16.gmra.mrb[252].mxu1 %vm1548_vm4, %v3363_v23 }
 0x3d4   :  { %15161 = vmatprep.mubr.msk.bf16.mxu1 %vm17149_vm0, %v22058_v10 }
 0x3d6   :  { %v2405_v47 = vpop.f32.mrb[148].mxu1 }
 0x3d7   :  { %v18603_v16 = vadd.f32 %v2405_v47, %v18499_v63  ;;  %v14943_v36 = vpop.f32.mrb[149].mxu1 }
 0x3d8   :  { %v2408_v42 = vpop.f32.mrb[150].mxu1 }
 0x3d9   :  { %v18606_v17 = vadd.f32 %v2408_v42, %v18502_v11  ;;  %v14944_v41 = vpop.f32.mrb[151].mxu1  ;;  %v3366_v11 = vrot.slane %v18423_v32, 5  ;;  %v3368_v32 = vrot.slane %v18045_v5, 5 }
 0x3db   :  { %15162 = vmatmul.mubr.msk.bf16.gmra.mrb[0].mxu1 %vm1548_vm4, %v3365_v6  ;;  %v3367_v28 = vsel %vm3350_vm11, %v3364_v40, %v3366_v11  ;;  %v3369_v24 = vsel %vm3350_vm11, %v3366_v11, %v3368_v32  ;;  %v16003_v6 = vld [vmem:[%s21904_s5 + $0xe0] sm:$0xff]  }
 0x3dc   :  { %15165 = vmatprep.mubr.msk.bf16.mxu1 %vm17149_vm0, %v22058_v10 }
 0x3de   :  { %v2413_v63 = vpop.f32.mrb[152].mxu1 }
 0x3df   :  { %v18620_v13 = vadd.f32 %v2413_v63, %v18510_v39  ;;  %v14947_v27 = vpop.f32.mrb[153].mxu1 }
 0x3e0   :  { %v2416_v43 = vpop.f32.mrb[154].mxu1 }
 0x3e1   :  { %v18623_v31 = vadd.f32 %v2416_v43, %v18513_v37  ;;  %v14948_v34 = vpop.f32.mrb[155].mxu1 }
 0x3e3   :  { %15166 = vmatmul.mubr.msk.bf16.gmra.mrb[4].mxu1 %vm1548_vm4, %v3367_v28 }
 0x3e4   :  { %15169 = vmatprep.mubr.msk.bf16.mxu1 %vm17149_vm0, %v22058_v10 }
 0x3e6   :  { %v2421_v39 = vpop.f32.mrb[156].mxu1 }
 0x3e7   :  { %v14951_v37 = vpop.f32.mrb[157].mxu1  ;;  %v18637_v35 = vadd.f32 %v2421_v39, %v18521_v15  ;;  %v16002_v15 = vld [vmem:[%s21904_s5 + $0x98] sm:$0xff]  }
 0x3e8   :  { %v2424_v14 = vpop.f32.mrb[158].mxu1  ;;  %14445 = vmatpush3.bf16.msra.mxu0 %v16002_v15  ;;  %v16008_v37 = vld [vmem:[%s21904_s5 + $0xe8] sm:$0xff]  }
 0x3e9   :  { %v14952_v33 = vpop.f32.mrb[159].mxu1  ;;  %v18640_v59 = vadd.f32 %v2424_v14, %v18524_v9  ;;  %14446 = vmatprep.subr.bf16.mxu0 %v16003_v6 }
 0x3eb   :  { %15170 = vmatmul.mubr.msk.bf16.gmra.mrb[8].mxu1 %vm1548_vm4, %v3369_v24 }
 0x3ee   :  { %v2531_v5 = vpop.f32.mrb[160].mxu1 }
 0x3ef   :  { %v2602_v23 = vadd.f32 %v2531_v5, %v18532_v19  ;;  %v14963_v40 = vpop.f32.mrb[161].mxu1  ;;  %v16009_v5 = vld [vmem:[%s21904_s5 + $0x8] sm:$0xff]  }
 0x3f0   :  { %v2534_v47 = vpop.f32.mrb[162].mxu1 }
 0x3f1   :  { %v2603_v9 = vadd.f32 %v2534_v47, %v18535_v57  ;;  %v14964_v36 = vpop.f32.mrb[163].mxu1  ;;  %v18653_v42 = vadd.f32 %v18184_v62, %v2602_v23  ;;  %v16004_v57 = vld [vmem:[%s21904_s5 + $0xa0] sm:$0xff]   ;;  %v16011_v23 = vld [vmem:[%s21904_s5 + $0x50] sm:$0xff]  }
 0x3f2   :  { %14447 = vmatpush3.bf16.msra.mxu0 %v16004_v57  ;;  %v16019_v57 = vld [vmem:[%s21904_s5 + $0x68] sm:$0xff]  }
 0x3f3   :  { %v18656_v41 = vadd.f32 %v18188_v44, %v2603_v9  ;;  %v16005_v44 = vld [vmem:[%s21904_s5 + $0x40] sm:$0xff]   ;;  %14448 = vmatprep.subr.bf16.mxu0 %v16008_v37 }
 0x3f4   :  { %14368 = vmatprep.subr.bf16.mxu1 %v16005_v44 }
 0x3f6   :  { %v2539_v30 = vpop.f32.mrb[164].mxu1 }
 0x3f7   :  { %v2604_v56 = vadd.f32 %v2539_v30, %v18543_v52  ;;  %v14967_v19 = vpop.f32.mrb[165].mxu1  ;;  %v16006_v52 = vld [vmem:[%s21904_s5] sm:$0xff]  }
 0x3f8   :  { %v2542_v63 = vpop.f32.mrb[166].mxu1  ;;  %14369 = vmatpush3.bf16.msra.mxu1 %v16006_v52  ;;  %v16014_v19 = vld [vmem:[%s21904_s5 + $0x18] sm:$0xff]  }
 0x3f9   :  { %v2605_v62 = vadd.f32 %v2542_v63, %v18546_v54  ;;  %v14968_v11 = vpop.f32.mrb[167].mxu1  ;;  %v18667_v27 = vadd.f32 %v18198_v53, %v2604_v56 }
 0x3fb   :  { %v18676_v43 = vadd.f32 %v18202_v1, %v2605_v62  ;;  %v16007_v1 = vld [vmem:[%s21904_s5 + $0x48] sm:$0xff]  }
 0x3fc   :  { %14370 = vmatprep.subr.bf16.mxu1 %v16007_v1 }
 0x3fd   :  { %14371 = vmatpush3.bf16.msra.mxu1 %v16009_v5 }
 0x3fe   :  { %v2547_v54 = vpop.f32.mrb[168].mxu1  ;;  %14372 = vmatprep.subr.bf16.mxu1 %v16011_v23 }
 0x3ff   :  { %v2606_v34 = vadd.f32 %v2547_v54, %v18554_v58  ;;  %v14971_v53 = vpop.f32.mrb[169].mxu1 }
 0x400   :  { %v2550_v20 = vpop.f32.mrb[170].mxu1  ;;  %v16020_v53 = vld [vmem:[%s21904_s5 + $0x28] sm:$0xff]  }
 0x401   :  { %v2607_v18 = vadd.f32 %v2550_v20, %v18557_v12  ;;  %v14972_v28 = vpop.f32.mrb[171].mxu1  ;;  %v18681_v32 = vadd.f32 %v18212_v26, %v2606_v34 }
 0x403   :  { %v18684_v39 = vadd.f32 %v18216_v2, %v2607_v18  ;;  %v16025_v18 = vld [vmem:[%s21904_s5 + $0x78] sm:$0xff]  }
 0x406   :  { %v2555_v58 = vpop.f32.mrb[172].mxu1 }
 0x407   :  { %v2608_v14 = vadd.f32 %v2555_v58, %v18564_v61  ;;  %v14975_v33 = vpop.f32.mrb[173].mxu1  ;;  %v16010_v61 = vld [vmem:[%s21904_s5 + $0xa8] sm:$0xff]  }
 0x408   :  { %v2558_v12 = vpop.f32.mrb[174].mxu1  ;;  %14449 = vmatpush3.bf16.msra.mxu0 %v16010_v61 }
 0x409   :  { %v2609_v26 = vadd.f32 %v2558_v12, %v18567_v7  ;;  %v14976_v48 = vpop.f32.mrb[175].mxu1  ;;  %v18695_v2 = vadd.f32 %v18224_v49, %v2608_v14  ;;  %v16012_v49 = vld [vmem:[%s21904_s5 + $0x10] sm:$0xff]   ;;  %v16013_v7 = vld [vmem:[%s21904_s5 + $0x58] sm:$0xff]  }
 0x40a   :  { %14373 = vmatpush3.bf16.msra.mxu1 %v16012_v49 }
 0x40b   :  { %v18698_v24 = vadd.f32 %v18228_v25, %v2609_v26  ;;  %14374 = vmatprep.subr.bf16.mxu1 %v16013_v7  ;;  %v16026_v26 = vld [vmem:[%s21904_s5 + $0x38] sm:$0xff]  }
 0x40e   :  { %v2563_v25 = vpop.f32.mrb[176].mxu1  ;;  %14375 = vmatpush3.bf16.msra.mxu1 %v16014_v19  ;;  %v22080_v19 = vld [vmem:[#allocation50_spill] sm:$0xff] }
 0x40f   :  { %v2610_v40 = vadd.f32 %v2563_v25, %v18575_v4  ;;  %v14979_v15 = vpop.f32.mrb[177].mxu1  ;;  %v16015_v4 = vld [vmem:[%s21904_s5 + $0xf0] sm:$0xff]  }
 0x410   :  { %v2566_v47 = vpop.f32.mrb[178].mxu1  ;;  %14450 = vmatprep.subr.bf16.mxu0 %v16015_v4 }
 0x411   :  { %v2611_v9 = vadd.f32 %v2566_v47, %v18578_v3  ;;  %v14980_v36 = vpop.f32.mrb[179].mxu1  ;;  %v18718_v30 = vadd.f32 %v18236_v8, %v2610_v40  ;;  %v16016_v3 = vld [vmem:[%s21904_s5 + $0xb0] sm:$0xff]   ;;  %v16017_v8 = vld [vmem:[%s21904_s5 + $0x60] sm:$0xff]  }
 0x412   :  { %14451 = vmatpush3.bf16.msra.mxu0 %v16016_v3  ;;  %14376 = vmatprep.subr.bf16.mxu1 %v16017_v8 }
 0x413   :  { %v18721_v56 = vadd.f32 %v18240_v51, %v2611_v9  ;;  %v16018_v51 = vld [vmem:[%s21904_s5 + $0x20] sm:$0xff]  }
 0x414   :  { %14377 = vmatpush3.bf16.msra.mxu1 %v16018_v51 }
 0x415   :  { %14378 = vmatprep.subr.bf16.mxu1 %v16019_v57  ;;  %v22082_v57 = vld [vmem:[#allocation52_spill] sm:$0xff] }
 0x416   :  { %v2571_v6 = vpop.f32.mrb[180].mxu1 }
 0x417   :  { %v2612_v63 = vadd.f32 %v2571_v6, %v18586_v50  ;;  %v14983_v62 = vpop.f32.mrb[181].mxu1  ;;  %v16021_v50 = vld [vmem:[%s21904_s5 + $0xf8] sm:$0xff]  }
 0x418   :  { %v2574_v11 = vpop.f32.mrb[182].mxu1  ;;  %14379 = vmatpush3.bf16.msra.mxu1 %v16020_v53  ;;  %14452 = vmatprep.subr.bf16.mxu0 %v16021_v50 }
 0x419   :  { %v2613_v44 = vadd.f32 %v2574_v11, %v18589_v0  ;;  %v14984_v52 = vpop.f32.mrb[183].mxu1  ;;  %v18744_v54 = vadd.f32 %v18248_v29, %v2612_v63  ;;  %v16022_v0 = vld [vmem:[%s21904_s5 + $0xb8] sm:$0xff]   ;;  %v16023_v29 = vld [vmem:[%s21904_s5 + $0x70] sm:$0xff]  }
 0x41a   :  { %14453 = vmatpush3.bf16.msra.mxu0 %v16022_v0  ;;  %14380 = vmatprep.subr.bf16.mxu1 %v16023_v29  ;;  %v22084_v0 = vld [vmem:[#allocation54_spill] sm:$0xff] }
 0x41b   :  { %v18747_v34 = vadd.f32 %v18252_v21, %v2613_v44  ;;  %v16024_v21 = vld [vmem:[%s21904_s5 + $0x30] sm:$0xff]  }
 0x41c   :  { %14381 = vmatpush3.bf16.msra.mxu1 %v16024_v21 }
 0x41d   :  { %14382 = vmatprep.subr.bf16.mxu1 %v16025_v18 }
 0x41e   :  { %v2579_v20 = vpop.f32.mrb[184].mxu1 }
 0x41f   :  { %v2614_v28 = vadd.f32 %v2579_v20, %v18603_v16  ;;  %v14987_v1 = vpop.f32.mrb[185].mxu1  ;;  %v16027_v16 = vld [vmem:[%s21904_s5 + $0x1c0] sm:$0xff]  }
 0x420   :  { %v2582_v37 = vpop.f32.mrb[186].mxu1  ;;  %14383 = vmatpush3.bf16.msra.mxu1 %v16026_v26  ;;  %14578 = vmatprep.subr.bf16.mxu0 %v16027_v16 }
 0x421   :  { %v2615_v58 = vadd.f32 %v2582_v37, %v18606_v17  ;;  %v14988_v14 = vpop.f32.mrb[187].mxu1  ;;  %v18770_v33 = vadd.f32 %v18260_v46, %v2614_v28 }
 0x422   :  { %v16037_v14 = vld [vmem:[%s21904_s5 + $0x140] sm:$0xff]  }
 0x423   :  { %v18773_v12 = vadd.f32 %v18264_v60, %v2615_v58  ;;  %v22086_v58 = vld [vmem:[#allocation56_spill] sm:$0xff]  ;;  %14508 = vmatprep.subr.bf16.mxu1 %v16037_v14 }
 0x426   :  { %v2587_v48 = vpop.f32.mrb[188].mxu1 }
 0x427   :  { %v2616_v17 = vadd.f32 %v2587_v48, %v18620_v13  ;;  %v14991_v46 = vpop.f32.mrb[189].mxu1  ;;  %v22079_v13 = vld [vmem:[#allocation49_spill] sm:$0xff] }
 0x428   :  { %v2590_v5 = vpop.f32.mrb[190].mxu1  ;;  %v22087_v46 = vld [vmem:[#allocation57_spill] sm:$0xff] }
 0x429   :  { %v2617_v61 = vadd.f32 %v2590_v5, %v18623_v31  ;;  %v14992_v23 = vpop.f32.mrb[191].mxu1  ;;  %v18784_v60 = vadd.f32 %v18272_v55, %v2616_v17 }
 0x42b   :  { %v18787_v49 = vadd.f32 %v18276_v45, %v2617_v61  ;;  %v22088_v61 = vld [vmem:[#allocation58_spill] sm:$0xff] }
 0x42e   :  { %v2595_v25 = vpop.f32.mrb[192].mxu1 }
 0x42f   :  { %v2618_v7 = vadd.f32 %v2595_v25, %v18637_v35  ;;  %v14995_v40 = vpop.f32.mrb[193].mxu1  ;;  %v22081_v35 = vld [vmem:[#allocation51_spill] sm:$0xff] }
 0x430   :  { %v2598_v15 = vpop.f32.mrb[194].mxu1 }
 0x431   :  { %v2619_v47 = vadd.f32 %v2598_v15, %v18640_v59  ;;  %v14996_v9 = vpop.f32.mrb[195].mxu1  ;;  %v18792_v36 = vadd.f32 %v22079_v13, %v2618_v7 }
 0x433   :  { %v18795_v31 = vadd.f32 %v22080_v19, %v2619_v47  ;;  %v22090_v19 = vld [vmem:[#allocation60_spill] sm:$0xff] }
 0x436   :  { %v3015_v4 = vpop.f32.mrb[196].mxu1 }
 0x437   :  { %v3086_v55 = vadd.f32 %v3015_v4, %v18653_v42  ;;  %v15051_v3 = vpop.f32.mrb[197].mxu1  ;;  %v22083_v42 = vld [vmem:[#allocation53_spill] sm:$0xff] }
 0x438   :  { %v3018_v45 = vpop.f32.mrb[198].mxu1 }
 0x439   :  { %v3087_v8 = vadd.f32 %v3018_v45, %v18656_v41  ;;  %v15052_v51 = vpop.f32.mrb[199].mxu1  ;;  %v18800_v6 = vadd.f32 %v22081_v35, %v3086_v55 }
 0x43b   :  { %v18803_v59 = vadd.f32 %v22082_v57, %v3087_v8  ;;  %v22092_v57 = vld [vmem:[#allocation62_spill] sm:$0xff] }
 0x43e   :  { %v3023_v63 = vpop.f32.mrb[200].mxu1 }
 0x43f   :  { %v3088_v62 = vadd.f32 %v3023_v63, %v18667_v27  ;;  %v15055_v11 = vpop.f32.mrb[201].mxu1  ;;  %v22085_v27 = vld [vmem:[#allocation55_spill] sm:$0xff] }
 0x440   :  { %v3026_v44 = vpop.f32.mrb[202].mxu1 }
 0x441   :  { %v3089_v52 = vadd.f32 %v3026_v44, %v18676_v43  ;;  %v15056_v53 = vpop.f32.mrb[203].mxu1  ;;  %v18808_v50 = vadd.f32 %v22083_v42, %v3088_v62 }
 0x443   :  { %v18811_v41 = vadd.f32 %v22084_v0, %v3089_v52  ;;  %v22094_v0 = vld [vmem:[#allocation64_spill] sm:$0xff] }
 0x446   :  { %v3031_v29 = vpop.f32.mrb[204].mxu1 }
 0x447   :  { %v3090_v21 = vadd.f32 %v3031_v29, %v18681_v32  ;;  %v15059_v20 = vpop.f32.mrb[205].mxu1 }
 0x448   :  { %v3034_v18 = vpop.f32.mrb[206].mxu1 }
 0x449   :  { %v3091_v28 = vadd.f32 %v3034_v18, %v18684_v39  ;;  %v15060_v1 = vpop.f32.mrb[207].mxu1  ;;  %v18816_v37 = vadd.f32 %v22085_v27, %v3090_v21 }
 0x44b   :  { %v18819_v43 = vadd.f32 %v22086_v58, %v3091_v28  ;;  %v22096_v58 = vld [vmem:[#allocation66_spill] sm:$0xff] }
 0x44e   :  { %v3039_v26 = vpop.f32.mrb[208].mxu1 }
 0x44f   :  { %v3092_v16 = vadd.f32 %v3039_v26, %v18695_v2  ;;  %v15063_v32 = vpop.f32.mrb[209].mxu1  ;;  %v22089_v2 = vld [vmem:[#allocation59_spill] sm:$0xff] }
 0x450   :  { %v3042_v48 = vpop.f32.mrb[210].mxu1 }
 0x451   :  { %v3093_v17 = vadd.f32 %v3042_v48, %v18698_v24  ;;  %v15064_v39 = vpop.f32.mrb[211].mxu1  ;;  %v18827_v5 = vadd.f32 %v22087_v46, %v3092_v16  ;;  %v18872_v46 = vld [vmem:[#allocation10] ss:$0 sm:$0xff] }
 0x453   :  { %v18830_v23 = vadd.f32 %v22088_v61, %v3093_v17 }
 0x456   :  { %v3047_v25 = vpop.f32.mrb[212].mxu1 }
 0x457   :  { %v3094_v7 = vadd.f32 %v3047_v25, %v18718_v30  ;;  %v15067_v40 = vpop.f32.mrb[213].mxu1  ;;  %v22091_v30 = vld [vmem:[#allocation61_spill] sm:$0xff] }
 0x458   :  { %v3050_v15 = vpop.f32.mrb[214].mxu1 }
 0x459   :  { %v3095_v47 = vadd.f32 %v3050_v15, %v18721_v56  ;;  %v15068_v9 = vpop.f32.mrb[215].mxu1  ;;  %v18835_v13 = vadd.f32 %v22089_v2, %v3094_v7 }
 0x45b   :  { %v18838_v24 = vadd.f32 %v22090_v19, %v3095_v47  ;;  %v4034_v19 = vld [vmem:[#allocation3] sm:$0x80] }
 0x45e   :  { %v3055_v4 = vpop.f32.mrb[216].mxu1 }
 0x45f   :  { %v3096_v55 = vadd.f32 %v3055_v4, %v18744_v54  ;;  %v15071_v3 = vpop.f32.mrb[217].mxu1  ;;  %v22093_v54 = vld [vmem:[#allocation63_spill] sm:$0xff] }
 0x460   :  { %v3058_v45 = vpop.f32.mrb[218].mxu1 }
 0x461   :  { %v3097_v8 = vadd.f32 %v3058_v45, %v18747_v34  ;;  %v15072_v51 = vpop.f32.mrb[219].mxu1  ;;  %v18843_v35 = vadd.f32 %v22091_v30, %v3096_v55  ;;  %v22097_v55 = vld [vmem:[#allocation33_spill] sm:$0xff]  ;;  %v22098_v45 = vld [vmem:[#allocation34_spill] sm:$0xff] }
 0x463   :  { %v18846_v56 = vadd.f32 %v22092_v57, %v3097_v8 }
 0x466   :  { %v3063_v63 = vpop.f32.mrb[220].mxu1 }
 0x467   :  { %v3098_v62 = vadd.f32 %v3063_v63, %v18770_v33  ;;  %v15075_v11 = vpop.f32.mrb[221].mxu1  ;;  %v22095_v33 = vld [vmem:[#allocation65_spill] sm:$0xff] }
 0x468   :  { %v3066_v44 = vpop.f32.mrb[222].mxu1 }
 0x469   :  { %v3099_v52 = vadd.f32 %v3066_v44, %v18773_v12  ;;  %v15076_v53 = vpop.f32.mrb[223].mxu1  ;;  %v18851_v42 = vadd.f32 %v22093_v54, %v3098_v62 }
 0x46a   :  { %v3803_v53 = vld [vmem:[#allocation3] sm:$0xf8] }
 0x46b   :  { %v18854_v34 = vadd.f32 %v22094_v0, %v3099_v52 }
 0x46e   :  { %v3071_v29 = vpop.f32.mrb[224].mxu1 }
 0x46f   :  { %v3100_v21 = vadd.f32 %v3071_v29, %v18784_v60  ;;  %v15079_v20 = vpop.f32.mrb[225].mxu1 }
 0x470   :  { %v3074_v18 = vpop.f32.mrb[226].mxu1 }
 0x471   :  { %v3101_v28 = vadd.f32 %v3074_v18, %v18787_v49  ;;  %v15080_v1 = vpop.f32.mrb[227].mxu1  ;;  %v18859_v27 = vadd.f32 %v22095_v33, %v3100_v21  ;;  %v3977_v21 = vld [vmem:[#allocation3] sm:$0xf0]  ;;  %v3823_v18 = vrot.slane %v3803_v53, 3  ;;  %v16030_v53 = vld [vmem:[%s21904_s5 + $0x188] sm:$0xff]  }
 0x473   :  { %v18862_v12 = vadd.f32 %v22096_v58, %v3101_v28 }
 0x476   :  { %v3079_v14 = vpop.f32.mrb[228].mxu1 }
 0x477   :  { %v3102_v26 = vadd.f32 %v3079_v14, %v18792_v36  ;;  %v15083_v16 = vpop.f32.mrb[229].mxu1 }
 0x478   :  { %v3082_v32 = vpop.f32.mrb[230].mxu1  ;;  %v3997_v16 = vrot.slane %v3977_v21, 4  ;;  %v16031_v21 = vld [vmem:[%s21904_s5 + $0x1d0] sm:$0xff]  }
 0x479   :  { %v3103_v48 = vadd.f32 %v3082_v32, %v18795_v31  ;;  %v15084_v17 = vpop.f32.mrb[231].mxu1  ;;  %v18867_v60 = vadd.f32 %v18427_v38, %v3102_v26  ;;  %v3860_v31 = vld [vmem:[#allocation3] sm:$0xf8] }
 0x47a   :  { %v3871_v9 = vshrl.u32 %v3860_v31, 16 }
 0x47b   :  { %v18870_v49 = vadd.f32 %v18431_v22, %v3103_v48  ;;  %v3874_v22 = vshll.u32 %v3860_v31, 16  ;;  %v22099_v48 = vld [vmem:[#allocation35_spill] sm:$0xff] }
 0x47c   :  { %v3873_v57 = vrot.slane %v3871_v9, 3  ;;  %v16038_v31 = vld [vmem:[%s21904_s5 + $0x100] sm:$0xff]  }
 0x47d   :  { %v3876_v52 = vrot.slane %v3874_v22, 4 }
 0x47e   :  { %v3455_v39 = vpop.f32.mrb[232].mxu1 }
 0x47f   :  { %v3526_v61 = vadd.f32 %v3455_v39, %v18800_v6  ;;  %v15139_v25 = vpop.f32.mrb[233].mxu1  ;;  %v3877_v1 = vor.u32 %v3876_v52, %v3873_v57  ;;  %v22100_v39 = vld [vmem:[#allocation36_spill] sm:$0xff] }
 0x480   :  { %v3458_v7 = vpop.f32.mrb[234].mxu1 }
 0x481   :  { %v3551_v36 = vadd.f32 %v18872_v46, %v3526_v61  ;;  %v3527_v40 = vadd.f32 %v3458_v7, %v18803_v59  ;;  %v15140_v15 = vpop.f32.mrb[235].mxu1  ;;  %v4045_v59 = vshrl.u32 %v4034_v19, 16  ;;  %v16039_v19 = vld [vmem:[%s21904_s5 + $0x148] sm:$0xff]  }
 0x483   :  { %v3569_v47 = vmax.f32 %v3551_v36, 0.0  ;;  %v3552_v38 = vadd.f32 %v18872_v46, %v3527_v40  ;;  %v4047_v20 = vrot.slane %v4045_v59, 7 }
 0x485   :  { %v3570_v2 = vmax.f32 %v3552_v38, 0.0  ;;  %v3587_v3 = vmul.f32 %v22097_v55, %v3569_v47 }
 0x486   :  { %v3463_v4 = vpop.f32.mrb[236].mxu1 }
 0x487   :  { %v3588_v6 = vmul.f32 %v22098_v45, %v3570_v2  ;;  %v3528_v8 = vadd.f32 %v3463_v4, %v18808_v50  ;;  %v15143_v51 = vpop.f32.mrb[237].mxu1 }
 0x488   :  { %v3466_v30 = vpop.f32.mrb[238].mxu1 }
 0x489   :  { %v18881_v63 = vpack.c.bf16 %v3588_v6, %v3587_v3  ;;  %v3553_v62 = vadd.f32 %v18872_v46, %v3528_v8  ;;  %v3529_v11 = vadd.f32 %v3466_v30, %v18811_v41  ;;  %v15144_v44 = vpop.f32.mrb[239].mxu1 }
 0x48b   :  { %3614 = vst [vmem:[#allocation3 + $0x10] sm:$0xff] %v18881_v63  ;;  %v3571_v54 = vmax.f32 %v3553_v62, 0.0  ;;  %v3554_v0 = vadd.f32 %v18872_v46, %v3529_v11  ;;  %v3879_v50 = vshrl.u32 %v18881_v63, 16  ;;  %v3882_v29 = vshll.u32 %v18881_v63, 16  ;;  %v16041_v62 = vld [vmem:[%s21904_s5 + $0x108] sm:$0xff]  }
 0x48c   :  { %v3824_v26 = vrot.slane %v18881_v63, 3  ;;  %v3998_v32 = vrot.slane %v18881_v63, 4 }
 0x48d   :  { %v3572_v28 = vmax.f32 %v3554_v0, 0.0  ;;  %v3881_v33 = vrot.slane %v3879_v50, 3  ;;  %v3884_v58 = vrot.slane %v3882_v29, 4  ;;  %v18889_v14 = vrot.slane %v3879_v50, 7 }
 0x48e   :  { %v3471_v41 = vpop.f32.mrb[240].mxu1  ;;  %v3589_v17 = vmul.f32 %v22099_v48, %v3571_v54  ;;  %v3825_v3 = vsel %vm1842_vm12, %v3823_v18, %v3824_v26  ;;  %v3999_v6 = vsel %vm2030_vm13, %v3997_v16, %v3998_v32 }
 0x48f   :  { %v3590_v61 = vmul.f32 %v22100_v39, %v3572_v28  ;;  %v3530_v25 = vadd.f32 %v3471_v41, %v18816_v37  ;;  %v15147_v7 = vpop.f32.mrb[241].mxu1  ;;  %v3885_v36 = vor.u32 %v3884_v58, %v3881_v33  ;;  %v4054_v15 = vor.u32 %v18889_v14, %v3882_v29  ;;  %v16028_v37 = vld [vmem:[%s21904_s5 + $0x180] sm:$0xff]   ;;  %v22102_v28 = vld [vmem:[#allocation42_spill] sm:$0xff] }
 0x490   :  { %v3474_v40 = vpop.f32.mrb[242].mxu1 }
 0x491   :  { %v18900_v47 = vpack.c.bf16 %v3590_v61, %v3589_v17  ;;  %v3555_v38 = vadd.f32 %v18872_v46, %v3530_v25  ;;  %v3531_v9 = vadd.f32 %v3474_v40, %v18819_v43  ;;  %v15148_v2 = vpop.f32.mrb[243].mxu1  ;;  %v3886_v22 = vsel %vm1586_vm1, %v3877_v1, %v3885_v36  ;;  %v16029_v43 = vld [vmem:[%s21904_s5 + $0x1c8] sm:$0xff]   ;;  %v16032_v40 = vld [vmem:[%s21904_s5 + $0x190] sm:$0xff]  }
 0x492   :  { %5187 = vmatprep.mubr.bf16.mxu1 %v3886_v22  ;;  %v4055_v4 = vsel %vm2235_vm10, %v4047_v20, %v4054_v15  ;;  %v22101_v20 = vld [vmem:[#allocation39_spill] sm:$0xff]  ;;  %v16044_v15 = vld [vmem:[%s21904_s5 + $0x110] sm:$0xff]  }
 0x493   :  { %3615 = vst [vmem:[#allocation3 + $0x20] sm:$0xff] %v18900_v47  ;;  %v3573_v8 = vmax.f32 %v3555_v38, 0.0  ;;  %v3556_v51 = vadd.f32 %v18872_v46, %v3531_v9  ;;  %5292 = vmatprep.mubr.bf16.mxu0 %v4055_v4  ;;  %5188 = vmatmul.mubr.bf16.vlgmr.msra.gmra.mrb[12].mxu1 %v3825_v3  ;;  %v18920_v30 = vshrl.u32 %v18900_v47, 16  ;;  %v18923_v57 = vshll.u32 %v18900_v47, 16 }
 0x494   :  { %5293 = vmatmul.mubr.bf16.vlgmr.msra.gmra.mrb[128].mxu0 %v3999_v6  ;;  %v3826_v59 = vrot.slane %v18900_v47, 3  ;;  %v4000_v63 = vrot.slane %v18900_v47, 4  ;;  %14509 = vmatpush3.bf16.msra.mxu1 %v16038_v31  ;;  %v16034_v6 = vld [vmem:[%s21904_s5 + $0x198] sm:$0xff]  }
 0x495   :  { %v3574_v11 = vmax.f32 %v3556_v51, 0.0  ;;  %14579 = vmatpush3.bf16.msra.mxu0 %v16028_v37  ;;  %v3890_v44 = vrot.slane %v18920_v30, 3  ;;  %v3893_v52 = vrot.slane %v18923_v57, 4  ;;  %14510 = vmatprep.subr.bf16.mxu1 %v16039_v19  ;;  %v4059_v0 = vrot.slane %v18920_v30, 7 }
 0x496   :  { %v3479_v54 = vpop.f32.mrb[244].mxu1  ;;  %v3827_v50 = vsel %vm1842_vm12, %v3824_v26, %v3826_v59  ;;  %v4001_v29 = vsel %vm2030_vm13, %v3998_v32, %v4000_v63  ;;  %14580 = vmatprep.subr.bf16.mxu0 %v16029_v43  ;;  %v3591_v18 = vmul.f32 %v22101_v20, %v3573_v8  ;;  %v16043_v32 = vld [vmem:[%s21904_s5 + $0x150] sm:$0xff]   ;;  %v21959_v37 = vrot.slane %v18923_v57, 1 }
 0x497   :  { %v3592_v1 = vmul.f32 %v22102_v28, %v3574_v11  ;;  %v3532_v33 = vadd.f32 %v3479_v54, %v18827_v5  ;;  %v15151_v58 = vpop.f32.mrb[245].mxu1  ;;  %v3894_v41 = vor.u32 %v3893_v52, %v3890_v44  ;;  %v4062_v26 = vor.u32 %v4059_v0, %v18923_v57  ;;  %v16035_v11 = vld [vmem:[%s21904_s5 + $0x1e0] sm:$0xff]  }
 0x498   :  { %v3482_v16 = vpop.f32.mrb[246].mxu1  ;;  %14511 = vmatpush3.bf16.msra.mxu1 %v16041_v62  ;;  %v22103_v44 = vld [vmem:[#allocation43_spill] sm:$0xff] }
 0x499   :  { %v18950_v17 = vpack.c.bf16 %v3592_v1, %v3591_v18  ;;  %v3557_v61 = vadd.f32 %v18872_v46, %v3532_v33  ;;  %v3533_v25 = vadd.f32 %v3482_v16, %v18830_v23  ;;  %v15152_v7 = vpop.f32.mrb[247].mxu1  ;;  %v3895_v5 = vsel %vm1586_vm1, %v3885_v36, %v3894_v41  ;;  %14581 = vmatpush3.bf16.msra.mxu0 %v16030_v53  ;;  %v16033_v23 = vld [vmem:[%s21904_s5 + $0x1d8] sm:$0xff]  }
 0x49a   :  { %5195 = vmatprep.mubr.bf16.mxu1 %v3895_v5  ;;  %v4063_v31 = vsel %vm2235_vm10, %v18889_v14, %v4062_v26  ;;  %14582 = vmatprep.subr.bf16.mxu0 %v16031_v21  ;;  %v16045_v36 = vld [vmem:[%s21904_s5 + $0x158] sm:$0xff]   ;;  %v4180_v1 = vor.u32 %v21959_v37, %v18920_v30 }
 0x49b   :  { %3616 = vst [vmem:[#allocation3 + $0x30] sm:$0xff] %v18950_v17  ;;  %v3575_v47 = vmax.f32 %v3557_v61, 0.0  ;;  %v3558_v38 = vadd.f32 %v18872_v46, %v3533_v25  ;;  %5300 = vmatprep.mubr.bf16.mxu0 %v4063_v31  ;;  %5196 = vmatmul.mubr.bf16.gmra.mrb[16].mxu1 %v3827_v50  ;;  %v18972_v9 = vshrl.u32 %v18950_v17, 16  ;;  %v18975_v14 = vshll.u32 %v18950_v17, 16  ;;  %v22104_v53 = vld [vmem:[#allocation47_spill] sm:$0xff] }
 0x49c   :  { %5301 = vmatmul.mubr.bf16.gmra.mrb[132].mxu0 %v4001_v29  ;;  %v3828_v2 = vrot.slane %v18950_v17, 3  ;;  %v4002_v22 = vrot.slane %v18950_v17, 4  ;;  %14512 = vmatprep.subr.bf16.mxu1 %v16043_v32  ;;  %v16036_v32 = vld [vmem:[%s21904_s5 + $0x1a0] sm:$0xff]  }
 0x49d   :  { %v3576_v19 = vmax.f32 %v3558_v38, 0.0  ;;  %v3899_v4 = vrot.slane %v18972_v9, 3  ;;  %v3902_v3 = vrot.slane %v18975_v14, 4  ;;  %14583 = vmatpush3.bf16.msra.mxu0 %v16032_v40  ;;  %14513 = vmatpush3.bf16.msra.mxu1 %v16044_v15  ;;  %v4067_v8 = vrot.slane %v18972_v9, 7  ;;  %v16049_v17 = vld [vmem:[%s21904_s5 + $0x160] sm:$0xff]   ;;  %v16042_v38 = vld [vmem:[%s21904_s5 + $0x1a8] sm:$0xff]  }
 0x49e   :  { %v3487_v43 = vpop.f32.mrb[248].mxu1  ;;  %v3829_v51 = vsel %vm1842_vm12, %v3826_v59, %v3828_v2  ;;  %v4003_v62 = vsel %vm2030_vm13, %v4000_v63, %v4002_v22  ;;  %14584 = vmatprep.subr.bf16.mxu0 %v16033_v23  ;;  %14514 = vmatprep.subr.bf16.mxu1 %v16045_v36  ;;  %v3593_v52 = vmul.f32 %v22103_v44, %v3575_v47  ;;  %v16046_v63 = vld [vmem:[%s21904_s5 + $0x118] sm:$0xff]   ;;  %v16050_v15 = vld [vmem:[%s21904_s5 + $0x120] sm:$0xff]  }
 0x49f   :  { %v3594_v54 = vmul.f32 %v22104_v53, %v3576_v19  ;;  %v3534_v50 = vadd.f32 %v3487_v43, %v18835_v13  ;;  %v15155_v29 = vpop.f32.mrb[249].mxu1  ;;  %v3903_v21 = vor.u32 %v3902_v3, %v3899_v4  ;;  %v4070_v59 = vor.u32 %v4067_v8, %v18975_v14 }
 0x4a0   :  { %v3490_v18 = vpop.f32.mrb[250].mxu1 }
 0x4a1   :  { %v19003_v33 = vpack.c.bf16 %v3594_v54, %v3593_v52  ;;  %v3559_v58 = vadd.f32 %v18872_v46, %v3534_v50  ;;  %v3535_v13 = vadd.f32 %v3490_v18, %v18838_v24  ;;  %v15156_v16 = vpop.f32.mrb[251].mxu1  ;;  %v3904_v26 = vsel %vm1586_vm1, %v3894_v41, %v3903_v21  ;;  %14585 = vmatpush3.bf16.msra.mxu0 %v16034_v6  ;;  %v16040_v24 = vld [vmem:[%s21904_s5 + $0x1e8] sm:$0xff]   ;;  %v16047_v6 = vld [vmem:[%s21904_s5 + $0x1f0] sm:$0xff]  }
 0x4a2   :  { %5203 = vmatprep.mubr.bf16.mxu1 %v3904_v26  ;;  %v4071_v61 = vsel %vm2235_vm10, %v4059_v0, %v4070_v59  ;;  %14586 = vmatprep.subr.bf16.mxu0 %v16035_v11  ;;  %v4184_v41 = vrot.slane %v18975_v14, 1  ;;  %v19252_v37 = vld [vmem:[#allocation3 + $0x30] sm:$0xff] }
 0x4a3   :  { %3617 = vst [vmem:[#allocation3 + $0x40] sm:$0xff] %v19003_v33  ;;  %v3577_v25 = vmax.f32 %v3559_v58, 0.0  ;;  %v3560_v7 = vadd.f32 %v18872_v46, %v3535_v13  ;;  %5308 = vmatprep.mubr.bf16.mxu0 %v4071_v61  ;;  %5204 = vmatmul.mubr.bf16.gmra.mrb[20].mxu1 %v3829_v51  ;;  %v19024_v5 = vshrl.u32 %v19003_v33, 16  ;;  %v19027_v30 = vshll.u32 %v19003_v33, 16  ;;  %v16052_v58 = vld [vmem:[%s21904_s5 + $0x128] sm:$0xff]  }
 0x4a4   :  { %5309 = vmatmul.mubr.bf16.gmra.mrb[136].mxu0 %v4003_v62  ;;  %v3830_v0 = vrot.slane %v19003_v33, 3  ;;  %v4004_v40 = vrot.slane %v19003_v33, 4  ;;  %14515 = vmatpush3.bf16.msra.mxu1 %v16046_v63  ;;  %v19035_v31 = vsel %vm2639_vm7, %v4180_v1, %v4184_v41  ;;  %v4188_v50 = vor.u32 %v4184_v41, %v18972_v9  ;;  %v16048_v1 = vld [vmem:[%s21904_s5 + $0x1b0] sm:$0xff]   ;;  %v16054_v41 = vld [vmem:[%s21904_s5 + $0x1b8] sm:$0xff]  }
 0x4a5   :  { %v3578_v23 = vmax.f32 %v3560_v7, 0.0  ;;  %v3908_v36 = vrot.slane %v19024_v5, 3  ;;  %v3911_v47 = vrot.slane %v19027_v30, 4  ;;  %14587 = vmatpush3.bf16.msra.mxu0 %v16036_v32  ;;  %14516 = vmatprep.subr.bf16.mxu1 %v16049_v17  ;;  %v4075_v19 = vrot.slane %v19024_v5, 7 }
 0x4a6   :  { %v3495_v14 = vpop.f32.mrb[252].mxu1  ;;  %v3831_v4 = vsel %vm1842_vm12, %v3828_v2, %v3830_v0  ;;  %v4005_v3 = vsel %vm2030_vm13, %v4002_v22, %v4004_v40  ;;  %14588 = vmatprep.subr.bf16.mxu0 %v16040_v24  ;;  %v3595_v43 = vmul.f32 0.0, %v3577_v25  ;;  %v16051_v22 = vld [vmem:[%s21904_s5 + $0x168] sm:$0xff]   ;;  %v4192_v32 = vrot.slane %v19027_v30, 1 }
 0x4a7   :  { %v3596_v51 = vmul.f32 0.0, %v3578_v23  ;;  %v3536_v62 = vadd.f32 %v3495_v14, %v18843_v35  ;;  %v15159_v11 = vpop.f32.mrb[253].mxu1  ;;  %v3912_v52 = vor.u32 %v3911_v47, %v3908_v36  ;;  %v4078_v2 = vor.u32 %v4075_v19, %v19027_v30  ;;  %v22105_v25 = vld [vmem:[#allocation37_spill] sm:$0xff]  ;;  %v22106_v14 = vld [vmem:[#allocation38_spill] sm:$0xff] }
 0x4a8   :  { %v3498_v54 = vpop.f32.mrb[254].mxu1  ;;  %14517 = vmatpush3.bf16.msra.mxu1 %v16050_v15 }
 0x4a9   :  { %v19060_v29 = vpack.c.bf16 %v3596_v51, %v3595_v43  ;;  %v3561_v18 = vadd.f32 %v18872_v46, %v3536_v62  ;;  %v3537_v35 = vadd.f32 %v3498_v54, %v18846_v56  ;;  %v15160_v59 = vpop.f32.mrb[255].mxu1  ;;  %v3913_v63 = vsel %vm1586_vm1, %v3903_v21, %v3912_v52  ;;  %14589 = vmatpush3.bf16.msra.mxu0 %v16042_v38  ;;  %v16053_v56 = vld [vmem:[%s21904_s5 + $0x1f8] sm:$0xff]   ;;  %v16055_v21 = vld [vmem:[%s21904_s5 + $0x170] sm:$0xff]  }
 0x4aa   :  { %5211 = vmatprep.mubr.bf16.mxu1 %v3913_v63  ;;  %v4079_v13 = vsel %vm2235_vm10, %v4067_v8, %v4078_v2  ;;  %14590 = vmatprep.subr.bf16.mxu0 %v16047_v6  ;;  %v16056_v38 = vld [vmem:[%s21904_s5 + $0x130] sm:$0xff]   ;;  %v19106_v51 = vsel %vm2639_vm7, %v4188_v50, %v4192_v32  ;;  %v16057_v54 = vld [vmem:[%s21904_s5 + $0x178] sm:$0xff]  }
 0x4ab   :  { %3618 = vst [vmem:[#allocation3 + $0x50] sm:$0xff] %v19060_v29  ;;  %v3579_v16 = vmax.f32 %v3561_v18, 0.0  ;;  %v3562_v26 = vadd.f32 %v18872_v46, %v3537_v35  ;;  %5316 = vmatprep.mubr.bf16.mxu0 %v4079_v13  ;;  %5212 = vmatmul.mubr.bf16.gmra.mrb[24].mxu1 %v3831_v4  ;;  %v19083_v9 = vshrl.u32 %v19060_v29, 16  ;;  %v19086_v8 = vshll.u32 %v19060_v29, 16 }
 0x4ac   :  { %5317 = vmatmul.mubr.bf16.gmra.mrb[140].mxu0 %v4005_v3  ;;  %14518 = vmatprep.subr.bf16.mxu1 %v16051_v22  ;;  %v3832_v36 = vrot.slane %v19060_v29, 3  ;;  %v19098_v47 = vrot.slane %v19060_v29, 4 }
 0x4ad   :  { %v3580_v17 = vmax.f32 %v3562_v26, 0.0  ;;  %v3917_v61 = vrot.slane %v19083_v9, 3  ;;  %v3920_v24 = vrot.slane %v19086_v8, 4  ;;  %14591 = vmatpush3.bf16.msra.mxu0 %v16048_v1  ;;  %14519 = vmatpush3.bf16.msra.mxu1 %v16052_v58  ;;  %v3597_v7 = vmul.f32 %v22105_v25, %v3579_v16 }
 0x4ae   :  { %v3503_v15 = vpop.f32.mrb[0].mxu1  ;;  %v4083_v23 = vrot.slane %v19083_v9, 7  ;;  %14592 = vmatprep.subr.bf16.mxu0 %v16053_v56  ;;  %14520 = vmatprep.subr.bf16.mxu1 %v16055_v21  ;;  %v3833_v59 = vsel %vm1842_vm12, %v3830_v0, %v3832_v36  ;;  %v4007_v63 = vsel %vm2030_vm13, %v4004_v40, %v19098_v47  ;;  %v4196_v40 = vor.u32 %v4192_v32, %v19024_v5 }
 0x4af   :  { %v3598_v4 = vmul.f32 %v22106_v14, %v3580_v17  ;;  %v3538_v3 = vadd.f32 %v3503_v15, %v18851_v42  ;;  %v15163_v6 = vpop.f32.mrb[1].mxu1  ;;  %v3921_v43 = vor.u32 %v3920_v24, %v3917_v61  ;;  %v22107_v24 = vld [vmem:[#allocation40_spill] sm:$0xff] }
 0x4b0   :  { %v3506_v62 = vpop.f32.mrb[2].mxu1  ;;  %v4086_v11 = vor.u32 %v4083_v23, %v19086_v8 }
 0x4b1   :  { %v19112_v2 = vpack.c.bf16 %v3598_v4, %v3597_v7  ;;  %v3563_v22 = vadd.f32 %v18872_v46, %v3538_v3  ;;  %v3539_v18 = vadd.f32 %v3506_v62, %v18854_v34  ;;  %v15164_v35 = vpop.f32.mrb[3].mxu1  ;;  %v3922_v42 = vsel %vm1586_vm1, %v3912_v52, %v3921_v43  ;;  %14593 = vmatpush3.bf16.msra.mxu0 %v16054_v41  ;;  %v16058_v34 = vld [vmem:[%s21904_s5 + $0x138] sm:$0xff]   ;;  %v22108_v41 = vld [vmem:[#allocation41_spill] sm:$0xff] }
 0x4b2   :  { %5219 = vmatprep.mubr.bf16.mxu1 %v3922_v42  ;;  %v4087_v50 = vsel %vm2235_vm10, %v4075_v19, %v4086_v11  ;;  %14521 = vmatpush3.bf16.msra.mxu1 %v16056_v38  ;;  %v4200_v52 = vrot.slane %v19086_v8, 1 }
 0x4b3   :  { %3619 = vst [vmem:[#allocation3 + $0x60] sm:$0xff] %v19112_v2  ;;  %v3581_v1 = vmax.f32 %v3563_v22, 0.0  ;;  %v3564_v19 = vadd.f32 %v18872_v46, %v3539_v18  ;;  %5324 = vmatprep.mubr.bf16.mxu0 %v4087_v50  ;;  %5220 = vmatmul.mubr.bf16.gmra.mrb[28].mxu1 %v3833_v59  ;;  %v19134_v0 = vshrl.u32 %v19112_v2, 16  ;;  %v19137_v33 = vshll.u32 %v19112_v2, 16 }
 0x4b4   :  { %5325 = vmatmul.mubr.bf16.gmra.mrb[144].mxu0 %v4007_v63  ;;  %14522 = vmatprep.subr.bf16.mxu1 %v16057_v54  ;;  %v3834_v26 = vrot.slane %v19112_v2, 3  ;;  %v4008_v17 = vrot.slane %v19112_v2, 4  ;;  %v19147_v61 = vsel %vm2639_vm7, %v4196_v40, %v4200_v52  ;;  %v4204_v62 = vor.u32 %v4200_v52, %v19083_v9 }
 0x4b5   :  { %v3582_v58 = vmax.f32 %v3564_v19, 0.0  ;;  %v3926_v13 = vrot.slane %v19134_v0, 3  ;;  %v3929_v56 = vrot.slane %v19137_v33, 4  ;;  %15217 = vmatprep.subr.bf16.mxu0 %v22058_v10  ;;  %v4091_v16 = vrot.slane %v19134_v0, 7  ;;  %v22109_v19 = vld [vmem:[#allocation44_spill] sm:$0xff] }
 0x4b6   :  { %v3511_v21 = vpop.f32.mrb[4].mxu1  ;;  %14523 = vmatpush3.bf16.msra.mxu1 %v16058_v34  ;;  %v3599_v32 = vmul.f32 %v22107_v24, %v3581_v1  ;;  %v19163_v50 = vsel %vm2030_vm13, %v19098_v47, %v4008_v17  ;;  %v4208_v59 = vrot.slane %v19137_v33, 1 }
 0x4b7   :  { %v3600_v7 = vmul.f32 %v22108_v41, %v3582_v58  ;;  %v3540_v15 = vadd.f32 %v3511_v21, %v18859_v27  ;;  %v15167_v38 = vpop.f32.mrb[5].mxu1  ;;  %v3930_v4 = vor.u32 %v3929_v56, %v3926_v13  ;;  %v4094_v6 = vor.u32 %v4091_v16, %v19137_v33 }
 0x4b8   :  { %v3514_v3 = vpop.f32.mrb[6].mxu1  ;;  %v3835_v27 = vsel %vm1842_vm12, %v3832_v36, %v3834_v26  ;;  %v19176_v36 = vsel %vm2639_vm7, %v4204_v62, %v4208_v59 }
 0x4b9   :  { %v19154_v11 = vpack.c.bf16 %v3600_v7, %v3599_v32  ;;  %v3565_v54 = vadd.f32 %v18872_v46, %v3540_v15  ;;  %v3541_v22 = vadd.f32 %v3514_v3, %v18862_v12  ;;  %v15168_v18 = vpop.f32.mrb[7].mxu1  ;;  %v3931_v35 = vsel %vm1586_vm1, %v3921_v43, %v3930_v4  ;;  %v22110_v32 = vld [vmem:[#allocation45_spill] sm:$0xff] }
 0x4ba   :  { %5227 = vmatprep.mubr.bf16.mxu1 %v3931_v35  ;;  %v4095_v42 = vsel %vm2235_vm10, %v4083_v23, %v4094_v6  ;;  %v4212_v6 = vor.u32 %v4208_v59, %v19134_v0 }
 0x4bb   :  { %3620 = vst [vmem:[#allocation3 + $0x70] sm:$0xff] %v19154_v11  ;;  %v3583_v63 = vmax.f32 %v3565_v54, 0.0  ;;  %v3566_v34 = vadd.f32 %v18872_v46, %v3541_v22  ;;  %5332 = vmatprep.mubr.bf16.mxu0 %v4095_v42  ;;  %5228 = vmatmul.mubr.bf16.gmra.mrb[32].mxu1 %v3835_v27  ;;  %v19169_v12 = vshrl.u32 %v19154_v11, 16  ;;  %v19172_v23 = vshll.u32 %v19154_v11, 16 }
 0x4bc   :  { %5333 = vmatmul.mubr.bf16.gmra.mrb[148].mxu0 %v19163_v50  ;;  %v3836_v56 = vrot.slane %v19154_v11, 3  ;;  %v4010_v21 = vrot.slane %v19154_v11, 4 }
 0x4bd   :  { %v3584_v43 = vmax.f32 %v3566_v34, 0.0  ;;  %v3935_v52 = vrot.slane %v19169_v12, 3  ;;  %v3938_v1 = vrot.slane %v19172_v23, 4  ;;  %v3601_v40 = vmul.f32 %v22109_v19, %v3583_v63 }
 0x4be   :  { %v3519_v58 = vpop.f32.mrb[8].mxu1  ;;  %v4099_v13 = vrot.slane %v19169_v12, 7  ;;  %v4216_v22 = vrot.slane %v19172_v23, 1  ;;  %v3837_v34 = vsel %vm1842_vm12, %v3834_v26, %v3836_v56  ;;  %v19197_v59 = vsel %vm2030_vm13, %v4008_v17, %v4010_v21 }
 0x4bf   :  { %v3602_v7 = vmul.f32 %v22110_v32, %v3584_v43  ;;  %v3542_v15 = vadd.f32 %v3519_v58, %v18867_v60  ;;  %v15171_v38 = vpop.f32.mrb[9].mxu1  ;;  %v3939_v3 = vor.u32 %v3938_v1, %v3935_v52 }
 0x4c0   :  { %v3522_v62 = vpop.f32.mrb[10].mxu1  ;;  %v4102_v54 = vor.u32 %v4099_v13, %v19172_v23  ;;  %v19200_v43 = vsel %vm2639_vm7, %v4212_v6, %v4216_v22  ;;  %v22112_v6 = vld [vmem:[#allocation48_spill] sm:$0xff] }
 0x4c1   :  { %v19189_v18 = vpack.c.bf16 %v3602_v7, %v3601_v40  ;;  %v3567_v35 = vadd.f32 %v18872_v46, %v3542_v15  ;;  %v3543_v42 = vadd.f32 %v3522_v62, %v18870_v49  ;;  %v15172_v27 = vpop.f32.mrb[11].mxu1  ;;  %v3940_v63 = vsel %vm1586_vm1, %v3930_v4, %v3939_v3  ;;  %v22111_v15 = vld [vmem:[#allocation46_spill] sm:$0xff] }
 0x4c2   :  { %5235 = vmatprep.mubr.bf16.mxu1 %v3940_v63  ;;  %v4103_v60 = vsel %vm2235_vm10, %v4091_v16, %v4102_v54  ;;  %v4220_v16 = vor.u32 %v4216_v22, %v19169_v12 }
 0x4c3   :  { %v3585_v52 = vmax.f32 %v3567_v35, 0.0  ;;  %v3568_v1 = vadd.f32 %v18872_v46, %v3543_v42  ;;  %5340 = vmatprep.mubr.bf16.mxu0 %v4103_v60  ;;  %5236 = vmatmul.mubr.bf16.gmra.mrb[36].mxu1 %v3837_v34  ;;  %v19204_v49 = vshrl.u32 %v19189_v18, 16  ;;  %v19207_v4 = vshll.u32 %v19189_v18, 16  ;;  %v19220_v35 = vld [vmem:[#allocation3 + $0x20] sm:$0xff]  ;;  %v4317_v60 = vld [vmem:[#allocation3 + $0x10] sm:$0xf0] }
 0x4c4   :  { %5341 = vmatmul.mubr.bf16.gmra.mrb[152].mxu0 %v19197_v59  ;;  %v21960_v46 = vrot.slane %v19189_v18, 3  ;;  %v19216_v7 = vrot.slane %v19189_v18, 4 }
 0x4c5   :  { %v3586_v26 = vmax.f32 %v3568_v1, 0.0  ;;  %v3944_v17 = vrot.slane %v19204_v49, 3  ;;  %v3947_v40 = vrot.slane %v19207_v4, 4  ;;  %v4107_v58 = vrot.slane %v19204_v49, 7 }
 0x4c6   :  { %v3603_v38 = vmul.f32 %v22111_v15, %v3585_v52  ;;  %v4224_v22 = vrot.slane %v19207_v4, 1 }
 0x4c7   :  { %v3604_v62 = vmul.f32 %v22112_v6, %v3586_v26  ;;  %v3948_v54 = vor.u32 %v3947_v40, %v3944_v17  ;;  %v4110_v42 = vor.u32 %v4107_v58, %v19207_v4  ;;  %v3839_v26 = vsel %vm1842_vm12, %v3836_v56, %v21960_v46  ;;  %v4156_v56 = vld [vmem:[#allocation3 + $0x10] sm:$0xff] }
 0x4c8   :  { %v19228_v34 = vsel %vm2639_vm7, %v4220_v16, %v4224_v22  ;;  %v4228_v1 = vor.u32 %v4224_v22, %v19204_v49  ;;  %v4336_v17 = vshrl.u32 %v19220_v35, 16  ;;  %v4339_v40 = vshll.u32 %v19220_v35, 16 }
 0x4c9   :  { %v19224_v27 = vpack.c.bf16 %v3604_v62, %v3603_v38  ;;  %v3949_v63 = vsel %vm1586_vm1, %v3939_v3, %v3948_v54  ;;  %v4111_v52 = vsel %vm2235_vm10, %v4099_v13, %v4110_v42  ;;  %v19240_v3 = vsel %vm2030_vm13, %v4010_v21, %v19216_v7 }
 0x4ca   :  { %5243 = vmatprep.mubr.bf16.mxu1 %v3949_v63  ;;  %5348 = vmatprep.mubr.bf16.mxu0 %v4111_v52  ;;  %v4328_v38 = vshrl.u32 %v4317_v60, 16  ;;  %v4331_v62 = vshll.u32 %v4317_v60, 16  ;;  %v4338_v63 = vrot.slane %v4336_v17, 4  ;;  %v4341_v52 = vrot.slane %v4339_v40, 5 }
 0x4cb   :  { %3622 = vst [vmem:[#allocation3 + $0x90] sm:$0xff] %v19224_v27  ;;  %5244 = vmatmul.mubr.bf16.gmra.mrb[40].mxu1 %v3839_v26  ;;  %v19243_v16 = vshrl.u32 %v19224_v27, 16  ;;  %v19246_v13 = vshll.u32 %v19224_v27, 16  ;;  %v4169_v26 = vshll.u32 %v4156_v56, 16  ;;  %v4345_v40 = vshrl.u32 %v19252_v37, 16 }
 0x4cc   :  { %5349 = vmatmul.mubr.bf16.gmra.mrb[156].mxu0 %v19240_v3  ;;  %v4330_v15 = vrot.slane %v4328_v38, 4  ;;  %v4333_v32 = vrot.slane %v4331_v62, 5  ;;  %v4342_v17 = vor.u32 %v4341_v52, %v4338_v63 }
 0x4cd   :  { %v4115_v22 = vrot.slane %v19243_v16, 7  ;;  %v4232_v42 = vrot.slane %v19246_v13, 1  ;;  %v4171_v53 = vrot.slane %v4169_v26, 1  ;;  %v4347_v52 = vrot.slane %v4345_v40, 4 }
 0x4ce   :  { %v4334_v44 = vor.u32 %v4333_v32, %v4330_v15  ;;  %v4281_v32 = vrot.slane %v19220_v35, 4  ;;  %v4356_v40 = vrot.slane %v19024_v5, 4 }
 0x4cf   :  { %v4118_v21 = vor.u32 %v19246_v13, %v4115_v22  ;;  %v19255_v46 = vsel %vm2639_vm7, %v4228_v1, %v4232_v42  ;;  %v19258_v6 = vor.u32 %v4232_v42, %v19243_v16  ;;  %v4348_v22 = vshll.u32 %v19252_v37, 16 }
 0x4d0   :  { %v4343_v63 = vsel %vm3114_vm9, %v4334_v44, %v4342_v17 }
 0x4d1   :  { %v4119_v60 = vsel %vm2235_vm10, %v4107_v58, %v4118_v21  ;;  %v4167_v58 = vshrl.u32 %v4156_v56, 16  ;;  %v4350_v21 = vrot.slane %v4348_v22, 5  ;;  %v4359_v22 = vrot.slane %v19027_v30, 5 }
 0x4d2   :  { %v3869_v19 = vld [vmem:[#allocation3 + $0x90] sm:$0xf]  ;;  %5356 = vmatprep.mubr.bf16.mxu0 %v4119_v60 }
 0x4d3   :  { %v3986_v41 = vld [vmem:[#allocation3 + $0x90] sm:$0xf]  ;;  %v3951_v24 = vshrl.u32 %v3869_v19, 16  ;;  %v3954_v14 = vshll.u32 %v3869_v19, 16  ;;  %v4172_v20 = vor.u32 %v4171_v53, %v4167_v58  ;;  %v4260_v19 = vld [vmem:[#allocation3 + $0x10] sm:$0xf0]  ;;  %v4351_v15 = vor.u32 %v4350_v21, %v4347_v52 }
 0x4d4   :  { %v3812_v25 = vld [vmem:[#allocation3 + $0x90] sm:$0x7]  ;;  %v4014_v1 = vrot.slane %v3986_v41, 4  ;;  %v4280_v26 = vrot.slane %v4260_v19, 4  ;;  %v16062_v58 = vld [vmem:[%s21904_s5 + $0x218] sm:$0xff]   ;;  %v4374_v52 = vrot.slane %v19134_v0, 4 }
 0x4d5   :  { %v3953_v42 = vrot.slane %v3951_v24, 3  ;;  %v3956_v28 = vrot.slane %v3954_v14, 4  ;;  %v3840_v62 = vrot.slane %v3812_v25, 3  ;;  %v22113_v14 = vrot.slane %v19189_v18, 3  ;;  %v16065_v19 = vld [vmem:[%s21904_s5 + $0x230] sm:$0xff]  }
 0x4d6   :  { %v4015_v38 = vsel %vm2030_vm13, %v19216_v7, %v4014_v1  ;;  %v22114_v25 = vrot.slane %v18923_v57, 1  ;;  %v4282_v53 = vsel %vm2030_vm13, %v4280_v26, %v4281_v32  ;;  %v16060_v57 = vld [vmem:[%s21904_s5 + $0x208] sm:$0xff]   ;;  %v4360_v1 = vor.u32 %v4359_v22, %v4356_v40 }
 0x4d7   :  { %5357 = vmatmul.mubr.bf16.gmra.mrb[160].mxu0 %v4015_v38  ;;  %v3957_v60 = vor.u32 %v3956_v28, %v3953_v42  ;;  %v3841_v24 = vsel %vm1842_vm12, %v22113_v14, %v3840_v62  ;;  %v16059_v28 = vld [vmem:[%s21904_s5 + $0x200] sm:$0xff]   ;;  %v19293_v42 = vld [vmem:[#allocation3 + $0x40] sm:$0xff]  ;;  %v4365_v38 = vrot.slane %v19083_v9, 4  ;;  %v4377_v21 = vrot.slane %v19137_v33, 5  ;;  %v16066_v14 = vld [vmem:[%s21904_s5 + $0x238] sm:$0xff]  }
 0x4d8   :  { %5502 = vmatprep.mubr.bf16.mxu0 %v4343_v63  ;;  %v4177_v44 = vsel %vm2639_vm7, %v4172_v20, %v22114_v25  ;;  %v4283_v20 = vrot.slane %v19252_v37, 4  ;;  %v4361_v30 = vsel %vm3114_vm9, %v4351_v15, %v4360_v1  ;;  %v16063_v9 = vld [vmem:[%s21904_s5 + $0x220] sm:$0xff]   ;;  %v4326_v25 = vld [vmem:[#allocation3 + $0xa0] sm:$0x1f] }
 0x4d9   :  { %v3958_v41 = vsel %vm1586_vm1, %v3948_v54, %v3957_v60  ;;  %v4352_v54 = vsel %vm3114_vm9, %v4342_v17, %v4351_v15  ;;  %v16061_v17 = vld [vmem:[%s21904_s5 + $0x210] sm:$0xff]   ;;  %v16064_v60 = vld [vmem:[%s21904_s5 + $0x228] sm:$0xff]   ;;  %v4411_v26 = vshll.u32 %v4326_v25, 16 }
 0x4da   :  { %5251 = vmatprep.mubr.bf16.mxu1 %v3958_v41  ;;  %v4284_v5 = vsel %vm2030_vm13, %v4281_v32, %v4283_v20  ;;  %v4383_v41 = vrot.slane %v19169_v12, 4  ;;  %v4386_v32 = vrot.slane %v19172_v23, 5  ;;  %v4392_v12 = vrot.slane %v19204_v49, 4 }
 0x4db   :  { %5252 = vmatmul.mubr.bf16.gmra.mrb[44].mxu1 %v3841_v24  ;;  %v4395_v23 = vrot.slane %v19207_v4, 5  ;;  %v4408_v49 = vshrl.u32 %v4326_v25, 16  ;;  %v4165_v4 = vld [vmem:[#allocation3 + $0xa0] sm:$0x1] }
 0x4dc   :  { %5397 = vmatprep.mubr.bf16.mxu1 %v4177_v44 }
 0x4dd   :  { %v4396_v24 = vor.u32 %v4395_v23, %v4392_v12  ;;  %v19390_v23 = vld [vmem:[#allocation12] ss:$0 sm:$0xff] }
 0x4df   :  { %5503 = vmatmul.mubr.bf16.vlgmr.msra.gmra.mrb[164].mxu0 %v4282_v53 }
 0x4e0   :  { %15218 = vmatpush3.bf16.msra.mxu0 %v16059_v28  ;;  %5510 = vmatprep.mubr.bf16.mxu0 %v4352_v54  ;;  %v4238_v28 = vshll.u32 %v4165_v4, 16 }
 0x4e1   :  { %15219 = vmatprep.subr.bf16.mxu0 %v22058_v10 }
 0x4e2   :  { %v4240_v53 = vrot.slane %v4238_v28, 1  ;;  %v16084_v28 = vld [vmem:[#allocation15 + $0x54] ss:$8 sps:$4 sm:$0xff]  }
 0x4e3   :  { %5398 = vmatmul.mubr.bf16.vlgmr.msra.gmra.mrb[48].mxu1 %v4156_v56  ;;  %v4368_v56 = vrot.slane %v19086_v8, 5 }
 0x4e4   :  { %15220 = vmatpush3.bf16.msra.mxu0 %v16060_v57  ;;  %5405 = vmatprep.mubr.bf16.mxu1 %v19035_v31  ;;  %v4285_v31 = vrot.slane %v19293_v42, 4  ;;  %v4241_v40 = vsel %vm2639_vm7, %v19258_v6, %v4240_v53  ;;  %v4457_v6 = vrot.slane %v19252_v37, 5 }
 0x4e5   :  { %15221 = vmatprep.subr.bf16.mxu0 %v22058_v10  ;;  %v4369_v62 = vor.u32 %v4368_v56, %v4365_v38 }
 0x4e6   :  { %v4286_v8 = vsel %vm2030_vm13, %v4283_v20, %v4285_v31  ;;  %v4288_v0 = vsel %vm2030_vm13, %v4285_v31, %v19098_v47 }
 0x4e7   :  { %5511 = vmatmul.mubr.bf16.gmra.mrb[168].mxu0 %v4284_v5  ;;  %v4370_v63 = vsel %vm3114_vm9, %v4360_v1, %v4369_v62  ;;  %v4459_v1 = vrot.slane %v19293_v42, 5 }
 0x4e8   :  { %5518 = vmatprep.mubr.bf16.mxu0 %v4361_v30  ;;  %15222 = vmatpush3.bf16.msra.mxu0 %v16061_v17  ;;  %v4438_v17 = vld [vmem:[#allocation3 + $0x50] sm:$0xff] }
 0x4e9   :  { %15223 = vmatprep.subr.bf16.mxu0 %v22058_v10  ;;  %v4461_v5 = vrot.slane %v4438_v17, 5 }
 0x4eb   :  { %5406 = vmatmul.mubr.bf16.gmra.mrb[52].mxu1 %v19220_v35  ;;  %v4462_v30 = vsel %vm3350_vm11, %v4459_v1, %v4461_v5 }
 0x4ec   :  { %15224 = vmatpush3.bf16.msra.mxu0 %v16062_v58  ;;  %5413 = vmatprep.mubr.bf16.mxu1 %v19106_v51  ;;  %v4378_v51 = vor.u32 %v4377_v21, %v4374_v52  ;;  %v16072_v52 = vld [vmem:[#allocation15 + $0x14] ss:$8 sps:$4 sm:$0xff]   ;;  %v16070_v21 = vld [vmem:[#allocation15 + $0x10] ss:$8 sps:$4 sm:$0xff]  }
 0x4ed   :  { %15225 = vmatprep.subr.bf16.mxu0 %v22058_v10 }
 0x4ee   :  { %v4379_v33 = vsel %vm3114_vm9, %v4369_v62, %v4378_v51  ;;  %v4467_v62 = vrot.slane %v19189_v18, 5 }
 0x4ef   :  { %5519 = vmatmul.mubr.bf16.gmra.mrb[172].mxu0 %v4286_v8  ;;  %v16069_v8 = vld [vmem:[#allocation15 + $0x4] ss:$8 sps:$4 sm:$0xff]  }
 0x4f0   :  { %5526 = vmatprep.mubr.bf16.mxu0 %v4370_v63  ;;  %15226 = vmatpush3.bf16.msra.mxu0 %v16063_v9  ;;  %v16067_v9 = vld [vmem:[#allocation15] ss:$8 sps:$4 sm:$0xff]  }
 0x4f1   :  { %15227 = vmatprep.subr.bf16.mxu0 %v22058_v10  ;;  %7397 = vmatprep.subr.bf16.mxu1 %v16069_v8  ;;  %v16094_v8 = vld [vmem:[#allocation15 + $0x80] ss:$8 sps:$4 sm:$0xff]  }
 0x4f2   :  { %7398 = vmatpush1.bf16.msra.mxu1 %v16067_v9 }
 0x4f3   :  { %5414 = vmatmul.mubr.bf16.gmra.mrb[56].mxu1 %v19252_v37  ;;  %v4439_v37 = vld [vmem:[#allocation3 + $0x60] sm:$0xff]  ;;  %7399 = vmatprep.subr.bf16.mxu1 %v16072_v52 }
 0x4f4   :  { %15228 = vmatpush3.bf16.msra.mxu0 %v16064_v60  ;;  %5421 = vmatprep.mubr.bf16.mxu1 %v19147_v61  ;;  %v4387_v61 = vor.u32 %v4386_v32, %v4383_v41  ;;  %v4463_v38 = vrot.slane %v4439_v37, 5  ;;  %v4469_v60 = vrot.slane %v19224_v27, 5  ;;  %v16076_v32 = vld [vmem:[#allocation15 + $0x30] ss:$8 sps:$4 sm:$0xff]  }
 0x4f5   :  { %15229 = vmatprep.subr.bf16.mxu0 %v22058_v10  ;;  %v16088_v37 = vld [vmem:[#allocation15 + $0x70] ss:$8 sps:$4 sm:$0xff]  }
 0x4f6   :  { %v4388_v47 = vsel %vm3114_vm9, %v4378_v51, %v4387_v61  ;;  %v4397_v15 = vsel %vm3114_vm9, %v4387_v61, %v4396_v24  ;;  %v4464_v56 = vsel %vm3350_vm11, %v4461_v5, %v4463_v38  ;;  %7400 = vmatpush1.bf16.msra.mxu1 %v16070_v21  ;;  %v4470_v51 = vsel %vm3350_vm11, %v4467_v62, %v4469_v60  ;;  %v16079_v61 = vld [vmem:[#allocation15 + $0x40] ss:$8 sps:$4 sm:$0xff]  }
 0x4f7   :  { %5527 = vmatmul.mubr.bf16.gmra.mrb[176].mxu0 %v4288_v0  ;;  %v16075_v0 = vld [vmem:[#allocation15 + $0x24] ss:$8 sps:$4 sm:$0xff]  }
 0x4f8   :  { %5534 = vmatprep.mubr.bf16.mxu0 %v4379_v33  ;;  %15230 = vmatpush3.bf16.msra.mxu0 %v16065_v19  ;;  %v16073_v19 = vld [vmem:[#allocation15 + $0x20] ss:$8 sps:$4 sm:$0xff]   ;;  %v16078_v33 = vld [vmem:[#allocation15 + $0x34] ss:$8 sps:$4 sm:$0xff]  }
 0x4f9   :  { %15231 = vmatprep.subr.bf16.mxu0 %v22058_v10  ;;  %7401 = vmatprep.subr.bf16.mxu1 %v16075_v0 }
 0x4fa   :  { %7402 = vmatpush1.bf16.msra.mxu1 %v16073_v19 }
 0x4fb   :  { %5422 = vmatmul.mubr.bf16.gmra.mrb[60].mxu1 %v19293_v42  ;;  %v4440_v42 = vld [vmem:[#allocation3 + $0x70] sm:$0xff]  ;;  %7403 = vmatprep.subr.bf16.mxu1 %v16078_v33  ;;  %v16097_v33 = vld [vmem:[#allocation18 + $0x10] ss:$8 sps:$4 sm:$0xff]  }
 0x4fc   :  { %15232 = vmatpush3.bf16.msra.mxu0 %v16066_v14  ;;  %5429 = vmatprep.mubr.bf16.mxu1 %v19176_v36  ;;  %v4401_v36 = vrot.slane %v19243_v16, 4  ;;  %v4295_v16 = vrot.slane %v19224_v27, 4  ;;  %v4465_v58 = vrot.slane %v4440_v42, 5 }
 0x4fe   :  { %v4466_v31 = vsel %vm3350_vm11, %v4463_v38, %v4465_v58  ;;  %v4468_v63 = vsel %vm3350_vm11, %v4465_v58, %v4467_v62  ;;  %7404 = vmatpush1.bf16.msra.mxu1 %v16076_v32  ;;  %v16090_v38 = vld [vmem:[#allocation15 + $0x74] ss:$8 sps:$4 sm:$0xff]   ;;  %v16091_v58 = vld [vmem:[#allocation18] ss:$8 sps:$4 sm:$0xff]  }
 0x4ff   :  { %5535 = vmatmul.mubr.bf16.gmra.mrb[180].mxu0 %v19163_v50  ;;  %v4404_v50 = vrot.slane %v19246_v13, 5 }
 0x500   :  { %5542 = vmatprep.mubr.bf16.mxu0 %v4388_v47  ;;  %v16081_v47 = vld [vmem:[#allocation15 + $0x44] ss:$8 sps:$4 sm:$0xff]  }
 0x501   :  { %v4405_v44 = vor.u32 %v4404_v50, %v4401_v36  ;;  %7405 = vmatprep.subr.bf16.mxu1 %v16081_v47 }
 0x502   :  { %7406 = vmatpush1.bf16.msra.mxu1 %v16079_v61 }
 0x503   :  { %5430 = vmatmul.mubr.bf16.gmra.mrb[64].mxu1 %v19060_v29  ;;  %v4406_v29 = vsel %vm3114_vm9, %v4396_v24, %v4405_v44  ;;  %7407 = vmatprep.subr.bf16.mxu1 %v16084_v28 }
 0x504   :  { %5437 = vmatprep.mubr.bf16.mxu1 %v19200_v43  ;;  %v4413_v43 = vrot.slane %v4411_v26, 5 }
 0x507   :  { %5543 = vmatmul.mubr.bf16.gmra.mrb[184].mxu0 %v19197_v59  ;;  %v4410_v59 = vrot.slane %v4408_v49, 4 }
 0x508   :  { %5550 = vmatprep.mubr.bf16.mxu0 %v4397_v15  ;;  %v19392_v15 = vld [vmem:[#allocation2] sm:$0xff] }
 0x509   :  { %v4414_v13 = vor.u32 %v4413_v43, %v4410_v59 }
 0x50b   :  { %5438 = vmatmul.mubr.bf16.gmra.mrb[68].mxu1 %v19112_v2  ;;  %v4296_v2 = vsel %vm2030_vm13, %v19216_v7, %v4295_v16  ;;  %v4455_v7 = vrot.slane %v19220_v35, 5  ;;  %v4460_v35 = vsel %vm3350_vm11, %v4457_v6, %v4459_v1 }
 0x50c   :  { %5445 = vmatprep.mubr.bf16.mxu1 %v19228_v34  ;;  %v4415_v34 = vsel %vm3114_vm9, %v4405_v44, %v4414_v13  ;;  %v16082_v13 = vld [vmem:[#allocation15 + $0x50] ss:$8 sps:$4 sm:$0xff]  }
 0x50d   :  { %v4458_v20 = vsel %vm3350_vm11, %v4455_v7, %v4457_v6  ;;  %7408 = vmatpush1.bf16.msra.mxu1 %v16082_v13 }
 0x50f   :  { %5551 = vmatmul.mubr.bf16.gmra.mrb[188].mxu0 %v19240_v3  ;;  %v4269_v3 = vld [vmem:[#allocation3 + $0xa0] sm:$0xf] }
 0x510   :  { %5558 = vmatprep.mubr.bf16.mxu0 %v4406_v29  ;;  %v4297_v54 = vrot.slane %v4269_v3, 4  ;;  %v16087_v3 = vld [vmem:[#allocation15 + $0x64] ss:$8 sps:$4 sm:$0xff]  }
 0x511   :  { %7409 = vmatprep.subr.bf16.mxu1 %v16087_v3  ;;  %v16111_v3 = vld [vmem:[#allocation18 + $0x34] ss:$8 sps:$4 sm:$0xff]  }
 0x513   :  { %5446 = vmatmul.mubr.bf16.gmra.mrb[72].mxu1 %v19154_v11  ;;  %v4298_v11 = vsel %vm2030_vm13, %v4295_v16, %v4297_v54 }
 0x514   :  { %5453 = vmatprep.mubr.bf16.mxu1 %v19255_v46  ;;  %v4434_v46 = vld [vmem:[#allocation3 + $0x10] sm:$0xe0] }
 0x515   :  { %v4454_v22 = vrot.slane %v4434_v46, 5 }
 0x517   :  { %5559 = vmatmul.mubr.bf16.gmra.mrb[192].mxu0 %v4296_v2  ;;  %v4456_v57 = vsel %vm3350_vm11, %v4454_v22, %v4455_v7 }
 0x518   :  { %5566 = vmatprep.mubr.bf16.mxu0 %v4415_v34 }
 0x51b   :  { %5454 = vmatmul.mubr.bf16.gmra.mrb[76].mxu1 %v19189_v18  ;;  %v4443_v18 = vld [vmem:[#allocation3 + $0xa0] sm:$0x1f] }
 0x51c   :  { %5461 = vmatprep.mubr.bf16.mxu1 %v4241_v40  ;;  %v4471_v41 = vrot.slane %v4443_v18, 5  ;;  %v16085_v40 = vld [vmem:[#allocation15 + $0x60] ss:$8 sps:$4 sm:$0xff]  }
 0x51d   :  { %7410 = vmatpush1.bf16.msra.mxu1 %v16085_v40 }
 0x51e   :  { %v4472_v14 = vsel %vm3350_vm11, %v4469_v60, %v4471_v41  ;;  %7411 = vmatprep.subr.bf16.mxu1 %v16090_v38 }
 0x51f   :  { %5567 = vmatmul.mubr.bf16.gmra.mrb[196].mxu0 %v4298_v11 }
 0x520   :  { %15233 = vmatprep.mubr.msk.bf16.mxu0 %vm17149_vm0, %v22058_v10 }
 0x521   :  { %7412 = vmatpush1.bf16.msra.mxu1 %v16088_v37 }
 0x523   :  { %5462 = vmatmul.mubr.bf16.gmra.mrb[80].mxu1 %v19224_v27 }
 0x527   :  { %15234 = vmatmul.mubr.bf16.vlgmr.msra.gmra.mrb[92].mxu0 %v4456_v57 }
 0x528   :  { %15237 = vmatprep.mubr.msk.bf16.mxu0 %vm17149_vm0, %v22058_v10 }
 0x52f   :  { %15238 = vmatmul.mubr.bf16.gmra.mrb[96].mxu0 %v4458_v20 }
 0x530   :  { %15241 = vmatprep.mubr.msk.bf16.mxu0 %vm17149_vm0, %v22058_v10 }
 0x537   :  { %15242 = vmatmul.mubr.bf16.gmra.mrb[100].mxu0 %v4460_v35 }
 0x538   :  { %15245 = vmatprep.mubr.msk.bf16.mxu0 %vm17149_vm0, %v22058_v10 }
 0x53f   :  { %15246 = vmatmul.mubr.bf16.gmra.mrb[104].mxu0 %v4462_v30 }
 0x540   :  { %15249 = vmatprep.mubr.msk.bf16.mxu0 %vm17149_vm0, %v22058_v10 }
 0x547   :  { %15250 = vmatmul.mubr.bf16.gmra.mrb[108].mxu0 %v4464_v56 }
 0x548   :  { %15253 = vmatprep.mubr.msk.bf16.mxu0 %vm17149_vm0, %v22058_v10 }
 0x54f   :  { %15254 = vmatmul.mubr.bf16.gmra.mrb[112].mxu0 %v4466_v31  ;;  %v16093_v31 = vld [vmem:[#allocation18 + $0x4] ss:$8 sps:$4 sm:$0xff]  }
 0x550   :  { %15257 = vmatprep.mubr.msk.bf16.mxu0 %vm17149_vm0, %v22058_v10  ;;  %8237 = vmatprep.subr.bf16.mxu0 %v16093_v31 }
 0x551   :  { %8238 = vmatpush1.bf16.msra.mxu0 %v16091_v58 }
 0x557   :  { %15258 = vmatmul.mubr.bf16.gmra.mrb[116].mxu0 %v4468_v63  ;;  %v16096_v63 = vld [vmem:[#allocation15 + $0x84] ss:$8 sps:$4 sm:$0xff]  }
 0x558   :  { %15261 = vmatprep.mubr.msk.bf16.mxu0 %vm17149_vm0, %v22058_v10  ;;  %7413 = vmatprep.subr.bf16.mxu1 %v16096_v63 }
 0x559   :  { %7414 = vmatpush1.bf16.msra.mxu1 %v16094_v8 }
 0x55f   :  { %15262 = vmatmul.mubr.bf16.gmra.mrb[120].mxu0 %v4470_v51  ;;  %v16099_v51 = vld [vmem:[#allocation18 + $0x14] ss:$8 sps:$4 sm:$0xff]  }
 0x560   :  { %15265 = vmatprep.mubr.msk.bf16.mxu0 %vm17149_vm0, %v22058_v10  ;;  %8239 = vmatprep.subr.bf16.mxu0 %v16099_v51  ;;  %vm13456_vm0 = vcmask 31744  }
 0x561   :  { %8240 = vmatpush1.bf16.msra.mxu0 %v16097_v33 }
 0x566   :  { %v14384_v27 = vpop.f32.mrb[12].mxu1 }
 0x567   :  { %15266 = vmatmul.mubr.bf16.gmra.mrb[124].mxu0 %v4472_v14  ;;  %v14454_v12 = vpop.f32.mrb[128].mxu0  ;;  %v14385_v24 = vpop.f32.mrb[13].mxu1 }
 0x568   :  { %8269 = vmatprep.mubr.bf16.mxu0 %v19392_v15  ;;  %v14386_v10 = vadd.f32 %v14385_v24, %v14384_v27  ;;  %v14455_v36 = vpop.f32.mrb[129].mxu0  ;;  %v14387_v50 = vpop.f32.mrb[14].mxu1 }
 0x569   :  { %v14456_v25 = vadd.f32 %v14455_v36, %v14454_v12  ;;  %v14457_v44 = vpop.f32.mrb[130].mxu0  ;;  %v14388_v49 = vpop.f32.mrb[15].mxu1  ;;  %v16102_v36 = vld [vmem:[#allocation15 + $0x94] ss:$8 sps:$4 sm:$0xff]  }
 0x56a   :  { %v5190_v26 = vadd.f32 %v14386_v10, %v19390_v23  ;;  %v14389_v29 = vadd.f32 %v14388_v49, %v14387_v50  ;;  %v14458_v59 = vpop.f32.mrb[131].mxu0  ;;  %v16100_v10 = vld [vmem:[#allocation15 + $0x90] ss:$8 sps:$4 sm:$0xff]   ;;  %7415 = vmatprep.subr.bf16.mxu1 %v16102_v36 }
 0x56b   :  { %v14459_v43 = vadd.f32 %v14458_v59, %v14457_v44  ;;  %v16103_v44 = vld [vmem:[#allocation18 + $0x20] ss:$8 sps:$4 sm:$0xff]   ;;  %v16105_v49 = vld [vmem:[#allocation18 + $0x24] ss:$8 sps:$4 sm:$0xff]   ;;  %7416 = vmatpush1.bf16.msra.mxu1 %v16100_v10 }
 0x56c   :  { %v19396_v4 = vadd.f32 %v14456_v25, %v5190_v26  ;;  %v5193_v16 = vadd.f32 %v14389_v29, %v19390_v23  ;;  %8241 = vmatprep.subr.bf16.mxu0 %v16105_v49  ;;  %v16135_v10 = vld [vmem:[#allocation15 + $0xe4] ss:$8 sps:$4 sm:$0xff]  }
 0x56d   :  { %8242 = vmatpush1.bf16.msra.mxu0 %v16103_v44 }
 0x56e   :  { %v19399_v2 = vadd.f32 %v14459_v43, %v5193_v16  ;;  %v14390_v34 = vpop.f32.mrb[16].mxu1  ;;  %v16108_v43 = vld [vmem:[#allocation15 + $0xa4] ss:$8 sps:$4 sm:$0xff]   ;;  %8243 = vmatprep.subr.bf16.mxu0 %v16111_v3  ;;  %v16130_v3 = vld [vmem:[#allocation18 + $0x70] ss:$8 sps:$4 sm:$0xff]  }
 0x56f   :  { %v14460_v53 = vpop.f32.mrb[132].mxu0  ;;  %v14391_v54 = vpop.f32.mrb[17].mxu1  ;;  %7417 = vmatprep.subr.bf16.mxu1 %v16108_v43 }
 0x570   :  { %v14392_v11 = vadd.f32 %v14391_v54, %v14390_v34  ;;  %v14461_v46 = vpop.f32.mrb[133].mxu0  ;;  %v14393_v7 = vpop.f32.mrb[18].mxu1  ;;  %v16106_v34 = vld [vmem:[#allocation15 + $0xa0] ss:$8 sps:$4 sm:$0xff]  }
 0x571   :  { %v14462_v22 = vadd.f32 %v14461_v46, %v14460_v53  ;;  %v14463_v57 = vpop.f32.mrb[134].mxu0  ;;  %v14394_v6 = vpop.f32.mrb[19].mxu1  ;;  %7418 = vmatpush1.bf16.msra.mxu1 %v16106_v34 }
 0x572   :  { %v5198_v20 = vadd.f32 %v14392_v11, %v19390_v23  ;;  %v14395_v1 = vadd.f32 %v14394_v6, %v14393_v7  ;;  %v14464_v35 = vpop.f32.mrb[135].mxu0  ;;  %v16109_v11 = vld [vmem:[#allocation18 + $0x30] ss:$8 sps:$4 sm:$0xff]  }
 0x573   :  { %v14465_v17 = vadd.f32 %v14464_v35, %v14463_v57  ;;  %v16114_v57 = vld [vmem:[#allocation18 + $0x44] ss:$8 sps:$4 sm:$0xff]   ;;  %8244 = vmatpush1.bf16.msra.mxu0 %v16109_v11  ;;  %v16138_v11 = vld [vmem:[#allocation15 + $0xf4] ss:$8 sps:$4 sm:$0xff]  }
 0x574   :  { %v19402_v5 = vadd.f32 %v14462_v22, %v5198_v20  ;;  %v5201_v30 = vadd.f32 %v14395_v1, %v19390_v23  ;;  %v16115_v6 = vld [vmem:[#allocation15 + $0xb0] ss:$8 sps:$4 sm:$0xff]   ;;  %v16117_v20 = vld [vmem:[#allocation15 + $0xb4] ss:$8 sps:$4 sm:$0xff]   ;;  %8245 = vmatprep.subr.bf16.mxu0 %v16114_v57 }
 0x575   :  { %7419 = vmatprep.subr.bf16.mxu1 %v16117_v20 }
 0x576   :  { %v19405_v56 = vadd.f32 %v14465_v17, %v5201_v30  ;;  %v14396_v42 = vpop.f32.mrb[20].mxu1  ;;  %v16112_v17 = vld [vmem:[#allocation18 + $0x40] ss:$8 sps:$4 sm:$0xff]   ;;  %7420 = vmatpush1.bf16.msra.mxu1 %v16115_v6 }
 0x577   :  { %v14466_v62 = vpop.f32.mrb[136].mxu0  ;;  %v14397_v9 = vpop.f32.mrb[21].mxu1  ;;  %v16123_v30 = vld [vmem:[#allocation15 + $0xc4] ss:$8 sps:$4 sm:$0xff]   ;;  %8246 = vmatpush1.bf16.msra.mxu0 %v16112_v17 }
 0x578   :  { %v14398_v52 = vadd.f32 %v14397_v9, %v14396_v42  ;;  %v14467_v21 = vpop.f32.mrb[137].mxu0  ;;  %v14399_v60 = vpop.f32.mrb[22].mxu1  ;;  %v16120_v42 = vld [vmem:[#allocation18 + $0x54] ss:$8 sps:$4 sm:$0xff]   ;;  %7421 = vmatprep.subr.bf16.mxu1 %v16123_v30 }
 0x579   :  { %v14468_v18 = vadd.f32 %v14467_v21, %v14466_v62  ;;  %v14469_v19 = vpop.f32.mrb[138].mxu0  ;;  %v14400_v0 = vpop.f32.mrb[23].mxu1  ;;  %8247 = vmatprep.subr.bf16.mxu0 %v16120_v42 }
 0x57a   :  { %v5206_v41 = vadd.f32 %v14398_v52, %v19390_v23  ;;  %v14401_v32 = vadd.f32 %v14400_v0, %v14399_v60  ;;  %v14470_v14 = vpop.f32.mrb[139].mxu0  ;;  %v16121_v52 = vld [vmem:[#allocation15 + $0xc0] ss:$8 sps:$4 sm:$0xff]  }
 0x57b   :  { %v14471_v27 = vadd.f32 %v14470_v14, %v14469_v19  ;;  %7422 = vmatpush1.bf16.msra.mxu1 %v16121_v52  ;;  %v16129_v14 = vld [vmem:[#allocation15 + $0xd4] ss:$8 sps:$4 sm:$0xff]   ;;  %v16141_v52 = vld [vmem:[#allocation15 + $0x104] ss:$8 sps:$4 sm:$0xff]  }
 0x57c   :  { %v19408_v61 = vadd.f32 %v14468_v18, %v5206_v41  ;;  %v5209_v47 = vadd.f32 %v14401_v32, %v19390_v23  ;;  %v16118_v18 = vld [vmem:[#allocation18 + $0x50] ss:$8 sps:$4 sm:$0xff]   ;;  %v16126_v41 = vld [vmem:[#allocation18 + $0x64] ss:$8 sps:$4 sm:$0xff]   ;;  %7423 = vmatprep.subr.bf16.mxu1 %v16129_v14 }
 0x57d   :  { %v16127_v32 = vld [vmem:[#allocation15 + $0xd0] ss:$8 sps:$4 sm:$0xff]   ;;  %8248 = vmatpush1.bf16.msra.mxu0 %v16118_v18 }
 0x57e   :  { %v19411_v12 = vadd.f32 %v14471_v27, %v5209_v47  ;;  %v14402_v24 = vpop.f32.mrb[24].mxu1  ;;  %8249 = vmatprep.subr.bf16.mxu0 %v16126_v41 }
 0x57f   :  { %v14472_v50 = vpop.f32.mrb[140].mxu0  ;;  %v14403_v25 = vpop.f32.mrb[25].mxu1  ;;  %7424 = vmatpush1.bf16.msra.mxu1 %v16127_v32 }
 0x580   :  { %v14404_v26 = vadd.f32 %v14403_v25, %v14402_v24  ;;  %v14473_v29 = vpop.f32.mrb[141].mxu0  ;;  %v14405_v59 = vpop.f32.mrb[26].mxu1  ;;  %v16124_v24 = vld [vmem:[#allocation18 + $0x60] ss:$8 sps:$4 sm:$0xff]   ;;  %v16132_v25 = vld [vmem:[#allocation18 + $0x74] ss:$8 sps:$4 sm:$0xff]   ;;  %7425 = vmatprep.subr.bf16.mxu1 %v16135_v10 }
 0x581   :  { %v14474_v16 = vadd.f32 %v14473_v29, %v14472_v50  ;;  %v14475_v13 = vpop.f32.mrb[142].mxu0  ;;  %v14406_v28 = vpop.f32.mrb[27].mxu1  ;;  %8250 = vmatpush1.bf16.msra.mxu0 %v16124_v24 }
 0x582   :  { %v5214_v53 = vadd.f32 %v14404_v26, %v19390_v23  ;;  %v14407_v54 = vadd.f32 %v14406_v28, %v14405_v59  ;;  %v14476_v40 = vpop.f32.mrb[143].mxu0  ;;  %8251 = vmatprep.subr.bf16.mxu0 %v16132_v25 }
 0x583   :  { %v14477_v46 = vadd.f32 %v14476_v40, %v14475_v13 }
 0x584   :  { %v19414_v7 = vadd.f32 %v14474_v16, %v5214_v53  ;;  %v5217_v22 = vadd.f32 %v14407_v54, %v19390_v23  ;;  %v16133_v16 = vld [vmem:[#allocation15 + $0xe0] ss:$8 sps:$4 sm:$0xff]  }
 0x585   :  { %7426 = vmatpush1.bf16.msra.mxu1 %v16133_v16  ;;  %8252 = vmatpush1.bf16.msra.mxu0 %v16130_v3 }
 0x586   :  { %v19417_v1 = vadd.f32 %v14477_v46, %v5217_v22  ;;  %v14408_v35 = vpop.f32.mrb[28].mxu1  ;;  %v16136_v46 = vld [vmem:[#allocation15 + $0xf0] ss:$8 sps:$4 sm:$0xff]   ;;  %7427 = vmatprep.subr.bf16.mxu1 %v16138_v11 }
 0x587   :  { %v14478_v37 = vpop.f32.mrb[144].mxu0  ;;  %v14409_v38 = vpop.f32.mrb[29].mxu1 }
 0x588   :  { %v14410_v58 = vadd.f32 %v14409_v38, %v14408_v35  ;;  %v14479_v31 = vpop.f32.mrb[145].mxu0  ;;  %v14411_v62 = vpop.f32.mrb[30].mxu1 }
 0x589   :  { %v14480_v9 = vadd.f32 %v14479_v31, %v14478_v37  ;;  %v14481_v8 = vpop.f32.mrb[146].mxu0  ;;  %v14412_v63 = vpop.f32.mrb[31].mxu1  ;;  %7428 = vmatpush1.bf16.msra.mxu1 %v16136_v46 }
 0x58a   :  { %v5222_v21 = vadd.f32 %v14410_v58, %v19390_v23  ;;  %v14413_v60 = vadd.f32 %v14412_v63, %v14411_v62  ;;  %v14482_v51 = vpop.f32.mrb[147].mxu0  ;;  %7520 = vmatprep.subr.bf16.mxu1 %v16141_v52 }
 0x58b   :  { %v14483_v19 = vadd.f32 %v14482_v51, %v14481_v8 }
 0x58c   :  { %v19420_v0 = vadd.f32 %v14480_v9, %v5222_v21  ;;  %v5225_v33 = vadd.f32 %v14413_v60, %v19390_v23 }
 0x58e   :  { %v19423_v27 = vadd.f32 %v14483_v19, %v5225_v33  ;;  %v14414_v47 = vpop.f32.mrb[32].mxu1 }
 0x58f   :  { %v14484_v36 = vpop.f32.mrb[148].mxu0  ;;  %v14415_v50 = vpop.f32.mrb[33].mxu1 }
 0x590   :  { %v14416_v44 = vadd.f32 %v14415_v50, %v14414_v47  ;;  %v14485_v49 = vpop.f32.mrb[149].mxu0  ;;  %v14417_v26 = vpop.f32.mrb[34].mxu1 }
 0x591   :  { %v14486_v29 = vadd.f32 %v14485_v49, %v14484_v36  ;;  %v14487_v59 = vpop.f32.mrb[150].mxu0  ;;  %v14418_v43 = vpop.f32.mrb[35].mxu1 }
 0x592   :  { %v5230_v13 = vadd.f32 %v14416_v44, %v19390_v23  ;;  %v14419_v28 = vadd.f32 %v14418_v43, %v14417_v26  ;;  %v14488_v34 = vpop.f32.mrb[151].mxu0 }
 0x593   :  { %v14489_v53 = vadd.f32 %v14488_v34, %v14487_v59 }
 0x594   :  { %v19426_v54 = vadd.f32 %v14486_v29, %v5230_v13  ;;  %v5233_v40 = vadd.f32 %v14419_v28, %v19390_v23 }
 0x596   :  { %v19429_v22 = vadd.f32 %v14489_v53, %v5233_v40  ;;  %v14420_v57 = vpop.f32.mrb[36].mxu1 }
 0x597   :  { %v14490_v6 = vpop.f32.mrb[152].mxu0  ;;  %v14421_v20 = vpop.f32.mrb[37].mxu1 }
 0x598   :  { %v14422_v35 = vadd.f32 %v14421_v20, %v14420_v57  ;;  %v14491_v17 = vpop.f32.mrb[153].mxu0  ;;  %v14423_v30 = vpop.f32.mrb[38].mxu1 }
 0x599   :  { %v14492_v37 = vadd.f32 %v14491_v17, %v14490_v6  ;;  %v14493_v38 = vpop.f32.mrb[154].mxu0  ;;  %v14424_v42 = vpop.f32.mrb[39].mxu1 }
 0x59a   :  { %v5238_v58 = vadd.f32 %v14422_v35, %v19390_v23  ;;  %v14425_v31 = vadd.f32 %v14424_v42, %v14423_v30  ;;  %v14494_v62 = vpop.f32.mrb[155].mxu0 }
 0x59b   :  { %v14495_v9 = vadd.f32 %v14494_v62, %v14493_v38 }
 0x59c   :  { %v19432_v8 = vadd.f32 %v14492_v37, %v5238_v58  ;;  %v5241_v63 = vadd.f32 %v14425_v31, %v19390_v23 }
 0x59e   :  { %v19435_v21 = vadd.f32 %v14495_v9, %v5241_v63  ;;  %v14426_v60 = vpop.f32.mrb[40].mxu1 }
 0x59f   :  { %v14496_v51 = vpop.f32.mrb[156].mxu0  ;;  %v14427_v18 = vpop.f32.mrb[41].mxu1 }
 0x5a0   :  { %v14428_v19 = vadd.f32 %v14427_v18, %v14426_v60  ;;  %v14497_v33 = vpop.f32.mrb[157].mxu0  ;;  %v14429_v41 = vpop.f32.mrb[42].mxu1 }
 0x5a1   :  { %v14498_v32 = vadd.f32 %v14497_v33, %v14496_v51  ;;  %v14499_v14 = vpop.f32.mrb[158].mxu0  ;;  %v14430_v47 = vpop.f32.mrb[43].mxu1 }
 0x5a2   :  { %v5246_v24 = vadd.f32 %v14428_v19, %v19390_v23  ;;  %v14431_v10 = vadd.f32 %v14430_v47, %v14429_v41  ;;  %v14500_v36 = vpop.f32.mrb[159].mxu0 }
 0x5a3   :  { %v14501_v50 = vadd.f32 %v14500_v36, %v14499_v14 }
 0x5a4   :  { %v19438_v25 = vadd.f32 %v14498_v32, %v5246_v24  ;;  %v5249_v44 = vadd.f32 %v14431_v10, %v19390_v23 }
 0x5a6   :  { %v19441_v49 = vadd.f32 %v14501_v50, %v5249_v44 }
 0x5aa   :  { %v14502_v26 = vpop.f32.mrb[160].mxu0 }
 0x5ab   :  { %v14503_v29 = vpop.f32.mrb[161].mxu0 }
 0x5ac   :  { %v14504_v59 = vadd.f32 %v14503_v29, %v14502_v26  ;;  %v14505_v43 = vpop.f32.mrb[162].mxu0 }
 0x5ad   :  { %v14506_v16 = vpop.f32.mrb[163].mxu0 }
 0x5ae   :  { %v14507_v13 = vadd.f32 %v14506_v16, %v14505_v43  ;;  %v14432_v28 = vpop.f32.mrb[44].mxu1 }
 0x5af   :  { %v14433_v34 = vpop.f32.mrb[45].mxu1 }
 0x5b0   :  { %v14434_v3 = vadd.f32 %v14433_v34, %v14432_v28  ;;  %v14435_v53 = vpop.f32.mrb[46].mxu1 }
 0x5b1   :  { %v14436_v40 = vpop.f32.mrb[47].mxu1 }
 0x5b2   :  { %v14594_v11 = vpop.f32.mrb[164].mxu0  ;;  %v5254_v46 = vadd.f32 %v14434_v3, %v19390_v23  ;;  %v14437_v57 = vadd.f32 %v14436_v40, %v14435_v53 }
 0x5b3   :  { %v14595_v6 = vpop.f32.mrb[165].mxu0 }
 0x5b4   :  { %v14596_v20 = vadd.f32 %v14595_v6, %v14594_v11  ;;  %v14597_v35 = vpop.f32.mrb[166].mxu0  ;;  %v19444_v17 = vadd.f32 %v14504_v59, %v5254_v46  ;;  %v5257_v30 = vadd.f32 %v14437_v57, %v19390_v23 }
 0x5b5   :  { %v14598_v37 = vpop.f32.mrb[167].mxu0 }
 0x5b6   :  { %v14599_v38 = vadd.f32 %v14598_v37, %v14597_v35  ;;  %v19447_v42 = vadd.f32 %v14507_v13, %v5257_v30  ;;  %v14524_v58 = vpop.f32.mrb[48].mxu1 }
 0x5b7   :  { %v14525_v31 = vpop.f32.mrb[49].mxu1 }
 0x5b8   :  { %v14526_v62 = vadd.f32 %v14525_v31, %v14524_v58  ;;  %v14527_v9 = vpop.f32.mrb[50].mxu1 }
 0x5b9   :  { %v14528_v63 = vpop.f32.mrb[51].mxu1 }
 0x5ba   :  { %v14600_v52 = vpop.f32.mrb[168].mxu0  ;;  %v5400_v60 = vadd.f32 %v14526_v62, %v19396_v4  ;;  %v14529_v51 = vadd.f32 %v14528_v63, %v14527_v9 }
 0x5bb   :  { %v14601_v18 = vpop.f32.mrb[169].mxu0 }
 0x5bc   :  { %v14602_v19 = vadd.f32 %v14601_v18, %v14600_v52  ;;  %v14603_v33 = vpop.f32.mrb[170].mxu0  ;;  %v19450_v41 = vadd.f32 %v14596_v20, %v5400_v60  ;;  %v5403_v23 = vadd.f32 %v14529_v51, %v19399_v2 }
 0x5bd   :  { %v14604_v32 = vpop.f32.mrb[171].mxu0 }
 0x5be   :  { %v14605_v14 = vadd.f32 %v14604_v32, %v14603_v33  ;;  %v19453_v47 = vadd.f32 %v14599_v38, %v5403_v23  ;;  %v14530_v24 = vpop.f32.mrb[52].mxu1 }
 0x5bf   :  { %v14531_v10 = vpop.f32.mrb[53].mxu1 }
 0x5c0   :  { %v14532_v36 = vadd.f32 %v14531_v10, %v14530_v24  ;;  %v14533_v50 = vpop.f32.mrb[54].mxu1 }
 0x5c1   :  { %v14534_v44 = vpop.f32.mrb[55].mxu1 }
 0x5c2   :  { %v14606_v26 = vpop.f32.mrb[172].mxu0  ;;  %v5408_v4 = vadd.f32 %v14532_v36, %v19402_v5  ;;  %v14535_v29 = vadd.f32 %v14534_v44, %v14533_v50 }
 0x5c3   :  { %v14607_v59 = vpop.f32.mrb[173].mxu0 }
 0x5c4   :  { %v14608_v43 = vadd.f32 %v14607_v59, %v14606_v26  ;;  %v14609_v16 = vpop.f32.mrb[174].mxu0  ;;  %v19456_v13 = vadd.f32 %v14602_v19, %v5408_v4  ;;  %v5411_v2 = vadd.f32 %v14535_v29, %v19405_v56 }
 0x5c5   :  { %v14610_v28 = vpop.f32.mrb[175].mxu0 }
 0x5c6   :  { %v14611_v34 = vadd.f32 %v14610_v28, %v14609_v16  ;;  %v19459_v3 = vadd.f32 %v14605_v14, %v5411_v2  ;;  %v14536_v53 = vpop.f32.mrb[56].mxu1 }
 0x5c7   :  { %v14537_v40 = vpop.f32.mrb[57].mxu1 }
 0x5c8   :  { %v14538_v11 = vadd.f32 %v14537_v40, %v14536_v53  ;;  %v14539_v46 = vpop.f32.mrb[58].mxu1 }
 0x5c9   :  { %v14540_v57 = vpop.f32.mrb[59].mxu1 }
 0x5ca   :  { %v14612_v6 = vpop.f32.mrb[176].mxu0  ;;  %v5416_v5 = vadd.f32 %v14538_v11, %v19408_v61  ;;  %v14541_v20 = vadd.f32 %v14540_v57, %v14539_v46 }
 0x5cb   :  { %v14613_v35 = vpop.f32.mrb[177].mxu0 }
 0x5cc   :  { %v14614_v30 = vadd.f32 %v14613_v35, %v14612_v6  ;;  %v14615_v37 = vpop.f32.mrb[178].mxu0  ;;  %v19462_v38 = vadd.f32 %v14608_v43, %v5416_v5  ;;  %v5419_v56 = vadd.f32 %v14541_v20, %v19411_v12 }
 0x5cd   :  { %v14616_v58 = vpop.f32.mrb[179].mxu0 }
 0x5ce   :  { %v14617_v31 = vadd.f32 %v14616_v58, %v14615_v37  ;;  %v19465_v62 = vadd.f32 %v14611_v34, %v5419_v56  ;;  %v14542_v9 = vpop.f32.mrb[60].mxu1 }
 0x5cf   :  { %v14543_v63 = vpop.f32.mrb[61].mxu1 }
 0x5d0   :  { %v14544_v52 = vadd.f32 %v14543_v63, %v14542_v9  ;;  %v14545_v60 = vpop.f32.mrb[62].mxu1 }
 0x5d1   :  { %v14546_v51 = vpop.f32.mrb[63].mxu1 }
 0x5d2   :  { %v14618_v18 = vpop.f32.mrb[180].mxu0  ;;  %v5424_v61 = vadd.f32 %v14544_v52, %v19414_v7  ;;  %v14547_v19 = vadd.f32 %v14546_v51, %v14545_v60 }
 0x5d3   :  { %v14619_v33 = vpop.f32.mrb[181].mxu0 }
 0x5d4   :  { %v14620_v23 = vadd.f32 %v14619_v33, %v14618_v18  ;;  %v14621_v32 = vpop.f32.mrb[182].mxu0  ;;  %v19468_v14 = vadd.f32 %v14614_v30, %v5424_v61  ;;  %v5427_v12 = vadd.f32 %v14547_v19, %v19417_v1 }
 0x5d5   :  { %v14622_v24 = vpop.f32.mrb[183].mxu0 }
 0x5d6   :  { %v14623_v10 = vadd.f32 %v14622_v24, %v14621_v32  ;;  %v19471_v36 = vadd.f32 %v14617_v31, %v5427_v12  ;;  %v14548_v50 = vpop.f32.mrb[64].mxu1 }
 0x5d7   :  { %v14549_v44 = vpop.f32.mrb[65].mxu1 }
 0x5d8   :  { %v14550_v26 = vadd.f32 %v14549_v44, %v14548_v50  ;;  %v14551_v4 = vpop.f32.mrb[66].mxu1 }
 0x5d9   :  { %v14552_v29 = vpop.f32.mrb[67].mxu1 }
 0x5da   :  { %v14624_v59 = vpop.f32.mrb[184].mxu0  ;;  %v5432_v7 = vadd.f32 %v14550_v26, %v19420_v0  ;;  %v14553_v43 = vadd.f32 %v14552_v29, %v14551_v4 }
 0x5db   :  { %v14625_v16 = vpop.f32.mrb[185].mxu0 }
 0x5dc   :  { %v14626_v2 = vadd.f32 %v14625_v16, %v14624_v59  ;;  %v14627_v28 = vpop.f32.mrb[186].mxu0  ;;  %v19474_v34 = vadd.f32 %v14620_v23, %v5432_v7  ;;  %v5435_v1 = vadd.f32 %v14553_v43, %v19423_v27 }
 0x5dd   :  { %v14628_v53 = vpop.f32.mrb[187].mxu0 }
 0x5de   :  { %v14629_v40 = vadd.f32 %v14628_v53, %v14627_v28  ;;  %v19477_v11 = vadd.f32 %v14623_v10, %v5435_v1  ;;  %v14554_v46 = vpop.f32.mrb[68].mxu1 }
 0x5df   :  { %v14555_v57 = vpop.f32.mrb[69].mxu1 }
 0x5e0   :  { %v14556_v6 = vadd.f32 %v14555_v57, %v14554_v46  ;;  %v14557_v5 = vpop.f32.mrb[70].mxu1 }
 0x5e1   :  { %v14558_v20 = vpop.f32.mrb[71].mxu1 }
 0x5e2   :  { %v14630_v35 = vpop.f32.mrb[188].mxu0  ;;  %v5440_v0 = vadd.f32 %v14556_v6, %v19426_v54  ;;  %v14559_v30 = vadd.f32 %v14558_v20, %v14557_v5  ;;  %v19495_v6 = vld [vmem:[#allocation13] ss:$0 sm:$0xff] }
 0x5e3   :  { %v14631_v37 = vpop.f32.mrb[189].mxu0 }
 0x5e4   :  { %v14632_v56 = vadd.f32 %v14631_v37, %v14630_v35  ;;  %v14633_v58 = vpop.f32.mrb[190].mxu0  ;;  %v19480_v31 = vadd.f32 %v14626_v2, %v5440_v0  ;;  %v5443_v27 = vadd.f32 %v14559_v30, %v19429_v22 }
 0x5e5   :  { %v14634_v9 = vpop.f32.mrb[191].mxu0 }
 0x5e6   :  { %v14635_v63 = vadd.f32 %v14634_v9, %v14633_v58  ;;  %v19483_v52 = vadd.f32 %v14629_v40, %v5443_v27  ;;  %v14560_v60 = vpop.f32.mrb[72].mxu1 }
 0x5e7   :  { %v14561_v51 = vpop.f32.mrb[73].mxu1 }
 0x5e8   :  { %v14562_v18 = vadd.f32 %v14561_v51, %v14560_v60  ;;  %v14563_v61 = vpop.f32.mrb[74].mxu1  ;;  %v5809_v60 = vld [vmem:[#allocation2] sm:$0xf8] }
 0x5e9   :  { %v14564_v19 = vpop.f32.mrb[75].mxu1 }
 0x5ea   :  { %v14636_v33 = vpop.f32.mrb[192].mxu0  ;;  %v5448_v54 = vadd.f32 %v14562_v18, %v19432_v8  ;;  %v14565_v23 = vadd.f32 %v14564_v19, %v14563_v61 }
 0x5eb   :  { %v14637_v32 = vpop.f32.mrb[193].mxu0 }
 0x5ec   :  { %v14638_v12 = vadd.f32 %v14637_v32, %v14636_v33  ;;  %v14639_v24 = vpop.f32.mrb[194].mxu0  ;;  %v19486_v10 = vadd.f32 %v14632_v56, %v5448_v54  ;;  %v5451_v22 = vadd.f32 %v14565_v23, %v19435_v21  ;;  %v5820_v23 = vshrl.u32 %v5809_v60, 16 }
 0x5ed   :  { %v14640_v50 = vpop.f32.mrb[195].mxu0 }
 0x5ee   :  { %v14641_v44 = vadd.f32 %v14640_v50, %v14639_v24  ;;  %v19489_v26 = vadd.f32 %v14635_v63, %v5451_v22  ;;  %v14566_v4 = vpop.f32.mrb[76].mxu1  ;;  %v15277_v63 = vadd.f32 %v19495_v6, %v19453_v47  ;;  %v15279_v47 = vadd.f32 %v19495_v6, %v19456_v13 }
 0x5ef   :  { %v14567_v29 = vpop.f32.mrb[77].mxu1 }
 0x5f0   :  { %v14568_v59 = vadd.f32 %v14567_v29, %v14566_v4  ;;  %v14569_v7 = vpop.f32.mrb[78].mxu1 }
 0x5f1   :  { %v14570_v43 = vpop.f32.mrb[79].mxu1 }
 0x5f2   :  { %v14642_v16 = vpop.f32.mrb[196].mxu0  ;;  %v5456_v8 = vadd.f32 %v14568_v59, %v19438_v25  ;;  %v14571_v2 = vadd.f32 %v14570_v43, %v14569_v7  ;;  %v15275_v25 = vadd.f32 %v19495_v6, %v19450_v41  ;;  %v15281_v7 = vadd.f32 %v19495_v6, %v19459_v3 }
 0x5f3   :  { %v14643_v28 = vpop.f32.mrb[197].mxu0 }
 0x5f4   :  { %v14644_v1 = vadd.f32 %v14643_v28, %v14642_v16  ;;  %v14645_v53 = vpop.f32.mrb[198].mxu0  ;;  %v19492_v40 = vadd.f32 %v14638_v12, %v5456_v8  ;;  %v5459_v21 = vadd.f32 %v14571_v2, %v19441_v49  ;;  %v5823_v12 = vshll.u32 %v5809_v60, 16 }
 0x5f5   :  { %v14646_v46 = vpop.f32.mrb[199].mxu0 }
 0x5f6   :  { %v14647_v57 = vadd.f32 %v14646_v46, %v14645_v53  ;;  %v19497_v5 = vadd.f32 %v14641_v44, %v5459_v21  ;;  %v14572_v20 = vpop.f32.mrb[80].mxu1  ;;  %v5822_v44 = vrot.slane %v5820_v23, 3  ;;  %v5825_v43 = vrot.slane %v5823_v12, 4  ;;  %v5752_v53 = vld [vmem:[#allocation2] sm:$0xf8] }
 0x5f7   :  { %v14573_v35 = vpop.f32.mrb[81].mxu1 }
 0x5f8   :  { %v14574_v0 = vadd.f32 %v14573_v35, %v14572_v20  ;;  %v14575_v30 = vpop.f32.mrb[82].mxu1  ;;  %v5826_v46 = vor.u32 %v5825_v43, %v5822_v44  ;;  %v5772_v20 = vrot.slane %v5752_v53, 3 }
 0x5f9   :  { %v14576_v37 = vpop.f32.mrb[83].mxu1 }
 0x5fa   :  { %v5609_v56 = vpop.f32.mrb[92].mxu0  ;;  %v5464_v58 = vadd.f32 %v14574_v0, %v19444_v17  ;;  %v14577_v27 = vadd.f32 %v14576_v37, %v14575_v30  ;;  %v15283_v37 = vadd.f32 %v19495_v6, %v19462_v38 }
 0x5fb   :  { %v15276_v9 = vadd.f32 %v15275_v25, %v5609_v56  ;;  %v15235_v49 = vpop.f32.mrb[93].mxu0 }
 0x5fc   :  { %v5612_v51 = vpop.f32.mrb[94].mxu0  ;;  %v5569_v18 = vadd.f32 %v14644_v1, %v5464_v58  ;;  %v5467_v61 = vadd.f32 %v14577_v27, %v19447_v42  ;;  %v16139_v27 = vld [vmem:[#allocation15 + $0x100] ss:$8 sps:$4 sm:$0xff]  }
 0x5fd   :  { %v5698_v19 = vmax.f32 %v15276_v9, 0.0  ;;  %v15278_v33 = vadd.f32 %v15277_v63, %v5612_v51  ;;  %v15236_v54 = vpop.f32.mrb[95].mxu0  ;;  %v15285_v51 = vadd.f32 %v19495_v6, %v19465_v62  ;;  %v16142_v62 = vld [vmem:[#allocation15 + $0x110] ss:$8 sps:$4 sm:$0xff]  }
 0x5fe   :  { %v5572_v41 = vadd.f32 %v14647_v57, %v5467_v61  ;;  %v19506_v17 = vadd.f32 %v19495_v6, %v5569_v18  ;;  %v16144_v61 = vld [vmem:[#allocation15 + $0x114] ss:$8 sps:$4 sm:$0xff]  }
 0x5ff   :  { %v5699_v32 = vmax.f32 %v15278_v33, 0.0  ;;  %v5716_v24 = vmul.f32 %v22097_v55, %v5698_v19 }
 0x600   :  { %v19513_v50 = vadd.f32 %v19495_v6, %v5572_v41 }
 0x601   :  { %v5717_v22 = vmul.f32 %v22098_v45, %v5699_v32 }
 0x602   :  { %v5617_v42 = vpop.f32.mrb[96].mxu0 }
 0x603   :  { %v19515_v4 = vpack.c.bf16 %v5717_v22, %v5716_v24  ;;  %v15280_v29 = vadd.f32 %v15279_v47, %v5617_v42  ;;  %v15239_v59 = vpop.f32.mrb[97].mxu0 }
 0x604   :  { %v5620_v16 = vpop.f32.mrb[98].mxu0 }
 0x605   :  { %5743 = vst [vmem:[#allocation2 + $0x10] sm:$0xff] %v19515_v4  ;;  %v5700_v8 = vmax.f32 %v15280_v29, 0.0  ;;  %v15282_v2 = vadd.f32 %v15281_v7, %v5620_v16  ;;  %v15240_v28 = vpop.f32.mrb[99].mxu0  ;;  %8270 = vmatmul.mubr.bf16.vlgmr.msra.gmra.mrb[200].mxu0 %v19515_v4  ;;  %v5828_v13 = vshrl.u32 %v19515_v4, 16  ;;  %v5831_v1 = vshll.u32 %v19515_v4, 16  ;;  %v22115_v16 = vld [vmem:[#allocation39_spill] sm:$0xff] }
 0x606   :  { %8279 = vmatprep.mubr.bf16.mxu0 %v19392_v15  ;;  %v5773_v35 = vrot.slane %v19515_v4, 3  ;;  %v21971_v24 = vrot.slane %v19515_v4, 4  ;;  %v16147_v29 = vld [vmem:[#allocation15 + $0x124] ss:$8 sps:$4 sm:$0xff]  }
 0x607   :  { %v5701_v21 = vmax.f32 %v15282_v2, 0.0  ;;  %v5830_v57 = vrot.slane %v5828_v13, 3  ;;  %v5833_v3 = vrot.slane %v5831_v1, 4  ;;  %v6000_v0 = vrot.slane %v5828_v13, 7  ;;  %v22116_v2 = vld [vmem:[#allocation42_spill] sm:$0xff] }
 0x608   :  { %v5718_v30 = vmul.f32 %v22099_v48, %v5700_v8  ;;  %v5774_v33 = vsel %vm1842_vm12, %v5772_v20, %v5773_v35  ;;  %v15287_v13 = vadd.f32 %v19495_v6, %v19468_v14 }
 0x609   :  { %v5719_v25 = vmul.f32 %v22100_v39, %v5701_v21  ;;  %v5834_v56 = vor.u32 %v5833_v3, %v5830_v57  ;;  %v19529_v9 = vor.u32 %v6000_v0, %v5831_v1  ;;  %v16145_v21 = vld [vmem:[#allocation15 + $0x120] ss:$8 sps:$4 sm:$0xff]  }
 0x60a   :  { %v5625_v58 = vpop.f32.mrb[100].mxu0 }
 0x60b   :  { %v19531_v49 = vpack.c.bf16 %v5719_v25, %v5718_v30  ;;  %v15284_v63 = vadd.f32 %v15283_v37, %v5625_v58  ;;  %v15243_v60 = vpop.f32.mrb[101].mxu0  ;;  %v5835_v18 = vsel %vm1586_vm1, %v5826_v46, %v5834_v56  ;;  %v16150_v25 = vld [vmem:[#allocation15 + $0x134] ss:$8 sps:$4 sm:$0xff]  }
 0x60c   :  { %v5628_v19 = vpop.f32.mrb[102].mxu0  ;;  %7429 = vmatprep.mubr.bf16.mxu1 %v5835_v18 }
 0x60d   :  { %5744 = vst [vmem:[#allocation2 + $0x20] sm:$0xff] %v19531_v49  ;;  %v5702_v38 = vmax.f32 %v15284_v63, 0.0  ;;  %v15286_v54 = vadd.f32 %v15285_v51, %v5628_v19  ;;  %v15244_v23 = vpop.f32.mrb[103].mxu0  ;;  %7430 = vmatmul.mubr.bf16.vlgmr.msra.gmra.mrb[84].mxu1 %v5774_v33  ;;  %8280 = vmatmul.mubr.bf16.gmra.mrb[204].mxu0 %v19531_v49  ;;  %v5837_v41 = vshrl.u32 %v19531_v49, 16  ;;  %v5840_v32 = vshll.u32 %v19531_v49, 16 }
 0x60e   :  { %7521 = vmatpush1.bf16.msra.mxu1 %v16139_v27  ;;  %8289 = vmatprep.mubr.bf16.mxu0 %v19392_v15  ;;  %v5775_v12 = vrot.slane %v19531_v49, 3  ;;  %v5949_v22 = vrot.slane %v19531_v49, 4  ;;  %v16153_v19 = vld [vmem:[#allocation15 + $0x144] ss:$8 sps:$4 sm:$0xff]  }
 0x60f   :  { %v5703_v47 = vmax.f32 %v15286_v54, 0.0  ;;  %7522 = vmatprep.subr.bf16.mxu1 %v16144_v61  ;;  %v5839_v42 = vrot.slane %v5837_v41, 3  ;;  %v5842_v44 = vrot.slane %v5840_v32, 4  ;;  %v6008_v7 = vrot.slane %v5837_v41, 7  ;;  %v22117_v23 = vld [vmem:[#allocation43_spill] sm:$0xff] }
 0x610   :  { %v5776_v59 = vsel %vm1842_vm12, %v5773_v35, %v5775_v12  ;;  %v19549_v43 = vsel %vm2030_vm13, %v21971_v24, %v5949_v22  ;;  %v5720_v8 = vmul.f32 %v22115_v16, %v5702_v38  ;;  %v15289_v35 = vadd.f32 %v19495_v6, %v19471_v36 }
 0x611   :  { %v5721_v28 = vmul.f32 %v22116_v2, %v5703_v47  ;;  %v5843_v1 = vor.u32 %v5842_v44, %v5839_v42  ;;  %v6011_v46 = vor.u32 %v6008_v7, %v5840_v32  ;;  %v22118_v32 = vld [vmem:[#allocation47_spill] sm:$0xff] }
 0x612   :  { %v5633_v53 = vpop.f32.mrb[104].mxu0  ;;  %7523 = vmatpush1.bf16.msra.mxu1 %v16142_v62  ;;  %v15291_v62 = vadd.f32 %v19495_v6, %v19474_v34  ;;  %v16151_v44 = vld [vmem:[#allocation15 + $0x140] ss:$8 sps:$4 sm:$0xff]  }
 0x613   :  { %v19555_v57 = vpack.c.bf16 %v5721_v28, %v5720_v8  ;;  %v15288_v3 = vadd.f32 %v15287_v13, %v5633_v53  ;;  %v15247_v20 = vpop.f32.mrb[105].mxu0  ;;  %v5844_v30 = vsel %vm1586_vm1, %v5834_v56, %v5843_v1  ;;  %7524 = vmatprep.subr.bf16.mxu1 %v16147_v29  ;;  %v19561_v14 = vsel %vm2235_vm10, %v6000_v0, %v6011_v46  ;;  %v16148_v56 = vld [vmem:[#allocation15 + $0x130] ss:$8 sps:$4 sm:$0xff]   ;;  %v16156_v13 = vld [vmem:[#allocation15 + $0x154] ss:$8 sps:$4 sm:$0xff]  }
 0x614   :  { %v5636_v37 = vpop.f32.mrb[106].mxu0  ;;  %7439 = vmatprep.mubr.bf16.mxu1 %v5844_v30  ;;  %v19586_v53 = vld [vmem:[#allocation2 + $0x20] sm:$0xff] }
 0x615   :  { %5745 = vst [vmem:[#allocation2 + $0x30] sm:$0xff] %v19555_v57  ;;  %v5704_v58 = vmax.f32 %v15288_v3, 0.0  ;;  %v15290_v27 = vadd.f32 %v15289_v35, %v5636_v37  ;;  %v15248_v49 = vpop.f32.mrb[107].mxu0  ;;  %7440 = vmatmul.mubr.bf16.gmra.mrb[88].mxu1 %v5776_v59  ;;  %8290 = vmatmul.mubr.bf16.gmra.mrb[208].mxu0 %v19555_v57  ;;  %v5846_v63 = vshrl.u32 %v19555_v57, 16  ;;  %v5849_v36 = vshll.u32 %v19555_v57, 16  ;;  %v19599_v30 = vld [vmem:[#allocation2] sm:$0xff] }
 0x616   :  { %7525 = vmatpush1.bf16.msra.mxu1 %v16145_v21  ;;  %8299 = vmatprep.mubr.bf16.mxu0 %v19392_v15  ;;  %v5777_v60 = vrot.slane %v19555_v57, 3  ;;  %v5951_v0 = vrot.slane %v19555_v57, 4  ;;  %v15295_v21 = vadd.f32 %v19495_v6, %v19480_v31  ;;  %v16154_v31 = vld [vmem:[#allocation15 + $0x150] ss:$8 sps:$4 sm:$0xff]   ;;  %v21966_v37 = vshll.u32 %v19586_v53, 16 }
 0x617   :  { %v5705_v51 = vmax.f32 %v15290_v27, 0.0  ;;  %7526 = vmatprep.subr.bf16.mxu1 %v16150_v25  ;;  %v5848_v18 = vrot.slane %v5846_v63, 3  ;;  %v5851_v61 = vrot.slane %v5849_v36, 4  ;;  %v19571_v38 = vrot.slane %v5846_v63, 7 }
 0x618   :  { %v5778_v33 = vsel %vm1842_vm12, %v5775_v12, %v5777_v60  ;;  %v19574_v54 = vsel %vm2030_vm13, %v5949_v22, %v5951_v0  ;;  %v5722_v41 = vmul.f32 %v22117_v23, %v5704_v58  ;;  %v15293_v22 = vadd.f32 %v19495_v6, %v19477_v11 }
 0x619   :  { %v5723_v15 = vmul.f32 %v22118_v32, %v5705_v51  ;;  %v5852_v47 = vor.u32 %v5851_v61, %v5848_v18  ;;  %v6019_v29 = vor.u32 %v19571_v38, %v5849_v36  ;;  %v21964_v58 = vshrl.u32 %v19586_v53, 16 }
 0x61a   :  { %v5641_v42 = vpop.f32.mrb[108].mxu0  ;;  %7527 = vmatpush1.bf16.msra.mxu1 %v16148_v56  ;;  %v15297_v49 = vadd.f32 %v19495_v6, %v19483_v52  ;;  %v16159_v56 = vld [vmem:[#allocation15 + $0x164] ss:$8 sps:$4 sm:$0xff]   ;;  %v16157_v52 = vld [vmem:[#allocation15 + $0x160] ss:$8 sps:$4 sm:$0xff]  }
 0x61b   :  { %v19581_v59 = vpack.c.bf16 %v5723_v15, %v5722_v41  ;;  %v15292_v12 = vadd.f32 %v15291_v62, %v5641_v42  ;;  %v15251_v8 = vpop.f32.mrb[109].mxu0  ;;  %v5853_v28 = vsel %vm1586_vm1, %v5843_v1, %v5852_v47  ;;  %7528 = vmatprep.subr.bf16.mxu1 %v16153_v19  ;;  %v19591_v46 = vsel %vm2235_vm10, %v6008_v7, %v6019_v29 }
 0x61c   :  { %v5644_v34 = vpop.f32.mrb[110].mxu0  ;;  %7449 = vmatprep.mubr.bf16.mxu1 %v5853_v28  ;;  %v19597_v35 = vld [vmem:[#allocation2 + $0x30] sm:$0xff]  ;;  %v6290_v29 = vrot.slane %v21966_v37, 5 }
 0x61d   :  { %5746 = vst [vmem:[#allocation2 + $0x40] sm:$0xff] %v19581_v59  ;;  %v5706_v57 = vmax.f32 %v15292_v12, 0.0  ;;  %v15294_v3 = vadd.f32 %v15293_v22, %v5644_v34  ;;  %v15252_v20 = vpop.f32.mrb[111].mxu0  ;;  %7450 = vmatmul.mubr.bf16.gmra.mrb[92].mxu1 %v5778_v33  ;;  %8300 = vmatmul.mubr.bf16.gmra.mrb[212].mxu0 %v19581_v59  ;;  %v5855_v11 = vshrl.u32 %v19581_v59, 16  ;;  %v5858_v1 = vshll.u32 %v19581_v59, 16 }
 0x61e   :  { %7529 = vmatpush1.bf16.msra.mxu1 %v16151_v44  ;;  %8309 = vmatprep.mubr.bf16.mxu0 %v19599_v30  ;;  %v5779_v7 = vrot.slane %v19581_v59, 3  ;;  %v5953_v25 = vrot.slane %v19581_v59, 4  ;;  %v21965_v19 = vshll.u32 %v19597_v35, 16  ;;  %v21962_v62 = vshrl.u32 %v19597_v35, 16  ;;  %v16162_v28 = vld [vmem:[#allocation15 + $0x174] ss:$8 sps:$4 sm:$0xff]  }
 0x61f   :  { %v5707_v27 = vmax.f32 %v15294_v3, 0.0  ;;  %7530 = vmatprep.subr.bf16.mxu1 %v16156_v13  ;;  %v5857_v63 = vrot.slane %v5855_v11, 3  ;;  %v5860_v36 = vrot.slane %v5858_v1, 4  ;;  %v19609_v18 = vrot.slane %v5855_v11, 7 }
 0x620   :  { %v5780_v51 = vsel %vm1842_vm12, %v5777_v60, %v5779_v7  ;;  %v19612_v61 = vsel %vm2030_vm13, %v5951_v0, %v5953_v25  ;;  %v5724_v33 = vmul.f32 0.0, %v5706_v57  ;;  %v6287_v60 = vrot.slane %v21964_v58, 4  ;;  %v16169_v58 = vld [vmem:[#allocation15 + $0x1a0] ss:$8 sps:$4 sm:$0xff]  }
 0x621   :  { %v5725_v41 = vmul.f32 0.0, %v5707_v27  ;;  %v5861_v15 = vor.u32 %v5860_v36, %v5857_v63  ;;  %v6027_v44 = vor.u32 %v19609_v18, %v5858_v1  ;;  %v6299_v0 = vrot.slane %v21965_v19, 5  ;;  %v22119_v36 = vld [vmem:[#allocation37_spill] sm:$0xff] }
 0x622   :  { %v5649_v42 = vpop.f32.mrb[112].mxu0  ;;  %7531 = vmatpush1.bf16.msra.mxu1 %v16154_v31  ;;  %v6296_v13 = vrot.slane %v21962_v62, 4  ;;  %v15299_v57 = vadd.f32 %v19495_v6, %v19486_v10  ;;  %v16160_v10 = vld [vmem:[#allocation15 + $0x170] ss:$8 sps:$4 sm:$0xff]   ;;  %v19643_v63 = vor.u32 %v6290_v29, %v6287_v60 }
 0x623   :  { %v19623_v59 = vpack.c.bf16 %v5725_v41, %v5724_v33  ;;  %v15296_v12 = vadd.f32 %v15295_v21, %v5649_v42  ;;  %v15255_v8 = vpop.f32.mrb[113].mxu0  ;;  %v5862_v22 = vsel %vm1586_vm1, %v5852_v47, %v5861_v15  ;;  %7532 = vmatprep.subr.bf16.mxu1 %v16159_v56  ;;  %v19632_v3 = vsel %vm2235_vm10, %v19571_v38, %v6027_v44  ;;  %v16165_v42 = vld [vmem:[#allocation15 + $0x184] ss:$8 sps:$4 sm:$0xff]   ;;  %v22120_v60 = vld [vmem:[#allocation38_spill] sm:$0xff] }
 0x624   :  { %v5652_v34 = vpop.f32.mrb[114].mxu0  ;;  %7459 = vmatprep.mubr.bf16.mxu1 %v5862_v22  ;;  %v19638_v31 = vld [vmem:[#allocation2 + $0x40] sm:$0xff] }
 0x625   :  { %5747 = vst [vmem:[#allocation2 + $0x50] sm:$0xff] %v19623_v59  ;;  %v5708_v21 = vmax.f32 %v15296_v12, 0.0  ;;  %v15298_v20 = vadd.f32 %v15297_v49, %v5652_v34  ;;  %v15256_v11 = vpop.f32.mrb[115].mxu0  ;;  %7460 = vmatmul.mubr.bf16.gmra.mrb[96].mxu1 %v5780_v51  ;;  %8310 = vmatmul.mubr.bf16.gmra.mrb[216].mxu0 %v19623_v59  ;;  %v5864_v47 = vshrl.u32 %v19623_v59, 16  ;;  %v5867_v1 = vshll.u32 %v19623_v59, 16 }
 0x626   :  { %7533 = vmatpush1.bf16.msra.mxu1 %v16157_v52  ;;  %8319 = vmatprep.mubr.bf16.mxu0 %v19599_v30  ;;  %v5781_v38 = vrot.slane %v19623_v59, 3  ;;  %v5955_v27 = vrot.slane %v19623_v59, 4  ;;  %v19645_v49 = vor.u32 %v6299_v0, %v6296_v13  ;;  %v21963_v59 = vshll.u32 %v19638_v31, 16  ;;  %v16163_v13 = vld [vmem:[#allocation15 + $0x180] ss:$8 sps:$4 sm:$0xff]  }
 0x627   :  { %v5726_v56 = vmul.f32 %v22119_v36, %v5708_v21  ;;  %v5709_v51 = vmax.f32 %v15298_v20, 0.0  ;;  %v5866_v33 = vrot.slane %v5864_v47, 3  ;;  %v5869_v41 = vrot.slane %v5867_v1, 4  ;;  %7534 = vmatprep.subr.bf16.mxu1 %v16162_v28 }
 0x628   :  { %v5782_v52 = vsel %vm1842_vm12, %v5779_v7, %v5781_v38  ;;  %v19649_v44 = vrot.slane %v5864_v47, 7  ;;  %v19652_v12 = vsel %vm2030_vm13, %v5953_v25, %v5955_v27  ;;  %v21961_v8 = vshrl.u32 %v19638_v31, 16 }
 0x629   :  { %v5727_v29 = vmul.f32 %v22120_v60, %v5709_v51  ;;  %v5870_v0 = vor.u32 %v5869_v41, %v5866_v33  ;;  %v19660_v22 = vsel %vm3114_vm9, %v19643_v63, %v19645_v49  ;;  %v15301_v7 = vadd.f32 %v19495_v6, %v19489_v26  ;;  %v16168_v51 = vld [vmem:[#allocation15 + $0x194] ss:$8 sps:$4 sm:$0xff]  }
 0x62a   :  { %v5657_v28 = vpop.f32.mrb[116].mxu0  ;;  %7535 = vmatpush1.bf16.msra.mxu1 %v16160_v10  ;;  %v6035_v25 = vor.u32 %v19649_v44, %v5867_v1  ;;  %v6308_v34 = vrot.slane %v21963_v59, 5  ;;  %v6305_v33 = vrot.slane %v21961_v8, 4 }
 0x62b   :  { %v19667_v21 = vpack.c.bf16 %v5727_v29, %v5726_v56  ;;  %v15300_v20 = vadd.f32 %v15299_v57, %v5657_v28  ;;  %v15259_v11 = vpop.f32.mrb[117].mxu0  ;;  %v5871_v47 = vsel %vm1586_vm1, %v5861_v15, %v5870_v0  ;;  %7536 = vmatprep.subr.bf16.mxu1 %v16165_v42  ;;  %v16166_v28 = vld [vmem:[#allocation15 + $0x190] ss:$8 sps:$4 sm:$0xff]  }
 0x62c   :  { %v5660_v41 = vpop.f32.mrb[118].mxu0  ;;  %7469 = vmatprep.mubr.bf16.mxu1 %v5871_v47  ;;  %v19674_v26 = vsel %vm2235_vm10, %v19609_v18, %v6035_v25  ;;  %v19684_v42 = vld [vmem:[#allocation2 + $0x50] sm:$0xff]  ;;  %v15303_v18 = vadd.f32 %v19495_v6, %v19492_v40  ;;  %v22121_v25 = vld [vmem:[#allocation40_spill] sm:$0xff] }
 0x62d   :  { %5748 = vst [vmem:[#allocation2 + $0x60] sm:$0xff] %v19667_v21  ;;  %v5710_v1 = vmax.f32 %v15300_v20, 0.0  ;;  %v15302_v10 = vadd.f32 %v15301_v7, %v5660_v41  ;;  %v15260_v56 = vpop.f32.mrb[119].mxu0  ;;  %7470 = vmatmul.mubr.bf16.gmra.mrb[100].mxu1 %v5782_v52  ;;  %8320 = vmatmul.mubr.bf16.gmra.mrb[220].mxu0 %v19667_v21  ;;  %v19679_v15 = vshrl.u32 %v19667_v21, 16  ;;  %v19682_v57 = vshll.u32 %v19667_v21, 16 }
 0x62e   :  { %7537 = vmatpush1.bf16.msra.mxu1 %v16163_v13  ;;  %8329 = vmatprep.mubr.bf16.mxu0 %v19599_v30  ;;  %v21973_v29 = vrot.slane %v19667_v21, 3  ;;  %v21967_v52 = vrot.slane %v19667_v21, 4  ;;  %v6309_v7 = vor.u32 %v6308_v34, %v6305_v33  ;;  %v16171_v56 = vld [vmem:[#allocation15 + $0x1a4] ss:$8 sps:$4 sm:$0xff]   ;;  %v21970_v34 = vshll.u32 %v19684_v42, 16  ;;  %v22122_v33 = vld [vmem:[#allocation41_spill] sm:$0xff] }
 0x62f   :  { %v5728_v20 = vmul.f32 %v22121_v25, %v5710_v1  ;;  %v5711_v11 = vmax.f32 %v15302_v10, 0.0  ;;  %v5875_v47 = vrot.slane %v19679_v15, 3  ;;  %v5878_v41 = vrot.slane %v19682_v57, 4  ;;  %7538 = vmatprep.subr.bf16.mxu1 %v16168_v51  ;;  %v16186_v25 = vld [vmem:[#allocation15 + $0x1f4] ss:$8 sps:$4 sm:$0xff]  }
 0x630   :  { %v5784_v40 = vsel %vm1842_vm12, %v5781_v38, %v21973_v29  ;;  %v21972_v13 = vrot.slane %v19679_v15, 7  ;;  %v19701_v8 = vsel %vm2030_vm13, %v5955_v27, %v21967_v52  ;;  %v21969_v62 = vshrl.u32 %v19684_v42, 16 }
 0x631   :  { %v5729_v1 = vmul.f32 %v22122_v33, %v5711_v11  ;;  %v5879_v10 = vor.u32 %v5878_v41, %v5875_v47  ;;  %v21968_v51 = vrot.slane %v19682_v57, 1  ;;  %v15305_v38 = vadd.f32 %v19495_v6, %v19497_v5  ;;  %v16174_v6 = vld [vmem:[#allocation15 + $0x1b4] ss:$8 sps:$4 sm:$0xff]  }
 0x632   :  { %v5665_v59 = vpop.f32.mrb[120].mxu0  ;;  %7539 = vmatpush1.bf16.msra.mxu1 %v16166_v28  ;;  %v6043_v27 = vor.u32 %v21972_v13, %v19682_v57  ;;  %v19714_v19 = vsel %vm3114_vm9, %v19645_v49, %v6309_v7  ;;  %v6317_v11 = vrot.slane %v21970_v34, 5  ;;  %v22124_v34 = vld [vmem:[#allocation45_spill] sm:$0xff] }
 0x633   :  { %v19718_v47 = vpack.c.bf16 %v5729_v1, %v5728_v20  ;;  %v15304_v41 = vadd.f32 %v15303_v18, %v5665_v59  ;;  %v15263_v37 = vpop.f32.mrb[121].mxu0  ;;  %v5880_v52 = vsel %vm1586_vm1, %v5870_v0, %v5879_v10  ;;  %7540 = vmatprep.subr.bf16.mxu1 %v16171_v56  ;;  %v6161_v5 = vor.u32 %v21968_v51, %v19679_v15  ;;  %v22123_v51 = vld [vmem:[#allocation44_spill] sm:$0xff] }
 0x634   :  { %v5668_v28 = vpop.f32.mrb[122].mxu0  ;;  %7479 = vmatprep.mubr.bf16.mxu1 %v5880_v52  ;;  %v19726_v49 = vsel %vm2235_vm10, %v19649_v44, %v6043_v27  ;;  %v6314_v20 = vrot.slane %v21969_v62, 4  ;;  %v16172_v44 = vld [vmem:[#allocation15 + $0x1b0] ss:$8 sps:$4 sm:$0xff]  }
 0x635   :  { %5749 = vst [vmem:[#allocation2 + $0x70] sm:$0xff] %v19718_v47  ;;  %v5712_v37 = vmax.f32 %v15304_v41, 0.0  ;;  %v15306_v59 = vadd.f32 %v15305_v38, %v5668_v28  ;;  %v15264_v0 = vpop.f32.mrb[123].mxu0  ;;  %7480 = vmatmul.mubr.bf16.gmra.mrb[104].mxu1 %v5784_v40  ;;  %8330 = vmatmul.mubr.bf16.gmra.mrb[224].mxu0 %v19718_v47  ;;  %v19733_v18 = vshrl.u32 %v19718_v47, 16  ;;  %v5885_v52 = vshll.u32 %v19718_v47, 16 }
 0x636   :  { %7541 = vmatpush1.bf16.msra.mxu1 %v16169_v58  ;;  %8339 = vmatprep.mubr.bf16.mxu0 %v19599_v30  ;;  %v19737_v56 = vor.u32 %v6317_v11, %v6314_v20  ;;  %v16177_v38 = vld [vmem:[#allocation15 + $0x1c4] ss:$8 sps:$4 sm:$0xff]   ;;  %v5785_v40 = vrot.slane %v19718_v47, 3 }
 0x637   :  { %v5713_v1 = vmax.f32 %v15306_v59, 0.0  ;;  %v5884_v27 = vrot.slane %v19733_v18, 3  ;;  %v5887_v41 = vrot.slane %v5885_v52, 4  ;;  %7542 = vmatprep.subr.bf16.mxu1 %v16174_v6  ;;  %v6048_v28 = vrot.slane %v19733_v18, 7  ;;  %v16175_v59 = vld [vmem:[#allocation15 + $0x1c0] ss:$8 sps:$4 sm:$0xff]  }
 0x638   :  { %v6165_v0 = vrot.slane %v5885_v52, 1  ;;  %v5730_v62 = vmul.f32 %v22123_v51, %v5712_v37  ;;  %v19746_v11 = vsel %vm3114_vm9, %v6309_v7, %v19737_v56 }
 0x639   :  { %v5731_v58 = vmul.f32 %v22124_v34, %v5713_v1  ;;  %v5888_v24 = vor.u32 %v5887_v41, %v5884_v27  ;;  %v6051_v13 = vor.u32 %v6048_v28, %v5885_v52  ;;  %v16180_v27 = vld [vmem:[#allocation15 + $0x1d4] ss:$8 sps:$4 sm:$0xff]  }
 0x63a   :  { %v5673_v20 = vpop.f32.mrb[124].mxu0  ;;  %7543 = vmatpush1.bf16.msra.mxu1 %v16172_v44  ;;  %v19749_v6 = vsel %vm2639_vm7, %v6161_v5, %v6165_v0  ;;  %v6169_v29 = vor.u32 %v6165_v0, %v19733_v18  ;;  %v22125_v44 = vrot.slane %v19667_v21, 3  ;;  %v22126_v5 = vrot.slane %v19679_v15, 7  ;;  %v16178_v15 = vld [vmem:[#allocation15 + $0x1d0] ss:$8 sps:$4 sm:$0xff]  }
 0x63b   :  { %v19752_v33 = vpack.c.bf16 %v5731_v58, %v5730_v62  ;;  %v15308_v37 = vadd.f32 %v19506_v17, %v5673_v20  ;;  %v15267_v51 = vpop.f32.mrb[125].mxu0  ;;  %v5889_v1 = vsel %vm1586_vm1, %v5879_v10, %v5888_v24  ;;  %7544 = vmatprep.subr.bf16.mxu1 %v16177_v38  ;;  %v16183_v58 = vld [vmem:[#allocation15 + $0x1e4] ss:$8 sps:$4 sm:$0xff]  }
 0x63c   :  { %v5676_v7 = vpop.f32.mrb[126].mxu0  ;;  %7489 = vmatprep.mubr.bf16.mxu1 %v5889_v1  ;;  %v5786_v52 = vsel %vm1842_vm12, %v22125_v44, %v5785_v40  ;;  %v19762_v41 = vsel %vm2235_vm10, %v22126_v5, %v6051_v13  ;;  %v22127_v1 = vld [vmem:[#allocation46_spill] sm:$0xff]  ;;  %v22128_v44 = vld [vmem:[#allocation48_spill] sm:$0xff] }
 0x63d   :  { %5750 = vst [vmem:[#allocation2 + $0x80] sm:$0xff] %v19752_v33  ;;  %v5714_v62 = vmax.f32 %v15308_v37, 0.0  ;;  %v15310_v17 = vadd.f32 %v19513_v50, %v5676_v7  ;;  %v15268_v51 = vpop.f32.mrb[127].mxu0  ;;  %7490 = vmatmul.mubr.bf16.gmra.mrb[108].mxu1 %v5786_v52  ;;  %8340 = vmatmul.mubr.bf16.gmra.mrb[228].mxu0 %v19752_v33  ;;  %v19768_v10 = vshrl.u32 %v19752_v33, 16  ;;  %v5894_v18 = vshll.u32 %v19752_v33, 16 }
 0x63e   :  { %7545 = vmatpush1.bf16.msra.mxu1 %v16175_v59  ;;  %8349 = vmatprep.mubr.bf16.mxu0 %v19599_v30  ;;  %v5787_v50 = vrot.slane %v19752_v33, 3  ;;  %v16181_v59 = vld [vmem:[#allocation15 + $0x1e0] ss:$8 sps:$4 sm:$0xff]  }
 0x63f   :  { %v5715_v13 = vmax.f32 %v15310_v17, 0.0  ;;  %v5893_v38 = vrot.slane %v19768_v10, 3  ;;  %v5896_v0 = vrot.slane %v5894_v18, 4  ;;  %7546 = vmatprep.subr.bf16.mxu1 %v16180_v27  ;;  %v21974_v20 = vrot.slane %v19768_v10, 7 }
 0x640   :  { %v6173_v37 = vrot.slane %v5894_v18, 1  ;;  %v5732_v7 = vmul.f32 %v22127_v1, %v5714_v62  ;;  %v5788_v62 = vsel %vm1842_vm12, %v5785_v40, %v5787_v50 }
 0x641   :  { %v5733_v52 = vmul.f32 %v22128_v44, %v5715_v13  ;;  %v5897_v5 = vor.u32 %v5896_v0, %v5893_v38  ;;  %v6059_v30 = vor.u32 %v21974_v20, %v5894_v18  ;;  %v16184_v18 = vld [vmem:[#allocation15 + $0x1f0] ss:$8 sps:$4 sm:$0xff]   ;;  %v16189_v13 = vld [vmem:[#allocation15 + $0x204] ss:$8 sps:$4 sm:$0xff]  }
 0x642   :  { %7547 = vmatpush1.bf16.msra.mxu1 %v16178_v15  ;;  %v19780_v17 = vsel %vm2639_vm7, %v6169_v29, %v6173_v37  ;;  %v6177_v27 = vor.u32 %v6173_v37, %v19768_v10  ;;  %v19805_v0 = vld [vmem:[#allocation2 + $0x70] sm:$0xff] }
 0x643   :  { %v19783_v51 = vpack.c.bf16 %v5733_v52, %v5732_v7  ;;  %v5898_v34 = vsel %vm1586_vm1, %v5888_v24, %v5897_v5  ;;  %7548 = vmatprep.subr.bf16.mxu1 %v16183_v58  ;;  %v19788_v15 = vsel %vm2235_vm10, %v6048_v28, %v6059_v30  ;;  %v5983_v58 = vld [vmem:[#allocation2] sm:$0x80]  ;;  %v21977_v7 = vrot.slane %v19805_v0, 5 }
 0x644   :  { %7499 = vmatprep.mubr.bf16.mxu1 %v5898_v34  ;;  %v19796_v40 = vld [vmem:[#allocation2 + $0x80] sm:$0xff] }
 0x645   :  { %5751 = vst [vmem:[#allocation2 + $0x90] sm:$0xff] %v19783_v51  ;;  %7500 = vmatmul.mubr.bf16.gmra.mrb[112].mxu1 %v5788_v62  ;;  %8350 = vmatmul.mubr.bf16.gmra.mrb[232].mxu0 %v19783_v51  ;;  %v21975_v29 = vshll.u32 %v19783_v51, 16  ;;  %v21976_v24 = vshrl.u32 %v19783_v51, 16  ;;  %v5994_v62 = vshrl.u32 %v5983_v58, 16 }
 0x646   :  { %7549 = vmatpush1.bf16.msra.mxu1 %v16181_v59 }
 0x647   :  { %7550 = vmatprep.subr.bf16.mxu1 %v16186_v25  ;;  %v6181_v34 = vrot.slane %v21975_v29, 1  ;;  %v6416_v25 = vrot.slane %v19796_v40, 5  ;;  %v5996_v44 = vrot.slane %v5994_v62, 7  ;;  %v22129_v62 = vrot.slane %v19515_v4, 4  ;;  %v16201_v4 = vld [vmem:[#allocation15 + $0x244] ss:$8 sps:$4 sm:$0xff]  }
 0x649   :  { %v19799_v28 = vsel %vm2639_vm7, %v6177_v27, %v6181_v34  ;;  %v19803_v38 = vor.u32 %v6181_v34, %v21976_v24  ;;  %v19812_v27 = vsel %vm3350_vm11, %v21977_v7, %v6416_v25  ;;  %v16187_v7 = vld [vmem:[#allocation15 + $0x200] ss:$8 sps:$4 sm:$0xff]  }
 0x64a   :  { %7551 = vmatpush1.bf16.msra.mxu1 %v16184_v18 }
 0x64b   :  { %7643 = vmatprep.subr.bf16.mxu1 %v16189_v13 }
 0x64c   :  { %v5818_v37 = vld [vmem:[#allocation2 + $0x90] sm:$0xf] }
 0x64d   :  { %v5900_v52 = vshrl.u32 %v5818_v37, 16  ;;  %v5903_v59 = vshll.u32 %v5818_v37, 16  ;;  %v5761_v30 = vld [vmem:[#allocation2 + $0x90] sm:$0x7] }
 0x64e   :  { %v19814_v29 = vld [vmem:[#allocation2 + $0x90] sm:$0xff]  ;;  %v5789_v18 = vrot.slane %v5761_v30, 3 }
 0x64f   :  { %v5902_v34 = vrot.slane %v5900_v52, 3  ;;  %v5905_v20 = vrot.slane %v5903_v59, 4  ;;  %v6418_v13 = vrot.slane %v19814_v29, 5  ;;  %v6004_v52 = vsel %vm2235_vm10, %v5996_v44, %v19529_v9  ;;  %v5926_v59 = vld [vmem:[#allocation2] sm:$0xf0] }
 0x650   :  { %v5790_v37 = vsel %vm1842_vm12, %v5787_v50, %v5789_v18  ;;  %v5946_v30 = vrot.slane %v5926_v59, 4  ;;  %v16195_v50 = vld [vmem:[#allocation15 + $0x224] ss:$8 sps:$4 sm:$0xff]   ;;  %v16198_v9 = vld [vmem:[#allocation15 + $0x234] ss:$8 sps:$4 sm:$0xff]  }
 0x651   :  { %v5906_v24 = vor.u32 %v5905_v20, %v5902_v34  ;;  %v19821_v58 = vsel %vm3350_vm11, %v6416_v25, %v6418_v13  ;;  %v16192_v20 = vld [vmem:[#allocation15 + $0x214] ss:$8 sps:$4 sm:$0xff]   ;;  %v16196_v44 = vld [vmem:[#allocation15 + $0x230] ss:$8 sps:$4 sm:$0xff]   ;;  %v16199_v25 = vld [vmem:[#allocation15 + $0x240] ss:$8 sps:$4 sm:$0xff]  }
 0x652   :  { %v16207_v34 = vld [vmem:[#allocation15 + $0x264] ss:$8 sps:$4 sm:$0xff]   ;;  %v16208_v18 = vld [vmem:[#allocation15 + $0x270] ss:$8 sps:$4 sm:$0xff]  }
 0x653   :  { %v5907_v1 = vsel %vm1586_vm1, %v5897_v5, %v5906_v24  ;;  %v5948_v5 = vsel %vm2030_vm13, %v5946_v30, %v22129_v62  ;;  %v16193_v24 = vld [vmem:[#allocation15 + $0x220] ss:$8 sps:$4 sm:$0xff]   ;;  %v16219_v59 = vld [vmem:[#allocation15 + $0x2a4] ss:$8 sps:$4 sm:$0xff]   ;;  %v16220_v30 = vld [vmem:[#allocation15 + $0x2b0] ss:$8 sps:$4 sm:$0xff]  }
 0x654   :  { %7509 = vmatprep.mubr.bf16.mxu1 %v5907_v1  ;;  %v16190_v1 = vld [vmem:[#allocation15 + $0x210] ss:$8 sps:$4 sm:$0xff]   ;;  %v16228_v62 = vld [vmem:[#allocation15 + $0x2d4] ss:$8 sps:$4 sm:$0xff]  }
 0x655   :  { %7510 = vmatmul.mubr.bf16.gmra.mrb[116].mxu1 %v5790_v37  ;;  %v16213_v37 = vld [vmem:[#allocation15 + $0x284] ss:$8 sps:$4 sm:$0xff]  }
 0x656   :  { %7552 = vmatprep.mubr.bf16.mxu1 %v6004_v52  ;;  %v16214_v52 = vld [vmem:[#allocation15 + $0x290] ss:$8 sps:$4 sm:$0xff]  }
 0x65d   :  { %7553 = vmatmul.mubr.bf16.vlgmr.msra.gmra.mrb[84].mxu1 %v5948_v5  ;;  %v22130_v5 = vrot.slane %v19667_v21, 4  ;;  %v16229_v21 = vld [vmem:[#allocation15 + $0x2e0] ss:$8 sps:$4 sm:$0xff]  }
 0x65e   :  { %7644 = vmatpush1.bf16.msra.mxu1 %v16187_v7  ;;  %7562 = vmatprep.mubr.bf16.mxu1 %v19561_v14  ;;  %v16204_v7 = vld [vmem:[#allocation15 + $0x254] ss:$8 sps:$4 sm:$0xff]   ;;  %v16202_v14 = vld [vmem:[#allocation15 + $0x250] ss:$8 sps:$4 sm:$0xff]  }
 0x65f   :  { %7645 = vmatprep.subr.bf16.mxu1 %v16192_v20  ;;  %v16225_v20 = vld [vmem:[#allocation15 + $0x2c4] ss:$8 sps:$4 sm:$0xff]  }
 0x662   :  { %7646 = vmatpush1.bf16.msra.mxu1 %v16190_v1 }
 0x663   :  { %7647 = vmatprep.subr.bf16.mxu1 %v16195_v50  ;;  %v22131_v50 = vshrl.u32 %v19783_v51, 16 }
 0x665   :  { %7563 = vmatmul.mubr.bf16.gmra.mrb[88].mxu1 %v19549_v43  ;;  %v16205_v43 = vld [vmem:[#allocation15 + $0x260] ss:$8 sps:$4 sm:$0xff]  }
 0x666   :  { %7572 = vmatprep.mubr.bf16.mxu1 %v19591_v46  ;;  %7648 = vmatpush1.bf16.msra.mxu1 %v16193_v24  ;;  %v16210_v46 = vld [vmem:[#allocation15 + $0x274] ss:$8 sps:$4 sm:$0xff]   ;;  %v16231_v24 = vld [vmem:[#allocation15 + $0x2e4] ss:$8 sps:$4 sm:$0xff]  }
 0x667   :  { %7649 = vmatprep.subr.bf16.mxu1 %v16198_v9  ;;  %v5961_v9 = vrot.slane %v19752_v33, 4 }
 0x66a   :  { %7650 = vmatpush1.bf16.msra.mxu1 %v16196_v44  ;;  %v6105_v44 = vld [vmem:[#allocation2 + $0x10] sm:$0xff] }
 0x66b   :  { %7651 = vmatprep.subr.bf16.mxu1 %v16201_v4  ;;  %v22132_v4 = vshll.u32 %v19783_v51, 16 }
 0x66d   :  { %7573 = vmatmul.mubr.bf16.gmra.mrb[92].mxu1 %v19574_v54  ;;  %v16211_v54 = vld [vmem:[#allocation15 + $0x280] ss:$8 sps:$4 sm:$0xff]  }
 0x66e   :  { %7582 = vmatprep.mubr.bf16.mxu1 %v19632_v3  ;;  %7652 = vmatpush1.bf16.msra.mxu1 %v16199_v25  ;;  %v16216_v3 = vld [vmem:[#allocation15 + $0x294] ss:$8 sps:$4 sm:$0xff]  }
 0x66f   :  { %7653 = vmatprep.subr.bf16.mxu1 %v16204_v7  ;;  %v6118_v7 = vshll.u32 %v6105_v44, 16 }
 0x672   :  { %7654 = vmatpush1.bf16.msra.mxu1 %v16202_v14  ;;  %v16234_v14 = vld [vmem:[#allocation15 + $0x2f4] ss:$8 sps:$4 sm:$0xff]  }
 0x673   :  { %7655 = vmatprep.subr.bf16.mxu1 %v16207_v34 }
 0x675   :  { %7583 = vmatmul.mubr.bf16.gmra.mrb[96].mxu1 %v19612_v61  ;;  %v16217_v61 = vld [vmem:[#allocation15 + $0x2a0] ss:$8 sps:$4 sm:$0xff]  }
 0x676   :  { %7592 = vmatprep.mubr.bf16.mxu1 %v19674_v26  ;;  %7656 = vmatpush1.bf16.msra.mxu1 %v16205_v43  ;;  %v16222_v26 = vld [vmem:[#allocation15 + $0x2b4] ss:$8 sps:$4 sm:$0xff]  }
 0x677   :  { %7657 = vmatprep.subr.bf16.mxu1 %v16210_v46  ;;  %v5935_v46 = vld [vmem:[#allocation2 + $0x90] sm:$0xf] }
 0x67a   :  { %7658 = vmatpush1.bf16.msra.mxu1 %v16208_v18  ;;  %v16232_v18 = vld [vmem:[#allocation15 + $0x2f0] ss:$8 sps:$4 sm:$0xff]  }
 0x67b   :  { %7659 = vmatprep.subr.bf16.mxu1 %v16213_v37  ;;  %v6120_v37 = vrot.slane %v6118_v7, 1  ;;  %v16246_v7 = vld [vmem:[#allocation15 + $0x334] ss:$8 sps:$4 sm:$0xff]  }
 0x67d   :  { %7593 = vmatmul.mubr.bf16.gmra.mrb[100].mxu1 %v19652_v12  ;;  %v5959_v12 = vrot.slane %v19718_v47, 4 }
 0x67e   :  { %7602 = vmatprep.mubr.bf16.mxu1 %v19726_v49  ;;  %7660 = vmatpush1.bf16.msra.mxu1 %v16211_v54  ;;  %v16223_v49 = vld [vmem:[#allocation15 + $0x2c0] ss:$8 sps:$4 sm:$0xff]   ;;  %v16237_v54 = vld [vmem:[#allocation15 + $0x304] ss:$8 sps:$4 sm:$0xff]  }
 0x67f   :  { %7661 = vmatprep.subr.bf16.mxu1 %v16216_v3  ;;  %v5960_v1 = vsel %vm2030_vm13, %v22130_v5, %v5959_v12  ;;  %v5962_v34 = vsel %vm2030_vm13, %v5959_v12, %v5961_v9  ;;  %v5963_v3 = vrot.slane %v5935_v46, 4  ;;  %v16247_v46 = vld [vmem:[#allocation15 + $0x340] ss:$8 sps:$4 sm:$0xff]  }
 0x682   :  { %7662 = vmatpush1.bf16.msra.mxu1 %v16214_v52  ;;  %v6116_v52 = vshrl.u32 %v6105_v44, 16 }
 0x683   :  { %7663 = vmatprep.subr.bf16.mxu1 %v16219_v59  ;;  %v22134_v59 = vshll.u32 %v19586_v53, 16 }
 0x685   :  { %7603 = vmatmul.mubr.bf16.gmra.mrb[104].mxu1 %v19701_v8  ;;  %v6064_v8 = vrot.slane %v22131_v50, 7 }
 0x686   :  { %7612 = vmatprep.mubr.bf16.mxu1 %v19762_v41  ;;  %7664 = vmatpush1.bf16.msra.mxu1 %v16217_v61  ;;  %v16226_v41 = vld [vmem:[#allocation15 + $0x2d0] ss:$8 sps:$4 sm:$0xff]   ;;  %v6125_v61 = vrot.slane %v22134_v59, 1  ;;  %v16255_v59 = vld [vmem:[#allocation15 + $0x364] ss:$8 sps:$4 sm:$0xff]  }
 0x687   :  { %7665 = vmatprep.subr.bf16.mxu1 %v16222_v26  ;;  %v6067_v25 = vor.u32 %v22132_v4, %v6064_v8  ;;  %v6121_v26 = vor.u32 %v6120_v37, %v6116_v52  ;;  %v16238_v8 = vld [vmem:[#allocation15 + $0x310] ss:$8 sps:$4 sm:$0xff]   ;;  %v16241_v4 = vld [vmem:[#allocation15 + $0x320] ss:$8 sps:$4 sm:$0xff]  }
 0x688   :  { %v16250_v52 = vld [vmem:[#allocation15 + $0x350] ss:$8 sps:$4 sm:$0xff]  }
 0x68a   :  { %7666 = vmatpush1.bf16.msra.mxu1 %v16220_v30  ;;  %v5964_v30 = vsel %vm2030_vm13, %v5961_v9, %v5963_v3 }
 0x68b   :  { %7667 = vmatprep.subr.bf16.mxu1 %v16225_v20  ;;  %v22135_v20 = vshll.u32 %v19597_v35, 16 }
 0x68d   :  { %7613 = vmatmul.mubr.bf16.gmra.mrb[108].mxu1 %v5960_v1  ;;  %v6133_v12 = vrot.slane %v22135_v20, 1  ;;  %v16240_v1 = vld [vmem:[#allocation15 + $0x314] ss:$8 sps:$4 sm:$0xff]   ;;  %v22142_v20 = vrot.slane %v19682_v57, 1  ;;  %v16265_v57 = vld [vmem:[#allocation15 + $0x3a0] ss:$8 sps:$4 sm:$0xff]  }
 0x68e   :  { %7622 = vmatprep.mubr.bf16.mxu1 %v19788_v15  ;;  %7668 = vmatpush1.bf16.msra.mxu1 %v16223_v49  ;;  %v22133_v15 = vrot.slane %v19768_v10, 7  ;;  %v6126_v10 = vsel %vm2639_vm7, %v6121_v26, %v6125_v61  ;;  %v16235_v49 = vld [vmem:[#allocation15 + $0x300] ss:$8 sps:$4 sm:$0xff]  }
 0x68f   :  { %7669 = vmatprep.subr.bf16.mxu1 %v16228_v62  ;;  %v22136_v62 = vshrl.u32 %v19586_v53, 16 }
 0x690   :  { %v6068_v43 = vsel %vm2235_vm10, %v22133_v15, %v6067_v25  ;;  %v22138_v25 = vshrl.u32 %v19597_v35, 16  ;;  %v22139_v15 = vshll.u32 %v19684_v42, 16 }
 0x691   :  { %v6129_v5 = vor.u32 %v22136_v62, %v6125_v61  ;;  %v22141_v61 = vshrl.u32 %v19684_v42, 16  ;;  %v16261_v62 = vld [vmem:[#allocation15 + $0x384] ss:$8 sps:$4 sm:$0xff]  }
 0x692   :  { %7670 = vmatpush1.bf16.msra.mxu1 %v16226_v41  ;;  %v16243_v41 = vld [vmem:[#allocation15 + $0x324] ss:$8 sps:$4 sm:$0xff]  }
 0x693   :  { %7671 = vmatprep.subr.bf16.mxu1 %v16231_v24  ;;  %v6134_v50 = vsel %vm2639_vm7, %v6129_v5, %v6133_v12  ;;  %v22137_v24 = vshll.u32 %v19638_v31, 16  ;;  %v16259_v5 = vld [vmem:[#allocation15 + $0x380] ss:$8 sps:$4 sm:$0xff]  }
 0x695   :  { %7623 = vmatmul.mubr.bf16.gmra.mrb[112].mxu1 %v5962_v34  ;;  %v6141_v9 = vrot.slane %v22137_v24, 1  ;;  %v16249_v34 = vld [vmem:[#allocation15 + $0x344] ss:$8 sps:$4 sm:$0xff]  }
 0x696   :  { %7632 = vmatprep.mubr.bf16.mxu1 %v6068_v43  ;;  %7672 = vmatpush1.bf16.msra.mxu1 %v16229_v21  ;;  %v6137_v21 = vor.u32 %v22138_v25, %v6133_v12  ;;  %v6149_v43 = vrot.slane %v22139_v15, 1  ;;  %v19883_v24 = vld [vmem:[#allocation2 + $0x60] sm:$0xff] }
 0x697   :  { %7673 = vmatprep.subr.bf16.mxu1 %v16234_v14  ;;  %v16244_v14 = vld [vmem:[#allocation15 + $0x330] ss:$8 sps:$4 sm:$0xff]   ;;  %v6114_v25 = vld [vmem:[#allocation2 + $0xa0] sm:$0x1]  ;;  %v16277_v15 = vld [vmem:[#allocation15 + $0x3e0] ss:$8 sps:$4 sm:$0xff]  }
 0x698   :  { %v6153_v26 = vor.u32 %v22141_v61, %v6149_v43  ;;  %v6230_v61 = vrot.slane %v19586_v53, 4 }
 0x69a   :  { %7674 = vmatpush1.bf16.msra.mxu1 %v16232_v18  ;;  %v22140_v18 = vshrl.u32 %v19638_v31, 16  ;;  %v6158_v12 = vsel %vm2639_vm7, %v6153_v26, %v22142_v20  ;;  %v16286_v20 = vld [vmem:[#allocation15 + $0x410] ss:$8 sps:$4 sm:$0xff]  }
 0x69b   :  { %7766 = vmatprep.subr.bf16.mxu1 %v16237_v54  ;;  %v16252_v54 = vld [vmem:[#allocation15 + $0x354] ss:$8 sps:$4 sm:$0xff]  }
 0x69c   :  { %v6145_v37 = vor.u32 %v22140_v18, %v6141_v9  ;;  %v16282_v18 = vld [vmem:[#allocation15 + $0x3f4] ss:$8 sps:$4 sm:$0xff]  }
 0x69d   :  { %7633 = vmatmul.mubr.bf16.gmra.mrb[116].mxu1 %v5964_v30  ;;  %v16253_v30 = vld [vmem:[#allocation15 + $0x360] ss:$8 sps:$4 sm:$0xff]  }
 0x69e   :  { %7675 = vmatprep.mubr.bf16.mxu1 %v6126_v10  ;;  %v6150_v3 = vsel %vm2639_vm7, %v6145_v37, %v6149_v43  ;;  %v16258_v10 = vld [vmem:[#allocation15 + $0x374] ss:$8 sps:$4 sm:$0xff]  }
 0x6a5   :  { %7676 = vmatmul.mubr.bf16.vlgmr.msra.gmra.mrb[84].mxu1 %v6105_v44  ;;  %v6142_v44 = vsel %vm2639_vm7, %v6137_v21, %v6141_v9  ;;  %v16268_v9 = vld [vmem:[#allocation15 + $0x3b0] ss:$8 sps:$4 sm:$0xff]   ;;  %v16276_v21 = vld [vmem:[#allocation15 + $0x3d4] ss:$8 sps:$4 sm:$0xff]  }
 0x6a6   :  { %7767 = vmatpush1.bf16.msra.mxu1 %v16235_v49  ;;  %7685 = vmatprep.mubr.bf16.mxu1 %v6134_v50  ;;  %v16256_v49 = vld [vmem:[#allocation15 + $0x370] ss:$8 sps:$4 sm:$0xff]  }
 0x6a7   :  { %7768 = vmatprep.subr.bf16.mxu1 %v16240_v1  ;;  %v16264_v1 = vld [vmem:[#allocation15 + $0x394] ss:$8 sps:$4 sm:$0xff]   ;;  %v16262_v50 = vld [vmem:[#allocation15 + $0x390] ss:$8 sps:$4 sm:$0xff]  }
 0x6aa   :  { %7769 = vmatpush1.bf16.msra.mxu1 %v16238_v8  ;;  %v16267_v8 = vld [vmem:[#allocation15 + $0x3a4] ss:$8 sps:$4 sm:$0xff]  }
 0x6ab   :  { %7770 = vmatprep.subr.bf16.mxu1 %v16243_v41  ;;  %v16270_v41 = vld [vmem:[#allocation15 + $0x3b4] ss:$8 sps:$4 sm:$0xff]  }
 0x6ad   :  { %7686 = vmatmul.mubr.bf16.gmra.mrb[88].mxu1 %v19586_v53 }
 0x6ae   :  { %7695 = vmatprep.mubr.bf16.mxu1 %v6142_v44  ;;  %7771 = vmatpush1.bf16.msra.mxu1 %v16241_v4  ;;  %v16273_v4 = vld [vmem:[#allocation15 + $0x3c4] ss:$8 sps:$4 sm:$0xff]   ;;  %v16274_v44 = vld [vmem:[#allocation15 + $0x3d0] ss:$8 sps:$4 sm:$0xff]  }
 0x6af   :  { %7772 = vmatprep.subr.bf16.mxu1 %v16246_v7  ;;  %v6187_v7 = vshll.u32 %v6114_v25, 16 }
 0x6b2   :  { %7773 = vmatpush1.bf16.msra.mxu1 %v16244_v14  ;;  %v16279_v14 = vld [vmem:[#allocation15 + $0x3e4] ss:$8 sps:$4 sm:$0xff]  }
 0x6b3   :  { %7774 = vmatprep.subr.bf16.mxu1 %v16249_v34  ;;  %v6266_v34 = vld [vmem:[#allocation2 + $0x10] sm:$0xf0] }
 0x6b4   :  { %v6277_v43 = vshrl.u32 %v6266_v34, 16 }
 0x6b5   :  { %7696 = vmatmul.mubr.bf16.gmra.mrb[92].mxu1 %v19597_v35 }
 0x6b6   :  { %7705 = vmatprep.mubr.bf16.mxu1 %v6150_v3  ;;  %7775 = vmatpush1.bf16.msra.mxu1 %v16247_v46  ;;  %v6280_v46 = vshll.u32 %v6266_v34, 16  ;;  %v6279_v37 = vrot.slane %v6277_v43, 4  ;;  %v16285_v3 = vld [vmem:[#allocation15 + $0x404] ss:$8 sps:$4 sm:$0xff]   ;;  %v6236_v34 = vrot.slane %v19684_v42, 4  ;;  %v6330_v43 = vshrl.u32 %v19805_v0, 16 }
 0x6b7   :  { %7776 = vmatprep.subr.bf16.mxu1 %v16252_v54 }
 0x6b8   :  { %v6282_v54 = vrot.slane %v6280_v46, 5  ;;  %v6333_v46 = vshll.u32 %v19805_v0, 16 }
 0x6ba   :  { %7777 = vmatpush1.bf16.msra.mxu1 %v16250_v52  ;;  %v6283_v52 = vor.u32 %v6282_v54, %v6279_v37  ;;  %v6332_v54 = vrot.slane %v6330_v43, 4  ;;  %v6244_v43 = vrot.slane %v19814_v29, 4 }
 0x6bb   :  { %7778 = vmatprep.subr.bf16.mxu1 %v16255_v59 }
 0x6bc   :  { %v6292_v59 = vsel %vm3114_vm9, %v6283_v52, %v19643_v63  ;;  %v16289_v63 = vld [vmem:[#allocation15 + $0x420] ss:$8 sps:$4 sm:$0xff]  }
 0x6bd   :  { %7706 = vmatmul.mubr.bf16.gmra.mrb[96].mxu1 %v19638_v31  ;;  %v16324_v52 = vld [vmem:[%s21910_s11 + $0x54] ss:$8 sps:$4 sm:$0xff]  }
 0x6be   :  { %7715 = vmatprep.mubr.bf16.mxu1 %v6158_v12  ;;  %7779 = vmatpush1.bf16.msra.mxu1 %v16253_v30  ;;  %v16288_v30 = vld [vmem:[#allocation15 + $0x414] ss:$8 sps:$4 sm:$0xff]   ;;  %v16291_v12 = vld [vmem:[#allocation15 + $0x424] ss:$8 sps:$4 sm:$0xff]  }
 0x6bf   :  { %7780 = vmatprep.subr.bf16.mxu1 %v16258_v10 }
 0x6c2   :  { %7781 = vmatpush1.bf16.msra.mxu1 %v16256_v49  ;;  %v16294_v49 = vld [vmem:[#allocation15 + $0x434] ss:$8 sps:$4 sm:$0xff]  }
 0x6c3   :  { %7782 = vmatprep.subr.bf16.mxu1 %v16261_v62  ;;  %v16307_v62 = vld [vmem:[%s21910_s11] ss:$8 sps:$4 sm:$0xff]  }
 0x6c5   :  { %7716 = vmatmul.mubr.bf16.gmra.mrb[100].mxu1 %v19684_v42 }
 0x6c6   :  { %7725 = vmatprep.mubr.bf16.mxu1 %v19749_v6  ;;  %7783 = vmatpush1.bf16.msra.mxu1 %v16259_v5  ;;  %v16271_v6 = vld [vmem:[#allocation15 + $0x3c0] ss:$8 sps:$4 sm:$0xff]   ;;  %v16292_v5 = vld [vmem:[#allocation15 + $0x430] ss:$8 sps:$4 sm:$0xff]  }
 0x6c7   :  { %7784 = vmatprep.subr.bf16.mxu1 %v16264_v1  ;;  %v16297_v1 = vld [vmem:[#allocation15 + $0x444] ss:$8 sps:$4 sm:$0xff]  }
 0x6ca   :  { %7785 = vmatpush1.bf16.msra.mxu1 %v16262_v50  ;;  %v6234_v50 = vrot.slane %v19638_v31, 4 }
 0x6cb   :  { %7786 = vmatprep.subr.bf16.mxu1 %v16267_v8  ;;  %v16310_v8 = vld [vmem:[%s21910_s11 + $0x10] ss:$8 sps:$4 sm:$0xff]  }
 0x6cc   :  { %v6237_v42 = vsel %vm2030_vm13, %v6234_v50, %v6236_v34 }
 0x6cd   :  { %7726 = vmatmul.mubr.bf16.gmra.mrb[104].mxu1 %v19883_v24 }
 0x6ce   :  { %7735 = vmatprep.mubr.bf16.mxu1 %v19780_v17  ;;  %7787 = vmatpush1.bf16.msra.mxu1 %v16265_v57  ;;  %v6189_v17 = vrot.slane %v6187_v7, 1  ;;  %v6321_v57 = vshrl.u32 %v19883_v24, 16  ;;  %v16318_v7 = vld [vmem:[%s21910_s11 + $0x34] ss:$8 sps:$4 sm:$0xff]  }
 0x6cf   :  { %7788 = vmatprep.subr.bf16.mxu1 %v16270_v41  ;;  %v16315_v41 = vld [vmem:[%s21910_s11 + $0x24] ss:$8 sps:$4 sm:$0xff]  }
 0x6d0   :  { %v6323_v25 = vrot.slane %v6321_v57, 4 }
 0x6d2   :  { %7789 = vmatpush1.bf16.msra.mxu1 %v16268_v9  ;;  %v16295_v9 = vld [vmem:[#allocation15 + $0x440] ss:$8 sps:$4 sm:$0xff]  }
 0x6d3   :  { %7790 = vmatprep.subr.bf16.mxu1 %v16273_v4  ;;  %v16300_v4 = vld [vmem:[#allocation15 + $0x454] ss:$8 sps:$4 sm:$0xff]  }
 0x6d5   :  { %7736 = vmatmul.mubr.bf16.gmra.mrb[108].mxu1 %v19718_v47  ;;  %v6190_v47 = vsel %vm2639_vm7, %v19803_v38, %v6189_v17  ;;  %v16283_v38 = vld [vmem:[#allocation15 + $0x400] ss:$8 sps:$4 sm:$0xff]   ;;  %v16316_v17 = vld [vmem:[%s21910_s11 + $0x30] ss:$8 sps:$4 sm:$0xff]  }
 0x6d6   :  { %7745 = vmatprep.mubr.bf16.mxu1 %v19799_v28  ;;  %7791 = vmatpush1.bf16.msra.mxu1 %v16271_v6  ;;  %v16280_v28 = vld [vmem:[#allocation15 + $0x3f0] ss:$8 sps:$4 sm:$0xff]   ;;  %v16313_v6 = vld [vmem:[%s21910_s11 + $0x20] ss:$8 sps:$4 sm:$0xff]  }
 0x6d7   :  { %7792 = vmatprep.subr.bf16.mxu1 %v16276_v21 }
 0x6da   :  { %7793 = vmatpush1.bf16.msra.mxu1 %v16274_v44  ;;  %v16298_v44 = vld [vmem:[#allocation15 + $0x450] ss:$8 sps:$4 sm:$0xff]  }
 0x6db   :  { %7794 = vmatprep.subr.bf16.mxu1 %v16279_v14  ;;  %v16303_v14 = vld [vmem:[#allocation15 + $0x464] ss:$8 sps:$4 sm:$0xff]  }
 0x6dd   :  { %7746 = vmatmul.mubr.bf16.gmra.mrb[112].mxu1 %v19752_v33  ;;  %v6209_v33 = vld [vmem:[#allocation2 + $0x10] sm:$0xf0] }
 0x6de   :  { %7755 = vmatprep.mubr.bf16.mxu1 %v6190_v47  ;;  %7795 = vmatpush1.bf16.msra.mxu1 %v16277_v15  ;;  %v6229_v26 = vrot.slane %v6209_v33, 4  ;;  %v16306_v47 = vld [vmem:[#allocation15 + $0x474] ss:$8 sps:$4 sm:$0xff]   ;;  %v6238_v33 = vrot.slane %v19883_v24, 4 }
 0x6df   :  { %7796 = vmatprep.subr.bf16.mxu1 %v16282_v18  ;;  %v16301_v18 = vld [vmem:[#allocation15 + $0x460] ss:$8 sps:$4 sm:$0xff]  }
 0x6e0   :  { %v6231_v10 = vsel %vm2030_vm13, %v6229_v26, %v6230_v61  ;;  %v6342_v26 = vshll.u32 %v19796_v40, 16 }
 0x6e2   :  { %7797 = vmatpush1.bf16.msra.mxu1 %v16280_v28  ;;  %v16319_v28 = vld [vmem:[%s21910_s11 + $0x40] ss:$8 sps:$4 sm:$0xff]  }
 0x6e3   :  { %7889 = vmatprep.subr.bf16.mxu1 %v16285_v3  ;;  %v6335_v3 = vrot.slane %v6333_v46, 5 }
 0x6e5   :  { %7756 = vmatmul.mubr.bf16.gmra.mrb[116].mxu1 %v19783_v51  ;;  %v6232_v51 = vrot.slane %v19597_v35, 4  ;;  %v16312_v35 = vld [vmem:[%s21910_s11 + $0x14] ss:$8 sps:$4 sm:$0xff]  }
 0x6e6   :  { %7798 = vmatprep.mubr.bf16.mxu1 %v6292_v59  ;;  %v16304_v59 = vld [vmem:[#allocation15 + $0x470] ss:$8 sps:$4 sm:$0xff]  }
 0x6e7   :  { %v6233_v53 = vsel %vm2030_vm13, %v6230_v61, %v6232_v51  ;;  %v6235_v31 = vsel %vm2030_vm13, %v6232_v51, %v6234_v50  ;;  %v16322_v61 = vld [vmem:[%s21910_s11 + $0x50] ss:$8 sps:$4 sm:$0xff]  }
 0x6ed   :  { %7799 = vmatmul.mubr.bf16.vlgmr.msra.gmra.mrb[84].mxu1 %v6231_v10  ;;  %v6239_v10 = vsel %vm2030_vm13, %v6236_v34, %v6238_v33 }
 0x6ee   :  { %7890 = vmatpush1.bf16.msra.mxu1 %v16283_v38  ;;  %7808 = vmatprep.mubr.bf16.mxu1 %v19660_v22  ;;  %v16309_v22 = vld [vmem:[%s21910_s11 + $0x4] ss:$8 sps:$4 sm:$0xff]   ;;  %v6336_v38 = vor.u32 %v6335_v3, %v6332_v54  ;;  %v6383_v54 = vld [vmem:[#allocation2 + $0x10] sm:$0xe0] }
 0x6ef   :  { %7891 = vmatprep.subr.bf16.mxu1 %v16288_v30  ;;  %11638 = vmatprep.subr.bf16.mxu0 %v16309_v22  ;;  %v16327_v30 = vld [vmem:[%s21910_s11 + $0x64] ss:$8 sps:$4 sm:$0xff]  }
 0x6f0   :  { %11639 = vmatpush1.bf16.msra.mxu0 %v16307_v62  ;;  %v16328_v62 = vld [vmem:[%s21910_s11 + $0x70] ss:$8 sps:$4 sm:$0xff]   ;;  %v16815_v3 = vld [vmem:[#allocation2 + $0x20] sm:$0xff] }
 0x6f1   :  { %11640 = vmatprep.subr.bf16.mxu0 %v16312_v35  ;;  %v6351_v35 = vshll.u32 %v19814_v29, 16 }
 0x6f2   :  { %7892 = vmatpush1.bf16.msra.mxu1 %v16286_v20  ;;  %v16325_v20 = vld [vmem:[%s21910_s11 + $0x60] ss:$8 sps:$4 sm:$0xff]  }
 0x6f3   :  { %7893 = vmatprep.subr.bf16.mxu1 %v16291_v12 }
 0x6f4   :  { %11641 = vmatpush1.bf16.msra.mxu0 %v16310_v8  ;;  %v16331_v8 = vld [vmem:[%s21910_s11 + $0x80] ss:$8 sps:$4 sm:$0xff]  }
 0x6f5   :  { %7809 = vmatmul.mubr.bf16.gmra.mrb[88].mxu1 %v6233_v53  ;;  %11642 = vmatprep.subr.bf16.mxu0 %v16315_v41  ;;  %v6240_v53 = vrot.slane %v19805_v0, 4  ;;  %v6353_v41 = vrot.slane %v6351_v35, 5  ;;  %v16342_v35 = vld [vmem:[%s21910_s11 + $0xb4] ss:$8 sps:$4 sm:$0xff]  }
 0x6f6   :  { %7818 = vmatprep.mubr.bf16.mxu1 %v19714_v19  ;;  %7894 = vmatpush1.bf16.msra.mxu1 %v16289_v63  ;;  %v6324_v19 = vshll.u32 %v19883_v24, 16  ;;  %v6344_v63 = vrot.slane %v6342_v26, 5  ;;  %v16817_v26 = vld [vmem:[#allocation2 + $0x40] sm:$0xff] }
 0x6f7   :  { %7895 = vmatprep.subr.bf16.mxu1 %v16294_v49  ;;  %v16330_v49 = vld [vmem:[%s21910_s11 + $0x74] ss:$8 sps:$4 sm:$0xff]   ;;  %v6241_v50 = vsel %vm2030_vm13, %v6238_v33, %v6240_v53 }
 0x6f8   :  { %v6326_v21 = vrot.slane %v6324_v19, 5  ;;  %11643 = vmatpush1.bf16.msra.mxu0 %v16313_v6  ;;  %v16334_v6 = vld [vmem:[%s21910_s11 + $0x90] ss:$8 sps:$4 sm:$0xff]  }
 0x6f9   :  { %11644 = vmatprep.subr.bf16.mxu0 %v16318_v7 }
 0x6fa   :  { %7896 = vmatpush1.bf16.msra.mxu1 %v16292_v5  ;;  %v6327_v15 = vor.u32 %v6326_v21, %v6323_v25  ;;  %v6348_v5 = vshrl.u32 %v19814_v29, 16  ;;  %v16345_v29 = vld [vmem:[%s21910_s11 + $0xc4] ss:$8 sps:$4 sm:$0xff]  }
 0x6fb   :  { %7897 = vmatprep.subr.bf16.mxu1 %v16297_v1  ;;  %v16333_v1 = vld [vmem:[%s21910_s11 + $0x84] ss:$8 sps:$4 sm:$0xff]  }
 0x6fc   :  { %11645 = vmatpush1.bf16.msra.mxu0 %v16316_v17  ;;  %v6328_v37 = vsel %vm3114_vm9, %v19737_v56, %v6327_v15  ;;  %v6339_v56 = vshrl.u32 %v19796_v40, 16  ;;  %v6337_v12 = vsel %vm3114_vm9, %v6327_v15, %v6336_v38  ;;  %v6350_v19 = vrot.slane %v6348_v5, 4 }
 0x6fd   :  { %7819 = vmatmul.mubr.bf16.gmra.mrb[92].mxu1 %v6235_v31  ;;  %v6242_v31 = vrot.slane %v19796_v40, 4  ;;  %v16337_v40 = vld [vmem:[%s21910_s11 + $0xa0] ss:$8 sps:$4 sm:$0xff]  }
 0x6fe   :  { %7828 = vmatprep.mubr.bf16.mxu1 %v19746_v11  ;;  %7898 = vmatpush1.bf16.msra.mxu1 %v16295_v9  ;;  %v16321_v11 = vld [vmem:[%s21910_s11 + $0x44] ss:$8 sps:$4 sm:$0xff]   ;;  %v6341_v51 = vrot.slane %v6339_v56, 4  ;;  %v16336_v9 = vld [vmem:[%s21910_s11 + $0x94] ss:$8 sps:$4 sm:$0xff]   ;;  %v6354_v25 = vor.u32 %v6353_v41, %v6350_v19 }
 0x6ff   :  { %7899 = vmatprep.subr.bf16.mxu1 %v16300_v4  ;;  %11646 = vmatprep.subr.bf16.mxu0 %v16321_v11  ;;  %v6275_v4 = vld [vmem:[#allocation2 + $0xa0] sm:$0x1f]  ;;  %v6245_v11 = vsel %vm2030_vm13, %v6242_v31, %v6244_v43 }
 0x700   :  { %11647 = vmatpush1.bf16.msra.mxu0 %v16319_v28  ;;  %v6345_v22 = vor.u32 %v6344_v63, %v6341_v51  ;;  %v6357_v21 = vshrl.u32 %v6275_v4, 16  ;;  %v6360_v7 = vshll.u32 %v6275_v4, 16  ;;  %v6412_v63 = vrot.slane %v19883_v24, 5  ;;  %v16357_v19 = vld [vmem:[%s21910_s11 + $0x104] ss:$8 sps:$4 sm:$0xff]  }
 0x701   :  { %11648 = vmatprep.subr.bf16.mxu0 %v16324_v52  ;;  %v6404_v52 = vrot.slane %v16815_v3, 5  ;;  %v22144_v41 = vld [vmem:[#allocation32_spill] sm:$0xff]  ;;  %v6665_v4 = vld [vmem:[%s21909_s10] sm:$0x3] }
 0x702   :  { %7900 = vmatpush1.bf16.msra.mxu1 %v16298_v44  ;;  %v6346_v57 = vsel %vm3114_vm9, %v6336_v38, %v6345_v22  ;;  %v16339_v44 = vld [vmem:[%s21910_s11 + $0xa4] ss:$8 sps:$4 sm:$0xff]   ;;  %v6355_v34 = vsel %vm3114_vm9, %v6345_v22, %v6354_v25  ;;  %v6359_v17 = vrot.slane %v6357_v21, 4  ;;  %v6362_v15 = vrot.slane %v6360_v7, 5 }
 0x703   :  { %7901 = vmatprep.subr.bf16.mxu1 %v16303_v14  ;;  %v6243_v14 = vsel %vm2030_vm13, %v6240_v53, %v6242_v31  ;;  %v22143_v53 = vrot.slane %v19805_v0, 5  ;;  %v6392_v22 = vld [vmem:[#allocation2 + $0xa0] sm:$0x1f]  ;;  %v16340_v0 = vld [vmem:[%s21910_s11 + $0xb0] ss:$8 sps:$4 sm:$0xff]   ;;  %v20049_v31 = vsub.s32 1, %v22144_v41 }
 0x704   :  { %11649 = vmatpush1.bf16.msra.mxu0 %v16322_v61  ;;  %v6363_v46 = vor.u32 %v6362_v15, %v6359_v17  ;;  %v16816_v61 = vld [vmem:[#allocation2 + $0x30] sm:$0xff]  ;;  %v6420_v5 = vrot.slane %v6392_v22, 5 }
 0x705   :  { %7829 = vmatmul.mubr.bf16.gmra.mrb[96].mxu1 %v6237_v42  ;;  %11650 = vmatprep.subr.bf16.mxu0 %v16327_v30  ;;  %v6406_v38 = vrot.slane %v16816_v61, 5  ;;  %v6408_v30 = vrot.slane %v16817_v26, 5  ;;  %22146 = vst [vmem:[#allocation50_spill] sm:$0xff] %v20049_v31 }
 0x706   :  { %7838 = vmatprep.mubr.bf16.mxu1 %v6328_v37  ;;  %7902 = vmatpush1.bf16.msra.mxu1 %v16301_v18  ;;  %v6364_v18 = vsel %vm3114_vm9, %v6354_v25, %v6363_v46  ;;  %v16814_v37 = vld [vmem:[#allocation2] sm:$0xff]  ;;  %v6421_v24 = vsel %vm3350_vm11, %v6418_v13, %v6420_v5  ;;  %v16346_v13 = vld [vmem:[%s21910_s11 + $0xd0] ss:$8 sps:$4 sm:$0xff]   ;;  %v20055_v25 = vrot.slane %v6665_v4, %v20049_v31 }
 0x707   :  { %7903 = vmatprep.subr.bf16.mxu1 %v16306_v47  ;;  %v6218_v47 = vld [vmem:[#allocation2 + $0xa0] sm:$0xf]  ;;  %v6407_v56 = vsel %vm3350_vm11, %v6404_v52, %v6406_v38 }
 0x708   :  { %11651 = vmatpush1.bf16.msra.mxu0 %v16325_v20  ;;  %v6246_v42 = vrot.slane %v6218_v47, 4  ;;  %v16818_v20 = vld [vmem:[#allocation2 + $0x50] sm:$0xff] }
 0x709   :  { %11652 = vmatprep.subr.bf16.mxu0 %v16330_v49 }
 0x70a   :  { %7904 = vmatpush1.bf16.msra.mxu1 %v16304_v59  ;;  %v6247_v28 = vsel %vm2030_vm13, %v6244_v43, %v6246_v42  ;;  %v6403_v59 = vrot.slane %v6383_v54, 5 }
 0x70c   :  { %11653 = vmatpush1.bf16.msra.mxu0 %v16328_v62  ;;  %v6405_v33 = vsel %vm3350_vm11, %v6403_v59, %v6404_v52  ;;  %v6415_v62 = vsel %vm3350_vm11, %v6412_v63, %v22143_v53  ;;  %v8360_v52 = vld [vmem:[#allocation3] sm:$0xf8] }
 0x70d   :  { %7839 = vmatmul.mubr.bf16.gmra.mrb[100].mxu1 %v6239_v10  ;;  %11654 = vmatprep.subr.bf16.mxu0 %v16333_v1  ;;  %v6409_v10 = vsel %vm3350_vm11, %v6406_v38, %v6408_v30  ;;  %v16351_v1 = vld [vmem:[%s21910_s11 + $0xe4] ss:$8 sps:$4 sm:$0xff]  }
 0x70e   :  { %7848 = vmatprep.mubr.bf16.mxu1 %v6337_v12  ;;  %v6410_v12 = vrot.slane %v16818_v20, 5 }
 0x710   :  { %11655 = vmatpush1.bf16.msra.mxu0 %v16331_v8  ;;  %v6411_v51 = vsel %vm3350_vm11, %v6408_v30, %v6410_v12  ;;  %v6413_v49 = vsel %vm3350_vm11, %v6410_v12, %v6412_v63  ;;  %v16352_v8 = vld [vmem:[%s21910_s11 + $0xf0] ss:$8 sps:$4 sm:$0xff]   ;;  %v8400_v12 = vrot.slane %v8360_v52, 3 }
 0x711   :  { %11656 = vmatprep.subr.bf16.mxu0 %v16336_v9  ;;  %v20043_v9 = vsub.s32 0, %v22144_v41  ;;  %v16358_v41 = vld [vmem:[%s21910_s11 + $0x110] ss:$8 sps:$4 sm:$0xff]  }
 0x713   :  { %22145 = vst [vmem:[#allocation49_spill] sm:$0xff] %v20043_v9 }
 0x714   :  { %11657 = vmatpush1.bf16.msra.mxu0 %v16334_v6  ;;  %v20052_v6 = vrot.slane %v6665_v4, %v20043_v9 }
 0x715   :  { %7849 = vmatmul.mubr.bf16.gmra.mrb[104].mxu1 %v6241_v50  ;;  %11658 = vmatprep.subr.bf16.mxu0 %v16339_v44  ;;  %v16349_v50 = vld [vmem:[%s21910_s11 + $0xe0] ss:$8 sps:$4 sm:$0xff]  }
 0x716   :  { %7858 = vmatprep.mubr.bf16.mxu1 %v6346_v57  ;;  %v16354_v57 = vld [vmem:[%s21910_s11 + $0xf4] ss:$8 sps:$4 sm:$0xff]  }
 0x718   :  { %11659 = vmatpush1.bf16.msra.mxu0 %v16337_v40 }
 0x719   :  { %11660 = vmatprep.subr.bf16.mxu0 %v16342_v35 }
 0x71c   :  { %11661 = vmatpush1.bf16.msra.mxu0 %v16340_v0 }
 0x71d   :  { %7859 = vmatmul.mubr.bf16.gmra.mrb[108].mxu1 %v6243_v14  ;;  %11662 = vmatprep.subr.bf16.mxu0 %v16345_v29 }
 0x71e   :  { %7868 = vmatprep.mubr.bf16.mxu1 %v6355_v34 }
 0x725   :  { %7869 = vmatmul.mubr.bf16.gmra.mrb[112].mxu1 %v6245_v11 }
 0x726   :  { %7878 = vmatprep.mubr.bf16.mxu1 %v6364_v18 }
 0x72d   :  { %7879 = vmatmul.mubr.bf16.gmra.mrb[116].mxu1 %v6247_v28  ;;  %v8361_v28 = vld [vmem:[#allocation3 + $0x8] sm:$0xf8] }
 0x72e   :  { %7921 = vmatprep.mubr.bf16.mxu1 %v16814_v37  ;;  %v8403_v30 = vrot.slane %v8361_v28, 3  ;;  %v16361_v28 = vld [vmem:[%s21910_s11 + $0x120] ss:$8 sps:$4 sm:$0xff]  }
 0x735   :  { %7922 = vmatmul.mubr.bf16.vlgmr.msra.gmra.mrb[84].mxu1 %v6405_v33 }
 0x736   :  { %7931 = vmatprep.mubr.bf16.mxu1 %v16814_v37 }
 0x73d   :  { %7932 = vmatmul.mubr.bf16.gmra.mrb[88].mxu1 %v6407_v56 }
 0x73e   :  { %7941 = vmatprep.mubr.bf16.mxu1 %v16814_v37 }
 0x745   :  { %7942 = vmatmul.mubr.bf16.gmra.mrb[92].mxu1 %v6409_v10 }
 0x746   :  { %7951 = vmatprep.mubr.bf16.mxu1 %v16814_v37 }
 0x74d   :  { %7952 = vmatmul.mubr.bf16.gmra.mrb[96].mxu1 %v6411_v51 }
 0x74e   :  { %7961 = vmatprep.mubr.bf16.mxu1 %v16814_v37 }
 0x755   :  { %7962 = vmatmul.mubr.bf16.gmra.mrb[100].mxu1 %v6413_v49 }
 0x756   :  { %7971 = vmatprep.mubr.bf16.mxu1 %v16814_v37 }
 0x75d   :  { %7972 = vmatmul.mubr.bf16.gmra.mrb[104].mxu1 %v6415_v62  ;;  %v16355_v62 = vld [vmem:[%s21910_s11 + $0x100] ss:$8 sps:$4 sm:$0xff]  }
 0x75e   :  { %7981 = vmatprep.mubr.bf16.mxu1 %v16814_v37 }
 0x765   :  { %7982 = vmatmul.mubr.bf16.gmra.mrb[108].mxu1 %v19812_v27  ;;  %v16343_v27 = vld [vmem:[%s21910_s11 + $0xc0] ss:$8 sps:$4 sm:$0xff]  }
 0x766   :  { %7991 = vmatprep.mubr.bf16.mxu1 %v16814_v37  ;;  %11663 = vmatpush1.bf16.msra.mxu0 %v16343_v27 }
 0x76d   :  { %7992 = vmatmul.mubr.bf16.gmra.mrb[112].mxu1 %v19821_v58  ;;  %v16348_v58 = vld [vmem:[%s21910_s11 + $0xd4] ss:$8 sps:$4 sm:$0xff]  }
 0x76e   :  { %8001 = vmatprep.mubr.bf16.mxu1 %v16814_v37  ;;  %11664 = vmatprep.subr.bf16.mxu0 %v16348_v58 }
 0x76f   :  { %11665 = vmatpush1.bf16.msra.mxu0 %v16346_v13 }
 0x770   :  { %11666 = vmatprep.subr.bf16.mxu0 %v16351_v1 }
 0x773   :  { %11667 = vmatpush1.bf16.msra.mxu0 %v16349_v50 }
 0x774   :  { %11668 = vmatprep.subr.bf16.mxu0 %v16354_v57 }
 0x775   :  { %8002 = vmatmul.mubr.bf16.gmra.mrb[116].mxu1 %v6421_v24  ;;  %v16360_v24 = vld [vmem:[%s21910_s11 + $0x114] ss:$8 sps:$4 sm:$0xff]  }
 0x777   :  { %11669 = vmatpush1.bf16.msra.mxu0 %v16352_v8 }
 0x778   :  { %11761 = vmatprep.subr.bf16.mxu0 %v16357_v19 }
 0x808   :  { %v7923_v21 = vpop.f32.mrb[84].mxu1 }
 0x809   :  { %v15311_v7 = vadd.f32 %v7923_v21, %v20052_v6  ;;  %v7925_v44 = vpop.f32.mrb[85].mxu1 }
 0x80a   :  { %v15312_v14 = vadd.f32 %v7925_v44, %v20055_v25  ;;  %v7927_v40 = vpop.f32.mrb[86].mxu1 }
 0x80b   :  { %v8012_v34 = vmax.f32 %v15311_v7, 0.0  ;;  %v15313_v17 = vadd.f32 %v7927_v40, %v20052_v6  ;;  %v7929_v15 = vpop.f32.mrb[87].mxu1  ;;  %v16363_v7 = vld [vmem:[%s21910_s11 + $0x124] ss:$8 sps:$4 sm:$0xff]  }
 0x80c   :  { %v8013_v43 = vmax.f32 %v15312_v14, 0.0  ;;  %v15314_v46 = vadd.f32 %v7929_v15, %v20055_v25 }
 0x80d   :  { %v8014_v11 = vmax.f32 %v15313_v17, 0.0  ;;  %v8048_v47 = vmul.f32 %v22097_v55, %v8012_v34 }
 0x80e   :  { %v8015_v18 = vmax.f32 %v15314_v46, 0.0  ;;  %v8049_v37 = vmul.f32 %v22097_v55, %v8013_v43 }
 0x80f   :  { %v8050_v42 = vmul.f32 %v22098_v45, %v8014_v11 }
 0x810   :  { %v8051_v54 = vmul.f32 %v22098_v45, %v8015_v18  ;;  %v7933_v3 = vpop.f32.mrb[88].mxu1 }
 0x811   :  { %v20065_v59 = vpack.c.bf16 %v8050_v42, %v8048_v47  ;;  %v15315_v33 = vadd.f32 %v7933_v3, %v20052_v6  ;;  %v7935_v61 = vpop.f32.mrb[89].mxu1 }
 0x812   :  { %v8085_v38 = vpack.c.bf16 %v8051_v54, %v8049_v37  ;;  %v15316_v56 = vadd.f32 %v7935_v61, %v20055_v25  ;;  %v7937_v26 = vpop.f32.mrb[90].mxu1 }
 0x813   :  { %8102 = vst [vmem:[#allocation3 + $0x10] sm:$0xff] %v20065_v59  ;;  %v8016_v10 = vmax.f32 %v15315_v33, 0.0  ;;  %v15317_v20 = vadd.f32 %v7937_v26, %v20052_v6  ;;  %v7939_v55 = vpop.f32.mrb[91].mxu1  ;;  %v8401_v45 = vrot.slane %v20065_v59, 3  ;;  %v8503_v4 = vshrl.u32 %v20065_v59, 16 }
 0x814   :  { %8103 = vst [vmem:[#allocation3 + $0x18] sm:$0xff] %v8085_v38  ;;  %v8017_v51 = vmax.f32 %v15316_v56, 0.0  ;;  %v15318_v63 = vadd.f32 %v7939_v55, %v20055_v25  ;;  %v8404_v49 = vrot.slane %v8085_v38, 3  ;;  %v8520_v29 = vshrl.u32 %v8085_v38, 16  ;;  %v16366_v33 = vld [vmem:[%s21910_s11 + $0x134] ss:$8 sps:$4 sm:$0xff]  }
 0x815   :  { %v8018_v53 = vmax.f32 %v15317_v20, 0.0  ;;  %v8052_v0 = vmul.f32 %v22099_v48, %v8016_v10  ;;  %v8402_v27 = vsel %vm1842_vm12, %v8400_v12, %v8401_v45  ;;  %v8523_v50 = vshll.u32 %v8085_v38, 16 }
 0x816   :  { %v8019_v22 = vmax.f32 %v15318_v63, 0.0  ;;  %v8405_v5 = vsel %vm1842_vm12, %v8403_v30, %v8404_v49  ;;  %v8053_v13 = vmul.f32 %v22099_v48, %v8017_v51  ;;  %v8506_v44 = vshll.u32 %v20065_v59, 16 }
 0x817   :  { %v8054_v35 = vmul.f32 %v22100_v39, %v8018_v53  ;;  %11670 = vmatprep.mubr.bf16.mxu0 %v8405_v5  ;;  %v8522_v15 = vrot.slane %v8520_v29, 3  ;;  %v8525_v18 = vrot.slane %v8523_v50, 4  ;;  %v8505_v37 = vrot.slane %v8503_v4, 3  ;;  %v16364_v53 = vld [vmem:[%s21910_s11 + $0x130] ss:$8 sps:$4 sm:$0xff]  }
 0x818   :  { %v8055_v58 = vmul.f32 %v22100_v39, %v8019_v22  ;;  %v7943_v1 = vpop.f32.mrb[92].mxu1  ;;  %11671 = vmatmul.mubr.bf16.vlgmr.msra.gmra.mrb[200].mxu0 %v8402_v27  ;;  %v8508_v61 = vrot.slane %v8506_v44, 4 }
 0x819   :  { %v20085_v8 = vpack.c.bf16 %v8054_v35, %v8052_v0  ;;  %v15319_v57 = vadd.f32 %v7943_v1, %v20052_v6  ;;  %v7945_v19 = vpop.f32.mrb[93].mxu1  ;;  %11762 = vmatpush1.bf16.msra.mxu0 %v16355_v62  ;;  %v20120_v12 = vor.u32 %v8525_v18, %v8522_v15 }
 0x81a   :  { %v20092_v21 = vpack.c.bf16 %v8055_v58, %v8053_v13  ;;  %v15320_v48 = vadd.f32 %v7945_v19, %v20055_v25  ;;  %v7947_v39 = vpop.f32.mrb[94].mxu1  ;;  %11763 = vmatprep.subr.bf16.mxu0 %v16360_v24  ;;  %v16369_v24 = vld [vmem:[%s21910_s11 + $0x144] ss:$8 sps:$4 sm:$0xff]   ;;  %v20135_v0 = vor.u32 %v8508_v61, %v8505_v37 }
 0x81b   :  { %8104 = vst [vmem:[#allocation3 + $0x20] sm:$0xff] %v20085_v8  ;;  %v8020_v14 = vmax.f32 %v15319_v57, 0.0  ;;  %v15321_v40 = vadd.f32 %v7947_v39, %v20052_v6  ;;  %v7949_v34 = vpop.f32.mrb[95].mxu1  ;;  %v8406_v17 = vrot.slane %v20085_v8, 3  ;;  %v8529_v30 = vshrl.u32 %v20085_v8, 16 }
 0x81c   :  { %8105 = vst [vmem:[#allocation3 + $0x28] sm:$0xff] %v20092_v21  ;;  %v8021_v43 = vmax.f32 %v15320_v48, 0.0  ;;  %v15322_v46 = vadd.f32 %v7949_v34, %v20055_v25  ;;  %v8408_v11 = vrot.slane %v20092_v21, 3  ;;  %v8538_v54 = vshrl.u32 %v20092_v21, 16 }
 0x81d   :  { %v8022_v47 = vmax.f32 %v15321_v40, 0.0  ;;  %11764 = vmatpush1.bf16.msra.mxu0 %v16358_v41  ;;  %v8407_v42 = vsel %vm1842_vm12, %v8401_v45, %v8406_v17  ;;  %v8056_v3 = vmul.f32 %v22115_v16, %v8020_v14  ;;  %v8541_v26 = vshll.u32 %v20092_v21, 16  ;;  %v16367_v21 = vld [vmem:[%s21910_s11 + $0x140] ss:$8 sps:$4 sm:$0xff]   ;;  %v16372_v14 = vld [vmem:[%s21910_s11 + $0x154] ss:$8 sps:$4 sm:$0xff]  }
 0x81e   :  { %v8023_v52 = vmax.f32 %v15322_v46, 0.0  ;;  %v8409_v59 = vsel %vm1842_vm12, %v8404_v49, %v8408_v11  ;;  %11765 = vmatprep.subr.bf16.mxu0 %v16363_v7  ;;  %v8540_v56 = vrot.slane %v8538_v54, 3  ;;  %v8057_v10 = vmul.f32 %v22115_v16, %v8021_v43  ;;  %v16370_v54 = vld [vmem:[%s21910_s11 + $0x150] ss:$8 sps:$4 sm:$0xff]  }
 0x81f   :  { %v8058_v38 = vmul.f32 %v22116_v2, %v8022_v47  ;;  %11680 = vmatprep.mubr.bf16.mxu0 %v8409_v59  ;;  %v8532_v45 = vshll.u32 %v20085_v8, 16  ;;  %v8543_v62 = vrot.slane %v8541_v26, 4  ;;  %v8531_v16 = vrot.slane %v8529_v30, 3 }
 0x820   :  { %v8059_v20 = vmul.f32 %v22116_v2, %v8023_v52  ;;  %v7953_v55 = vpop.f32.mrb[96].mxu1  ;;  %11681 = vmatmul.mubr.bf16.gmra.mrb[204].mxu0 %v8407_v42 }
 0x821   :  { %v20123_v51 = vpack.c.bf16 %v8058_v38, %v8056_v3  ;;  %v15323_v63 = vadd.f32 %v7953_v55, %v20052_v6  ;;  %v7955_v49 = vpop.f32.mrb[97].mxu1  ;;  %11766 = vmatpush1.bf16.msra.mxu0 %v16361_v28  ;;  %v8534_v35 = vrot.slane %v8532_v45, 4  ;;  %v8544_v1 = vor.u32 %v8543_v62, %v8540_v56  ;;  %v16373_v62 = vld [vmem:[%s21910_s11 + $0x160] ss:$8 sps:$4 sm:$0xff]  }
 0x822   :  { %v20129_v22 = vpack.c.bf16 %v8059_v20, %v8057_v10  ;;  %v15324_v2 = vadd.f32 %v7955_v49, %v20055_v25  ;;  %v7957_v5 = vpop.f32.mrb[98].mxu1  ;;  %11767 = vmatprep.subr.bf16.mxu0 %v16366_v33  ;;  %v16375_v33 = vld [vmem:[%s21910_s11 + $0x164] ss:$8 sps:$4 sm:$0xff]  }
 0x823   :  { %8106 = vst [vmem:[#allocation3 + $0x30] sm:$0xff] %v20123_v51  ;;  %v8024_v27 = vmax.f32 %v15323_v63, 0.0  ;;  %v15325_v29 = vadd.f32 %v7957_v5, %v20052_v6  ;;  %v7959_v13 = vpop.f32.mrb[99].mxu1  ;;  %v8410_v58 = vrot.slane %v20123_v51, 3  ;;  %v8535_v19 = vor.u32 %v8534_v35, %v8531_v16 }
 0x824   :  { %8107 = vst [vmem:[#allocation3 + $0x38] sm:$0xff] %v20129_v22  ;;  %v8025_v50 = vmax.f32 %v15324_v2, 0.0  ;;  %v15326_v8 = vadd.f32 %v7959_v13, %v20055_v25  ;;  %v8412_v57 = vrot.slane %v20129_v22, 3  ;;  %v20149_v48 = vsel %vm1586_vm1, %v20120_v12, %v8544_v1 }
 0x825   :  { %v8026_v41 = vmax.f32 %v15325_v29, 0.0  ;;  %11768 = vmatpush1.bf16.msra.mxu0 %v16364_v53  ;;  %v8411_v4 = vsel %vm1842_vm12, %v8406_v17, %v8410_v58  ;;  %v8060_v39 = vmul.f32 %v22117_v23, %v8024_v27  ;;  %v20158_v40 = vsel %vm1586_vm1, %v20135_v0, %v8535_v19 }
 0x826   :  { %v8027_v7 = vmax.f32 %v15326_v8, 0.0  ;;  %v8413_v44 = vsel %vm1842_vm12, %v8408_v11, %v8412_v57  ;;  %11769 = vmatprep.subr.bf16.mxu0 %v16369_v24  ;;  %v8556_v17 = vshrl.u32 %v20129_v22, 16  ;;  %v8559_v15 = vshll.u32 %v20129_v22, 16  ;;  %v16378_v24 = vld [vmem:[%s21910_s11 + $0x174] ss:$8 sps:$4 sm:$0xff]  }
 0x827   :  { %v8062_v34 = vmul.f32 %v22118_v32, %v8026_v41  ;;  %11690 = vmatprep.mubr.bf16.mxu0 %v8413_v44  ;;  %v8547_v43 = vshrl.u32 %v20123_v51, 16  ;;  %v8061_v46 = vmul.f32 %v22117_v23, %v8025_v50  ;;  %v8550_v47 = vshll.u32 %v20123_v51, 16 }
 0x828   :  { %v8063_v11 = vmul.f32 %v22118_v32, %v8027_v7  ;;  %v7963_v18 = vpop.f32.mrb[100].mxu1  ;;  %11691 = vmatmul.mubr.bf16.gmra.mrb[208].mxu0 %v8411_v4  ;;  %v8558_v3 = vrot.slane %v8556_v17, 3  ;;  %v8561_v52 = vrot.slane %v8559_v15, 4  ;;  %v16381_v17 = vld [vmem:[%s21910_s11 + $0x184] ss:$8 sps:$4 sm:$0xff]  }
 0x829   :  { %v20167_v42 = vpack.c.bf16 %v8062_v34, %v8060_v39  ;;  %v15327_v28 = vadd.f32 %v7963_v18, %v20052_v6  ;;  %v7965_v37 = vpop.f32.mrb[101].mxu1  ;;  %11770 = vmatpush1.bf16.msra.mxu0 %v16367_v21  ;;  %v8549_v61 = vrot.slane %v8547_v43, 3  ;;  %v8552_v38 = vrot.slane %v8550_v47, 4  ;;  %v16376_v21 = vld [vmem:[%s21910_s11 + $0x170] ss:$8 sps:$4 sm:$0xff]  }
 0x82a   :  { %v20173_v59 = vpack.c.bf16 %v8063_v11, %v8061_v46  ;;  %v15328_v23 = vadd.f32 %v7965_v37, %v20055_v25  ;;  %v7967_v32 = vpop.f32.mrb[102].mxu1  ;;  %11771 = vmatprep.subr.bf16.mxu0 %v16372_v14  ;;  %v8562_v20 = vor.u32 %v8561_v52, %v8558_v3 }
 0x82b   :  { %8108 = vst [vmem:[#allocation3 + $0x40] sm:$0xff] %v20167_v42  ;;  %v8028_v56 = vmax.f32 %v15327_v28, 0.0  ;;  %v15329_v26 = vadd.f32 %v7967_v32, %v20052_v6  ;;  %v7969_v30 = vpop.f32.mrb[103].mxu1  ;;  %v8414_v10 = vrot.slane %v20167_v42, 3  ;;  %v8553_v63 = vor.u32 %v8552_v38, %v8549_v61 }
 0x82c   :  { %8109 = vst [vmem:[#allocation3 + $0x48] sm:$0xff] %v20173_v59  ;;  %v8029_v55 = vmax.f32 %v15328_v23, 0.0  ;;  %v15330_v45 = vadd.f32 %v7969_v30, %v20055_v25  ;;  %v8416_v51 = vrot.slane %v20173_v59, 3  ;;  %v20190_v16 = vsel %vm1586_vm1, %v8544_v1, %v8562_v20  ;;  %v16379_v23 = vld [vmem:[%s21910_s11 + $0x180] ss:$8 sps:$4 sm:$0xff]  }
 0x82d   :  { %v8030_v49 = vmax.f32 %v15329_v26, 0.0  ;;  %11772 = vmatpush1.bf16.msra.mxu0 %v16370_v54  ;;  %v8415_v53 = vsel %vm1842_vm12, %v8410_v58, %v8414_v10  ;;  %v8064_v22 = vmul.f32 0.0, %v8028_v56  ;;  %v20197_v35 = vsel %vm1586_vm1, %v8535_v19, %v8553_v63  ;;  %v16384_v56 = vld [vmem:[%s21910_s11 + $0x194] ss:$8 sps:$4 sm:$0xff]  }
 0x82e   :  { %v8031_v2 = vmax.f32 %v15330_v45, 0.0  ;;  %v8417_v5 = vsel %vm1842_vm12, %v8412_v57, %v8416_v51  ;;  %11773 = vmatprep.subr.bf16.mxu0 %v16375_v33  ;;  %v8574_v29 = vshrl.u32 %v20173_v59, 16  ;;  %v8577_v13 = vshll.u32 %v20173_v59, 16 }
 0x82f   :  { %v8066_v27 = vmul.f32 0.0, %v8030_v49  ;;  %11700 = vmatprep.mubr.bf16.mxu0 %v8417_v5  ;;  %v8565_v58 = vshrl.u32 %v20167_v42, 16  ;;  %v8065_v1 = vmul.f32 0.0, %v8029_v55  ;;  %v8568_v57 = vshll.u32 %v20167_v42, 16 }
 0x830   :  { %v8067_v50 = vmul.f32 0.0, %v8031_v2  ;;  %v7973_v8 = vpop.f32.mrb[104].mxu1  ;;  %11701 = vmatmul.mubr.bf16.gmra.mrb[212].mxu0 %v8415_v53  ;;  %v8576_v39 = vrot.slane %v8574_v29, 3  ;;  %v8579_v7 = vrot.slane %v8577_v13, 4  ;;  %v16382_v2 = vld [vmem:[%s21910_s11 + $0x190] ss:$8 sps:$4 sm:$0xff]  }
 0x831   :  { %v20203_v41 = vpack.c.bf16 %v8066_v27, %v8064_v22  ;;  %v15331_v4 = vadd.f32 %v7973_v8, %v20052_v6  ;;  %v7975_v19 = vpop.f32.mrb[105].mxu1  ;;  %11774 = vmatpush1.bf16.msra.mxu0 %v16373_v62  ;;  %v8567_v15 = vrot.slane %v8565_v58, 3  ;;  %v8570_v43 = vrot.slane %v8568_v57, 4  ;;  %v16387_v29 = vld [vmem:[%s21910_s11 + $0x1a4] ss:$8 sps:$4 sm:$0xff]  }
 0x832   :  { %v20209_v44 = vpack.c.bf16 %v8067_v50, %v8065_v1  ;;  %v15332_v14 = vadd.f32 %v7975_v19, %v20055_v25  ;;  %v7977_v34 = vpop.f32.mrb[106].mxu1  ;;  %11775 = vmatprep.subr.bf16.mxu0 %v16378_v24  ;;  %v8580_v42 = vor.u32 %v8579_v7, %v8576_v39 }
 0x833   :  { %8110 = vst [vmem:[#allocation3 + $0x50] sm:$0xff] %v20203_v41  ;;  %v8032_v46 = vmax.f32 %v15331_v4, 0.0  ;;  %v15333_v11 = vadd.f32 %v7977_v34, %v20052_v6  ;;  %v7979_v18 = vpop.f32.mrb[107].mxu1  ;;  %v8418_v47 = vrot.slane %v20203_v41, 3  ;;  %v8571_v3 = vor.u32 %v8570_v43, %v8567_v15 }
 0x834   :  { %8111 = vst [vmem:[#allocation3 + $0x58] sm:$0xff] %v20209_v44  ;;  %v8033_v28 = vmax.f32 %v15332_v14, 0.0  ;;  %v15334_v37 = vadd.f32 %v7979_v18, %v20055_v25  ;;  %v8420_v54 = vrot.slane %v20209_v44, 3  ;;  %v20226_v32 = vsel %vm1586_vm1, %v8562_v20, %v8580_v42  ;;  %v16385_v14 = vld [vmem:[%s21910_s11 + $0x1a0] ss:$8 sps:$4 sm:$0xff]  }
 0x835   :  { %v8034_v52 = vmax.f32 %v15333_v11, 0.0  ;;  %v8419_v59 = vsel %vm1842_vm12, %v8414_v10, %v8418_v47  ;;  %11776 = vmatpush1.bf16.msra.mxu0 %v16376_v21  ;;  %v8068_v33 = vmul.f32 %v22119_v36, %v8032_v46  ;;  %v20234_v26 = vsel %vm1586_vm1, %v8553_v63, %v8571_v3  ;;  %v16390_v11 = vld [vmem:[%s21910_s11 + $0x1b4] ss:$8 sps:$4 sm:$0xff]  }
 0x836   :  { %v8035_v61 = vmax.f32 %v15334_v37, 0.0  ;;  %v8421_v38 = vsel %vm1842_vm12, %v8416_v51, %v8420_v54  ;;  %11777 = vmatprep.subr.bf16.mxu0 %v16381_v17  ;;  %v8592_v10 = vshrl.u32 %v20209_v44, 16  ;;  %v8595_v20 = vshll.u32 %v20209_v44, 16  ;;  %v22147_v17 = vld [vmem:[#allocation40_spill] sm:$0xff] }
 0x837   :  { %v8070_v30 = vmul.f32 %v22120_v60, %v8034_v52  ;;  %11710 = vmatprep.mubr.bf16.mxu0 %v8421_v38  ;;  %v8583_v55 = vshrl.u32 %v20203_v41, 16  ;;  %v8069_v45 = vmul.f32 %v22119_v36, %v8033_v28  ;;  %v8586_v53 = vshll.u32 %v20203_v41, 16 }
 0x838   :  { %v8071_v51 = vmul.f32 %v22120_v60, %v8035_v61  ;;  %v7983_v49 = vpop.f32.mrb[108].mxu1  ;;  %11711 = vmatmul.mubr.bf16.gmra.mrb[216].mxu0 %v8419_v59  ;;  %v8594_v5 = vrot.slane %v8592_v10, 3  ;;  %v8597_v24 = vrot.slane %v8595_v20, 4 }
 0x839   :  { %v20243_v62 = vpack.c.bf16 %v8070_v30, %v8068_v33  ;;  %v15335_v63 = vadd.f32 %v7983_v49, %v20052_v6  ;;  %v7985_v22 = vpop.f32.mrb[109].mxu1  ;;  %11778 = vmatpush1.bf16.msra.mxu0 %v16379_v23  ;;  %v8585_v13 = vrot.slane %v8583_v55, 3  ;;  %v8588_v58 = vrot.slane %v8586_v53, 4 }
 0x83a   :  { %v20249_v27 = vpack.c.bf16 %v8071_v51, %v8069_v45  ;;  %v15336_v36 = vadd.f32 %v7985_v22, %v20055_v25  ;;  %v7987_v60 = vpop.f32.mrb[110].mxu1  ;;  %11779 = vmatprep.subr.bf16.mxu0 %v16384_v56  ;;  %v8598_v41 = vor.u32 %v8597_v24, %v8594_v5  ;;  %v16388_v56 = vld [vmem:[%s21910_s11 + $0x1b0] ss:$8 sps:$4 sm:$0xff]   ;;  %v16393_v51 = vld [vmem:[%s21910_s11 + $0x1c4] ss:$8 sps:$4 sm:$0xff]  }
 0x83b   :  { %8112 = vst [vmem:[#allocation3 + $0x60] sm:$0xff] %v20243_v62  ;;  %v8036_v1 = vmax.f32 %v15335_v63, 0.0  ;;  %v15337_v50 = vadd.f32 %v7987_v60, %v20052_v6  ;;  %v7989_v8 = vpop.f32.mrb[111].mxu1  ;;  %v8422_v57 = vrot.slane %v20243_v62, 3  ;;  %v8589_v39 = vor.u32 %v8588_v58, %v8585_v13  ;;  %v16391_v58 = vld [vmem:[%s21910_s11 + $0x1c0] ss:$8 sps:$4 sm:$0xff]  }
 0x83c   :  { %8113 = vst [vmem:[#allocation3 + $0x68] sm:$0xff] %v20249_v27  ;;  %v8037_v4 = vmax.f32 %v15336_v36, 0.0  ;;  %v15338_v19 = vadd.f32 %v7989_v8, %v20055_v25  ;;  %v8424_v21 = vrot.slane %v20249_v27, 3  ;;  %v20266_v34 = vsel %vm1586_vm1, %v8580_v42, %v8598_v41 }
 0x83d   :  { %v8038_v7 = vmax.f32 %v15337_v50, 0.0  ;;  %v8423_v44 = vsel %vm1842_vm12, %v8418_v47, %v8422_v57  ;;  %11780 = vmatpush1.bf16.msra.mxu0 %v16382_v2  ;;  %v8072_v15 = vmul.f32 %v22147_v17, %v8036_v1  ;;  %v20274_v18 = vsel %vm1586_vm1, %v8571_v3, %v8589_v39  ;;  %v22148_v47 = vld [vmem:[#allocation41_spill] sm:$0xff]  ;;  %v22149_v50 = vld [vmem:[#allocation44_spill] sm:$0xff] }
 0x83e   :  { %v8039_v43 = vmax.f32 %v15338_v19, 0.0  ;;  %v8425_v46 = vsel %vm1842_vm12, %v8420_v54, %v8424_v21  ;;  %11781 = vmatprep.subr.bf16.mxu0 %v16387_v29  ;;  %v8610_v37 = vshrl.u32 %v20249_v27, 16  ;;  %v8613_v42 = vshll.u32 %v20249_v27, 16 }
 0x83f   :  { %v8074_v28 = vmul.f32 %v22148_v47, %v8038_v7  ;;  %11720 = vmatprep.mubr.bf16.mxu0 %v8425_v46  ;;  %v8601_v52 = vshrl.u32 %v20243_v62, 16  ;;  %v8073_v59 = vmul.f32 %v22147_v17, %v8037_v4  ;;  %v8604_v33 = vshll.u32 %v20243_v62, 16  ;;  %v16396_v7 = vld [vmem:[%s21910_s11 + $0x1d4] ss:$8 sps:$4 sm:$0xff]  }
 0x840   :  { %v8075_v54 = vmul.f32 %v22148_v47, %v8039_v43  ;;  %v7993_v23 = vpop.f32.mrb[112].mxu1  ;;  %11721 = vmatmul.mubr.bf16.gmra.mrb[220].mxu0 %v8423_v44  ;;  %v8612_v30 = vrot.slane %v8610_v37, 3  ;;  %v8615_v10 = vrot.slane %v8613_v42, 4  ;;  %v22150_v44 = vld [vmem:[#allocation45_spill] sm:$0xff] }
 0x841   :  { %v20283_v61 = vpack.c.bf16 %v8074_v28, %v8072_v15  ;;  %v15339_v3 = vadd.f32 %v7993_v23, %v20052_v6  ;;  %v7995_v38 = vpop.f32.mrb[113].mxu1  ;;  %11782 = vmatpush1.bf16.msra.mxu0 %v16385_v14  ;;  %v8603_v49 = vrot.slane %v8601_v52, 3  ;;  %v8606_v53 = vrot.slane %v8604_v33, 4  ;;  %v16394_v37 = vld [vmem:[%s21910_s11 + $0x1d0] ss:$8 sps:$4 sm:$0xff]  }
 0x842   :  { %v20289_v20 = vpack.c.bf16 %v8075_v54, %v8073_v59  ;;  %v15340_v55 = vadd.f32 %v7995_v38, %v20055_v25  ;;  %v7997_v45 = vpop.f32.mrb[114].mxu1  ;;  %11783 = vmatprep.subr.bf16.mxu0 %v16390_v11  ;;  %v8616_v5 = vor.u32 %v8615_v10, %v8612_v30  ;;  %v16399_v33 = vld [vmem:[%s21910_s11 + $0x1e4] ss:$8 sps:$4 sm:$0xff]  }
 0x843   :  { %8114 = vst [vmem:[#allocation3 + $0x70] sm:$0xff] %v20283_v61  ;;  %v8040_v62 = vmax.f32 %v15339_v3, 0.0  ;;  %v15341_v63 = vadd.f32 %v7997_v45, %v20052_v6  ;;  %v7999_v22 = vpop.f32.mrb[115].mxu1  ;;  %v8426_v2 = vrot.slane %v20283_v61, 3  ;;  %v8607_v60 = vor.u32 %v8606_v53, %v8603_v49 }
 0x844   :  { %8115 = vst [vmem:[#allocation3 + $0x78] sm:$0xff] %v20289_v20  ;;  %v8041_v24 = vmax.f32 %v15340_v55, 0.0  ;;  %v15342_v27 = vadd.f32 %v7999_v22, %v20055_v25  ;;  %v8428_v36 = vrot.slane %v20289_v20, 3  ;;  %v20306_v1 = vsel %vm1586_vm1, %v8598_v41, %v8616_v5 }
 0x845   :  { %v8042_v29 = vmax.f32 %v15341_v63, 0.0  ;;  %v8427_v13 = vsel %vm1842_vm12, %v8422_v57, %v8426_v2  ;;  %11784 = vmatpush1.bf16.msra.mxu0 %v16388_v56  ;;  %v8076_v8 = vmul.f32 %v22149_v50, %v8040_v62  ;;  %v20314_v57 = vsel %vm1586_vm1, %v8589_v39, %v8607_v60 }
 0x846   :  { %v8043_v4 = vmax.f32 %v15342_v27, 0.0  ;;  %v8429_v19 = vsel %vm1842_vm12, %v8424_v21, %v8428_v36  ;;  %11785 = vmatprep.subr.bf16.mxu0 %v16393_v51  ;;  %v8628_v17 = vshrl.u32 %v20289_v20, 16  ;;  %v8631_v41 = vshll.u32 %v20289_v20, 16 }
 0x847   :  { %v8078_v14 = vmul.f32 %v22150_v44, %v8042_v29  ;;  %11730 = vmatprep.mubr.bf16.mxu0 %v8429_v19  ;;  %v8619_v15 = vshrl.u32 %v20283_v61, 16  ;;  %v8077_v43 = vmul.f32 %v22149_v50, %v8041_v24  ;;  %v8622_v11 = vshll.u32 %v20283_v61, 16  ;;  %v22151_v24 = vld [vmem:[#allocation46_spill] sm:$0xff] }
 0x848   :  { %v8079_v21 = vmul.f32 %v22150_v44, %v8043_v4  ;;  %v8003_v46 = vpop.f32.mrb[116].mxu1  ;;  %11731 = vmatmul.mubr.bf16.gmra.mrb[224].mxu0 %v8427_v13  ;;  %v8630_v42 = vrot.slane %v8628_v17, 3  ;;  %v8633_v52 = vrot.slane %v8631_v41, 4  ;;  %v16402_v13 = vld [vmem:[%s21910_s11 + $0x1f4] ss:$8 sps:$4 sm:$0xff]  }
 0x849   :  { %v20323_v47 = vpack.c.bf16 %v8078_v14, %v8076_v8  ;;  %v15343_v39 = vadd.f32 %v8003_v46, %v20052_v6  ;;  %v8005_v28 = vpop.f32.mrb[117].mxu1  ;;  %11786 = vmatpush1.bf16.msra.mxu0 %v16391_v58  ;;  %v8621_v61 = vrot.slane %v8619_v15, 3  ;;  %v8624_v3 = vrot.slane %v8622_v11, 4  ;;  %v22152_v58 = vld [vmem:[#allocation48_spill] sm:$0xff] }
 0x84a   :  { %v20329_v59 = vpack.c.bf16 %v8079_v21, %v8077_v43  ;;  %v15344_v54 = vadd.f32 %v8005_v28, %v20055_v25  ;;  %v8007_v23 = vpop.f32.mrb[118].mxu1  ;;  %11787 = vmatprep.subr.bf16.mxu0 %v16396_v7  ;;  %v8634_v55 = vor.u32 %v8633_v52, %v8630_v42  ;;  %v8475_v7 = vld [vmem:[#allocation3 + $0x8] sm:$0xf8]  ;;  %v16405_v21 = vld [vmem:[%s21910_s11 + $0x204] ss:$8 sps:$4 sm:$0xff]  }
 0x84b   :  { %8116 = vst [vmem:[#allocation3 + $0x80] sm:$0xff] %v20323_v47  ;;  %v8044_v38 = vmax.f32 %v15343_v39, 0.0  ;;  %v15345_v56 = vadd.f32 %v8007_v23, %v20052_v6  ;;  %v8009_v30 = vpop.f32.mrb[119].mxu1  ;;  %v8430_v10 = vrot.slane %v20323_v47, 3  ;;  %v8625_v53 = vor.u32 %v8624_v3, %v8621_v61  ;;  %v16397_v6 = vld [vmem:[%s21910_s11 + $0x1e0] ss:$8 sps:$4 sm:$0xff]  }
 0x84c   :  { %8117 = vst [vmem:[#allocation3 + $0x88] sm:$0xff] %v20329_v59  ;;  %v8045_v45 = vmax.f32 %v15344_v54, 0.0  ;;  %v15346_v51 = vadd.f32 %v8009_v30, %v20055_v25  ;;  %v8432_v49 = vrot.slane %v20329_v59, 3  ;;  %v20348_v22 = vsel %vm1586_vm1, %v8616_v5, %v8634_v55  ;;  %v8474_v3 = vld [vmem:[#allocation3] sm:$0xf8] }
 0x84d   :  { %v8046_v62 = vmax.f32 %v15345_v56, 0.0  ;;  %v8431_v63 = vsel %vm1842_vm12, %v8426_v2, %v8430_v10  ;;  %11788 = vmatpush1.bf16.msra.mxu0 %v16394_v37  ;;  %v8080_v27 = vmul.f32 %v22151_v24, %v8044_v38  ;;  %v20356_v2 = vsel %vm1586_vm1, %v8607_v60, %v8625_v53  ;;  %v16400_v60 = vld [vmem:[%s21910_s11 + $0x1f0] ss:$8 sps:$4 sm:$0xff]  }
 0x84e   :  { %v8047_v29 = vmax.f32 %v15346_v51, 0.0  ;;  %v8433_v25 = vsel %vm1842_vm12, %v8428_v36, %v8432_v49  ;;  %11789 = vmatprep.subr.bf16.mxu0 %v16399_v33  ;;  %v8646_v8 = vshrl.u32 %v20329_v59, 16  ;;  %v8649_v5 = vshll.u32 %v20329_v59, 16 }
 0x84f   :  { %v8082_v50 = vmul.f32 %v22152_v58, %v8046_v62  ;;  %11740 = vmatprep.mubr.bf16.mxu0 %v8433_v25  ;;  %v8637_v4 = vshrl.u32 %v20323_v47, 16  ;;  %v8081_v19 = vmul.f32 %v22151_v24, %v8045_v45  ;;  %v8640_v44 = vshll.u32 %v20323_v47, 16 }
 0x850   :  { %v8083_v36 = vmul.f32 %v22152_v58, %v8047_v29  ;;  %11741 = vmatmul.mubr.bf16.gmra.mrb[228].mxu0 %v8431_v63  ;;  %v8648_v17 = vrot.slane %v8646_v8, 3  ;;  %v8651_v41 = vrot.slane %v8649_v5, 4  ;;  %v8512_v39 = vshrl.u32 %v8475_v7, 16  ;;  %v16412_v8 = vld [vmem:[%s21910_s11 + $0x230] ss:$8 sps:$4 sm:$0xff]  }
 0x851   :  { %v8100_v14 = vpack.c.bf16 %v8082_v50, %v8080_v27  ;;  %11790 = vmatpush1.bf16.msra.mxu0 %v16397_v6  ;;  %v8639_v15 = vrot.slane %v8637_v4, 3  ;;  %v8642_v46 = vrot.slane %v8640_v44, 4  ;;  %v8515_v28 = vshll.u32 %v8475_v7, 16  ;;  %v16409_v50 = vld [vmem:[%s21910_s11 + $0x220] ss:$8 sps:$4 sm:$0xff]  }
 0x852   :  { %v8101_v43 = vpack.c.bf16 %v8083_v36, %v8081_v19  ;;  %11791 = vmatprep.subr.bf16.mxu0 %v16402_v13  ;;  %v20371_v11 = vor.u32 %v8651_v41, %v8648_v17  ;;  %v21995_v54 = vrot.slane %v20289_v20, 4  ;;  %v21993_v23 = vrot.slane %v20329_v59, 4  ;;  %v16403_v13 = vld [vmem:[%s21910_s11 + $0x200] ss:$8 sps:$4 sm:$0xff]   ;;  %v16417_v4 = vld [vmem:[%s21910_s11 + $0x244] ss:$8 sps:$4 sm:$0xff]  }
 0x853   :  { %8118 = vst [vmem:[#allocation3 + $0x90] sm:$0xff] %v8100_v14  ;;  %v20373_v37 = vor.u32 %v8642_v46, %v8639_v15  ;;  %v8514_v33 = vrot.slane %v8512_v39, 3  ;;  %v8517_v61 = vrot.slane %v8515_v28, 4  ;;  %v8495_v45 = vshrl.u32 %v8474_v3, 16  ;;  %v16415_v19 = vld [vmem:[%s21910_s11 + $0x240] ss:$8 sps:$4 sm:$0xff]  }
 0x854   :  { %8119 = vst [vmem:[#allocation3 + $0x98] sm:$0xff] %v8101_v43  ;;  %v20377_v42 = vsel %vm1586_vm1, %v8634_v55, %v20371_v11  ;;  %v20390_v38 = vsel %vm2030_vm13, %v21995_v54, %v21993_v23  ;;  %v8498_v51 = vshll.u32 %v8474_v3, 16  ;;  %v16420_v36 = vld [vmem:[%s21910_s11 + $0x254] ss:$8 sps:$4 sm:$0xff]   ;;  %v16418_v44 = vld [vmem:[%s21910_s11 + $0x250] ss:$8 sps:$4 sm:$0xff]  }
 0x855   :  { %11792 = vmatpush1.bf16.msra.mxu0 %v16400_v60  ;;  %v20381_v52 = vsel %vm1586_vm1, %v8625_v53, %v20373_v37  ;;  %v8518_v62 = vor.u32 %v8517_v61, %v8514_v33  ;;  %v8497_v24 = vrot.slane %v8495_v45, 3  ;;  %v16423_v14 = vld [vmem:[%s21910_s11 + $0x264] ss:$8 sps:$4 sm:$0xff]   ;;  %v16421_v17 = vld [vmem:[%s21910_s11 + $0x260] ss:$8 sps:$4 sm:$0xff]   ;;  %v20464_v41 = vld [vmem:[#allocation3 + $0x80] sm:$0xff] }
 0x856   :  { %11884 = vmatprep.subr.bf16.mxu0 %v16405_v21  ;;  %v8500_v27 = vrot.slane %v8498_v51, 4  ;;  %v20454_v60 = vld [vmem:[#allocation3 + $0x78] sm:$0xff]  ;;  %v16424_v21 = vld [vmem:[%s21910_s11 + $0x270] ss:$8 sps:$4 sm:$0xff]   ;;  %v21981_v39 = vshll.u32 %v20464_v41, 16  ;;  %v21983_v45 = vshrl.u32 %v20464_v41, 16 }
 0x857   :  { %v8527_v29 = vsel %vm1586_vm1, %v8518_v62, %v20120_v12  ;;  %v16406_v12 = vld [vmem:[%s21910_s11 + $0x210] ss:$8 sps:$4 sm:$0xff]   ;;  %v21987_v15 = vshll.u32 %v20454_v60, 16  ;;  %v21988_v33 = vshrl.u32 %v20454_v60, 16  ;;  %v16427_v3 = vld [vmem:[%s21910_s11 + $0x280] ss:$8 sps:$4 sm:$0xff]  }
 0x858   :  { %v8501_v25 = vor.u32 %v8500_v27, %v8497_v24  ;;  %v20500_v62 = vrot.slane %v21981_v39, 1  ;;  %v16430_v24 = vld [vmem:[%s21910_s11 + $0x290] ss:$8 sps:$4 sm:$0xff]  }
 0x859   :  { %v20485_v61 = vrot.slane %v21987_v15, 1 }
 0x85a   :  { %v8378_v56 = vld [vmem:[#allocation3 + $0x90] sm:$0x7]  ;;  %v8510_v58 = vsel %vm1586_vm1, %v8501_v25, %v20135_v0  ;;  %v16414_v0 = vld [vmem:[%s21910_s11 + $0x234] ss:$8 sps:$4 sm:$0xff]  }
 0x85b   :  { %v8379_v30 = vld [vmem:[#allocation3 + $0x98] sm:$0x7]  ;;  %v8434_v55 = vrot.slane %v8378_v56, 3  ;;  %v20476_v28 = vld [vmem:[#allocation3 + $0x90] sm:$0xff]  ;;  %v9200_v51 = vor.u32 %v20485_v61, %v21988_v33 }
 0x85c   :  { %v8436_v53 = vrot.slane %v8379_v30, 3  ;;  %v20468_v43 = vld [vmem:[#allocation3 + $0x98] sm:$0xff]  ;;  %v21978_v30 = vshll.u32 %v20476_v28, 16 }
 0x85d   :  { %v8435_v6 = vsel %vm1842_vm12, %v8430_v10, %v8434_v55  ;;  %v16411_v10 = vld [vmem:[%s21910_s11 + $0x224] ss:$8 sps:$4 sm:$0xff]   ;;  %v8493_v55 = vld [vmem:[#allocation3 + $0x98] sm:$0xf] }
 0x85e   :  { %v8437_v63 = vsel %vm1842_vm12, %v8432_v49, %v8436_v53  ;;  %v16408_v49 = vld [vmem:[%s21910_s11 + $0x214] ss:$8 sps:$4 sm:$0xff]  }
 0x85f   :  { %11750 = vmatprep.mubr.bf16.mxu0 %v8437_v63  ;;  %v16432_v63 = vld [vmem:[%s21910_s11 + $0x294] ss:$8 sps:$4 sm:$0xff]  }
 0x860   :  { %11751 = vmatmul.mubr.bf16.gmra.mrb[232].mxu0 %v8435_v6  ;;  %v21982_v6 = vshrl.u32 %v20468_v43, 16 }
 0x861   :  { %11793 = vmatprep.mubr.bf16.mxu0 %v8527_v29 }
 0x868   :  { %11794 = vmatmul.mubr.bf16.vlgmr.msra.gmra.mrb[200].mxu0 %v8510_v58  ;;  %v8492_v58 = vld [vmem:[#allocation3 + $0x90] sm:$0xf] }
 0x869   :  { %11885 = vmatpush1.bf16.msra.mxu0 %v16403_v13  ;;  %11803 = vmatprep.mubr.bf16.mxu0 %v20149_v48  ;;  %v20419_v48 = vld [vmem:[#allocation3 + $0x28] sm:$0xff]  ;;  %v9208_v13 = vor.u32 %v20500_v62, %v21983_v45 }
 0x86a   :  { %11886 = vmatprep.subr.bf16.mxu0 %v16408_v49  ;;  %v21990_v5 = vshll.u32 %v20419_v48, 16  ;;  %v8664_v49 = vshrl.u32 %v8493_v55, 16 }
 0x86d   :  { %11887 = vmatpush1.bf16.msra.mxu0 %v16406_v12  ;;  %v21979_v12 = vshrl.u32 %v20476_v28, 16 }
 0x86e   :  { %11888 = vmatprep.subr.bf16.mxu0 %v16411_v10  ;;  %v9212_v10 = vrot.slane %v21978_v30, 1  ;;  %v20564_v30 = vld [vmem:[#allocation3 + $0x60] sm:$0xff] }
 0x86f   :  { %v9332_v33 = vrot.slane %v20564_v30, 4 }
 0x870   :  { %11804 = vmatmul.mubr.bf16.gmra.mrb[204].mxu0 %v20158_v40  ;;  %v21992_v40 = vshrl.u32 %v20419_v48, 16 }
 0x871   :  { %11813 = vmatprep.mubr.bf16.mxu0 %v20190_v16  ;;  %11889 = vmatpush1.bf16.msra.mxu0 %v16409_v50  ;;  %v20436_v16 = vrot.slane %v21990_v5, 1  ;;  %v16435_v50 = vld [vmem:[%s21910_s11 + $0x2a4] ss:$8 sps:$4 sm:$0xff]  }
 0x872   :  { %11890 = vmatprep.subr.bf16.mxu0 %v16414_v0  ;;  %v8667_v0 = vshll.u32 %v8493_v55, 16  ;;  %v20556_v55 = vld [vmem:[#allocation3 + $0x58] sm:$0xff] }
 0x873   :  { %v20444_v7 = vor.u32 %v20436_v16, %v21992_v40 }
 0x875   :  { %11891 = vmatpush1.bf16.msra.mxu0 %v16412_v8  ;;  %v8709_v8 = vld [vmem:[#allocation3 + $0x8] sm:$0xf0] }
 0x876   :  { %11892 = vmatprep.subr.bf16.mxu0 %v16417_v4  ;;  %v20527_v4 = vld [vmem:[#allocation3 + $0x20] sm:$0xff] }
 0x878   :  { %11814 = vmatmul.mubr.bf16.gmra.mrb[208].mxu0 %v20197_v35  ;;  %v16426_v35 = vld [vmem:[%s21910_s11 + $0x274] ss:$8 sps:$4 sm:$0xff]  }
 0x879   :  { %11823 = vmatprep.mubr.bf16.mxu0 %v20226_v32  ;;  %11893 = vmatpush1.bf16.msra.mxu0 %v16415_v19  ;;  %v20462_v32 = vld [vmem:[#allocation3 + $0x88] sm:$0xff]  ;;  %v20529_v19 = vld [vmem:[#allocation3 + $0x30] sm:$0xff] }
 0x87a   :  { %11894 = vmatprep.subr.bf16.mxu0 %v16420_v36  ;;  %v21984_v46 = vshll.u32 %v20462_v32, 16  ;;  %v21985_v56 = vshrl.u32 %v20462_v32, 16 }
 0x87c   :  { %v9204_v53 = vrot.slane %v21984_v46, 1  ;;  %v20581_v46 = vld [vmem:[#allocation3 + $0x70] sm:$0xff] }
 0x87d   :  { %11895 = vmatpush1.bf16.msra.mxu0 %v16418_v44  ;;  %v20540_v44 = vld [vmem:[#allocation3 + $0x48] sm:$0xff] }
 0x87e   :  { %11896 = vmatprep.subr.bf16.mxu0 %v16423_v14  ;;  %v20510_v27 = vsel %vm2639_vm7, %v9200_v51, %v9204_v53  ;;  %v9216_v29 = vor.u32 %v9204_v53, %v21985_v56  ;;  %v20542_v14 = vld [vmem:[#allocation3 + $0x40] sm:$0xff]  ;;  %v8666_v51 = vrot.slane %v8664_v49, 3  ;;  %v8658_v53 = vshll.u32 %v8492_v58, 16 }
 0x87f   :  { %v9324_v39 = vrot.slane %v20542_v14, 4  ;;  %v16438_v49 = vld [vmem:[%s21910_s11 + $0x2b4] ss:$8 sps:$4 sm:$0xff]   ;;  %v22163_v31 = vshll.u32 %v20542_v14, 16 }
 0x880   :  { %11824 = vmatmul.mubr.bf16.gmra.mrb[212].mxu0 %v20234_v26  ;;  %v16429_v26 = vld [vmem:[%s21910_s11 + $0x284] ss:$8 sps:$4 sm:$0xff]  }
 0x881   :  { %11833 = vmatprep.mubr.bf16.mxu0 %v20266_v34  ;;  %11897 = vmatpush1.bf16.msra.mxu0 %v16421_v17  ;;  %v21980_v34 = vshll.u32 %v20468_v43, 16  ;;  %v20545_v17 = vsel %vm2639_vm7, %v9208_v13, %v9212_v10  ;;  %v8669_v13 = vrot.slane %v8667_v0, 4  ;;  %v9330_v0 = vrot.slane %v20556_v55, 4 }
 0x882   :  { %11898 = vmatprep.subr.bf16.mxu0 %v16426_v35  ;;  %v20549_v35 = vor.u32 %v9212_v10, %v21979_v12  ;;  %v20562_v10 = vld [vmem:[#allocation3 + $0x68] sm:$0xff] }
 0x883   :  { %v9220_v25 = vrot.slane %v21980_v34, 1  ;;  %v9326_v34 = vrot.slane %v20540_v44, 4 }
 0x885   :  { %11899 = vmatpush1.bf16.msra.mxu0 %v16424_v21  ;;  %v20536_v36 = vor.u32 %v9220_v25, %v21982_v6  ;;  %v16433_v21 = vld [vmem:[%s21910_s11 + $0x2a0] ss:$8 sps:$4 sm:$0xff]   ;;  %v20596_v15 = vsel %vm2030_vm13, %v9326_v34, %v9330_v0 }
 0x886   :  { %11900 = vmatprep.subr.bf16.mxu0 %v16429_v26  ;;  %v8655_v26 = vshrl.u32 %v8492_v58, 16  ;;  %v8751_v58 = vrot.slane %v8709_v8, 4 }
 0x888   :  { %11834 = vmatmul.mubr.bf16.gmra.mrb[216].mxu0 %v20274_v18  ;;  %v20532_v18 = vsel %vm2639_vm7, %v9216_v29, %v9220_v25  ;;  %v21986_v29 = vrot.slane %v20527_v4, 4  ;;  %v9320_v25 = vrot.slane %v20529_v19, 4  ;;  %v20579_v45 = vrot.slane %v8655_v26, 3 }
 0x889   :  { %11843 = vmatprep.mubr.bf16.mxu0 %v20306_v1  ;;  %11901 = vmatpush1.bf16.msra.mxu0 %v16427_v3  ;;  %v20538_v1 = vld [vmem:[#allocation3 + $0x38] sm:$0xff]  ;;  %v21991_v26 = vrot.slane %v20562_v10, 4 }
 0x88a   :  { %11902 = vmatprep.subr.bf16.mxu0 %v16432_v63  ;;  %v20554_v3 = vld [vmem:[#allocation3 + $0x18] sm:$0xff]  ;;  %v20558_v63 = vld [vmem:[#allocation3 + $0x50] sm:$0xff]  ;;  %v21989_v12 = vrot.slane %v20538_v1, 4  ;;  %v20589_v8 = vsel %vm2030_vm13, %v9320_v25, %v9324_v39  ;;  %v21999_v23 = vshrl.u32 %v20538_v1, 16 }
 0x88b   :  { %v21996_v6 = vrot.slane %v20554_v3, 4  ;;  %v9328_v56 = vrot.slane %v20558_v63, 4 }
 0x88d   :  { %11903 = vmatpush1.bf16.msra.mxu0 %v16430_v24  ;;  %v20576_v24 = vsel %vm2030_vm13, %v21986_v29, %v9320_v25  ;;  %v20593_v29 = vrot.slane %v8658_v53, 4  ;;  %v16436_v25 = vld [vmem:[%s21910_s11 + $0x2b0] ss:$8 sps:$4 sm:$0xff]   ;;  %v20605_v5 = vsel %vm2030_vm13, %v9324_v39, %v9328_v56  ;;  %v20622_v39 = vsel %vm2030_vm13, %v8751_v58, %v21996_v6 }
 0x88e   :  { %11904 = vmatprep.subr.bf16.mxu0 %v16435_v50  ;;  %v20586_v50 = vsel %vm2030_vm13, %v21989_v12, %v9326_v34  ;;  %v8670_v12 = vor.u32 %v8669_v13, %v8666_v51  ;;  %v20613_v34 = vsel %vm2030_vm13, %v9330_v0, %v21991_v26  ;;  %v21998_v53 = vshll.u32 %v20527_v4, 16  ;;  %v16439_v0 = vld [vmem:[%s21910_s11 + $0x2c0] ss:$8 sps:$4 sm:$0xff]  }
 0x88f   :  { %22153 = vst [vmem:[#allocation51_spill] sm:$0xff] %v20613_v34  ;;  %v21997_v13 = vshrl.u32 %v20527_v4, 16  ;;  %v22165_v34 = vshll.u32 %v20556_v55, 16 }
 0x890   :  { %11844 = vmatmul.mubr.bf16.gmra.mrb[220].mxu0 %v20314_v57  ;;  %v16441_v57 = vld [vmem:[%s21910_s11 + $0x2c4] ss:$8 sps:$4 sm:$0xff]   ;;  %v8671_v58 = vsel %vm1586_vm1, %v20371_v11, %v8670_v12  ;;  %v9422_v54 = vrot.slane %v21998_v53, 5  ;;  %v16442_v11 = vld [vmem:[%s21910_s11 + $0x2d0] ss:$8 sps:$4 sm:$0xff]   ;;  %v22159_v53 = vshrl.u32 %v20540_v44, 16 }
 0x891   :  { %11853 = vmatprep.mubr.bf16.mxu0 %v20348_v22  ;;  %11905 = vmatpush1.bf16.msra.mxu0 %v16433_v21  ;;  %v20616_v22 = vsel %vm2030_vm13, %v9328_v56, %v9332_v33  ;;  %v21994_v21 = vrot.slane %v20581_v46, 4 }
 0x892   :  { %11906 = vmatprep.subr.bf16.mxu0 %v16438_v49  ;;  %22154 = vst [vmem:[#allocation52_spill] sm:$0xff] %v20616_v22  ;;  %v9277_v49 = vld [vmem:[#allocation3 + $0x28] sm:$0xff] }
 0x893   :  { %v20631_v56 = vsel %vm2030_vm13, %v9332_v33, %v21994_v21  ;;  %v16444_v33 = vld [vmem:[%s21910_s11 + $0x2d4] ss:$8 sps:$4 sm:$0xff]   ;;  %v22002_v21 = vshrl.u32 %v20529_v19, 16  ;;  %v9434_v51 = vshrl.u32 %v9277_v49, 16  ;;  %v9437_v40 = vshll.u32 %v9277_v49, 16 }
 0x894   :  { %22155 = vst [vmem:[#allocation53_spill] sm:$0xff] %v20631_v56  ;;  %v9466_v56 = vrot.slane %v22163_v31, 5 }
 0x895   :  { %11907 = vmatpush1.bf16.msra.mxu0 %v16436_v25  ;;  %v9419_v25 = vrot.slane %v21997_v13, 4  ;;  %v9439_v12 = vrot.slane %v9437_v40, 5  ;;  %v16447_v13 = vld [vmem:[%s21910_s11 + $0x2e4] ss:$8 sps:$4 sm:$0xff]   ;;  %v22157_v40 = vshll.u32 %v20538_v1, 16 }
 0x896   :  { %11908 = vmatprep.subr.bf16.mxu0 %v16441_v57  ;;  %v9454_v57 = vrot.slane %v21999_v23, 4  ;;  %v22158_v23 = vshll.u32 %v20529_v19, 16 }
 0x897   :  { %v20670_v26 = vor.u32 %v9422_v54, %v9419_v25  ;;  %v22161_v25 = vshrl.u32 %v20542_v14, 16 }
 0x898   :  { %11854 = vmatmul.mubr.bf16.gmra.mrb[224].mxu0 %v20356_v2  ;;  %v9436_v2 = vrot.slane %v9434_v51, 4  ;;  %v9457_v51 = vrot.slane %v22157_v40, 5  ;;  %v9448_v6 = vrot.slane %v22158_v23, 5  ;;  %v16445_v40 = vld [vmem:[%s21910_s11 + $0x2e0] ss:$8 sps:$4 sm:$0xff]  }
 0x899   :  { %11863 = vmatprep.mubr.bf16.mxu0 %v20377_v42  ;;  %11909 = vmatpush1.bf16.msra.mxu0 %v16439_v0  ;;  %22156 = vst [vmem:[#allocation54_spill] sm:$0xff] %v20670_v26  ;;  %v9472_v42 = vrot.slane %v22159_v53, 4  ;;  %v22160_v0 = vshll.u32 %v20540_v44, 16  ;;  %v9463_v49 = vrot.slane %v22161_v25, 4  ;;  %v16450_v53 = vld [vmem:[%s21910_s11 + $0x2f4] ss:$8 sps:$4 sm:$0xff]  }
 0x89a   :  { %11910 = vmatprep.subr.bf16.mxu0 %v16444_v33  ;;  %v9445_v33 = vrot.slane %v22002_v21, 4  ;;  %v20689_v21 = vor.u32 %v9439_v12, %v9436_v2  ;;  %v9458_v9 = vor.u32 %v9457_v51, %v9454_v57  ;;  %v9493_v12 = vrot.slane %v22165_v34, 5  ;;  %v20701_v2 = vld [vmem:[#allocation3 + $0x78] sm:$0xff] }
 0x89b   :  { %v9475_v54 = vrot.slane %v22160_v0, 5  ;;  %22166 = vst [vmem:[#allocation56_spill] sm:$0xff] %v20701_v2  ;;  %v22169_v57 = vshrl.u32 %v20558_v63, 16 }
 0x89c   :  { %22162 = vst [vmem:[#allocation55_spill] sm:$0xff] %v20689_v21  ;;  %v9449_v23 = vor.u32 %v9448_v6, %v9445_v33  ;;  %v20705_v6 = vsel %vm3114_vm9, %v20689_v21, %v9458_v9  ;;  %v22171_v33 = vshll.u32 %v20558_v63, 16  ;;  %v8756_v21 = vrot.slane %v20419_v48, 4 }
 0x89d   :  { %11911 = vmatpush1.bf16.msra.mxu0 %v16442_v11  ;;  %v9476_v25 = vor.u32 %v9475_v54, %v9472_v42  ;;  %v22164_v11 = vshrl.u32 %v20556_v55, 16  ;;  %22167 = vst [vmem:[#allocation57_spill] sm:$0xff] %v20705_v6  ;;  %v9481_v42 = vrot.slane %v22169_v57, 4  ;;  %v20754_v6 = vld [vmem:[#allocation3 + $0x98] sm:$0xff] }
 0x89e   :  { %11912 = vmatprep.subr.bf16.mxu0 %v16447_v13  ;;  %v20709_v31 = vsel %vm3114_vm9, %v20670_v26, %v9449_v23  ;;  %v9467_v13 = vor.u32 %v9466_v56, %v9463_v49  ;;  %v9484_v54 = vrot.slane %v22171_v33, 5  ;;  %v22173_v56 = vor.u32 %v20593_v29, %v20579_v45  ;;  %22182 = vst [vmem:[#allocation63_spill] sm:$0xff] %v20754_v6 }
 0x89f   :  { %v9490_v22 = vrot.slane %v22164_v11, 4  ;;  %22168 = vst [vmem:[#allocation58_spill] sm:$0xff] %v20709_v31  ;;  %v20715_v51 = vsel %vm3114_vm9, %v9458_v9, %v9476_v25  ;;  %v22172_v11 = vshrl.u32 %v20562_v10, 16  ;;  %v16448_v9 = vld [vmem:[%s21910_s11 + $0x2f0] ss:$8 sps:$4 sm:$0xff]   ;;  %v22178_v33 = vshll.u32 %v20564_v30, 16 }
 0x8a0   :  { %11864 = vmatmul.mubr.bf16.gmra.mrb[228].mxu0 %v20381_v52  ;;  %22170 = vst [vmem:[#allocation59_spill] sm:$0xff] %v20715_v51  ;;  %v8662_v49 = vsel %vm1586_vm1, %v20373_v37, %v22173_v56  ;;  %v20729_v52 = vld [vmem:[#allocation3 + $0x88] sm:$0xff]  ;;  %v16453_v37 = vld [vmem:[%s21910_s11 + $0x304] ss:$8 sps:$4 sm:$0xff]   ;;  %v9485_v29 = vor.u32 %v9484_v54, %v9481_v42  ;;  %v20747_v56 = vld [vmem:[#allocation3 + $0x80] sm:$0xff]  ;;  %v22181_v51 = vshll.u32 %v20581_v46, 16 }
 0x8a1   :  { %v9494_v34 = vor.u32 %v9493_v12, %v9490_v22  ;;  %v9508_v0 = vrot.slane %v22172_v11, 4  ;;  %11873 = vmatprep.mubr.bf16.mxu0 %v8671_v58  ;;  %11913 = vmatpush1.bf16.msra.mxu0 %v16445_v40  ;;  %v20732_v22 = vsel %vm3114_vm9, %v9449_v23, %v9467_v13  ;;  %v22175_v12 = vshll.u32 %v20562_v10, 16  ;;  %22179 = vst [vmem:[#allocation62_spill] sm:$0xff] %v20747_v56 }
 0x8a2   :  { %22174 = vst [vmem:[#allocation60_spill] sm:$0xff] %v20732_v22  ;;  %v22176_v58 = vshrl.u32 %v20564_v30, 16  ;;  %11914 = vmatprep.subr.bf16.mxu0 %v16450_v53  ;;  %v9502_v11 = vrot.slane %v22178_v33, 5  ;;  %v9524_v23 = vshrl.u32 %v20701_v2, 16  ;;  %v9527_v22 = vshll.u32 %v20701_v2, 16 }
 0x8a3   :  { %v9511_v57 = vrot.slane %v22175_v12, 5  ;;  %v20742_v45 = vsel %vm3114_vm9, %v9476_v25, %v9494_v34  ;;  %v22180_v53 = vshrl.u32 %v20581_v46, 16  ;;  %v9520_v31 = vrot.slane %v22181_v51, 5 }
 0x8a4   :  { %v9499_v40 = vrot.slane %v22176_v58, 4  ;;  %22177 = vst [vmem:[#allocation61_spill] sm:$0xff] %v20742_v45  ;;  %v20757_v25 = vsel %vm3114_vm9, %v9467_v13, %v9485_v29  ;;  %v9526_v54 = vrot.slane %v9524_v23, 4  ;;  %v9542_v33 = vshrl.u32 %v20729_v52, 16  ;;  %v20760_v45 = vld [vmem:[#allocation3 + $0x90] sm:$0xff] }
 0x8a5   :  { %v9512_v12 = vor.u32 %v9511_v57, %v9508_v0  ;;  %v9517_v58 = vrot.slane %v22180_v53, 4  ;;  %22183 = vst [vmem:[#allocation64_spill] sm:$0xff] %v20757_v25  ;;  %11915 = vmatpush1.bf16.msra.mxu0 %v16448_v9  ;;  %22184 = vst [vmem:[#allocation65_spill] sm:$0xff] %v20760_v45  ;;  %v9529_v57 = vrot.slane %v9527_v22, 5  ;;  %v9545_v26 = vshll.u32 %v20729_v52, 16 }
 0x8a6   :  { %v9503_v42 = vor.u32 %v9502_v11, %v9499_v40  ;;  %12007 = vmatprep.subr.bf16.mxu0 %v16453_v37  ;;  %v9544_v13 = vrot.slane %v9542_v33, 4  ;;  %v9533_v40 = vshrl.u32 %v20747_v56, 16  ;;  %v9536_v11 = vshll.u32 %v20747_v56, 16  ;;  %v8708_v23 = vld [vmem:[#allocation3] sm:$0xf0] }
 0x8a7   :  { %v20763_v0 = vsel %vm3114_vm9, %v9494_v34, %v9512_v12  ;;  %v9521_v53 = vor.u32 %v9520_v31, %v9517_v58  ;;  %v9530_v9 = vor.u32 %v9529_v57, %v9526_v54  ;;  %v9547_v34 = vrot.slane %v9545_v26, 5  ;;  %v20775_v31 = vld [vmem:[#allocation3 + $0x10] sm:$0xff] }
 0x8a8   :  { %22185 = vst [vmem:[#allocation66_spill] sm:$0xff] %v20763_v0  ;;  %v20767_v51 = vsel %vm3114_vm9, %v9485_v29, %v9503_v42  ;;  %v9560_v22 = vshrl.u32 %v20754_v6, 16  ;;  %11874 = vmatmul.mubr.bf16.gmra.mrb[232].mxu0 %v8662_v49  ;;  %v9535_v37 = vrot.slane %v9533_v40, 4  ;;  %v9538_v58 = vrot.slane %v9536_v11, 5 }
 0x8a9   :  { %22186 = vst [vmem:[#allocation33_spill] sm:$0xff] %v20767_v51  ;;  %v20772_v25 = vsel %vm3114_vm9, %v9503_v42, %v9521_v53  ;;  %v9563_v29 = vshll.u32 %v20754_v6, 16  ;;  %v9551_v33 = vshrl.u32 %v20760_v45, 16  ;;  %11916 = vmatprep.mubr.bf16.mxu0 %v20622_v39  ;;  %v20781_v51 = vsel %vm3114_vm9, %v9512_v12, %v9530_v9 }
 0x8aa   :  { %22187 = vst [vmem:[#allocation34_spill] sm:$0xff] %v20772_v25  ;;  %v9548_v54 = vor.u32 %v9547_v34, %v9544_v13  ;;  %v8748_v42 = vrot.slane %v8708_v23, 4  ;;  %v9539_v57 = vor.u32 %v9538_v58, %v9535_v37  ;;  %v9562_v26 = vrot.slane %v9560_v22, 4  ;;  %v16451_v13 = vld [vmem:[%s21910_s11 + $0x300] ss:$8 sps:$4 sm:$0xff]   ;;  %v20810_v58 = vld [vmem:[#allocation3 + $0x20] sm:$0xff] }
 0x8ab   :  { %v9565_v25 = vrot.slane %v9563_v29, 5  ;;  %v8749_v49 = vrot.slane %v20775_v31, 4  ;;  %v9553_v40 = vrot.slane %v9551_v33, 4  ;;  %v9554_v11 = vshll.u32 %v20760_v45, 16  ;;  %v16454_v29 = vld [vmem:[%s21910_s11 + $0x310] ss:$8 sps:$4 sm:$0xff]  }
 0x8ac   :  { %v20785_v0 = vsel %vm3114_vm9, %v9530_v9, %v9548_v54  ;;  %v20790_v39 = vsel %vm3114_vm9, %v9521_v53, %v9539_v57  ;;  %v16456_v9 = vld [vmem:[%s21910_s11 + $0x314] ss:$8 sps:$4 sm:$0xff]   ;;  %v20815_v33 = vld [vmem:[#allocation3 + $0x38] sm:$0xff] }
 0x8ad   :  { %22188 = vst [vmem:[#allocation35_spill] sm:$0xff] %v20790_v39  ;;  %v20792_v12 = vor.u32 %v9565_v25, %v9562_v26  ;;  %v9556_v23 = vrot.slane %v9554_v11, 5  ;;  %v8750_v22 = vsel %vm2030_vm13, %v8748_v42, %v8749_v49  ;;  %v22192_v25 = vrot.slane %v20554_v3, 4  ;;  %v16459_v42 = vld [vmem:[%s21910_s11 + $0x324] ss:$8 sps:$4 sm:$0xff]  }
 0x8ae   :  { %v8754_v26 = vrot.slane %v20810_v58, 4  ;;  %v16457_v11 = vld [vmem:[%s21910_s11 + $0x320] ss:$8 sps:$4 sm:$0xff]  }
 0x8af   :  { %22189 = vst [vmem:[#allocation36_spill] sm:$0xff] %v20792_v12  ;;  %v20802_v34 = vsel %vm3114_vm9, %v9548_v54, %v20792_v12  ;;  %v20805_v37 = vor.u32 %v9556_v23, %v9553_v40  ;;  %v8757_v53 = vsel %vm2030_vm13, %v22192_v25, %v8756_v21  ;;  %v8760_v40 = vrot.slane %v20815_v33, 4 }
 0x8b0   :  { %22190 = vst [vmem:[#allocation39_spill] sm:$0xff] %v20802_v34  ;;  %11917 = vmatmul.mubr.bf16.vlgmr.msra.gmra.mrb[200].mxu0 %v8750_v22  ;;  %v9690_v23 = vrot.slane %v20729_v52, 5  ;;  %v22011_v22 = vrot.slane %v20747_v56, 5  ;;  %v22010_v25 = vrot.slane %v20754_v6, 5  ;;  %v16460_v52 = vld [vmem:[%s21910_s11 + $0x330] ss:$8 sps:$4 sm:$0xff]  }
 0x8b1   :  { %22191 = vst [vmem:[#allocation42_spill] sm:$0xff] %v20805_v37  ;;  %12008 = vmatpush1.bf16.msra.mxu0 %v16451_v13  ;;  %11926 = vmatprep.mubr.bf16.mxu0 %v8757_v53  ;;  %v20819_v54 = vsel %vm3114_vm9, %v9539_v57, %v20805_v37  ;;  %v16462_v57 = vld [vmem:[%s21910_s11 + $0x334] ss:$8 sps:$4 sm:$0xff]   ;;  %v22008_v13 = vrot.slane %v20701_v2, 5  ;;  %v22009_v53 = vrot.slane %v20760_v45, 5  ;;  %v20881_v45 = vld [vmem:[#allocation3 + $0x58] sm:$0xff] }
 0x8b2   :  { %22193 = vst [vmem:[#allocation43_spill] sm:$0xff] %v20819_v54  ;;  %12009 = vmatprep.subr.bf16.mxu0 %v16456_v9  ;;  %v8755_v9 = vsel %vm2030_vm13, %v8749_v49, %v8754_v26  ;;  %v20849_v49 = vld [vmem:[#allocation3 + $0x48] sm:$0xff]  ;;  %v20896_v6 = vld [vmem:[#allocation3 + $0x50] sm:$0xff]  ;;  %v8862_v2 = vshll.u32 %v20554_v3, 16 }
 0x8b3   :  { %v20844_v37 = vsel %vm3350_vm11, %v22008_v13, %v9690_v23  ;;  %v8764_v13 = vrot.slane %v20849_v49, 4 }
 0x8b4   :  { %22194 = vst [vmem:[#allocation47_spill] sm:$0xff] %v20844_v37 }
 0x8b5   :  { %12010 = vmatpush1.bf16.msra.mxu0 %v16454_v29  ;;  %v8761_v29 = vsel %vm2030_vm13, %v8756_v21, %v8760_v40  ;;  %v20861_v21 = vsel %vm3350_vm11, %v22011_v22, %v22009_v53  ;;  %v16468_v53 = vld [vmem:[%s21910_s11 + $0x354] ss:$8 sps:$4 sm:$0xff]  }
 0x8b6   :  { %12011 = vmatprep.subr.bf16.mxu0 %v16459_v42  ;;  %v20839_v42 = vld [vmem:[#allocation3 + $0x30] sm:$0xff]  ;;  %22196 = vst [vmem:[#allocation38_spill] sm:$0xff] %v20861_v21  ;;  %v20876_v22 = vld [vmem:[#allocation3 + $0x40] sm:$0xff]  ;;  %v20901_v21 = vld [vmem:[#allocation3 + $0x68] sm:$0xff] }
 0x8b8   :  { %11927 = vmatmul.mubr.bf16.gmra.mrb[204].mxu0 %v8755_v9  ;;  %v20854_v9 = vsel %vm3350_vm11, %v9690_v23, %v22010_v25  ;;  %v16463_v23 = vld [vmem:[%s21910_s11 + $0x340] ss:$8 sps:$4 sm:$0xff]   ;;  %v8765_v25 = vsel %vm2030_vm13, %v8760_v40, %v8764_v13 }
 0x8b9   :  { %11936 = vmatprep.mubr.bf16.mxu0 %v8761_v29  ;;  %12012 = vmatpush1.bf16.msra.mxu0 %v16457_v11  ;;  %22195 = vst [vmem:[#allocation37_spill] sm:$0xff] %v20854_v9  ;;  %v16465_v11 = vld [vmem:[%s21910_s11 + $0x344] ss:$8 sps:$4 sm:$0xff]   ;;  %v8758_v29 = vrot.slane %v20839_v42, 4  ;;  %v16469_v40 = vld [vmem:[%s21910_s11 + $0x360] ss:$8 sps:$4 sm:$0xff]  }
 0x8ba   :  { %12013 = vmatprep.subr.bf16.mxu0 %v16462_v57  ;;  %v20916_v9 = vld [vmem:[#allocation3 + $0x60] sm:$0xff] }
 0x8bb   :  { %v8759_v57 = vsel %vm2030_vm13, %v8754_v26, %v8758_v29  ;;  %v8762_v26 = vrot.slane %v20876_v22, 4  ;;  %v8770_v56 = vrot.slane %v20916_v9, 4 }
 0x8bd   :  { %12014 = vmatpush1.bf16.msra.mxu0 %v16460_v52  ;;  %v16466_v52 = vld [vmem:[%s21910_s11 + $0x350] ss:$8 sps:$4 sm:$0xff]  }
 0x8be   :  { %12015 = vmatprep.subr.bf16.mxu0 %v16465_v11  ;;  %v16471_v11 = vld [vmem:[%s21910_s11 + $0x364] ss:$8 sps:$4 sm:$0xff]  }
 0x8c0   :  { %11937 = vmatmul.mubr.bf16.gmra.mrb[208].mxu0 %v8759_v57  ;;  %v8768_v57 = vrot.slane %v20881_v45, 4 }
 0x8c1   :  { %11946 = vmatprep.mubr.bf16.mxu0 %v8765_v25  ;;  %12016 = vmatpush1.bf16.msra.mxu0 %v16463_v23  ;;  %v16474_v25 = vld [vmem:[%s21910_s11 + $0x374] ss:$8 sps:$4 sm:$0xff]  }
 0x8c2   :  { %12017 = vmatprep.subr.bf16.mxu0 %v16468_v53  ;;  %v8763_v53 = vsel %vm2030_vm13, %v8758_v29, %v8762_v26  ;;  %v8769_v23 = vsel %vm2030_vm13, %v8764_v13, %v8768_v57  ;;  %v8766_v29 = vrot.slane %v20896_v6, 4  ;;  %v16475_v13 = vld [vmem:[%s21910_s11 + $0x380] ss:$8 sps:$4 sm:$0xff]  }
 0x8c5   :  { %12018 = vmatpush1.bf16.msra.mxu0 %v16466_v52  ;;  %v16472_v52 = vld [vmem:[%s21910_s11 + $0x370] ss:$8 sps:$4 sm:$0xff]  }
 0x8c6   :  { %12019 = vmatprep.subr.bf16.mxu0 %v16471_v11  ;;  %v16477_v11 = vld [vmem:[%s21910_s11 + $0x384] ss:$8 sps:$4 sm:$0xff]  }
 0x8c8   :  { %11947 = vmatmul.mubr.bf16.gmra.mrb[212].mxu0 %v8763_v53  ;;  %v8772_v53 = vrot.slane %v20901_v21, 4 }
 0x8c9   :  { %11956 = vmatprep.mubr.bf16.mxu0 %v8769_v23  ;;  %12020 = vmatpush1.bf16.msra.mxu0 %v16469_v40  ;;  %v16480_v40 = vld [vmem:[%s21910_s11 + $0x394] ss:$8 sps:$4 sm:$0xff]  }
 0x8ca   :  { %12021 = vmatprep.subr.bf16.mxu0 %v16474_v25  ;;  %v8767_v25 = vsel %vm2030_vm13, %v8762_v26, %v8766_v29  ;;  %v8773_v23 = vsel %vm2030_vm13, %v8768_v57, %v8772_v53  ;;  %v16481_v26 = vld [vmem:[%s21910_s11 + $0x3a0] ss:$8 sps:$4 sm:$0xff]   ;;  %v16486_v57 = vld [vmem:[%s21910_s11 + $0x3b4] ss:$8 sps:$4 sm:$0xff]  }
 0x8cd   :  { %12022 = vmatpush1.bf16.msra.mxu0 %v16472_v52  ;;  %v16478_v52 = vld [vmem:[%s21910_s11 + $0x390] ss:$8 sps:$4 sm:$0xff]  }
 0x8ce   :  { %12023 = vmatprep.subr.bf16.mxu0 %v16477_v11  ;;  %v16483_v11 = vld [vmem:[%s21910_s11 + $0x3a4] ss:$8 sps:$4 sm:$0xff]  }
 0x8d0   :  { %11957 = vmatmul.mubr.bf16.gmra.mrb[216].mxu0 %v8767_v25 }
 0x8d1   :  { %11966 = vmatprep.mubr.bf16.mxu0 %v8773_v23  ;;  %12024 = vmatpush1.bf16.msra.mxu0 %v16475_v13  ;;  %v8771_v13 = vsel %vm2030_vm13, %v8766_v29, %v8770_v56  ;;  %v20935_v23 = vld [vmem:[#allocation3 + $0x70] sm:$0xff] }
 0x8d2   :  { %12025 = vmatprep.subr.bf16.mxu0 %v16480_v40  ;;  %v22197_v40 = vrot.slane %v20289_v20, 4  ;;  %v8774_v29 = vrot.slane %v20935_v23, 4  ;;  %v16487_v20 = vld [vmem:[%s21910_s11 + $0x3c0] ss:$8 sps:$4 sm:$0xff]  }
 0x8d4   :  { %v8777_v25 = vsel %vm2030_vm13, %v8772_v53, %v22197_v40  ;;  %v16492_v53 = vld [vmem:[%s21910_s11 + $0x3d4] ss:$8 sps:$4 sm:$0xff]   ;;  %v16495_v40 = vld [vmem:[%s21910_s11 + $0x3e4] ss:$8 sps:$4 sm:$0xff]  }
 0x8d5   :  { %12026 = vmatpush1.bf16.msra.mxu0 %v16478_v52  ;;  %v16484_v52 = vld [vmem:[%s21910_s11 + $0x3b0] ss:$8 sps:$4 sm:$0xff]  }
 0x8d6   :  { %12027 = vmatprep.subr.bf16.mxu0 %v16483_v11  ;;  %v16489_v11 = vld [vmem:[%s21910_s11 + $0x3c4] ss:$8 sps:$4 sm:$0xff]  }
 0x8d8   :  { %11967 = vmatmul.mubr.bf16.gmra.mrb[220].mxu0 %v8771_v13  ;;  %v16490_v13 = vld [vmem:[%s21910_s11 + $0x3d0] ss:$8 sps:$4 sm:$0xff]  }
 0x8d9   :  { %11976 = vmatprep.mubr.bf16.mxu0 %v8777_v25  ;;  %12028 = vmatpush1.bf16.msra.mxu0 %v16481_v26  ;;  %v8775_v26 = vsel %vm2030_vm13, %v8770_v56, %v8774_v29  ;;  %v8778_v25 = vrot.slane %v20323_v47, 4  ;;  %v8823_v56 = vld [vmem:[#allocation3 + $0x8] sm:$0x80] }
 0x8da   :  { %12029 = vmatprep.subr.bf16.mxu0 %v16486_v57  ;;  %v8727_v57 = vld [vmem:[#allocation3 + $0x98] sm:$0xf]  ;;  %v8855_v37 = vshrl.u32 %v8823_v56, 16  ;;  %v8822_v56 = vld [vmem:[#allocation3] sm:$0x80] }
 0x8dd   :  { %12030 = vmatpush1.bf16.msra.mxu0 %v16484_v52  ;;  %v8784_v52 = vrot.slane %v8727_v57, 4  ;;  %v8726_v57 = vld [vmem:[#allocation3 + $0x90] sm:$0xf] }
 0x8de   :  { %12031 = vmatprep.subr.bf16.mxu0 %v16489_v11  ;;  %v8859_v11 = vshrl.u32 %v20554_v3, 16 }
 0x8e0   :  { %11977 = vmatmul.mubr.bf16.gmra.mrb[224].mxu0 %v8775_v26  ;;  %v22198_v26 = vrot.slane %v20329_v59, 4  ;;  %v8847_v59 = vshrl.u32 %v20775_v31, 16 }
 0x8e1   :  { %11986 = vmatprep.mubr.bf16.mxu0 %v20390_v38  ;;  %12032 = vmatpush1.bf16.msra.mxu0 %v16487_v20  ;;  %v16493_v38 = vld [vmem:[%s21910_s11 + $0x3e0] ss:$8 sps:$4 sm:$0xff]   ;;  %v16498_v20 = vld [vmem:[%s21910_s11 + $0x3f4] ss:$8 sps:$4 sm:$0xff]  }
 0x8e2   :  { %12033 = vmatprep.subr.bf16.mxu0 %v16492_v53  ;;  %v8779_v53 = vsel %vm2030_vm13, %v8774_v29, %v8778_v25  ;;  %v8785_v47 = vsel %vm2030_vm13, %v22198_v26, %v8784_v52  ;;  %v16501_v29 = vld [vmem:[%s21910_s11 + $0x404] ss:$8 sps:$4 sm:$0xff]   ;;  %v8857_v52 = vrot.slane %v8855_v37, 7  ;;  %v22200_v37 = vshll.u32 %v20419_v48, 16 }
 0x8e5   :  { %12034 = vmatpush1.bf16.msra.mxu0 %v16490_v13  ;;  %v8861_v13 = vrot.slane %v8859_v11, 7 }
 0x8e6   :  { %12035 = vmatprep.subr.bf16.mxu0 %v16495_v40  ;;  %v16496_v40 = vld [vmem:[%s21910_s11 + $0x3f0] ss:$8 sps:$4 sm:$0xff]  }
 0x8e7   :  { %v8864_v26 = vor.u32 %v8862_v2, %v8861_v13  ;;  %v8867_v2 = vshrl.u32 %v20810_v58, 16 }
 0x8e8   :  { %11987 = vmatmul.mubr.bf16.gmra.mrb[228].mxu0 %v8779_v53  ;;  %v8782_v53 = vrot.slane %v8726_v57, 4  ;;  %v8850_v57 = vshll.u32 %v20775_v31, 16 }
 0x8e9   :  { %11996 = vmatprep.mubr.bf16.mxu0 %v8785_v47  ;;  %12036 = vmatpush1.bf16.msra.mxu0 %v16493_v38  ;;  %v8843_v38 = vshrl.u32 %v8822_v56, 16  ;;  %v8849_v47 = vrot.slane %v8847_v59, 7  ;;  %v8865_v12 = vsel %vm2235_vm10, %v8857_v52, %v8864_v26  ;;  %v8869_v59 = vrot.slane %v8867_v2, 7  ;;  %v16510_v2 = vld [vmem:[%s21910_s11 + $0x434] ss:$8 sps:$4 sm:$0xff]  }
 0x8ea   :  { %12037 = vmatprep.subr.bf16.mxu0 %v16498_v20  ;;  %v8783_v11 = vsel %vm2030_vm13, %v8778_v25, %v8782_v53  ;;  %v22199_v20 = vshrl.u32 %v20419_v48, 16  ;;  %v8891_v25 = vshrl.u32 %v20815_v33, 16  ;;  %v16504_v53 = vld [vmem:[%s21910_s11 + $0x414] ss:$8 sps:$4 sm:$0xff]   ;;  %v16502_v48 = vld [vmem:[%s21910_s11 + $0x410] ss:$8 sps:$4 sm:$0xff]  }
 0x8eb   :  { %v8845_v34 = vrot.slane %v8843_v38, 7  ;;  %v8852_v39 = vor.u32 %v8850_v57, %v8849_v47  ;;  %v8870_v56 = vshll.u32 %v20810_v58, 16  ;;  %v8883_v38 = vshrl.u32 %v20839_v42, 16  ;;  %v16505_v57 = vld [vmem:[%s21910_s11 + $0x420] ss:$8 sps:$4 sm:$0xff]  }
 0x8ec   :  { %v8877_v54 = vrot.slane %v22199_v20, 7  ;;  %v8893_v26 = vrot.slane %v8891_v25, 7  ;;  %v8907_v20 = vshrl.u32 %v20849_v49, 16 }
 0x8ed   :  { %12038 = vmatpush1.bf16.msra.mxu0 %v16496_v40 }
 0x8ee   :  { %12130 = vmatprep.subr.bf16.mxu0 %v16501_v29  ;;  %v8880_v40 = vor.u32 %v22200_v37, %v8877_v54  ;;  %v16499_v29 = vld [vmem:[%s21910_s11 + $0x400] ss:$8 sps:$4 sm:$0xff]  }
 0x8f0   :  { %11997 = vmatmul.mubr.bf16.gmra.mrb[232].mxu0 %v8783_v11  ;;  %v8881_v52 = vsel %vm2235_vm10, %v8861_v13, %v8880_v40  ;;  %v16507_v11 = vld [vmem:[%s21910_s11 + $0x424] ss:$8 sps:$4 sm:$0xff]   ;;  %v8885_v40 = vrot.slane %v8883_v38, 7 }
 0x8f1   :  { %12039 = vmatprep.mubr.bf16.mxu0 %v8865_v12  ;;  %v8853_v12 = vsel %vm2235_vm10, %v8845_v34, %v8852_v39  ;;  %v8894_v39 = vshll.u32 %v20815_v33, 16  ;;  %v8872_v34 = vor.u32 %v8870_v56, %v8869_v59  ;;  %v8899_v56 = vshrl.u32 %v20876_v22, 16 }
 0x8f3   :  { %v8896_v13 = vor.u32 %v8894_v39, %v8893_v26  ;;  %v8873_v37 = vsel %vm2235_vm10, %v8849_v47, %v8872_v34  ;;  %v16513_v47 = vld [vmem:[%s21910_s11 + $0x444] ss:$8 sps:$4 sm:$0xff]   ;;  %v16511_v39 = vld [vmem:[%s21910_s11 + $0x440] ss:$8 sps:$4 sm:$0xff]   ;;  %v16516_v34 = vld [vmem:[%s21910_s11 + $0x454] ss:$8 sps:$4 sm:$0xff]  }
 0x8f5   :  { %v8897_v25 = vsel %vm2235_vm10, %v8877_v54, %v8896_v13  ;;  %v8901_v13 = vrot.slane %v8899_v56, 7 }
 0x8f8   :  { %12040 = vmatmul.mubr.bf16.vlgmr.msra.gmra.mrb[200].mxu0 %v8853_v12  ;;  %v8886_v12 = vshll.u32 %v20839_v42, 16 }
 0x8f9   :  { %12131 = vmatpush1.bf16.msra.mxu0 %v16499_v29  ;;  %12049 = vmatprep.mubr.bf16.mxu0 %v8881_v52  ;;  %v8909_v29 = vrot.slane %v8907_v20, 7  ;;  %v8910_v52 = vshll.u32 %v20849_v49, 16 }
 0x8fa   :  { %12132 = vmatprep.subr.bf16.mxu0 %v16504_v53  ;;  %v16508_v53 = vld [vmem:[%s21910_s11 + $0x430] ss:$8 sps:$4 sm:$0xff]  }
 0x8fb   :  { %v8912_v54 = vor.u32 %v8910_v52, %v8909_v29  ;;  %v8939_v52 = vshrl.u32 %v20901_v21, 16 }
 0x8fd   :  { %12133 = vmatpush1.bf16.msra.mxu0 %v16502_v48  ;;  %v8888_v48 = vor.u32 %v8886_v12, %v8885_v40  ;;  %v8913_v20 = vsel %vm2235_vm10, %v8893_v26, %v8912_v54  ;;  %v8915_v12 = vshrl.u32 %v20896_v6, 16 }
 0x8fe   :  { %12134 = vmatprep.subr.bf16.mxu0 %v16507_v11  ;;  %v8923_v11 = vshrl.u32 %v20881_v45, 16 }
 0x8ff   :  { %v8889_v38 = vsel %vm2235_vm10, %v8869_v59, %v8888_v48  ;;  %v16519_v59 = vld [vmem:[%s21910_s11 + $0x464] ss:$8 sps:$4 sm:$0xff]   ;;  %v16522_v48 = vld [vmem:[%s21910_s11 + $0x474] ss:$8 sps:$4 sm:$0xff]   ;;  %v8917_v54 = vrot.slane %v8915_v12, 7 }
 0x900   :  { %12050 = vmatmul.mubr.bf16.gmra.mrb[204].mxu0 %v8873_v37  ;;  %v8902_v37 = vshll.u32 %v20876_v22, 16 }
 0x901   :  { %12059 = vmatprep.mubr.bf16.mxu0 %v8897_v25  ;;  %12135 = vmatpush1.bf16.msra.mxu0 %v16505_v57  ;;  %v8925_v57 = vrot.slane %v8923_v11, 7  ;;  %v8926_v25 = vshll.u32 %v20881_v45, 16 }
 0x902   :  { %12136 = vmatprep.subr.bf16.mxu0 %v16510_v2  ;;  %v16514_v2 = vld [vmem:[%s21910_s11 + $0x450] ss:$8 sps:$4 sm:$0xff]  }
 0x903   :  { %v8928_v26 = vor.u32 %v8926_v25, %v8925_v57  ;;  %v16523_v25 = vld [vmem:[%s21910_s11 + $0x480] ss:$8 sps:$4 sm:$0xff]  }
 0x905   :  { %12137 = vmatpush1.bf16.msra.mxu0 %v16508_v53  ;;  %v8904_v53 = vor.u32 %v8902_v37, %v8901_v13  ;;  %v8929_v11 = vsel %vm2235_vm10, %v8909_v29, %v8928_v26  ;;  %v8931_v37 = vshrl.u32 %v20916_v9, 16 }
 0x906   :  { %12138 = vmatprep.subr.bf16.mxu0 %v16513_v47  ;;  %v16517_v47 = vld [vmem:[%s21910_s11 + $0x460] ss:$8 sps:$4 sm:$0xff]  }
 0x907   :  { %v8905_v56 = vsel %vm2235_vm10, %v8885_v40, %v8904_v53  ;;  %v16525_v40 = vld [vmem:[%s21910_s11 + $0x484] ss:$8 sps:$4 sm:$0xff]   ;;  %v8933_v12 = vrot.slane %v8931_v37, 7 }
 0x908   :  { %12060 = vmatmul.mubr.bf16.gmra.mrb[208].mxu0 %v8889_v38  ;;  %v8918_v38 = vshll.u32 %v20896_v6, 16 }
 0x909   :  { %12069 = vmatprep.mubr.bf16.mxu0 %v8913_v20  ;;  %12139 = vmatpush1.bf16.msra.mxu0 %v16511_v39  ;;  %v8941_v39 = vrot.slane %v8939_v52, 7  ;;  %v8942_v20 = vshll.u32 %v20901_v21, 16  ;;  %v22201_v52 = vshrl.u32 %v20454_v60, 16 }
 0x90a   :  { %12140 = vmatprep.subr.bf16.mxu0 %v16516_v34  ;;  %v16520_v34 = vld [vmem:[%s21910_s11 + $0x470] ss:$8 sps:$4 sm:$0xff]  }
 0x90b   :  { %v8944_v29 = vor.u32 %v8942_v20, %v8941_v39  ;;  %v16529_v20 = vld [vmem:[%s21910_s11 + $0x4a0] ss:$8 sps:$4 sm:$0xff]  }
 0x90d   :  { %12141 = vmatpush1.bf16.msra.mxu0 %v16514_v2  ;;  %v8920_v2 = vor.u32 %v8918_v38, %v8917_v54  ;;  %v8945_v26 = vsel %vm2235_vm10, %v8925_v57, %v8944_v29  ;;  %v22202_v57 = vshll.u32 %v20454_v60, 16 }
 0x90e   :  { %12142 = vmatprep.subr.bf16.mxu0 %v16519_v59  ;;  %v16528_v59 = vld [vmem:[%s21910_s11 + $0x494] ss:$8 sps:$4 sm:$0xff]  }
 0x90f   :  { %v8921_v53 = vsel %vm2235_vm10, %v8901_v13, %v8920_v2  ;;  %v16531_v13 = vld [vmem:[%s21910_s11 + $0x4a4] ss:$8 sps:$4 sm:$0xff]  }
 0x910   :  { %12070 = vmatmul.mubr.bf16.gmra.mrb[212].mxu0 %v8905_v56  ;;  %v16526_v56 = vld [vmem:[%s21910_s11 + $0x490] ss:$8 sps:$4 sm:$0xff]  }
 0x911   :  { %12079 = vmatprep.mubr.bf16.mxu0 %v8929_v11  ;;  %12143 = vmatpush1.bf16.msra.mxu0 %v16517_v47  ;;  %v8957_v47 = vrot.slane %v22201_v52, 7  ;;  %v22204_v52 = vshll.u32 %v20462_v32, 16 }
 0x912   :  { %12144 = vmatprep.subr.bf16.mxu0 %v16522_v48  ;;  %v8934_v48 = vshll.u32 %v20916_v9, 16 }
 0x913   :  { %v8960_v38 = vor.u32 %v22202_v57, %v8957_v47 }
 0x914   :  { %v8936_v11 = vor.u32 %v8934_v48, %v8933_v12  ;;  %v16535_v48 = vld [vmem:[%s21910_s11 + $0x4c0] ss:$8 sps:$4 sm:$0xff]  }
 0x915   :  { %12145 = vmatpush1.bf16.msra.mxu0 %v16520_v34  ;;  %v8947_v34 = vshrl.u32 %v20935_v23, 16  ;;  %v8961_v29 = vsel %vm2235_vm10, %v8941_v39, %v8960_v38 }
 0x916   :  { %12146 = vmatprep.subr.bf16.mxu0 %v16525_v40  ;;  %v16534_v40 = vld [vmem:[%s21910_s11 + $0x4b4] ss:$8 sps:$4 sm:$0xff]   ;;  %v8937_v2 = vsel %vm2235_vm10, %v8917_v54, %v8936_v11  ;;  %v16537_v54 = vld [vmem:[%s21910_s11 + $0x4c4] ss:$8 sps:$4 sm:$0xff]   ;;  %v22205_v11 = vshrl.u32 %v20464_v41, 16 }
 0x917   :  { %v8949_v37 = vrot.slane %v8947_v34, 7 }
 0x918   :  { %12080 = vmatmul.mubr.bf16.gmra.mrb[216].mxu0 %v8921_v53  ;;  %v16532_v53 = vld [vmem:[%s21910_s11 + $0x4b0] ss:$8 sps:$4 sm:$0xff]   ;;  %v8965_v34 = vrot.slane %v22205_v11, 7  ;;  %v16553_v11 = vld [vmem:[%s21910_s11 + $0x520] ss:$8 sps:$4 sm:$0xff]  }
 0x919   :  { %12089 = vmatprep.mubr.bf16.mxu0 %v8945_v26  ;;  %12147 = vmatpush1.bf16.msra.mxu0 %v16523_v25  ;;  %v22203_v25 = vshrl.u32 %v20462_v32, 16  ;;  %v22206_v32 = vshrl.u32 %v20468_v43, 16 }
 0x91a   :  { %12148 = vmatprep.subr.bf16.mxu0 %v16528_v59  ;;  %v8950_v59 = vshll.u32 %v20935_v23, 16 }
 0x91b   :  { %v8973_v60 = vrot.slane %v22203_v25, 7  ;;  %v8989_v38 = vrot.slane %v22206_v32, 7  ;;  %v16541_v25 = vld [vmem:[%s21910_s11 + $0x4e0] ss:$8 sps:$4 sm:$0xff]  }
 0x91c   :  { %v8952_v26 = vor.u32 %v8950_v59, %v8949_v37  ;;  %v16546_v59 = vld [vmem:[%s21910_s11 + $0x4f4] ss:$8 sps:$4 sm:$0xff]   ;;  %v16559_v32 = vld [vmem:[%s21910_s11 + $0x540] ss:$8 sps:$4 sm:$0xff]  }
 0x91d   :  { %12149 = vmatpush1.bf16.msra.mxu0 %v16526_v56  ;;  %v8976_v39 = vor.u32 %v22204_v52, %v8973_v60  ;;  %v16540_v56 = vld [vmem:[%s21910_s11 + $0x4d4] ss:$8 sps:$4 sm:$0xff]   ;;  %v16549_v52 = vld [vmem:[%s21910_s11 + $0x504] ss:$8 sps:$4 sm:$0xff]  }
 0x91e   :  { %12150 = vmatprep.subr.bf16.mxu0 %v16531_v13  ;;  %v8953_v13 = vsel %vm2235_vm10, %v8933_v12, %v8952_v26  ;;  %v16543_v12 = vld [vmem:[%s21910_s11 + $0x4e4] ss:$8 sps:$4 sm:$0xff]  }
 0x91f   :  { %v8977_v57 = vsel %vm2235_vm10, %v8957_v47, %v8976_v39  ;;  %v22210_v39 = vshll.u32 %v20476_v28, 16 }
 0x920   :  { %12090 = vmatmul.mubr.bf16.gmra.mrb[220].mxu0 %v8937_v2 }
 0x921   :  { %12099 = vmatprep.mubr.bf16.mxu0 %v8961_v29  ;;  %12151 = vmatpush1.bf16.msra.mxu0 %v16529_v20  ;;  %v16538_v20 = vld [vmem:[%s21910_s11 + $0x4d0] ss:$8 sps:$4 sm:$0xff]   ;;  %v22208_v29 = vshll.u32 %v20468_v43, 16 }
 0x922   :  { %12152 = vmatprep.subr.bf16.mxu0 %v16534_v40  ;;  %v22207_v40 = vshll.u32 %v20464_v41, 16  ;;  %v16544_v43 = vld [vmem:[%s21910_s11 + $0x4f0] ss:$8 sps:$4 sm:$0xff]  }
 0x923   :  { %v8992_v47 = vor.u32 %v22208_v29, %v8989_v38  ;;  %v16567_v38 = vld [vmem:[%s21910_s11 + $0x564] ss:$8 sps:$4 sm:$0xff]   ;;  %v16577_v29 = vld [vmem:[%s21910_s11 + $0x5a0] ss:$8 sps:$4 sm:$0xff]  }
 0x924   :  { %v8968_v2 = vor.u32 %v22207_v40, %v8965_v34  ;;  %v16571_v40 = vld [vmem:[%s21910_s11 + $0x580] ss:$8 sps:$4 sm:$0xff]  }
 0x925   :  { %12153 = vmatpush1.bf16.msra.mxu0 %v16532_v53  ;;  %v8993_v41 = vsel %vm2235_vm10, %v8973_v60, %v8992_v47  ;;  %v16547_v60 = vld [vmem:[%s21910_s11 + $0x500] ss:$8 sps:$4 sm:$0xff]   ;;  %v16580_v47 = vld [vmem:[%s21910_s11 + $0x5b0] ss:$8 sps:$4 sm:$0xff]  }
 0x926   :  { %12154 = vmatprep.subr.bf16.mxu0 %v16537_v54  ;;  %v8969_v53 = vsel %vm2235_vm10, %v8949_v37, %v8968_v2  ;;  %v22209_v54 = vshrl.u32 %v20476_v28, 16  ;;  %v16819_v28 = vld [vmem:[#allocation3 + $0x28] sm:$0xff]  ;;  %v16579_v2 = vld [vmem:[%s21910_s11 + $0x5a4] ss:$8 sps:$4 sm:$0xff]  }
 0x928   :  { %12100 = vmatmul.mubr.bf16.gmra.mrb[224].mxu0 %v8953_v13  ;;  %v8981_v26 = vrot.slane %v22209_v54, 7  ;;  %v16550_v13 = vld [vmem:[%s21910_s11 + $0x510] ss:$8 sps:$4 sm:$0xff]  }
 0x929   :  { %12109 = vmatprep.mubr.bf16.mxu0 %v8977_v57  ;;  %12155 = vmatpush1.bf16.msra.mxu0 %v16535_v48  ;;  %v16561_v57 = vld [vmem:[%s21910_s11 + $0x544] ss:$8 sps:$4 sm:$0xff]   ;;  %v16586_v54 = vld [vmem:[%s21910_s11 + $0x5d0] ss:$8 sps:$4 sm:$0xff]  }
 0x92a   :  { %12156 = vmatprep.subr.bf16.mxu0 %v16540_v56  ;;  %v8984_v37 = vor.u32 %v22210_v39, %v8981_v26  ;;  %v16552_v56 = vld [vmem:[%s21910_s11 + $0x514] ss:$8 sps:$4 sm:$0xff]   ;;  %v16591_v26 = vld [vmem:[%s21910_s11 + $0x5e4] ss:$8 sps:$4 sm:$0xff]  }
 0x92b   :  { %v16822_v39 = vld [vmem:[#allocation3 + $0x80] sm:$0xff] }
 0x92c   :  { %v8985_v48 = vsel %vm2235_vm10, %v8965_v34, %v8984_v37  ;;  %v16556_v34 = vld [vmem:[%s21910_s11 + $0x530] ss:$8 sps:$4 sm:$0xff]   ;;  %v16823_v37 = vld [vmem:[#allocation3 + $0x98] sm:$0xff] }
 0x92d   :  { %12157 = vmatpush1.bf16.msra.mxu0 %v16538_v20  ;;  %v16565_v20 = vld [vmem:[%s21910_s11 + $0x560] ss:$8 sps:$4 sm:$0xff]  }
 0x92e   :  { %12158 = vmatprep.subr.bf16.mxu0 %v16543_v12  ;;  %v16573_v12 = vld [vmem:[%s21910_s11 + $0x584] ss:$8 sps:$4 sm:$0xff]  }
 0x930   :  { %12110 = vmatmul.mubr.bf16.gmra.mrb[228].mxu0 %v8969_v53  ;;  %v16821_v53 = vld [vmem:[#allocation3 + $0x88] sm:$0xff] }
 0x931   :  { %12119 = vmatprep.mubr.bf16.mxu0 %v8993_v41  ;;  %12159 = vmatpush1.bf16.msra.mxu0 %v16541_v25  ;;  %v16585_v25 = vld [vmem:[%s21910_s11 + $0x5c4] ss:$8 sps:$4 sm:$0xff]  }
 0x932   :  { %12160 = vmatprep.subr.bf16.mxu0 %v16546_v59  ;;  %v16583_v59 = vld [vmem:[%s21910_s11 + $0x5c0] ss:$8 sps:$4 sm:$0xff]  }
 0x933   :  { %v9067_v41 = vld [vmem:[#allocation3 + $0x18] sm:$0xff] }
 0x935   :  { %12161 = vmatpush1.bf16.msra.mxu0 %v16544_v43  ;;  %v16589_v43 = vld [vmem:[%s21910_s11 + $0x5e0] ss:$8 sps:$4 sm:$0xff]  }
 0x936   :  { %12253 = vmatprep.subr.bf16.mxu0 %v16549_v52  ;;  %v16594_v52 = vld [vmem:[%s21910_s11 + $0x5f4] ss:$8 sps:$4 sm:$0xff]  }
 0x938   :  { %12120 = vmatmul.mubr.bf16.gmra.mrb[232].mxu0 %v8985_v48  ;;  %v16592_v48 = vld [vmem:[%s21910_s11 + $0x5f0] ss:$8 sps:$4 sm:$0xff]  }
 0x939   :  { %12162 = vmatprep.mubr.bf16.mxu0 %v20554_v3  ;;  %v16555_v3 = vld [vmem:[%s21910_s11 + $0x524] ss:$8 sps:$4 sm:$0xff]  }
 0x940   :  { %12163 = vmatmul.mubr.bf16.vlgmr.msra.gmra.mrb[200].mxu0 %v20775_v31  ;;  %v16558_v31 = vld [vmem:[%s21910_s11 + $0x534] ss:$8 sps:$4 sm:$0xff]  }
 0x941   :  { %12254 = vmatpush1.bf16.msra.mxu0 %v16547_v60  ;;  %12172 = vmatprep.mubr.bf16.mxu0 %v16819_v28  ;;  %v9066_v28 = vld [vmem:[#allocation3 + $0x10] sm:$0xff] }
 0x942   :  { %12255 = vmatprep.subr.bf16.mxu0 %v16552_v56  ;;  %v16597_v56 = vld [vmem:[%s21910_s11 + $0x604] ss:$8 sps:$4 sm:$0xff]  }
 0x945   :  { %12256 = vmatpush1.bf16.msra.mxu0 %v16550_v13  ;;  %v9099_v13 = vshrl.u32 %v9067_v41, 16 }
 0x946   :  { %12257 = vmatprep.subr.bf16.mxu0 %v16555_v3  ;;  %v9089_v3 = vshll.u32 %v9066_v28, 16 }
 0x948   :  { %12173 = vmatmul.mubr.bf16.gmra.mrb[204].mxu0 %v20810_v58  ;;  %v16564_v58 = vld [vmem:[%s21910_s11 + $0x554] ss:$8 sps:$4 sm:$0xff]  }
 0x949   :  { %12182 = vmatprep.mubr.bf16.mxu0 %v20815_v33  ;;  %12258 = vmatpush1.bf16.msra.mxu0 %v16553_v11  ;;  %v16562_v33 = vld [vmem:[%s21910_s11 + $0x550] ss:$8 sps:$4 sm:$0xff]  }
 0x94a   :  { %12259 = vmatprep.subr.bf16.mxu0 %v16558_v31  ;;  %v16824_v31 = vld [vmem:[#allocation3 + $0x90] sm:$0xff] }
 0x94d   :  { %12260 = vmatpush1.bf16.msra.mxu0 %v16556_v34 }
 0x94e   :  { %12261 = vmatprep.subr.bf16.mxu0 %v16561_v57  ;;  %v9091_v57 = vrot.slane %v9089_v3, 1  ;;  %v16612_v3 = vld [vmem:[%s21910_s11 + $0x654] ss:$8 sps:$4 sm:$0xff]  }
 0x950   :  { %12183 = vmatmul.mubr.bf16.gmra.mrb[208].mxu0 %v20839_v42  ;;  %v16570_v42 = vld [vmem:[%s21910_s11 + $0x574] ss:$8 sps:$4 sm:$0xff]  }
 0x951   :  { %12192 = vmatprep.mubr.bf16.mxu0 %v20849_v49  ;;  %12262 = vmatpush1.bf16.msra.mxu0 %v16559_v32  ;;  %v16568_v49 = vld [vmem:[%s21910_s11 + $0x570] ss:$8 sps:$4 sm:$0xff]   ;;  %v9087_v32 = vshrl.u32 %v9066_v28, 16  ;;  %v22220_v28 = vshrl.u32 %v20540_v44, 16 }
 0x952   :  { %12263 = vmatprep.subr.bf16.mxu0 %v16564_v58  ;;  %v22211_v58 = vshll.u32 %v20527_v4, 16 }
 0x955   :  { %12264 = vmatpush1.bf16.msra.mxu0 %v16562_v33  ;;  %v9096_v33 = vrot.slane %v22211_v58, 1 }
 0x956   :  { %12265 = vmatprep.subr.bf16.mxu0 %v16567_v38  ;;  %v22212_v38 = vshll.u32 %v20538_v1, 16 }
 0x958   :  { %12193 = vmatmul.mubr.bf16.gmra.mrb[212].mxu0 %v20876_v22  ;;  %v16574_v22 = vld [vmem:[%s21910_s11 + $0x590] ss:$8 sps:$4 sm:$0xff]  }
 0x959   :  { %12202 = vmatprep.mubr.bf16.mxu0 %v20881_v45  ;;  %12266 = vmatpush1.bf16.msra.mxu0 %v16565_v20  ;;  %v16576_v45 = vld [vmem:[%s21910_s11 + $0x594] ss:$8 sps:$4 sm:$0xff]   ;;  %v9124_v20 = vrot.slane %v22212_v38, 1 }
 0x95a   :  { %12267 = vmatprep.subr.bf16.mxu0 %v16570_v42  ;;  %v16595_v42 = vld [vmem:[%s21910_s11 + $0x600] ss:$8 sps:$4 sm:$0xff]  }
 0x95d   :  { %12268 = vmatpush1.bf16.msra.mxu0 %v16568_v49  ;;  %v9092_v49 = vor.u32 %v9091_v57, %v9087_v32  ;;  %v22222_v32 = vshll.u32 %v20562_v10, 16 }
 0x95e   :  { %12269 = vmatprep.subr.bf16.mxu0 %v16573_v12  ;;  %v16600_v12 = vld [vmem:[%s21910_s11 + $0x614] ss:$8 sps:$4 sm:$0xff]  }
 0x95f   :  { %v9172_v58 = vrot.slane %v22222_v32, 1 }
 0x960   :  { %12203 = vmatmul.mubr.bf16.gmra.mrb[216].mxu0 %v20896_v6  ;;  %v16582_v6 = vld [vmem:[%s21910_s11 + $0x5b4] ss:$8 sps:$4 sm:$0xff]  }
 0x961   :  { %12212 = vmatprep.mubr.bf16.mxu0 %v20901_v21  ;;  %12270 = vmatpush1.bf16.msra.mxu0 %v16571_v40  ;;  %v16820_v21 = vld [vmem:[#allocation3 + $0x78] sm:$0xff]  ;;  %v9125_v40 = vsel %vm2639_vm7, %v20444_v7, %v9124_v20  ;;  %v22215_v7 = vshrl.u32 %v20527_v4, 16 }
 0x962   :  { %12271 = vmatprep.subr.bf16.mxu0 %v16576_v45  ;;  %v16598_v45 = vld [vmem:[%s21910_s11 + $0x610] ss:$8 sps:$4 sm:$0xff]  }
 0x965   :  { %12272 = vmatpush1.bf16.msra.mxu0 %v16574_v22  ;;  %v16603_v22 = vld [vmem:[%s21910_s11 + $0x624] ss:$8 sps:$4 sm:$0xff]  }
 0x966   :  { %12273 = vmatprep.subr.bf16.mxu0 %v16579_v2  ;;  %v22213_v2 = vshll.u32 %v20529_v19, 16 }
 0x968   :  { %12213 = vmatmul.mubr.bf16.gmra.mrb[220].mxu0 %v20916_v9  ;;  %v16588_v9 = vld [vmem:[%s21910_s11 + $0x5d4] ss:$8 sps:$4 sm:$0xff]  }
 0x969   :  { %12222 = vmatprep.mubr.bf16.mxu0 %v16820_v21  ;;  %12274 = vmatpush1.bf16.msra.mxu0 %v16577_v29  ;;  %v9116_v29 = vrot.slane %v22213_v2, 1  ;;  %v22226_v2 = vshrl.u32 %v20558_v63, 16 }
 0x96a   :  { %12275 = vmatprep.subr.bf16.mxu0 %v16582_v6  ;;  %v22214_v6 = vshll.u32 %v20540_v44, 16  ;;  %v16615_v44 = vld [vmem:[%s21910_s11 + $0x664] ss:$8 sps:$4 sm:$0xff]  }
 0x96c   :  { %v9140_v21 = vrot.slane %v22214_v6, 1  ;;  %v16619_v6 = vld [vmem:[%s21910_s11 + $0x680] ss:$8 sps:$4 sm:$0xff]  }
 0x96d   :  { %12276 = vmatpush1.bf16.msra.mxu0 %v16580_v47  ;;  %v9112_v47 = vor.u32 %v22215_v7, %v9096_v33 }
 0x96e   :  { %12277 = vmatprep.subr.bf16.mxu0 %v16585_v25  ;;  %v16601_v25 = vld [vmem:[%s21910_s11 + $0x620] ss:$8 sps:$4 sm:$0xff]  }
 0x970   :  { %12223 = vmatmul.mubr.bf16.gmra.mrb[224].mxu0 %v20935_v23  ;;  %v9101_v23 = vshll.u32 %v9067_v41, 16  ;;  %v16604_v41 = vld [vmem:[%s21910_s11 + $0x630] ss:$8 sps:$4 sm:$0xff]  }
 0x971   :  { %12232 = vmatprep.mubr.bf16.mxu0 %v16821_v53  ;;  %12278 = vmatpush1.bf16.msra.mxu0 %v16583_v59  ;;  %v22216_v59 = vshrl.u32 %v20538_v1, 16  ;;  %v16606_v53 = vld [vmem:[%s21910_s11 + $0x634] ss:$8 sps:$4 sm:$0xff]  }
 0x972   :  { %12279 = vmatprep.subr.bf16.mxu0 %v16588_v9  ;;  %v9103_v60 = vrot.slane %v9101_v23, 1  ;;  %v22217_v23 = vshll.u32 %v20542_v14, 16 }
 0x973   :  { %v9136_v9 = vor.u32 %v22216_v59, %v9124_v20  ;;  %v16613_v20 = vld [vmem:[%s21910_s11 + $0x660] ss:$8 sps:$4 sm:$0xff]   ;;  %v16622_v59 = vld [vmem:[%s21910_s11 + $0x690] ss:$8 sps:$4 sm:$0xff]  }
 0x974   :  { %v9104_v11 = vor.u32 %v9103_v60, %v9099_v13  ;;  %v9152_v13 = vor.u32 %v22220_v28, %v9140_v21 }
 0x975   :  { %12280 = vmatpush1.bf16.msra.mxu0 %v16586_v54  ;;  %v9117_v54 = vsel %vm2639_vm7, %v9112_v47, %v9116_v29  ;;  %v16624_v47 = vld [vmem:[%s21910_s11 + $0x694] ss:$8 sps:$4 sm:$0xff]  }
 0x976   :  { %12281 = vmatprep.subr.bf16.mxu0 %v16591_v26  ;;  %v9109_v34 = vsel %vm2639_vm7, %v9104_v11, %v20436_v16  ;;  %v9097_v16 = vsel %vm2639_vm7, %v9092_v49, %v9096_v33  ;;  %v9141_v26 = vsel %vm2639_vm7, %v9136_v9, %v9140_v21  ;;  %v22223_v33 = vshrl.u32 %v20542_v14, 16  ;;  %v16616_v14 = vld [vmem:[%s21910_s11 + $0x670] ss:$8 sps:$4 sm:$0xff]   ;;  %v16627_v9 = vld [vmem:[%s21910_s11 + $0x6a4] ss:$8 sps:$4 sm:$0xff]  }
 0x977   :  { %v22227_v21 = vshrl.u32 %v20562_v10, 16 }
 0x978   :  { %12233 = vmatmul.mubr.bf16.gmra.mrb[228].mxu0 %v16822_v39  ;;  %v22218_v39 = vshll.u32 %v20556_v55, 16 }
 0x979   :  { %12242 = vmatprep.mubr.bf16.mxu0 %v16823_v37  ;;  %12282 = vmatpush1.bf16.msra.mxu0 %v16589_v43  ;;  %v16609_v43 = vld [vmem:[%s21910_s11 + $0x644] ss:$8 sps:$4 sm:$0xff]   ;;  %v9184_v7 = vor.u32 %v22227_v21, %v9172_v58 }
 0x97a   :  { %12283 = vmatprep.subr.bf16.mxu0 %v16594_v52  ;;  %v9132_v52 = vrot.slane %v22217_v23, 1  ;;  %v9156_v37 = vrot.slane %v22218_v39, 1  ;;  %v22230_v39 = vshrl.u32 %v20581_v46, 16  ;;  %v16663_v21 = vld [vmem:[%s21910_s11 + $0x764] ss:$8 sps:$4 sm:$0xff]  }
 0x97c   :  { %v9144_v38 = vor.u32 %v22223_v33, %v9132_v52  ;;  %v21404_v33 = vld [vmem:[#allocation3 + $0x28] sm:$0xff] }
 0x97d   :  { %12284 = vmatpush1.bf16.msra.mxu0 %v16592_v48  ;;  %v22219_v48 = vshrl.u32 %v20529_v19, 16  ;;  %v16610_v19 = vld [vmem:[%s21910_s11 + $0x650] ss:$8 sps:$4 sm:$0xff]  }
 0x97e   :  { %12376 = vmatprep.subr.bf16.mxu0 %v16597_v56  ;;  %v16607_v56 = vld [vmem:[%s21910_s11 + $0x640] ss:$8 sps:$4 sm:$0xff]  }
 0x97f   :  { %v9128_v60 = vor.u32 %v22219_v48, %v9116_v29  ;;  %v16631_v48 = vld [vmem:[%s21910_s11 + $0x6c0] ss:$8 sps:$4 sm:$0xff]  }
 0x980   :  { %12243 = vmatmul.mubr.bf16.gmra.mrb[232].mxu0 %v16824_v31  ;;  %v9157_v31 = vsel %vm2639_vm7, %v9152_v13, %v9156_v37  ;;  %v16634_v13 = vld [vmem:[%s21910_s11 + $0x6d0] ss:$8 sps:$4 sm:$0xff]  }
 0x981   :  { %12285 = vmatprep.mubr.bf16.mxu0 %v9109_v34  ;;  %v9133_v11 = vsel %vm2639_vm7, %v9128_v60, %v9132_v52  ;;  %v22221_v34 = vshll.u32 %v20558_v63, 16  ;;  %v9189_v63 = vsel %vm2639_vm7, %v9184_v7, %v20485_v61  ;;  %v16625_v61 = vld [vmem:[%s21910_s11 + $0x6a0] ss:$8 sps:$4 sm:$0xff]   ;;  %v16633_v52 = vld [vmem:[%s21910_s11 + $0x6c4] ss:$8 sps:$4 sm:$0xff]  }
 0x982   :  { %v9085_v60 = vld [vmem:[#allocation3 + $0xa8] sm:$0x1]  ;;  %v16661_v7 = vld [vmem:[%s21910_s11 + $0x760] ss:$8 sps:$4 sm:$0xff]  }
 0x983   :  { %v9148_v57 = vrot.slane %v22221_v34, 1  ;;  %v9234_v28 = vshll.u32 %v9085_v60, 16  ;;  %v16640_v34 = vld [vmem:[%s21910_s11 + $0x6f0] ss:$8 sps:$4 sm:$0xff]  }
 0x984   :  { %v16828_v60 = vld [vmem:[#allocation3 + $0x80] sm:$0xff] }
 0x985   :  { %v9160_v29 = vor.u32 %v22226_v2, %v9148_v57  ;;  %v16652_v2 = vld [vmem:[%s21910_s11 + $0x730] ss:$8 sps:$4 sm:$0xff]  }
 0x988   :  { %12286 = vmatmul.mubr.bf16.vlgmr.msra.gmra.mrb[200].mxu0 %v9097_v16  ;;  %v9149_v16 = vsel %vm2639_vm7, %v9144_v38, %v9148_v57  ;;  %v16645_v57 = vld [vmem:[%s21910_s11 + $0x704] ss:$8 sps:$4 sm:$0xff]  }
 0x989   :  { %12377 = vmatpush1.bf16.msra.mxu0 %v16595_v42  ;;  %12295 = vmatprep.mubr.bf16.mxu0 %v9125_v40  ;;  %v22224_v42 = vshrl.u32 %v20556_v55, 16  ;;  %v16621_v55 = vld [vmem:[%s21910_s11 + $0x684] ss:$8 sps:$4 sm:$0xff]  }
 0x98a   :  { %12378 = vmatprep.subr.bf16.mxu0 %v16600_v12  ;;  %v16618_v12 = vld [vmem:[%s21910_s11 + $0x674] ss:$8 sps:$4 sm:$0xff]  }
 0x98b   :  { %v9168_v49 = vor.u32 %v22224_v42, %v9156_v37  ;;  %v9274_v42 = vld [vmem:[#allocation3 + $0x10] sm:$0xf0] }
 0x98d   :  { %12379 = vmatpush1.bf16.msra.mxu0 %v16598_v45  ;;  %v9173_v40 = vsel %vm2639_vm7, %v9168_v49, %v9172_v58  ;;  %v22225_v45 = vshll.u32 %v20564_v30, 16  ;;  %v9275_v58 = vld [vmem:[#allocation3 + $0x18] sm:$0xf0]  ;;  %v16643_v49 = vld [vmem:[%s21910_s11 + $0x700] ss:$8 sps:$4 sm:$0xff]  }
 0x98e   :  { %12380 = vmatprep.subr.bf16.mxu0 %v16603_v22  ;;  %v9317_v38 = vrot.slane %v9275_v58, 4  ;;  %v16685_v58 = vld [vmem:[%s21910_s11 + $0x7e0] ss:$8 sps:$4 sm:$0xff]  }
 0x98f   :  { %v9164_v22 = vrot.slane %v22225_v45, 1  ;;  %v16646_v45 = vld [vmem:[%s21910_s11 + $0x710] ss:$8 sps:$4 sm:$0xff]  }
 0x990   :  { %12296 = vmatmul.mubr.bf16.gmra.mrb[204].mxu0 %v9117_v54 }
 0x991   :  { %12305 = vmatprep.mubr.bf16.mxu0 %v9141_v26  ;;  %12381 = vmatpush1.bf16.msra.mxu0 %v16601_v25  ;;  %v9165_v25 = vsel %vm2639_vm7, %v9160_v29, %v9164_v22  ;;  %v22229_v26 = vshrl.u32 %v20564_v30, 16  ;;  %v16628_v30 = vld [vmem:[%s21910_s11 + $0x6b0] ss:$8 sps:$4 sm:$0xff]   ;;  %v16657_v29 = vld [vmem:[%s21910_s11 + $0x744] ss:$8 sps:$4 sm:$0xff]  }
 0x992   :  { %12382 = vmatprep.subr.bf16.mxu0 %v16606_v53  ;;  %v22228_v53 = vshll.u32 %v20581_v46, 16 }
 0x994   :  { %v9180_v54 = vrot.slane %v22228_v53, 1  ;;  %v22234_v53 = vld [vmem:[#allocation52_spill] sm:$0xff] }
 0x995   :  { %12383 = vmatpush1.bf16.msra.mxu0 %v16604_v41  ;;  %v9176_v41 = vor.u32 %v22229_v26, %v9164_v22  ;;  %v16651_v22 = vld [vmem:[%s21910_s11 + $0x724] ss:$8 sps:$4 sm:$0xff]  }
 0x996   :  { %12384 = vmatprep.subr.bf16.mxu0 %v16609_v43  ;;  %v16630_v43 = vld [vmem:[%s21910_s11 + $0x6b4] ss:$8 sps:$4 sm:$0xff]   ;;  %v9192_v37 = vor.u32 %v22230_v39, %v9180_v54 }
 0x997   :  { %v9181_v23 = vsel %vm2639_vm7, %v9176_v41, %v9180_v54  ;;  %v22235_v54 = vrot.slane %v20562_v10, 4  ;;  %v16670_v41 = vld [vmem:[%s21910_s11 + $0x790] ss:$8 sps:$4 sm:$0xff]   ;;  %v16673_v10 = vld [vmem:[%s21910_s11 + $0x7a0] ss:$8 sps:$4 sm:$0xff]  }
 0x998   :  { %12306 = vmatmul.mubr.bf16.gmra.mrb[208].mxu0 %v9133_v11  ;;  %v9236_v11 = vrot.slane %v9234_v28, 1 }
 0x999   :  { %12315 = vmatprep.mubr.bf16.mxu0 %v9157_v31  ;;  %12385 = vmatpush1.bf16.msra.mxu0 %v16607_v56  ;;  %v9197_v56 = vsel %vm2639_vm7, %v9192_v37, %v20500_v62  ;;  %v9084_v31 = vld [vmem:[#allocation3 + $0xa0] sm:$0x1]  ;;  %v16637_v62 = vld [vmem:[%s21910_s11 + $0x6e0] ss:$8 sps:$4 sm:$0xff]  }
 0x99a   :  { %12386 = vmatprep.subr.bf16.mxu0 %v16612_v3  ;;  %v16639_v3 = vld [vmem:[%s21910_s11 + $0x6e4] ss:$8 sps:$4 sm:$0xff]   ;;  %v16676_v37 = vld [vmem:[%s21910_s11 + $0x7b0] ss:$8 sps:$4 sm:$0xff]  }
 0x99d   :  { %12387 = vmatpush1.bf16.msra.mxu0 %v16610_v19  ;;  %v9226_v19 = vshll.u32 %v9084_v31, 16 }
 0x99e   :  { %12388 = vmatprep.subr.bf16.mxu0 %v16615_v44  ;;  %v9237_v44 = vsel %vm2639_vm7, %v20536_v36, %v9236_v11  ;;  %v22237_v11 = vrot.slane %v20581_v46, 4  ;;  %v9389_v46 = vld [vmem:[#allocation3 + $0x18] sm:$0xf0] }
 0x99f   :  { %v9228_v32 = vrot.slane %v9226_v19, 1  ;;  %v16682_v19 = vld [vmem:[%s21910_s11 + $0x7d0] ss:$8 sps:$4 sm:$0xff]  }
 0x9a0   :  { %12316 = vmatmul.mubr.bf16.gmra.mrb[212].mxu0 %v9149_v16  ;;  %v16648_v16 = vld [vmem:[%s21910_s11 + $0x714] ss:$8 sps:$4 sm:$0xff]  }
 0x9a1   :  { %12325 = vmatprep.mubr.bf16.mxu0 %v9173_v40  ;;  %12389 = vmatpush1.bf16.msra.mxu0 %v16613_v20  ;;  %v9229_v36 = vsel %vm2639_vm7, %v20549_v35, %v9228_v32  ;;  %v22231_v40 = vrot.slane %v20527_v4, 4  ;;  %v22232_v35 = vrot.slane %v20538_v1, 4  ;;  %v16649_v4 = vld [vmem:[%s21910_s11 + $0x720] ss:$8 sps:$4 sm:$0xff]   ;;  %v16654_v1 = vld [vmem:[%s21910_s11 + $0x734] ss:$8 sps:$4 sm:$0xff]  }
 0x9a2   :  { %12390 = vmatprep.subr.bf16.mxu0 %v16618_v12  ;;  %v9314_v12 = vrot.slane %v9274_v42, 4 }
 0x9a5   :  { %12391 = vmatpush1.bf16.msra.mxu0 %v16616_v14  ;;  %v9316_v14 = vsel %vm2030_vm13, %v9314_v12, %v22231_v40  ;;  %v16688_v12 = vld [vmem:[%s21910_s11 + $0x7f0] ss:$8 sps:$4 sm:$0xff]  }
 0x9a6   :  { %12392 = vmatprep.subr.bf16.mxu0 %v16621_v55 }
 0x9a8   :  { %12326 = vmatmul.mubr.bf16.gmra.mrb[216].mxu0 %v9165_v25  ;;  %v16669_v25 = vld [vmem:[%s21910_s11 + $0x784] ss:$8 sps:$4 sm:$0xff]  }
 0x9a9   :  { %12335 = vmatprep.mubr.bf16.mxu0 %v9189_v63  ;;  %12393 = vmatpush1.bf16.msra.mxu0 %v16619_v6  ;;  %v16655_v6 = vld [vmem:[%s21910_s11 + $0x740] ss:$8 sps:$4 sm:$0xff]  }
 0x9aa   :  { %12394 = vmatprep.subr.bf16.mxu0 %v16624_v47  ;;  %v16664_v47 = vld [vmem:[%s21910_s11 + $0x770] ss:$8 sps:$4 sm:$0xff]   ;;  %v16826_v63 = vld [vmem:[#allocation3 + $0x78] sm:$0xff] }
 0x9ad   :  { %12395 = vmatpush1.bf16.msra.mxu0 %v16622_v59  ;;  %v9338_v59 = vrot.slane %v16826_v63, 4  ;;  %v16699_v63 = vld [vmem:[%s21910_s11 + $0x824] ss:$8 sps:$4 sm:$0xff]  }
 0x9ae   :  { %12396 = vmatprep.subr.bf16.mxu0 %v16627_v9  ;;  %v16667_v9 = vld [vmem:[%s21910_s11 + $0x780] ss:$8 sps:$4 sm:$0xff]  }
 0x9af   :  { %v9339_v26 = vsel %vm2030_vm13, %v22235_v54, %v9338_v59  ;;  %v16741_v54 = vld [vmem:[#allocation21 + $0x4] ss:$8 sps:$4 sm:$0xff]  }
 0x9b0   :  { %12336 = vmatmul.mubr.bf16.gmra.mrb[220].mxu0 %v9181_v23  ;;  %13039 = vmatprep.subr.bf16.mxu1 %v16741_v54  ;;  %v16777_v54 = vld [vmem:[#allocation21 + $0xc4] ss:$8 sps:$4 sm:$0xff]  }
 0x9b1   :  { %12345 = vmatprep.mubr.bf16.mxu0 %v20510_v27  ;;  %12397 = vmatpush1.bf16.msra.mxu0 %v16625_v61  ;;  %v16636_v27 = vld [vmem:[%s21910_s11 + $0x6d4] ss:$8 sps:$4 sm:$0xff]   ;;  %v16675_v61 = vld [vmem:[%s21910_s11 + $0x7a4] ss:$8 sps:$4 sm:$0xff]  }
 0x9b2   :  { %12398 = vmatprep.subr.bf16.mxu0 %v16630_v43  ;;  %v16827_v43 = vld [vmem:[#allocation3 + $0x88] sm:$0xff] }
 0x9b3   :  { %v9342_v23 = vrot.slane %v16827_v43, 4  ;;  %v16705_v43 = vld [vmem:[%s21910_s11 + $0x844] ss:$8 sps:$4 sm:$0xff]  }
 0x9b5   :  { %12399 = vmatpush1.bf16.msra.mxu0 %v16628_v30  ;;  %v16678_v30 = vld [vmem:[%s21910_s11 + $0x7b4] ss:$8 sps:$4 sm:$0xff]   ;;  %v9343_v39 = vsel %vm2030_vm13, %v9338_v59, %v9342_v23  ;;  %v16697_v59 = vld [vmem:[%s21910_s11 + $0x820] ss:$8 sps:$4 sm:$0xff]  }
 0x9b6   :  { %12400 = vmatprep.subr.bf16.mxu0 %v16633_v52  ;;  %v22236_v52 = vld [vmem:[#allocation53_spill] sm:$0xff] }
 0x9b8   :  { %12346 = vmatmul.mubr.bf16.gmra.mrb[224].mxu0 %v9197_v56  ;;  %v16829_v56 = vld [vmem:[#allocation3 + $0x98] sm:$0xff] }
 0x9b9   :  { %12355 = vmatprep.mubr.bf16.mxu0 %v20532_v18  ;;  %12401 = vmatpush1.bf16.msra.mxu0 %v16631_v48  ;;  %v16642_v18 = vld [vmem:[%s21910_s11 + $0x6f4] ss:$8 sps:$4 sm:$0xff]   ;;  %v16681_v48 = vld [vmem:[%s21910_s11 + $0x7c4] ss:$8 sps:$4 sm:$0xff]   ;;  %v9346_v28 = vrot.slane %v16829_v56, 4 }
 0x9ba   :  { %12402 = vmatprep.subr.bf16.mxu0 %v16636_v27  ;;  %v9340_v27 = vrot.slane %v16828_v60, 4  ;;  %v22244_v60 = vld [vmem:[#allocation61_spill] sm:$0xff] }
 0x9bb   :  { %v16711_v56 = vld [vmem:[%s21910_s11 + $0x864] ss:$8 sps:$4 sm:$0xff]  }
 0x9bc   :  { %v9341_v31 = vsel %vm2030_vm13, %v22237_v11, %v9340_v27  ;;  %v16714_v11 = vld [vmem:[%s21910_s11 + $0x874] ss:$8 sps:$4 sm:$0xff]  }
 0x9bd   :  { %12403 = vmatpush1.bf16.msra.mxu0 %v16634_v13  ;;  %v16679_v13 = vld [vmem:[%s21910_s11 + $0x7c0] ss:$8 sps:$4 sm:$0xff]  }
 0x9be   :  { %12404 = vmatprep.subr.bf16.mxu0 %v16639_v3  ;;  %v16684_v3 = vld [vmem:[%s21910_s11 + $0x7d4] ss:$8 sps:$4 sm:$0xff]  }
 0x9c0   :  { %12356 = vmatmul.mubr.bf16.gmra.mrb[228].mxu0 %v20545_v17  ;;  %v9318_v17 = vrot.slane %v21404_v33, 4 }
 0x9c1   :  { %12365 = vmatprep.mubr.bf16.mxu0 %v9237_v44  ;;  %12405 = vmatpush1.bf16.msra.mxu0 %v16637_v62  ;;  %v9347_v62 = vsel %vm2030_vm13, %v9342_v23, %v9346_v28  ;;  %v16687_v44 = vld [vmem:[%s21910_s11 + $0x7e4] ss:$8 sps:$4 sm:$0xff]   ;;  %v16742_v23 = vld [vmem:[#allocation21 + $0x10] ss:$8 sps:$4 sm:$0xff]  }
 0x9c2   :  { %12406 = vmatprep.subr.bf16.mxu0 %v16642_v18  ;;  %v9319_v20 = vsel %vm2030_vm13, %v9317_v38, %v9318_v17  ;;  %v9323_v55 = vsel %vm2030_vm13, %v9318_v17, %v22232_v35  ;;  %v9293_v18 = vld [vmem:[#allocation3 + $0xa8] sm:$0xf]  ;;  %v9426_v17 = vshrl.u32 %v9389_v46, 16  ;;  %v9429_v38 = vshll.u32 %v9389_v46, 16  ;;  %v9388_v35 = vld [vmem:[#allocation3 + $0x10] sm:$0xf0] }
 0x9c3   :  { %v9350_v32 = vrot.slane %v9293_v18, 4  ;;  %v16756_v18 = vld [vmem:[#allocation21 + $0x54] ss:$8 sps:$4 sm:$0xff]   ;;  %v16759_v46 = vld [vmem:[#allocation21 + $0x64] ss:$8 sps:$4 sm:$0xff]  }
 0x9c4   :  { %v9431_v40 = vrot.slane %v9429_v38, 5  ;;  %v22247_v38 = vld [vmem:[#allocation33_spill] sm:$0xff] }
 0x9c5   :  { %12407 = vmatpush1.bf16.msra.mxu0 %v16640_v34  ;;  %v16830_v34 = vld [vmem:[#allocation3 + $0x90] sm:$0xff]  ;;  %v9351_v42 = vsel %vm2030_vm13, %v9346_v28, %v9350_v32  ;;  %v16748_v28 = vld [vmem:[#allocation21 + $0x30] ss:$8 sps:$4 sm:$0xff]  }
 0x9c6   :  { %12499 = vmatprep.subr.bf16.mxu0 %v16645_v57  ;;  %v9344_v57 = vrot.slane %v16830_v34, 4  ;;  %v16717_v34 = vld [vmem:[%s21910_s11 + $0x884] ss:$8 sps:$4 sm:$0xff]   ;;  %v16715_v32 = vld [vmem:[%s21910_s11 + $0x880] ss:$8 sps:$4 sm:$0xff]  }
 0x9c8   :  { %12366 = vmatmul.mubr.bf16.gmra.mrb[232].mxu0 %v9229_v36  ;;  %v16690_v36 = vld [vmem:[%s21910_s11 + $0x7f4] ss:$8 sps:$4 sm:$0xff]  }
 0x9c9   :  { %12408 = vmatprep.mubr.bf16.mxu0 %v9319_v20  ;;  %v9345_v20 = vsel %vm2030_vm13, %v9340_v27, %v9344_v57  ;;  %v16706_v27 = vld [vmem:[%s21910_s11 + $0x850] ss:$8 sps:$4 sm:$0xff]  }
 0x9d0   :  { %12409 = vmatmul.mubr.bf16.vlgmr.msra.gmra.mrb[200].mxu0 %v9316_v14  ;;  %v16693_v14 = vld [vmem:[%s21910_s11 + $0x804] ss:$8 sps:$4 sm:$0xff]  }
 0x9d1   :  { %12500 = vmatpush1.bf16.msra.mxu0 %v16643_v49  ;;  %12418 = vmatprep.mubr.bf16.mxu0 %v9323_v55  ;;  %v9292_v49 = vld [vmem:[#allocation3 + $0xa0] sm:$0xf] }
 0x9d2   :  { %12501 = vmatprep.subr.bf16.mxu0 %v16648_v16  ;;  %v9428_v16 = vrot.slane %v9426_v17, 4  ;;  %v9348_v55 = vrot.slane %v9292_v49, 4  ;;  %v16757_v17 = vld [vmem:[#allocation21 + $0x60] ss:$8 sps:$4 sm:$0xff]   ;;  %v16760_v49 = vld [vmem:[#allocation21 + $0x70] ss:$8 sps:$4 sm:$0xff]  }
 0x9d5   :  { %12502 = vmatpush1.bf16.msra.mxu0 %v16646_v45  ;;  %v9409_v45 = vshrl.u32 %v9388_v35, 16 }
 0x9d6   :  { %12503 = vmatprep.subr.bf16.mxu0 %v16651_v22  ;;  %v9412_v22 = vshll.u32 %v9388_v35, 16  ;;  %v16768_v35 = vld [vmem:[#allocation21 + $0x94] ss:$8 sps:$4 sm:$0xff]  }
 0x9d8   :  { %12419 = vmatmul.mubr.bf16.gmra.mrb[204].mxu0 %v20576_v24  ;;  %v16660_v24 = vld [vmem:[%s21910_s11 + $0x754] ss:$8 sps:$4 sm:$0xff]  }
 0x9d9   :  { %12428 = vmatprep.mubr.bf16.mxu0 %v20586_v50  ;;  %12504 = vmatpush1.bf16.msra.mxu0 %v16649_v4  ;;  %v16658_v50 = vld [vmem:[%s21910_s11 + $0x750] ss:$8 sps:$4 sm:$0xff]   ;;  %v9432_v4 = vor.u32 %v9431_v40, %v9428_v16  ;;  %v16721_v16 = vld [vmem:[%s21910_s11 + $0x8a0] ss:$8 sps:$4 sm:$0xff]  }
 0x9da   :  { %12505 = vmatprep.subr.bf16.mxu0 %v16654_v1  ;;  %v9349_v1 = vsel %vm2030_vm13, %v9344_v57, %v9348_v55  ;;  %v16754_v57 = vld [vmem:[#allocation21 + $0x50] ss:$8 sps:$4 sm:$0xff]   ;;  %v16763_v40 = vld [vmem:[#allocation21 + $0x80] ss:$8 sps:$4 sm:$0xff]  }
 0x9db   :  { %v16724_v55 = vld [vmem:[%s21910_s11 + $0x8b0] ss:$8 sps:$4 sm:$0xff]  }
 0x9dd   :  { %12506 = vmatpush1.bf16.msra.mxu0 %v16652_v2  ;;  %v22238_v2 = vld [vmem:[#allocation55_spill] sm:$0xff] }
 0x9de   :  { %12507 = vmatprep.subr.bf16.mxu0 %v16657_v29  ;;  %v9441_v29 = vsel %vm3114_vm9, %v9432_v4, %v22238_v2  ;;  %v16766_v4 = vld [vmem:[#allocation21 + $0x90] ss:$8 sps:$4 sm:$0xff]  }
 0x9e0   :  { %12429 = vmatmul.mubr.bf16.gmra.mrb[208].mxu0 %v20589_v8  ;;  %v22233_v8 = vld [vmem:[#allocation51_spill] sm:$0xff] }
 0x9e1   :  { %12438 = vmatprep.mubr.bf16.mxu0 %v20596_v15  ;;  %12508 = vmatpush1.bf16.msra.mxu0 %v16655_v6  ;;  %v16666_v15 = vld [vmem:[%s21910_s11 + $0x774] ss:$8 sps:$4 sm:$0xff]   ;;  %v9411_v6 = vrot.slane %v9409_v45, 4 }
 0x9e2   :  { %12509 = vmatprep.subr.bf16.mxu0 %v16660_v24  ;;  %v9414_v24 = vrot.slane %v9412_v22, 5  ;;  %v9407_v45 = vld [vmem:[#allocation3 + $0xa8] sm:$0x1f]  ;;  %v16729_v22 = vld [vmem:[%s21910_s11 + $0x8c4] ss:$8 sps:$4 sm:$0xff]  }
 0x9e3   :  { %v9581_v2 = vshll.u32 %v9407_v45, 16 }
 0x9e5   :  { %12510 = vmatpush1.bf16.msra.mxu0 %v16658_v50  ;;  %v16691_v50 = vld [vmem:[%s21910_s11 + $0x800] ss:$8 sps:$4 sm:$0xff]  }
 0x9e6   :  { %12511 = vmatprep.subr.bf16.mxu0 %v16663_v21  ;;  %v9415_v21 = vor.u32 %v9414_v24, %v9411_v6  ;;  %v16732_v6 = vld [vmem:[%s21910_s11 + $0x8d4] ss:$8 sps:$4 sm:$0xff]   ;;  %v16769_v24 = vld [vmem:[#allocation21 + $0xa0] ss:$8 sps:$4 sm:$0xff]  }
 0x9e8   :  { %12439 = vmatmul.mubr.bf16.gmra.mrb[212].mxu0 %v20605_v5  ;;  %v16672_v5 = vld [vmem:[%s21910_s11 + $0x794] ss:$8 sps:$4 sm:$0xff]  }
 0x9e9   :  { %12448 = vmatprep.mubr.bf16.mxu0 %v22233_v8  ;;  %12512 = vmatpush1.bf16.msra.mxu0 %v16661_v7  ;;  %v16696_v7 = vld [vmem:[%s21910_s11 + $0x814] ss:$8 sps:$4 sm:$0xff]  }
 0x9ea   :  { %12513 = vmatprep.subr.bf16.mxu0 %v16666_v15  ;;  %v22239_v15 = vld [vmem:[#allocation54_spill] sm:$0xff] }
 0x9eb   :  { %v9424_v8 = vsel %vm3114_vm9, %v9415_v21, %v22239_v15  ;;  %v9406_v15 = vld [vmem:[#allocation3 + $0xa0] sm:$0x1f] }
 0x9ed   :  { %12514 = vmatpush1.bf16.msra.mxu0 %v16664_v47  ;;  %v22240_v47 = vld [vmem:[#allocation57_spill] sm:$0xff] }
 0x9ee   :  { %12515 = vmatprep.subr.bf16.mxu0 %v16669_v25  ;;  %v16694_v25 = vld [vmem:[%s21910_s11 + $0x810] ss:$8 sps:$4 sm:$0xff]  }
 0x9f0   :  { %12449 = vmatmul.mubr.bf16.gmra.mrb[216].mxu0 %v22234_v53  ;;  %v16739_v53 = vld [vmem:[#allocation21] ss:$8 sps:$4 sm:$0xff]  }
 0x9f1   :  { %12458 = vmatprep.mubr.bf16.mxu0 %v9339_v26  ;;  %12516 = vmatpush1.bf16.msra.mxu0 %v16667_v9  ;;  %v16702_v9 = vld [vmem:[%s21910_s11 + $0x834] ss:$8 sps:$4 sm:$0xff]  }
 0x9f2   :  { %12517 = vmatprep.subr.bf16.mxu0 %v16672_v5  ;;  %v22241_v5 = vld [vmem:[#allocation58_spill] sm:$0xff]  ;;  %v22242_v26 = vld [vmem:[#allocation59_spill] sm:$0xff]  ;;  %13040 = vmatpush1.bf16.msra.mxu1 %v16739_v53 }
 0x9f5   :  { %12518 = vmatpush1.bf16.msra.mxu0 %v16670_v41  ;;  %v16700_v41 = vld [vmem:[%s21910_s11 + $0x830] ss:$8 sps:$4 sm:$0xff]  }
 0x9f6   :  { %12519 = vmatprep.subr.bf16.mxu0 %v16675_v61  ;;  %v16744_v61 = vld [vmem:[#allocation21 + $0x14] ss:$8 sps:$4 sm:$0xff]  }
 0x9f7   :  { %13041 = vmatprep.subr.bf16.mxu1 %v16744_v61 }
 0x9f8   :  { %12459 = vmatmul.mubr.bf16.gmra.mrb[220].mxu0 %v22236_v52  ;;  %v16708_v52 = vld [vmem:[%s21910_s11 + $0x854] ss:$8 sps:$4 sm:$0xff]   ;;  %13042 = vmatpush1.bf16.msra.mxu1 %v16742_v23  ;;  %v16775_v23 = vld [vmem:[#allocation21 + $0xc0] ss:$8 sps:$4 sm:$0xff]  }
 0x9f9   :  { %12468 = vmatprep.mubr.bf16.mxu0 %v9343_v39  ;;  %12520 = vmatpush1.bf16.msra.mxu0 %v16673_v10  ;;  %v16747_v10 = vld [vmem:[#allocation21 + $0x24] ss:$8 sps:$4 sm:$0xff]   ;;  %v16745_v39 = vld [vmem:[#allocation21 + $0x20] ss:$8 sps:$4 sm:$0xff]  }
 0x9fa   :  { %12521 = vmatprep.subr.bf16.mxu0 %v16678_v30  ;;  %v16703_v30 = vld [vmem:[%s21910_s11 + $0x840] ss:$8 sps:$4 sm:$0xff]   ;;  %13043 = vmatprep.subr.bf16.mxu1 %v16747_v10 }
 0x9fb   :  { %v22251_v10 = vld [vmem:[#allocation43_spill] sm:$0xff] }
 0x9fc   :  { %13044 = vmatpush1.bf16.msra.mxu1 %v16745_v39  ;;  %v16780_v39 = vld [vmem:[#allocation21 + $0xd4] ss:$8 sps:$4 sm:$0xff]  }
 0x9fd   :  { %12522 = vmatpush1.bf16.msra.mxu0 %v16676_v37  ;;  %v22243_v37 = vld [vmem:[#allocation60_spill] sm:$0xff] }
 0x9fe   :  { %12523 = vmatprep.subr.bf16.mxu0 %v16681_v48  ;;  %v16750_v48 = vld [vmem:[#allocation21 + $0x34] ss:$8 sps:$4 sm:$0xff]  }
 0x9ff   :  { %13045 = vmatprep.subr.bf16.mxu1 %v16750_v48 }
 0xa00   :  { %12469 = vmatmul.mubr.bf16.gmra.mrb[224].mxu0 %v9341_v31  ;;  %13046 = vmatpush1.bf16.msra.mxu1 %v16748_v28  ;;  %v16751_v31 = vld [vmem:[#allocation21 + $0x40] ss:$8 sps:$4 sm:$0xff]  }
 0xa01   :  { %12478 = vmatprep.mubr.bf16.mxu0 %v9347_v62  ;;  %12524 = vmatpush1.bf16.msra.mxu0 %v16679_v13  ;;  %v16753_v13 = vld [vmem:[#allocation21 + $0x44] ss:$8 sps:$4 sm:$0xff]  }
 0xa02   :  { %12525 = vmatprep.subr.bf16.mxu0 %v16684_v3  ;;  %v16709_v3 = vld [vmem:[%s21910_s11 + $0x860] ss:$8 sps:$4 sm:$0xff]   ;;  %13047 = vmatprep.subr.bf16.mxu1 %v16753_v13  ;;  %v22253_v13 = vld [vmem:[#allocation42_spill] sm:$0xff] }
 0xa03   :  { %v22245_v62 = vld [vmem:[#allocation64_spill] sm:$0xff] }
 0xa04   :  { %13048 = vmatpush1.bf16.msra.mxu1 %v16751_v31  ;;  %v9624_v31 = vld [vmem:[#allocation3 + $0x20] sm:$0xff] }
 0xa05   :  { %12526 = vmatpush1.bf16.msra.mxu0 %v16682_v19  ;;  %v22246_v19 = vld [vmem:[#allocation66_spill] sm:$0xff]  ;;  %13049 = vmatprep.subr.bf16.mxu1 %v16756_v18  ;;  %v9622_v18 = vld [vmem:[#allocation3 + $0x10] sm:$0xe0] }
 0xa06   :  { %12527 = vmatprep.subr.bf16.mxu0 %v16687_v44  ;;  %v16712_v44 = vld [vmem:[%s21910_s11 + $0x870] ss:$8 sps:$4 sm:$0xff]  }
 0xa08   :  { %12479 = vmatmul.mubr.bf16.gmra.mrb[228].mxu0 %v9345_v20  ;;  %13050 = vmatpush1.bf16.msra.mxu1 %v16754_v57  ;;  %v16718_v20 = vld [vmem:[%s21910_s11 + $0x890] ss:$8 sps:$4 sm:$0xff]  }
 0xa09   :  { %12488 = vmatprep.mubr.bf16.mxu0 %v9351_v42  ;;  %12528 = vmatpush1.bf16.msra.mxu0 %v16685_v58  ;;  %v16720_v58 = vld [vmem:[%s21910_s11 + $0x894] ss:$8 sps:$4 sm:$0xff]   ;;  %v16723_v42 = vld [vmem:[%s21910_s11 + $0x8a4] ss:$8 sps:$4 sm:$0xff]  }
 0xa0a   :  { %12529 = vmatprep.subr.bf16.mxu0 %v16690_v36  ;;  %13051 = vmatprep.subr.bf16.mxu1 %v16759_v46  ;;  %v16762_v36 = vld [vmem:[#allocation21 + $0x74] ss:$8 sps:$4 sm:$0xff]   ;;  %v9626_v46 = vld [vmem:[#allocation3 + $0x30] sm:$0xff] }
 0xa0c   :  { %13052 = vmatpush1.bf16.msra.mxu1 %v16757_v17 }
 0xa0d   :  { %12530 = vmatpush1.bf16.msra.mxu0 %v16688_v12  ;;  %13053 = vmatprep.subr.bf16.mxu1 %v16762_v36  ;;  %v16765_v12 = vld [vmem:[#allocation21 + $0x84] ss:$8 sps:$4 sm:$0xff]  }
 0xa0e   :  { %12622 = vmatprep.subr.bf16.mxu0 %v16693_v14  ;;  %v22248_v14 = vld [vmem:[#allocation34_spill] sm:$0xff] }
 0xa10   :  { %12489 = vmatmul.mubr.bf16.gmra.mrb[232].mxu0 %v9349_v1  ;;  %13054 = vmatpush1.bf16.msra.mxu1 %v16760_v49  ;;  %v9578_v1 = vshrl.u32 %v9407_v45, 16 }
 0xa11   :  { %12531 = vmatprep.mubr.bf16.mxu0 %v9441_v29  ;;  %13055 = vmatprep.subr.bf16.mxu1 %v16765_v12  ;;  %v16771_v29 = vld [vmem:[#allocation21 + $0xa4] ss:$8 sps:$4 sm:$0xff]  }
 0xa12   :  { %v9580_v21 = vrot.slane %v9578_v1, 4 }
 0xa14   :  { %13056 = vmatpush1.bf16.msra.mxu1 %v16763_v40  ;;  %v9630_v40 = vld [vmem:[#allocation3 + $0x50] sm:$0xff] }
 0xa15   :  { %13057 = vmatprep.subr.bf16.mxu1 %v16768_v35  ;;  %v9676_v35 = vrot.slane %v9630_v40, 5  ;;  %v16789_v40 = vld [vmem:[%s21916_s17 + $0x48] sm:$0xff]  }
 0xa18   :  { %12532 = vmatmul.mubr.bf16.vlgmr.msra.gmra.mrb[200].mxu0 %v9424_v8  ;;  %13058 = vmatpush1.bf16.msra.mxu1 %v16766_v4  ;;  %v16774_v8 = vld [vmem:[#allocation21 + $0xb4] ss:$8 sps:$4 sm:$0xff]  }
 0xa19   :  { %12623 = vmatpush1.bf16.msra.mxu0 %v16691_v50  ;;  %12541 = vmatprep.mubr.bf16.mxu0 %v22240_v47  ;;  %v22249_v50 = vld [vmem:[#allocation35_spill] sm:$0xff]  ;;  %v9632_v4 = vld [vmem:[#allocation3 + $0x60] sm:$0xff] }
 0xa1a   :  { %12624 = vmatprep.subr.bf16.mxu0 %v16696_v7  ;;  %v9583_v7 = vrot.slane %v9581_v2, 5  ;;  %13059 = vmatprep.subr.bf16.mxu1 %v16771_v29  ;;  %v22250_v47 = vld [vmem:[#allocation39_spill] sm:$0xff]  ;;  %v9680_v1 = vrot.slane %v9632_v4, 5  ;;  %v22254_v29 = vld [vmem:[#allocation56_spill] sm:$0xff] }
 0xa1b   :  { %v16790_v4 = vld [vmem:[%s21916_s17 + $0x8] sm:$0xff]  }
 0xa1c   :  { %13060 = vmatpush1.bf16.msra.mxu1 %v16769_v24  ;;  %v9584_v53 = vor.u32 %v9583_v7, %v9580_v21  ;;  %v9681_v2 = vsel %vm3350_vm11, %v9676_v35, %v9680_v1  ;;  %v9634_v24 = vld [vmem:[#allocation3 + $0x70] sm:$0xff] }
 0xa1d   :  { %12625 = vmatpush1.bf16.msra.mxu0 %v16694_v25  ;;  %v16730_v25 = vld [vmem:[%s21910_s11 + $0x8d0] ss:$8 sps:$4 sm:$0xff]   ;;  %13061 = vmatprep.subr.bf16.mxu1 %v16774_v8  ;;  %v22256_v7 = vld [vmem:[#allocation47_spill] sm:$0xff] }
 0xa1e   :  { %12626 = vmatprep.subr.bf16.mxu0 %v16699_v63  ;;  %v16735_v63 = vld [vmem:[%s21910_s11 + $0x8e4] ss:$8 sps:$4 sm:$0xff]  }
 0xa20   :  { %12542 = vmatmul.mubr.bf16.gmra.mrb[204].mxu0 %v22241_v5  ;;  %v16772_v5 = vld [vmem:[#allocation21 + $0xb0] ss:$8 sps:$4 sm:$0xff]  }
 0xa21   :  { %12551 = vmatprep.mubr.bf16.mxu0 %v22242_v26  ;;  %12627 = vmatpush1.bf16.msra.mxu0 %v16697_v59  ;;  %v9569_v59 = vshrl.u32 %v9406_v15, 16  ;;  %v16733_v26 = vld [vmem:[%s21910_s11 + $0x8e0] ss:$8 sps:$4 sm:$0xff]  }
 0xa22   :  { %12628 = vmatprep.subr.bf16.mxu0 %v16702_v9  ;;  %v9572_v9 = vshll.u32 %v9406_v15, 16  ;;  %13062 = vmatpush1.bf16.msra.mxu1 %v16772_v5  ;;  %v22257_v15 = vld [vmem:[#allocation62_spill] sm:$0xff]  ;;  %v22261_v5 = vld [vmem:[#allocation63_spill] sm:$0xff] }
 0xa23   :  { %v9571_v61 = vrot.slane %v9569_v59, 4  ;;  %13063 = vmatprep.subr.bf16.mxu1 %v16777_v54  ;;  %v22258_v8 = vrot.slane %v22257_v15, 5 }
 0xa25   :  { %12629 = vmatpush1.bf16.msra.mxu0 %v16700_v41  ;;  %v16738_v41 = vld [vmem:[%s21910_s11 + $0x8f4] ss:$8 sps:$4 sm:$0xff]  }
 0xa26   :  { %12630 = vmatprep.subr.bf16.mxu0 %v16705_v43  ;;  %v9574_v43 = vrot.slane %v9572_v9, 5  ;;  %13064 = vmatpush1.bf16.msra.mxu1 %v16775_v23  ;;  %v22260_v9 = vld [vmem:[#allocation38_spill] sm:$0xff] }
 0xa27   :  { %13065 = vmatprep.subr.bf16.mxu1 %v16780_v39  ;;  %v16786_v39 = vld [vmem:[#allocation21 + $0xf4] ss:$8 sps:$4 sm:$0xff]  }
 0xa28   :  { %12552 = vmatmul.mubr.bf16.gmra.mrb[208].mxu0 %v22243_v37  ;;  %v16736_v37 = vld [vmem:[%s21910_s11 + $0x8f0] ss:$8 sps:$4 sm:$0xff]   ;;  %v9575_v48 = vor.u32 %v9574_v43, %v9571_v61 }
 0xa29   :  { %12561 = vmatprep.mubr.bf16.mxu0 %v22244_v60  ;;  %12631 = vmatpush1.bf16.msra.mxu0 %v16703_v30  ;;  %v22252_v30 = vld [vmem:[#allocation36_spill] sm:$0xff]  ;;  %v9623_v60 = vld [vmem:[#allocation3 + $0x18] sm:$0xe0] }
 0xa2a   :  { %12632 = vmatprep.subr.bf16.mxu0 %v16708_v52  ;;  %v9585_v52 = vsel %vm3114_vm9, %v22252_v30, %v9584_v53  ;;  %v9665_v28 = vrot.slane %v9623_v60, 5  ;;  %v22262_v53 = vrot.slane %v22261_v5, 5  ;;  %v22263_v61 = vld [vmem:[#allocation65_spill] sm:$0xff]  ;;  %v10186_v60 = vld [vmem:[#allocation16] sm:$0x3] }
 0xa2b   :  { %v22264_v43 = vrot.slane %v22263_v61, 5  ;;  %v16783_v30 = vld [vmem:[#allocation21 + $0xe4] ss:$8 sps:$4 sm:$0xff]  }
 0xa2d   :  { %12633 = vmatpush1.bf16.msra.mxu0 %v16706_v27  ;;  %v16778_v27 = vld [vmem:[#allocation21 + $0xd0] ss:$8 sps:$4 sm:$0xff]  }
 0xa2e   :  { %12634 = vmatprep.subr.bf16.mxu0 %v16711_v56  ;;  %v9666_v56 = vrot.slane %v21404_v33, 5  ;;  %13066 = vmatpush1.bf16.msra.mxu1 %v16778_v27  ;;  %v22265_v27 = vld [vmem:[#allocation49_spill] sm:$0xff] }
 0xa2f   :  { %13067 = vmatprep.subr.bf16.mxu1 %v16783_v30 }
 0xa30   :  { %12562 = vmatmul.mubr.bf16.gmra.mrb[212].mxu0 %v22245_v62  ;;  %v9627_v62 = vld [vmem:[#allocation3 + $0x38] sm:$0xff] }
 0xa31   :  { %12571 = vmatprep.mubr.bf16.mxu0 %v22246_v19  ;;  %12635 = vmatpush1.bf16.msra.mxu0 %v16709_v3  ;;  %v9576_v3 = vsel %vm3114_vm9, %v22253_v13, %v9575_v48  ;;  %v9663_v19 = vrot.slane %v9624_v31, 5  ;;  %v8145_v48 = vld [vmem:[#allocation19] sm:$0x3]  ;;  %v22266_v13 = vld [vmem:[#allocation50_spill] sm:$0xff] }
 0xa32   :  { %12636 = vmatprep.subr.bf16.mxu0 %v16714_v11  ;;  %v9667_v11 = vsel %vm3350_vm11, %v9665_v28, %v9666_v56  ;;  %v10191_v28 = vrot.slane %v10186_v60, %v22265_v27 }
 0xa35   :  { %12637 = vmatpush1.bf16.msra.mxu0 %v16712_v44  ;;  %v9670_v44 = vrot.slane %v9627_v62, 5 }
 0xa36   :  { %12638 = vmatprep.subr.bf16.mxu0 %v16717_v34  ;;  %v9662_v34 = vrot.slane %v9622_v18, 5 }
 0xa37   :  { %v9671_v33 = vsel %vm3350_vm11, %v9666_v56, %v9670_v44  ;;  %v8150_v56 = vrot.slane %v8145_v48, %v22265_v27 }
 0xa38   :  { %12572 = vmatmul.mubr.bf16.gmra.mrb[216].mxu0 %v22247_v38  ;;  %v9664_v57 = vsel %vm3350_vm11, %v9662_v34, %v9663_v19 }
 0xa39   :  { %12581 = vmatprep.mubr.bf16.mxu0 %v20781_v51  ;;  %12639 = vmatpush1.bf16.msra.mxu0 %v16715_v32  ;;  %v16726_v51 = vld [vmem:[%s21910_s11 + $0x8b4] ss:$8 sps:$4 sm:$0xff]   ;;  %v21680_v31 = vadd.f32 %v10191_v28, %v8150_v56 }
 0xa3a   :  { %12640 = vmatprep.subr.bf16.mxu0 %v16720_v58  ;;  %v9629_v32 = vld [vmem:[#allocation3 + $0x48] sm:$0xff]  ;;  %v9668_v58 = vrot.slane %v9626_v46, 5 }
 0xa3b   :  { %v9674_v17 = vrot.slane %v9629_v32, 5 }
 0xa3c   :  { %v9669_v38 = vsel %vm3350_vm11, %v9663_v19, %v9668_v58 }
 0xa3d   :  { %12641 = vmatpush1.bf16.msra.mxu0 %v16718_v20  ;;  %v9675_v36 = vsel %vm3350_vm11, %v9670_v44, %v9674_v17  ;;  %v9628_v20 = vld [vmem:[#allocation3 + $0x40] sm:$0xff] }
 0xa3e   :  { %12642 = vmatprep.subr.bf16.mxu0 %v16723_v42  ;;  %v9631_v42 = vld [vmem:[#allocation3 + $0x58] sm:$0xff]  ;;  %v9672_v49 = vrot.slane %v9628_v20, 5 }
 0xa3f   :  { %v9678_v12 = vrot.slane %v9631_v42, 5 }
 0xa40   :  { %12582 = vmatmul.mubr.bf16.gmra.mrb[220].mxu0 %v22248_v14  ;;  %v9633_v14 = vld [vmem:[#allocation3 + $0x68] sm:$0xff]  ;;  %v9677_v45 = vsel %vm3350_vm11, %v9672_v49, %v9676_v35 }
 0xa41   :  { %12591 = vmatprep.mubr.bf16.mxu0 %v20785_v0  ;;  %12643 = vmatpush1.bf16.msra.mxu0 %v16721_v16  ;;  %v16727_v0 = vld [vmem:[%s21910_s11 + $0x8c0] ss:$8 sps:$4 sm:$0xff]   ;;  %v9673_v16 = vsel %vm3350_vm11, %v9668_v58, %v9672_v49 }
 0xa42   :  { %12644 = vmatprep.subr.bf16.mxu0 %v16726_v51  ;;  %v9679_v51 = vsel %vm3350_vm11, %v9674_v17, %v9678_v12 }
 0xa45   :  { %12645 = vmatpush1.bf16.msra.mxu0 %v16724_v55  ;;  %v9682_v55 = vrot.slane %v9633_v14, 5 }
 0xa46   :  { %12646 = vmatprep.subr.bf16.mxu0 %v16729_v22 }
 0xa47   :  { %v9683_v22 = vsel %vm3350_vm11, %v9678_v12, %v9682_v55  ;;  %v16788_v12 = vld [vmem:[%s21916_s17] sm:$0xff]  }
 0xa48   :  { %12592 = vmatmul.mubr.bf16.gmra.mrb[224].mxu0 %v22249_v50  ;;  %v9684_v50 = vrot.slane %v9634_v24, 5 }
 0xa49   :  { %12601 = vmatprep.mubr.bf16.mxu0 %v22250_v47  ;;  %12647 = vmatpush1.bf16.msra.mxu0 %v16727_v0  ;;  %v22255_v0 = vrot.slane %v22254_v29, 5  ;;  %v16791_v29 = vld [vmem:[%s21916_s17 + $0x50] sm:$0xff]  }
 0xa4a   :  { %12648 = vmatprep.subr.bf16.mxu0 %v16732_v6  ;;  %v9685_v21 = vsel %vm3350_vm11, %v9680_v1, %v9684_v50  ;;  %v9689_v47 = vsel %vm3350_vm11, %v9684_v50, %v22258_v8 }
 0xa4b   :  { %v9687_v6 = vsel %vm3350_vm11, %v9682_v55, %v22255_v0 }
 0xa4d   :  { %12649 = vmatpush1.bf16.msra.mxu0 %v16730_v25  ;;  %v22259_v25 = vld [vmem:[#allocation37_spill] sm:$0xff] }
 0xa4e   :  { %12650 = vmatprep.subr.bf16.mxu0 %v16735_v63  ;;  %v9641_v63 = vld [vmem:[#allocation3 + $0xa8] sm:$0x1f] }
 0xa4f   :  { %v9698_v59 = vrot.slane %v9641_v63, 5 }
 0xa50   :  { %12602 = vmatmul.mubr.bf16.gmra.mrb[228].mxu0 %v22251_v10  ;;  %v16781_v10 = vld [vmem:[#allocation21 + $0xe0] ss:$8 sps:$4 sm:$0xff]  }
 0xa51   :  { %12611 = vmatprep.mubr.bf16.mxu0 %v9585_v52  ;;  %12651 = vmatpush1.bf16.msra.mxu0 %v16733_v26  ;;  %v9699_v54 = vsel %vm3350_vm11, %v22262_v53, %v9698_v59  ;;  %v9640_v26 = vld [vmem:[#allocation3 + $0xa0] sm:$0x1f]  ;;  %v16794_v53 = vld [vmem:[%s21916_s17 + $0x18] sm:$0xff]  }
 0xa52   :  { %12652 = vmatprep.subr.bf16.mxu0 %v16738_v41  ;;  %v9696_v41 = vrot.slane %v9640_v26, 5  ;;  %13068 = vmatpush1.bf16.msra.mxu1 %v16781_v10  ;;  %v16784_v52 = vld [vmem:[#allocation21 + $0xf0] ss:$8 sps:$4 sm:$0xff]  }
 0xa53   :  { %13069 = vmatprep.subr.bf16.mxu1 %v16786_v39 }
 0xa54   :  { %v9697_v23 = vsel %vm3350_vm11, %v22264_v43, %v9696_v41  ;;  %v16795_v41 = vld [vmem:[%s21916_s17 + $0x60] sm:$0xff]  }
 0xa55   :  { %12653 = vmatpush1.bf16.msra.mxu0 %v16736_v37  ;;  %v16787_v37 = vld [vmem:[%s21916_s17 + $0x40] sm:$0xff]  }
 0xa56   :  { %13070 = vmatpush1.bf16.msra.mxu1 %v16784_v52  ;;  %v16796_v52 = vld [vmem:[%s21916_s17 + $0x20] sm:$0xff]  }
 0xa57   :  { %14665 = vmatprep.subr.bf16.mxu1 %v16787_v37 }
 0xa58   :  { %12612 = vmatmul.mubr.bf16.gmra.mrb[232].mxu0 %v9576_v3  ;;  %v8154_v3 = vrot.slane %v8145_v48, %v22266_v13  ;;  %v16797_v48 = vld [vmem:[%s21916_s17 + $0x68] sm:$0xff]  }
 0xa59   :  { %12654 = vmatprep.mubr.bf16.mxu0 %v9667_v11  ;;  %v10195_v11 = vrot.slane %v10186_v60, %v22266_v13 }
 0xa5b   :  { %v21682_v62 = vadd.f32 %v10195_v11, %v8154_v3 }
 0xa60   :  { %12655 = vmatmul.mubr.bf16.vlgmr.msra.gmra.mrb[200].mxu0 %v9664_v57 }
 0xa61   :  { %12664 = vmatprep.mubr.bf16.mxu0 %v9671_v33 }
 0xa68   :  { %12665 = vmatmul.mubr.bf16.gmra.mrb[204].mxu0 %v9669_v38 }
 0xa69   :  { %12674 = vmatprep.mubr.bf16.mxu0 %v9675_v36 }
 0xa70   :  { %12675 = vmatmul.mubr.bf16.gmra.mrb[208].mxu0 %v9673_v16 }
 0xa71   :  { %12684 = vmatprep.mubr.bf16.mxu0 %v9679_v51 }
 0xa78   :  { %12685 = vmatmul.mubr.bf16.gmra.mrb[212].mxu0 %v9677_v45 }
 0xa79   :  { %12694 = vmatprep.mubr.bf16.mxu0 %v9683_v22 }
 0xa80   :  { %12695 = vmatmul.mubr.bf16.gmra.mrb[216].mxu0 %v9681_v2 }
 0xa81   :  { %12704 = vmatprep.mubr.bf16.mxu0 %v9687_v6 }
 0xa88   :  { %12705 = vmatmul.mubr.bf16.gmra.mrb[220].mxu0 %v9685_v21 }
 0xa89   :  { %12714 = vmatprep.mubr.bf16.mxu0 %v22256_v7  ;;  %v16792_v7 = vld [vmem:[%s21916_s17 + $0x10] sm:$0xff]  }
 0xa90   :  { %12715 = vmatmul.mubr.bf16.gmra.mrb[224].mxu0 %v9689_v47  ;;  %v16793_v47 = vld [vmem:[%s21916_s17 + $0x58] sm:$0xff]  }
 0xa91   :  { %12724 = vmatprep.mubr.bf16.mxu0 %v22259_v25 }
 0xa98   :  { %12725 = vmatmul.mubr.bf16.gmra.mrb[228].mxu0 %v22260_v9 }
 0xa99   :  { %12734 = vmatprep.mubr.bf16.mxu0 %v9699_v54 }
 0xaa0   :  { %12735 = vmatmul.mubr.bf16.gmra.mrb[232].mxu0 %v9697_v23 }
 0xb33   :  { %v12656_v18 = vpop.f32.mrb[200].mxu0 }
 0xb34   :  { %v15348_v19 = vadd.f32 %v21680_v31, %v12656_v18  ;;  %v12658_v44 = vpop.f32.mrb[201].mxu0  ;;  %v16798_v18 = vld [vmem:[%s21916_s17 + $0x28] sm:$0xff]  }
 0xb35   :  { %v15350_v34 = vadd.f32 %v21682_v62, %v12658_v44  ;;  %v12660_v57 = vpop.f32.mrb[202].mxu0 }
 0xb36   :  { %v15352_v33 = vadd.f32 %v21680_v31, %v12660_v57  ;;  %v12662_v46 = vpop.f32.mrb[203].mxu0  ;;  %v12781_v58 = vmax.f32 %v15348_v19, 0.0 }
 0xb37   :  { %v15354_v32 = vadd.f32 %v21682_v62, %v12662_v46  ;;  %v12782_v38 = vmax.f32 %v15350_v34, 0.0  ;;  %v16799_v34 = vld [vmem:[%s21916_s17 + $0x70] sm:$0xff]  }
 0xb38   :  { %v12783_v17 = vmax.f32 %v15352_v33, 0.0 }
 0xb39   :  { %v12784_v36 = vmax.f32 %v15354_v32, 0.0 }
 0xb3a   :  { %v12817_v20 = vpack.c.bf16 %v12783_v17, %v12781_v58  ;;  %v16800_v17 = vld [vmem:[%s21916_s17 + $0x30] sm:$0xff]  }
 0xb3b   :  { %v12818_v42 = vpack.c.bf16 %v12784_v36, %v12782_v38  ;;  %v12666_v49 = vpop.f32.mrb[204].mxu0 }
 0xb3c   :  { %v15356_v16 = vadd.f32 %v21680_v31, %v12666_v49  ;;  %v12668_v51 = vpop.f32.mrb[205].mxu0 }
 0xb3d   :  { %v15358_v14 = vadd.f32 %v21682_v62, %v12668_v51  ;;  %v12670_v35 = vpop.f32.mrb[206].mxu0  ;;  %13071 = vmatprep.mubr.bf16.mxu1 %v12818_v42 }
 0xb3e   :  { %v15360_v55 = vadd.f32 %v21680_v31, %v12670_v35  ;;  %v12672_v45 = vpop.f32.mrb[207].mxu0  ;;  %13072 = vmatmul.mubr.bf16.vlgmr.msra.gmra.mrb[120].mxu1 %v12817_v20  ;;  %v12785_v1 = vmax.f32 %v15356_v16, 0.0 }
 0xb3f   :  { %v15362_v22 = vadd.f32 %v21682_v62, %v12672_v45  ;;  %14666 = vmatpush3.bf16.msra.mxu1 %v16788_v12  ;;  %v12786_v0 = vmax.f32 %v15358_v14, 0.0 }
 0xb40   :  { %v12787_v2 = vmax.f32 %v15360_v55, 0.0  ;;  %14667 = vmatprep.subr.bf16.mxu1 %v16789_v40 }
 0xb41   :  { %v12788_v6 = vmax.f32 %v15362_v22, 0.0 }
 0xb42   :  { %v12819_v24 = vpack.c.bf16 %v12787_v2, %v12785_v1 }
 0xb43   :  { %v12820_v50 = vpack.c.bf16 %v12788_v6, %v12786_v0  ;;  %v12676_v21 = vpop.f32.mrb[208].mxu0  ;;  %14668 = vmatpush3.bf16.msra.mxu1 %v16790_v4 }
 0xb44   :  { %v15364_v15 = vadd.f32 %v21680_v31, %v12676_v21  ;;  %v12678_v8 = vpop.f32.mrb[209].mxu0  ;;  %14669 = vmatprep.subr.bf16.mxu1 %v16791_v29 }
 0xb45   :  { %v15366_v25 = vadd.f32 %v21682_v62, %v12678_v8  ;;  %v12680_v63 = vpop.f32.mrb[210].mxu0  ;;  %13081 = vmatprep.mubr.bf16.mxu1 %v12820_v50 }
 0xb46   :  { %v15368_v59 = vadd.f32 %v21680_v31, %v12680_v63  ;;  %v12682_v9 = vpop.f32.mrb[211].mxu0  ;;  %13082 = vmatmul.mubr.bf16.gmra.mrb[124].mxu1 %v12819_v24  ;;  %v12789_v54 = vmax.f32 %v15364_v15, 0.0 }
 0xb47   :  { %v15370_v5 = vadd.f32 %v21682_v62, %v12682_v9  ;;  %14670 = vmatpush3.bf16.msra.mxu1 %v16792_v7  ;;  %v12790_v61 = vmax.f32 %v15366_v25, 0.0 }
 0xb48   :  { %v12791_v26 = vmax.f32 %v15368_v59, 0.0  ;;  %14671 = vmatprep.subr.bf16.mxu1 %v16793_v47 }
 0xb49   :  { %v12792_v43 = vmax.f32 %v15370_v5, 0.0 }
 0xb4a   :  { %v12821_v23 = vpack.c.bf16 %v12791_v26, %v12789_v54 }
 0xb4b   :  { %v12822_v10 = vpack.c.bf16 %v12792_v43, %v12790_v61  ;;  %v12686_v30 = vpop.f32.mrb[212].mxu0  ;;  %14672 = vmatpush3.bf16.msra.mxu1 %v16794_v53 }
 0xb4c   :  { %v15372_v39 = vadd.f32 %v21680_v31, %v12686_v30  ;;  %v12688_v37 = vpop.f32.mrb[213].mxu0  ;;  %14673 = vmatprep.subr.bf16.mxu1 %v16795_v41 }
 0xb4d   :  { %v15374_v60 = vadd.f32 %v21682_v62, %v12688_v37  ;;  %v12690_v56 = vpop.f32.mrb[214].mxu0  ;;  %13091 = vmatprep.mubr.bf16.mxu1 %v12822_v10 }
 0xb4e   :  { %v15376_v28 = vadd.f32 %v21680_v31, %v12690_v56  ;;  %v12692_v3 = vpop.f32.mrb[215].mxu0  ;;  %13092 = vmatmul.mubr.bf16.gmra.mrb[128].mxu1 %v12821_v23  ;;  %v12793_v19 = vmax.f32 %v15372_v39, 0.0 }
 0xb4f   :  { %v15378_v11 = vadd.f32 %v21682_v62, %v12692_v3  ;;  %14674 = vmatpush3.bf16.msra.mxu1 %v16796_v52  ;;  %v12794_v57 = vmax.f32 %v15374_v60, 0.0 }
 0xb50   :  { %v12795_v44 = vmax.f32 %v15376_v28, 0.0  ;;  %14675 = vmatprep.subr.bf16.mxu1 %v16797_v48 }
 0xb51   :  { %v12796_v33 = vmax.f32 %v15378_v11, 0.0 }
 0xb52   :  { %v12823_v46 = vpack.c.bf16 %v12795_v44, %v12793_v19 }
 0xb53   :  { %v12824_v32 = vpack.c.bf16 %v12796_v33, %v12794_v57  ;;  %v12696_v58 = vpop.f32.mrb[216].mxu0  ;;  %14676 = vmatpush3.bf16.msra.mxu1 %v16798_v18 }
 0xb54   :  { %v15380_v38 = vadd.f32 %v21680_v31, %v12696_v58  ;;  %v12698_v36 = vpop.f32.mrb[217].mxu0  ;;  %14677 = vmatprep.subr.bf16.mxu1 %v16799_v34 }
 0xb55   :  { %v15382_v20 = vadd.f32 %v21682_v62, %v12698_v36  ;;  %v12700_v42 = vpop.f32.mrb[218].mxu0  ;;  %13101 = vmatprep.mubr.bf16.mxu1 %v12824_v32 }
 0xb56   :  { %v15384_v49 = vadd.f32 %v21680_v31, %v12700_v42  ;;  %v12702_v12 = vpop.f32.mrb[219].mxu0  ;;  %13102 = vmatmul.mubr.bf16.gmra.mrb[132].mxu1 %v12823_v46  ;;  %v12797_v51 = vmax.f32 %v15380_v38, 0.0 }
 0xb57   :  { %v15386_v16 = vadd.f32 %v21682_v62, %v12702_v12  ;;  %14678 = vmatpush3.bf16.msra.mxu1 %v16800_v17  ;;  %v12798_v14 = vmax.f32 %v15382_v20, 0.0 }
 0xb58   :  { %v12799_v40 = vmax.f32 %v15384_v49, 0.0 }
 0xb59   :  { %v12800_v35 = vmax.f32 %v15386_v16, 0.0 }
 0xb5a   :  { %v12825_v55 = vpack.c.bf16 %v12799_v40, %v12797_v51 }
 0xb5b   :  { %v12826_v45 = vpack.c.bf16 %v12800_v35, %v12798_v14  ;;  %v12706_v22 = vpop.f32.mrb[220].mxu0  ;;  %v16801_v14 = vld [vmem:[%s21916_s17 + $0x78] sm:$0xff]   ;;  %v12867_v35 = vld [vmem:[#allocation22] sm:$0x3] }
 0xb5c   :  { %v15388_v4 = vadd.f32 %v21680_v31, %v12706_v22  ;;  %v12708_v1 = vpop.f32.mrb[221].mxu0  ;;  %14679 = vmatprep.subr.bf16.mxu1 %v16801_v14 }
 0xb5d   :  { %v15390_v2 = vadd.f32 %v21682_v62, %v12708_v1  ;;  %v12710_v29 = vpop.f32.mrb[222].mxu0  ;;  %13111 = vmatprep.mubr.bf16.mxu1 %v12826_v45 }
 0xb5e   :  { %v15392_v0 = vadd.f32 %v21680_v31, %v12710_v29  ;;  %v12712_v6 = vpop.f32.mrb[223].mxu0  ;;  %13112 = vmatmul.mubr.bf16.gmra.mrb[136].mxu1 %v12825_v55  ;;  %v12801_v50 = vmax.f32 %v15388_v4, 0.0  ;;  %v21769_v55 = vrot.slane %v12867_v35, %v22266_v13 }
 0xb5f   :  { %v15394_v24 = vadd.f32 %v21682_v62, %v12712_v6  ;;  %v12802_v7 = vmax.f32 %v15390_v2, 0.0 }
 0xb60   :  { %v12803_v21 = vmax.f32 %v15392_v0, 0.0 }
 0xb61   :  { %v12804_v15 = vmax.f32 %v15394_v24, 0.0 }
 0xb62   :  { %v12827_v8 = vpack.c.bf16 %v12803_v21, %v12801_v50 }
 0xb63   :  { %v12828_v47 = vpack.c.bf16 %v12804_v15, %v12802_v7  ;;  %v12716_v25 = vpop.f32.mrb[224].mxu0 }
 0xb64   :  { %v15396_v63 = vadd.f32 %v21680_v31, %v12716_v25  ;;  %v12718_v59 = vpop.f32.mrb[225].mxu0 }
 0xb65   :  { %v15398_v9 = vadd.f32 %v21682_v62, %v12718_v59  ;;  %v12720_v5 = vpop.f32.mrb[226].mxu0  ;;  %13121 = vmatprep.mubr.bf16.mxu1 %v12828_v47 }
 0xb66   :  { %v15400_v53 = vadd.f32 %v21680_v31, %v12720_v5  ;;  %v12722_v54 = vpop.f32.mrb[227].mxu0  ;;  %13122 = vmatmul.mubr.bf16.gmra.mrb[140].mxu1 %v12827_v8  ;;  %v12805_v41 = vmax.f32 %v15396_v63, 0.0 }
 0xb67   :  { %v15402_v26 = vadd.f32 %v21682_v62, %v12722_v54  ;;  %v12806_v43 = vmax.f32 %v15398_v9, 0.0 }
 0xb68   :  { %v12807_v61 = vmax.f32 %v15400_v53, 0.0 }
 0xb69   :  { %v12808_v23 = vmax.f32 %v15402_v26, 0.0 }
 0xb6a   :  { %v12829_v10 = vpack.c.bf16 %v12807_v61, %v12805_v41 }
 0xb6b   :  { %v12830_v30 = vpack.c.bf16 %v12808_v23, %v12806_v43  ;;  %v12726_v52 = vpop.f32.mrb[228].mxu0 }
 0xb6c   :  { %v15404_v39 = vadd.f32 %v21680_v31, %v12726_v52  ;;  %v12728_v37 = vpop.f32.mrb[229].mxu0 }
 0xb6d   :  { %v15406_v48 = vadd.f32 %v21682_v62, %v12728_v37  ;;  %v12730_v60 = vpop.f32.mrb[230].mxu0  ;;  %13131 = vmatprep.mubr.bf16.mxu1 %v12830_v30 }
 0xb6e   :  { %v15408_v56 = vadd.f32 %v21680_v31, %v12730_v60  ;;  %v12732_v28 = vpop.f32.mrb[231].mxu0  ;;  %13132 = vmatmul.mubr.bf16.gmra.mrb[144].mxu1 %v12829_v10  ;;  %v12809_v11 = vmax.f32 %v15404_v39, 0.0 }
 0xb6f   :  { %v15410_v3 = vadd.f32 %v21682_v62, %v12732_v28  ;;  %v12810_v19 = vmax.f32 %v15406_v48, 0.0 }
 0xb70   :  { %v12811_v18 = vmax.f32 %v15408_v56, 0.0 }
 0xb71   :  { %v12812_v44 = vmax.f32 %v15410_v3, 0.0 }
 0xb72   :  { %v12831_v34 = vpack.c.bf16 %v12811_v18, %v12809_v11 }
 0xb73   :  { %v12832_v57 = vpack.c.bf16 %v12812_v44, %v12810_v19  ;;  %v12736_v33 = vpop.f32.mrb[232].mxu0 }
 0xb74   :  { %v15412_v46 = vadd.f32 %v21680_v31, %v12736_v33  ;;  %v12738_v32 = vpop.f32.mrb[233].mxu0 }
 0xb75   :  { %v15414_v58 = vadd.f32 %v21682_v62, %v12738_v32  ;;  %v12740_v17 = vpop.f32.mrb[234].mxu0  ;;  %13141 = vmatprep.mubr.bf16.mxu1 %v12832_v57 }
 0xb76   :  { %v15416_v38 = vadd.f32 %v21680_v31, %v12740_v17  ;;  %v12742_v36 = vpop.f32.mrb[235].mxu0  ;;  %13142 = vmatmul.mubr.bf16.gmra.mrb[148].mxu1 %v12831_v34  ;;  %v12813_v42 = vmax.f32 %v15412_v46, 0.0  ;;  %v16802_v31 = vld [vmem:[%s21916_s17 + $0x38] sm:$0xff]  }
 0xb77   :  { %v15418_v20 = vadd.f32 %v21682_v62, %v12742_v36  ;;  %v12814_v12 = vmax.f32 %v15414_v58, 0.0  ;;  %14680 = vmatpush3.bf16.msra.mxu1 %v16802_v31  ;;  %v21766_v62 = vrot.slane %v12867_v35, %v22265_v27 }
 0xb78   :  { %v12815_v49 = vmax.f32 %v15416_v38, 0.0 }
 0xb79   :  { %v12816_v16 = vmax.f32 %v15418_v20, 0.0 }
 0xb7a   :  { %v12833_v51 = vpack.c.bf16 %v12815_v49, %v12813_v42 }
 0xb7b   :  { %v12834_v40 = vpack.c.bf16 %v12816_v16, %v12814_v12 }
 0xb7d   :  { %13151 = vmatprep.mubr.bf16.mxu1 %v12834_v40 }
 0xb7e   :  { %13152 = vmatmul.mubr.bf16.gmra.mrb[152].mxu1 %v12833_v51 }
 0xc11   :  { %v13073_v45 = vpop.f32.mrb[120].mxu1 }
 0xc12   :  { %v13074_v22 = vadd.f32 %v13073_v45, %v21766_v62  ;;  %v13075_v4 = vpop.f32.mrb[121].mxu1 }
 0xc13   :  { %v13076_v1 = vadd.f32 %v13075_v4, %v21769_v55  ;;  %v13077_v2 = vpop.f32.mrb[122].mxu1 }
 0xc14   :  { %v13078_v29 = vadd.f32 %v13077_v2, %v21766_v62  ;;  %v13079_v0 = vpop.f32.mrb[123].mxu1  ;;  %v13162_v24 = vmax.f32 %v13074_v22, 0.0 }
 0xc15   :  { %v13080_v6 = vadd.f32 %v13079_v0, %v21769_v55  ;;  %v13163_v21 = vmax.f32 %v13076_v1, 0.0 }
 0xc16   :  { %v13164_v50 = vmax.f32 %v13078_v29, 0.0 }
 0xc17   :  { %v13165_v27 = vmax.f32 %v13080_v6, 0.0 }
 0xc18   :  { %v13198_v7 = vpack.c.bf16 %v13164_v50, %v13162_v24 }
 0xc19   :  { %v13199_v15 = vpack.c.bf16 %v13165_v27, %v13163_v21  ;;  %v13083_v13 = vpop.f32.mrb[124].mxu1 }
 0xc1a   :  { %v13084_v8 = vadd.f32 %v13083_v13, %v21766_v62  ;;  %v13085_v47 = vpop.f32.mrb[125].mxu1 }
 0xc1b   :  { %v13086_v25 = vadd.f32 %v13085_v47, %v21769_v55  ;;  %v13087_v63 = vpop.f32.mrb[126].mxu1  ;;  %13383 = vmatprep.mubr.bf16.mxu1 %v13199_v15 }
 0xc1c   :  { %v13088_v59 = vadd.f32 %v13087_v63, %v21766_v62  ;;  %v13089_v9 = vpop.f32.mrb[127].mxu1  ;;  %13384 = vmatmul.mubr.bf16.vlgmr.msra.gmra.mrb[156].mxu1 %v13198_v7  ;;  %v13166_v53 = vmax.f32 %v13084_v8, 0.0 }
 0xc1d   :  { %v13090_v5 = vadd.f32 %v13089_v9, %v21769_v55  ;;  %v13167_v26 = vmax.f32 %v13086_v25, 0.0 }
 0xc1e   :  { %v13168_v54 = vmax.f32 %v13088_v59, 0.0 }
 0xc1f   :  { %v13169_v41 = vmax.f32 %v13090_v5, 0.0 }
 0xc20   :  { %v13200_v61 = vpack.c.bf16 %v13168_v54, %v13166_v53 }
 0xc21   :  { %v13201_v43 = vpack.c.bf16 %v13169_v41, %v13167_v26  ;;  %v13093_v23 = vpop.f32.mrb[128].mxu1 }
 0xc22   :  { %v13094_v10 = vadd.f32 %v13093_v23, %v21766_v62  ;;  %v13095_v30 = vpop.f32.mrb[129].mxu1 }
 0xc23   :  { %v13096_v52 = vadd.f32 %v13095_v30, %v21769_v55  ;;  %v13097_v39 = vpop.f32.mrb[130].mxu1  ;;  %13391 = vmatprep.mubr.bf16.mxu1 %v13201_v43 }
 0xc24   :  { %v13098_v37 = vadd.f32 %v13097_v39, %v21766_v62  ;;  %v13099_v48 = vpop.f32.mrb[131].mxu1  ;;  %13392 = vmatmul.mubr.bf16.gmra.mrb[160].mxu1 %v13200_v61  ;;  %v13170_v56 = vmax.f32 %v13094_v10, 0.0 }
 0xc25   :  { %v13100_v60 = vadd.f32 %v13099_v48, %v21769_v55  ;;  %v13171_v3 = vmax.f32 %v13096_v52, 0.0 }
 0xc26   :  { %v13172_v28 = vmax.f32 %v13098_v37, 0.0 }
 0xc27   :  { %v13173_v11 = vmax.f32 %v13100_v60, 0.0 }
 0xc28   :  { %v13202_v18 = vpack.c.bf16 %v13172_v28, %v13170_v56 }
 0xc29   :  { %v13203_v19 = vpack.c.bf16 %v13173_v11, %v13171_v3  ;;  %v13103_v44 = vpop.f32.mrb[132].mxu1 }
 0xc2a   :  { %v13104_v34 = vadd.f32 %v13103_v44, %v21766_v62  ;;  %v13105_v57 = vpop.f32.mrb[133].mxu1 }
 0xc2b   :  { %v13106_v33 = vadd.f32 %v13105_v57, %v21769_v55  ;;  %v13107_v46 = vpop.f32.mrb[134].mxu1  ;;  %13399 = vmatprep.mubr.bf16.mxu1 %v13203_v19 }
 0xc2c   :  { %v13108_v32 = vadd.f32 %v13107_v46, %v21766_v62  ;;  %v13109_v58 = vpop.f32.mrb[135].mxu1  ;;  %13400 = vmatmul.mubr.bf16.gmra.mrb[164].mxu1 %v13202_v18  ;;  %v13174_v38 = vmax.f32 %v13104_v34, 0.0 }
 0xc2d   :  { %v13110_v17 = vadd.f32 %v13109_v58, %v21769_v55  ;;  %v13175_v20 = vmax.f32 %v13106_v33, 0.0 }
 0xc2e   :  { %v13176_v36 = vmax.f32 %v13108_v32, 0.0 }
 0xc2f   :  { %v13177_v42 = vmax.f32 %v13110_v17, 0.0 }
 0xc30   :  { %v13204_v49 = vpack.c.bf16 %v13176_v36, %v13174_v38 }
 0xc31   :  { %v13205_v12 = vpack.c.bf16 %v13177_v42, %v13175_v20  ;;  %v13113_v16 = vpop.f32.mrb[136].mxu1 }
 0xc32   :  { %v13114_v51 = vadd.f32 %v13113_v16, %v21766_v62  ;;  %v13115_v40 = vpop.f32.mrb[137].mxu1 }
 0xc33   :  { %v13116_v14 = vadd.f32 %v13115_v40, %v21769_v55  ;;  %v13117_v31 = vpop.f32.mrb[138].mxu1  ;;  %13407 = vmatprep.mubr.bf16.mxu1 %v13205_v12 }
 0xc34   :  { %v13118_v35 = vadd.f32 %v13117_v31, %v21766_v62  ;;  %v13119_v45 = vpop.f32.mrb[139].mxu1  ;;  %13408 = vmatmul.mubr.bf16.gmra.mrb[168].mxu1 %v13204_v49  ;;  %v13178_v4 = vmax.f32 %v13114_v51, 0.0 }
 0xc35   :  { %v13120_v22 = vadd.f32 %v13119_v45, %v21769_v55  ;;  %v13179_v2 = vmax.f32 %v13116_v14, 0.0 }
 0xc36   :  { %v13180_v1 = vmax.f32 %v13118_v35, 0.0 }
 0xc37   :  { %v13181_v29 = vmax.f32 %v13120_v22, 0.0 }
 0xc38   :  { %v13206_v0 = vpack.c.bf16 %v13180_v1, %v13178_v4  ;;  %v21807_v1 = vld [vmem:[#allocation24] ss:$0 sm:$0xff] }
 0xc39   :  { %v13207_v6 = vpack.c.bf16 %v13181_v29, %v13179_v2  ;;  %v13123_v24 = vpop.f32.mrb[140].mxu1 }
 0xc3a   :  { %v13124_v50 = vadd.f32 %v13123_v24, %v21766_v62  ;;  %v13125_v21 = vpop.f32.mrb[141].mxu1 }
 0xc3b   :  { %v13126_v27 = vadd.f32 %v13125_v21, %v21769_v55  ;;  %v13127_v7 = vpop.f32.mrb[142].mxu1  ;;  %13415 = vmatprep.mubr.bf16.mxu1 %v13207_v6 }
 0xc3c   :  { %v13128_v15 = vadd.f32 %v13127_v7, %v21766_v62  ;;  %v13129_v13 = vpop.f32.mrb[143].mxu1  ;;  %13416 = vmatmul.mubr.bf16.gmra.mrb[172].mxu1 %v13206_v0  ;;  %v13182_v47 = vmax.f32 %v13124_v50, 0.0 }
 0xc3d   :  { %v13130_v8 = vadd.f32 %v13129_v13, %v21769_v55  ;;  %v13183_v63 = vmax.f32 %v13126_v27, 0.0 }
 0xc3e   :  { %v13184_v25 = vmax.f32 %v13128_v15, 0.0 }
 0xc3f   :  { %v13185_v59 = vmax.f32 %v13130_v8, 0.0 }
 0xc40   :  { %v13208_v9 = vpack.c.bf16 %v13184_v25, %v13182_v47 }
 0xc41   :  { %v13209_v5 = vpack.c.bf16 %v13185_v59, %v13183_v63  ;;  %v13133_v53 = vpop.f32.mrb[144].mxu1 }
 0xc42   :  { %v13134_v54 = vadd.f32 %v13133_v53, %v21766_v62  ;;  %v13135_v26 = vpop.f32.mrb[145].mxu1 }
 0xc43   :  { %v13136_v41 = vadd.f32 %v13135_v26, %v21769_v55  ;;  %v13137_v61 = vpop.f32.mrb[146].mxu1  ;;  %13423 = vmatprep.mubr.bf16.mxu1 %v13209_v5 }
 0xc44   :  { %v13138_v43 = vadd.f32 %v13137_v61, %v21766_v62  ;;  %v13139_v23 = vpop.f32.mrb[147].mxu1  ;;  %13424 = vmatmul.mubr.bf16.gmra.mrb[176].mxu1 %v13208_v9  ;;  %v13186_v30 = vmax.f32 %v13134_v54, 0.0 }
 0xc45   :  { %v13140_v10 = vadd.f32 %v13139_v23, %v21769_v55  ;;  %v13187_v39 = vmax.f32 %v13136_v41, 0.0 }
 0xc46   :  { %v13188_v52 = vmax.f32 %v13138_v43, 0.0 }
 0xc47   :  { %v13189_v37 = vmax.f32 %v13140_v10, 0.0 }
 0xc48   :  { %v13210_v48 = vpack.c.bf16 %v13188_v52, %v13186_v30 }
 0xc49   :  { %v13211_v60 = vpack.c.bf16 %v13189_v37, %v13187_v39  ;;  %v13143_v56 = vpop.f32.mrb[148].mxu1 }
 0xc4a   :  { %v13144_v28 = vadd.f32 %v13143_v56, %v21766_v62  ;;  %v13145_v3 = vpop.f32.mrb[149].mxu1 }
 0xc4b   :  { %v13146_v11 = vadd.f32 %v13145_v3, %v21769_v55  ;;  %v13147_v18 = vpop.f32.mrb[150].mxu1  ;;  %13431 = vmatprep.mubr.bf16.mxu1 %v13211_v60 }
 0xc4c   :  { %v13148_v19 = vadd.f32 %v13147_v18, %v21766_v62  ;;  %v13149_v44 = vpop.f32.mrb[151].mxu1  ;;  %13432 = vmatmul.mubr.bf16.gmra.mrb[180].mxu1 %v13210_v48  ;;  %v13190_v57 = vmax.f32 %v13144_v28, 0.0 }
 0xc4d   :  { %v13150_v34 = vadd.f32 %v13149_v44, %v21769_v55  ;;  %v13191_v46 = vmax.f32 %v13146_v11, 0.0 }
 0xc4e   :  { %v13192_v33 = vmax.f32 %v13148_v19, 0.0 }
 0xc4f   :  { %v13193_v32 = vmax.f32 %v13150_v34, 0.0 }
 0xc50   :  { %v13212_v58 = vpack.c.bf16 %v13192_v33, %v13190_v57 }
 0xc51   :  { %v13213_v17 = vpack.c.bf16 %v13193_v32, %v13191_v46  ;;  %v13153_v38 = vpop.f32.mrb[152].mxu1 }
 0xc52   :  { %v13154_v36 = vadd.f32 %v13153_v38, %v21766_v62  ;;  %v13155_v20 = vpop.f32.mrb[153].mxu1 }
 0xc53   :  { %v13156_v42 = vadd.f32 %v13155_v20, %v21769_v55  ;;  %v13157_v49 = vpop.f32.mrb[154].mxu1  ;;  %13439 = vmatprep.mubr.bf16.mxu1 %v13213_v17 }
 0xc54   :  { %v13158_v12 = vadd.f32 %v13157_v49, %v21766_v62  ;;  %v13159_v16 = vpop.f32.mrb[155].mxu1  ;;  %13440 = vmatmul.mubr.bf16.gmra.mrb[184].mxu1 %v13212_v58  ;;  %v13194_v40 = vmax.f32 %v13154_v36, 0.0 }
 0xc55   :  { %v13160_v51 = vadd.f32 %v13159_v16, %v21769_v55  ;;  %v13195_v31 = vmax.f32 %v13156_v42, 0.0 }
 0xc56   :  { %v13196_v14 = vmax.f32 %v13158_v12, 0.0 }
 0xc57   :  { %v13197_v35 = vmax.f32 %v13160_v51, 0.0 }
 0xc58   :  { %v13214_v45 = vpack.c.bf16 %v13196_v14, %v13194_v40 }
 0xc59   :  { %v13215_v22 = vpack.c.bf16 %v13197_v35, %v13195_v31 }
 0xc5b   :  { %13447 = vmatprep.mubr.bf16.mxu1 %v13215_v22 }
 0xc5c   :  { %13448 = vmatmul.mubr.bf16.gmra.mrb[188].mxu1 %v13214_v45 }
 0xcef   :  { %v14681_v4 = vpop.f32.mrb[156].mxu1 }
 0xcf0   :  { %v14682_v2 = vpop.f32.mrb[157].mxu1 }
 0xcf1   :  { %v14683_v29 = vadd.f32 %v14682_v2, %v14681_v4  ;;  %v14684_v0 = vpop.f32.mrb[158].mxu1 }
 0xcf2   :  { %v14685_v62 = vpop.f32.mrb[159].mxu1 }
 0xcf3   :  { %v13386_v6 = vadd.f32 %v14683_v29, %v21807_v1  ;;  %v14686_v24 = vadd.f32 %v14685_v62, %v14684_v0 }
 0xcf5   :  { %13457 = vst.msk [vmem:[%s21918_s19] sm:$0xff] %vm13456_vm0, %v13386_v6  ;;  %v13389_v55 = vadd.f32 %v14686_v24, %v21807_v1 }
 0xcf7   :  { %13458 = vst.msk [vmem:[%s21918_s19 + $0x8] sm:$0xff] %vm13456_vm0, %v13389_v55  ;;  %v14687_v50 = vpop.f32.mrb[160].mxu1 }
 0xcf8   :  { %v14688_v21 = vpop.f32.mrb[161].mxu1 }
 0xcf9   :  { %v14689_v27 = vadd.f32 %v14688_v21, %v14687_v50  ;;  %v14690_v7 = vpop.f32.mrb[162].mxu1 }
 0xcfa   :  { %v14691_v15 = vpop.f32.mrb[163].mxu1 }
 0xcfb   :  { %v13394_v13 = vadd.f32 %v14689_v27, %v21807_v1  ;;  %v14692_v8 = vadd.f32 %v14691_v15, %v14690_v7 }
 0xcfd   :  { %13459 = vst.msk [vmem:[%s21918_s19 + $0x10] sm:$0xff] %vm13456_vm0, %v13394_v13  ;;  %v13397_v47 = vadd.f32 %v14692_v8, %v21807_v1 }
 0xcff   :  { %13460 = vst.msk [vmem:[%s21918_s19 + $0x18] sm:$0xff] %vm13456_vm0, %v13397_v47  ;;  %v14693_v25 = vpop.f32.mrb[164].mxu1 }
 0xd00   :  { %v14694_v63 = vpop.f32.mrb[165].mxu1 }
 0xd01   :  { %v14695_v59 = vadd.f32 %v14694_v63, %v14693_v25  ;;  %v14696_v9 = vpop.f32.mrb[166].mxu1 }
 0xd02   :  { %v14697_v5 = vpop.f32.mrb[167].mxu1 }
 0xd03   :  { %v13402_v53 = vadd.f32 %v14695_v59, %v21807_v1  ;;  %v14698_v54 = vadd.f32 %v14697_v5, %v14696_v9 }
 0xd05   :  { %13461 = vst.msk [vmem:[%s21918_s19 + $0x20] sm:$0xff] %vm13456_vm0, %v13402_v53  ;;  %v13405_v26 = vadd.f32 %v14698_v54, %v21807_v1 }
 0xd07   :  { %13462 = vst.msk [vmem:[%s21918_s19 + $0x28] sm:$0xff] %vm13456_vm0, %v13405_v26  ;;  %v14699_v41 = vpop.f32.mrb[168].mxu1 }
 0xd08   :  { %v14700_v61 = vpop.f32.mrb[169].mxu1 }
 0xd09   :  { %v14701_v43 = vadd.f32 %v14700_v61, %v14699_v41  ;;  %v14702_v23 = vpop.f32.mrb[170].mxu1 }
 0xd0a   :  { %v14703_v10 = vpop.f32.mrb[171].mxu1 }
 0xd0b   :  { %v13410_v30 = vadd.f32 %v14701_v43, %v21807_v1  ;;  %v14704_v52 = vadd.f32 %v14703_v10, %v14702_v23 }
 0xd0d   :  { %13463 = vst.msk [vmem:[%s21918_s19 + $0x30] sm:$0xff] %vm13456_vm0, %v13410_v30  ;;  %v13413_v39 = vadd.f32 %v14704_v52, %v21807_v1 }
 0xd0f   :  { %13464 = vst.msk [vmem:[%s21918_s19 + $0x38] sm:$0xff] %vm13456_vm0, %v13413_v39  ;;  %v14705_v37 = vpop.f32.mrb[172].mxu1 }
 0xd10   :  { %v14706_v48 = vpop.f32.mrb[173].mxu1 }
 0xd11   :  { %v14707_v60 = vadd.f32 %v14706_v48, %v14705_v37  ;;  %v14708_v56 = vpop.f32.mrb[174].mxu1 }
 0xd12   :  { %v14709_v28 = vpop.f32.mrb[175].mxu1 }
 0xd13   :  { %v13418_v3 = vadd.f32 %v14707_v60, %v21807_v1  ;;  %v14710_v11 = vadd.f32 %v14709_v28, %v14708_v56 }
 0xd15   :  { %13465 = vst.msk [vmem:[%s21918_s19 + $0x40] sm:$0xff] %vm13456_vm0, %v13418_v3  ;;  %v13421_v18 = vadd.f32 %v14710_v11, %v21807_v1 }
 0xd17   :  { %13466 = vst.msk [vmem:[%s21918_s19 + $0x48] sm:$0xff] %vm13456_vm0, %v13421_v18  ;;  %v14711_v19 = vpop.f32.mrb[176].mxu1 }
 0xd18   :  { %v14712_v44 = vpop.f32.mrb[177].mxu1 }
 0xd19   :  { %v14713_v34 = vadd.f32 %v14712_v44, %v14711_v19  ;;  %v14714_v57 = vpop.f32.mrb[178].mxu1 }
 0xd1a   :  { %v14715_v33 = vpop.f32.mrb[179].mxu1 }
 0xd1b   :  { %v13426_v46 = vadd.f32 %v14713_v34, %v21807_v1  ;;  %v14716_v32 = vadd.f32 %v14715_v33, %v14714_v57 }
 0xd1d   :  { %13467 = vst.msk [vmem:[%s21918_s19 + $0x50] sm:$0xff] %vm13456_vm0, %v13426_v46  ;;  %v13429_v58 = vadd.f32 %v14716_v32, %v21807_v1 }
 0xd1f   :  { %13468 = vst.msk [vmem:[%s21918_s19 + $0x58] sm:$0xff] %vm13456_vm0, %v13429_v58  ;;  %v14717_v17 = vpop.f32.mrb[180].mxu1 }
 0xd20   :  { %v14718_v38 = vpop.f32.mrb[181].mxu1 }
 0xd21   :  { %v14719_v36 = vadd.f32 %v14718_v38, %v14717_v17  ;;  %v14720_v20 = vpop.f32.mrb[182].mxu1 }
 0xd22   :  { %v14721_v42 = vpop.f32.mrb[183].mxu1 }
 0xd23   :  { %v13434_v49 = vadd.f32 %v14719_v36, %v21807_v1  ;;  %v14722_v12 = vadd.f32 %v14721_v42, %v14720_v20 }
 0xd25   :  { %13469 = vst.msk [vmem:[%s21918_s19 + $0x60] sm:$0xff] %vm13456_vm0, %v13434_v49  ;;  %v13437_v16 = vadd.f32 %v14722_v12, %v21807_v1 }
 0xd27   :  { %13470 = vst.msk [vmem:[%s21918_s19 + $0x68] sm:$0xff] %vm13456_vm0, %v13437_v16  ;;  %v14723_v51 = vpop.f32.mrb[184].mxu1 }
 0xd28   :  { %v14724_v40 = vpop.f32.mrb[185].mxu1 }
 0xd29   :  { %v14725_v14 = vadd.f32 %v14724_v40, %v14723_v51  ;;  %v14726_v31 = vpop.f32.mrb[186].mxu1 }
 0xd2a   :  { %v14727_v35 = vpop.f32.mrb[187].mxu1 }
 0xd2b   :  { %v13442_v45 = vadd.f32 %v14725_v14, %v21807_v1  ;;  %v14728_v22 = vadd.f32 %v14727_v35, %v14726_v31 }
 0xd2d   :  { %13471 = vst.msk [vmem:[%s21918_s19 + $0x70] sm:$0xff] %vm13456_vm0, %v13442_v45  ;;  %v13445_v4 = vadd.f32 %v14728_v22, %v21807_v1 }
 0xd2f   :  { %13472 = vst.msk [vmem:[%s21918_s19 + $0x78] sm:$0xff] %vm13456_vm0, %v13445_v4  ;;  %v14729_v2 = vpop.f32.mrb[188].mxu1 }
 0xd30   :  { %v14730_v29 = vpop.f32.mrb[189].mxu1 }
 0xd31   :  { %v14731_v0 = vadd.f32 %v14730_v29, %v14729_v2  ;;  %v14732_v62 = vpop.f32.mrb[190].mxu1 }
 0xd32   :  { %v14733_v6 = vpop.f32.mrb[191].mxu1 }
 0xd33   :  { %v13450_v24 = vadd.f32 %v14731_v0, %v21807_v1  ;;  %v14734_v55 = vadd.f32 %v14733_v6, %v14732_v62 }
 0xd35   :  { %13473 = vst.msk [vmem:[%s21918_s19 + $0x80] sm:$0xff] %vm13456_vm0, %v13450_v24  ;;  %v13453_v50 = vadd.f32 %v14734_v55, %v21807_v1 }
 0xd37   :  { %13474 = vst.msk [vmem:[%s21918_s19 + $0x88] sm:$0xff] %vm13456_vm0, %v13453_v50 }
 0xd38   :  { %13479 = vsyncpa [#allocation6], 1 }
 0xd39   :  { %13480 = vsyncpa [#allocation8], 1 }
 0xd3a   :  { %13481 = vsyncpa [#allocation11], 1 }
 0xd3b   :  { %13482 = vsyncpa [#allocation14], 1 }
 0xd3c   :  { %13483 = vsyncpa [#allocation17], 1 }
 0xd3d   :  { %13484 = vsyncpa [#allocation20], 1 }
 0xd3e   :  { %13485 = vsyncpa [#allocation23], 1 }

</bundles_post_ra>
